<compile_context>
chip_gen: v5e
topology: v5e:2x2
jax: 0.10.0
libtpu: 0.0.40
codegen_flags: <defaults>
</compile_context>

<pallas_src>
import jax
import jax.numpy as jnp
from jax.experimental import pallas as pl
from jax.experimental.pallas import tpu as pltpu

KSIZE = 5          # all convs are 5x5, padding 2, stride 1
PAD = 2
NCH = 14           # packed input channels: 4 + 4 + 4 + 1 + 1
NBR = 5            # number of branch outputs (concat channel dim)
ENC = 8            # encoder width


# ------------------------------ kernel helpers ------------------------------ #

def _conv_im2col(xpad, w, b, h, wd):
    """5x5 'same' conv + ReLU as a single im2col MXU matmul.

    xpad: (Bt, h+4, wd+4, cin) zero-padded, channels-last
    w:    (25*cin, cout)   rows ordered (kh, kw, cin)
    b:    (1, cout)
    returns (Bt*h*wd, cout), rows in (b, y, x) order.
    """
    bt, _, _, cin = xpad.shape
    cols = [xpad[:, kh:kh + h, kw:kw + wd, :]
            for kh in range(KSIZE) for kw in range(KSIZE)]
    patch = jnp.concatenate(cols, axis=-1)                  # (Bt, h, wd, 25*cin)
    patch = patch.reshape(bt * h * wd, KSIZE * KSIZE * cin)
    out = jnp.dot(patch, w, preferred_element_type=jnp.float32) + b
    return jnp.maximum(out, 0.0)


def _sum_keep(x):
    # per-sample sum of a (Bt, a, b, c) tensor -> (Bt, 1, 1, 1)
    s = jnp.sum(x, axis=3, keepdims=True)
    s = jnp.sum(s, axis=2, keepdims=True)
    return jnp.sum(s, axis=1, keepdims=True)


# --------------------------------- kernel ---------------------------------- #

def _lite_encoder_kernel(x_ref, wb_ref, bb_ref, g_ref, beta_ref,
                         w1_ref, b1_ref, w2_ref, b2_ref,
                         out_ref, xpad_ref, pad1_ref, pad2_ref):
    bt, H, W, _ = x_ref.shape
    mnh, mnw = H // 4, W // 4

    # ---- fused 5-branch conv: zero-pad into scratch, im2col, one MXU dot ----
    xpad_ref[...] = jnp.zeros_like(xpad_ref)                 # borders -> 0 (tiny)
    xpad_ref[:, PAD:PAD + H, PAD:PAD + W, :] = x_ref[...]
    z = _conv_im2col(xpad_ref[...], wb_ref[...], bb_ref[...], H, W)   # (bt*H*W, 5)

    # ---- double 2x2 max-pool == 4x4 max-pool, done as grouped row maxima ----
    z = jnp.max(z.reshape(bt * H * mnw, 4, NBR), axis=1)     # pool along W
    z = jnp.max(z.reshape(bt * mnh, 4, mnw, NBR), axis=1)    # pool along H
    feat = z.reshape(bt, mnh, mnw, NBR)                      # (bt, mn, mn, 5)

    # ---- per-sample LayerNorm over all (5, mn, mn) elements ----
    n = float(NBR * mnh * mnw)
    mu = _sum_keep(feat) / n
    xc = feat - mu
    var = _sum_keep(xc * xc) / n
    y = xc * jax.lax.rsqrt(var + 1e-5) * g_ref[...] + beta_ref[...]

    # ---- encoder conv1 (5 -> 8) ----
    pad1_ref[...] = jnp.zeros_like(pad1_ref)
    pad1_ref[:, PAD:PAD + mnh, PAD:PAD + mnw, :] = y
    h1 = _conv_im2col(pad1_ref[...], w1_ref[...], b1_ref[...], mnh, mnw)

    # ---- encoder conv2 (8 -> 8) ----
    pad2_ref[...] = jnp.zeros_like(pad2_ref)
    pad2_ref[:, PAD:PAD + mnh, PAD:PAD + mnw, :] = h1.reshape(bt, mnh, mnw, ENC)
    h2 = _conv_im2col(pad2_ref[...], w2_ref[...], b2_ref[...], mnh, mnw)

    out_ref[...] = h2.reshape(bt, mnh, mnw, ENC)


# ------------------------------ host-side prep ------------------------------ #

def _pack_inputs(wrf):
    # gather the 14 used channels once, channels-last (NHWC)
    x = jnp.concatenate([wrf[:, 3:7], wrf[:, 12:16], wrf[:, 21:25],
                         wrf[:, 27:29]], axis=1)             # (B, 14, H, W)
    return jnp.transpose(x, (0, 2, 3, 1))                    # (B, H, W, 14)


def _pack_branch_weight(params):
    # block-diagonal fused branch weight, rows ordered (kh, kw, packed channel)
    wb = jnp.zeros((KSIZE, KSIZE, NCH, NBR), jnp.float32)

    def put(acc, w_oihw, coff, o):
        w = jnp.transpose(w_oihw[0], (1, 2, 0))              # (kh, kw, cin)
        return acc.at[:, :, coff:coff + w.shape[-1], o].set(w)

    wb = put(wb, params['qice_w'], 0, 0)
    wb = put(wb, params['qsnow_w'], 4, 1)
    wb = put(wb, params['qgroup_w'], 8, 2)
    wb = put(wb, params['w_w'], 12, 3)
    wb = put(wb, params['rain_w'], 13, 4)
    return wb.reshape(KSIZE * KSIZE * NCH, NBR)              # (350, 5)


def _pack_branch_bias(params):
    return jnp.concatenate([params['qice_b'], params['qsnow_b'],
                            params['qgroup_b'], params['w_b'],
                            params['rain_b']]).reshape(1, NBR)


def _enc_weight(w_oihw):
    cout = w_oihw.shape[0]
    return jnp.transpose(w_oihw, (2, 3, 1, 0)).reshape(-1, cout)   # (25*cin, cout)


def _vmem_limit_bytes():
    cap = 0
    try:
        cap = int(pltpu.get_tpu_info().vmem_capacity_bytes)
    except Exception:
        cap = 0
    if cap <= 0:
        cap = 64 * 1024 * 1024          # conservative (v7x-sized) fallback
    return max(32 * 1024 * 1024, min(cap * 3 // 4, 96 * 1024 * 1024))


def _vmem_estimate(bt, H, W, mn):
    hp, wp = H + 2 * PAD, W + 2 * PAD
    m = bt * H * W
    words = (2 * bt * H * W * NCH                        # double-buffered input
             + bt * hp * wp * NCH                        # padded scratch
             + 2 * m * KSIZE * KSIZE * NCH               # branch im2col patch
             + m * NBR
             + bt * (mn + 4) ** 2 * (NBR + ENC)          # encoder pad scratches
             + 2 * bt * mn * mn * KSIZE * KSIZE * (NBR + ENC)
             + 2 * bt * mn * mn * ENC)                   # double-buffered output
    return words * 4 + (2 << 20)


def _pick_block_batch(B, H, W, mn, budget):
    best = 1
    for bt in range(1, B + 1):
        if B % bt:
            continue
        if _vmem_estimate(bt, H, W, mn) > budget:
            break
        if B >= 2 and B // bt < 2:       # keep >= 2 grid steps for megacore
            break
        best = bt
        if bt * H * W >= 512:            # enough MXU rows; stop growing
            break
    return best


# ------------------------------- public wrapper ----------------------------- #

def lite_encoder_pallas(wrf, params):
    B, _, H, W = wrf.shape
    assert H % 4 == 0 and W % 4 == 0, "spatial dims must be divisible by 4"
    mnh, mnw = H // 4, W // 4

    x = _pack_inputs(wrf)
    wb = _pack_branch_weight(params)
    bb = _pack_branch_bias(params)
    gamma = jnp.transpose(params['ln_g'], (1, 2, 0))     # (mn, mn, 5)
    beta = jnp.transpose(params['ln_b'], (1, 2, 0))
    w1 = _enc_weight(params['enc1_w'])                   # (125, 8)
    b1 = params['enc1_b'].reshape(1, ENC)
    w2 = _enc_weight(params['enc2_w'])                   # (200, 8)
    b2 = params['enc2_b'].reshape(1, ENC)

    vmem_limit = _vmem_limit_bytes()
    bt = _pick_block_batch(B, H, W, max(mnh, mnw), int(vmem_limit * 0.8))
    grid = (B // bt,)

    def const_spec(a):
        nd = a.ndim
        return pl.BlockSpec(a.shape, lambda b, _nd=nd: (0,) * _nd)

    in_specs = [pl.BlockSpec((bt, H, W, NCH), lambda b: (b, 0, 0, 0))]
    in_specs += [const_spec(a) for a in (wb, bb, gamma, beta, w1, b1, w2, b2)]

    out_nhwc = pl.pallas_call(
        _lite_encoder_kernel,
        out_shape=jax.ShapeDtypeStruct((B, mnh, mnw, ENC), jnp.float32),
        grid_spec=pltpu.PrefetchScalarGridSpec(
            num_scalar_prefetch=0,
            grid=grid,
            in_specs=in_specs,
            out_specs=pl.BlockSpec((bt, mnh, mnw, ENC), lambda b: (b, 0, 0, 0)),
            scratch_shapes=[
                pltpu.VMEM((bt, H + 2 * PAD, W + 2 * PAD, NCH), jnp.float32),
                pltpu.VMEM((bt, mnh + 2 * PAD, mnw + 2 * PAD, NBR), jnp.float32),
                pltpu.VMEM((bt, mnh + 2 * PAD, mnw + 2 * PAD, ENC), jnp.float32),
            ]),
        compiler_params=pltpu.CompilerParams(
            dimension_semantics=("parallel",),
            vmem_limit_bytes=int(vmem_limit)),
    )(x, wb, bb, gamma, beta, w1, b1, w2, b2)

    return jnp.transpose(out_nhwc, (0, 3, 1, 2))         # back to NCHW


# ------------------------------ parameter init ------------------------------ #

def init_params(key, grid_rowcol):
    mn = grid_rowcol // 2 // 2
    keys = jax.random.split(key, 16)

    def conv_w(k, cout, cin):
        return 0.1 * jax.random.normal(k, (cout, cin, KSIZE, KSIZE), jnp.float32)

    def conv_b(k, cout):
        return 0.1 * jax.random.normal(k, (cout,), jnp.float32)

    return {
        'qice_w': conv_w(keys[0], 1, 4), 'qice_b': conv_b(keys[1], 1),
        'qsnow_w': conv_w(keys[2], 1, 4), 'qsnow_b': conv_b(keys[3], 1),
        'qgroup_w': conv_w(keys[4], 1, 4), 'qgroup_b': conv_b(keys[5], 1),
        'w_w': conv_w(keys[6], 1, 1), 'w_b': conv_b(keys[7], 1),
        'rain_w': conv_w(keys[8], 1, 1), 'rain_b': conv_b(keys[9], 1),
        'ln_g': 1.0 + 0.1 * jax.random.normal(keys[10], (5, mn, mn), jnp.float32),
        'ln_b': 0.1 * jax.random.normal(keys[11], (5, mn, mn), jnp.float32),
        'enc1_w': conv_w(keys[12], 8, 5), 'enc1_b': conv_b(keys[13], 8),
        'enc2_w': conv_w(keys[14], 8, 8), 'enc2_b': conv_b(keys[15], 8),
    }


# ----------------------------- pure-JAX reference --------------------------- #

def lite_encoder_ref(wrf, params):
    def conv(x, w, b):
        y = jax.lax.conv_general_dilated(
            x, w, window_strides=(1, 1), padding=((PAD, PAD), (PAD, PAD)),
            dimension_numbers=('NCHW', 'OIHW', 'NCHW'))
        return y + b[None, :, None, None]

    def pool2(x):
        B, C, H, W = x.shape
        return jnp.max(x.reshape(B, C, H // 2, 2, W // 2, 2), axis=(3, 5))

    def branch(x, w, b):
        return pool2(pool2(jax.nn.relu(conv(x, w, b))))

    f = jnp.concatenate([
        branch(wrf[:, 3:7], params['qice_w'], params['qice_b']),
        branch(wrf[:, 12:16], params['qsnow_w'], params['qsnow_b']),
        branch(wrf[:, 21:25], params['qgroup_w'], params['qgroup_b']),
        branch(wrf[:, 27:28], params['w_w'], params['w_b']),
        branch(wrf[:, 28:29], params['rain_w'], params['rain_b']),
    ], axis=1)

    mu = jnp.mean(f, axis=(1, 2, 3), keepdims=True)
    var = jnp.mean((f - mu) ** 2, axis=(1, 2, 3), keepdims=True)
    f = (f - mu) * jax.lax.rsqrt(var + 1e-5)
    f = f * params['ln_g'][None] + params['ln_b'][None]

    h = jax.nn.relu(conv(f, params['enc1_w'], params['enc1_b']))
    h = jax.nn.relu(conv(h, params['enc2_w'], params['enc2_b']))
    return h


if __name__ == "__main__":
    key = jax.random.PRNGKey(0)
    kx, kp = jax.random.split(key)
    C, H = 32, 16                     # GridRowColNum = 16 -> mn = 4; wrf has >= 29 channels
    params = init_params(kp, H)

    # B=2 runs one sample per grid step; B=4 exercises the multi-sample (Bt=2) path.
    for B in (2, 4):
        wrf = jax.random.normal(jax.random.fold_in(kx, B), (B, C, H, H), jnp.float32)
        out = jax.block_until_ready(lite_encoder_pallas(wrf, params))
        ref = lite_encoder_ref(wrf, params)
        assert out.shape == (B, 8, H // 4, H // 4), out.shape
        err = float(jnp.max(jnp.abs(out - ref)))
        if err > 1e-4:
            raise AssertionError(f"Pallas / reference mismatch (B={B}): max abs err = {err}")
    print("KERNEL_OK")
</pallas_src>

<mosaic_0001>
module attributes {stable_mosaic.version = 11 : i64} {
  func.func @_lite_encoder_kernel(%arg0: i32, %arg1: memref<1x16x16x14xf32, #tpu.memory_space<vmem>>, %arg2: memref<350x5xf32, #tpu.memory_space<vmem>>, %arg3: memref<1x5xf32, #tpu.memory_space<vmem>>, %arg4: memref<4x4x5xf32, #tpu.memory_space<vmem>>, %arg5: memref<4x4x5xf32, #tpu.memory_space<vmem>>, %arg6: memref<125x8xf32, #tpu.memory_space<vmem>>, %arg7: memref<1x8xf32, #tpu.memory_space<vmem>>, %arg8: memref<200x8xf32, #tpu.memory_space<vmem>>, %arg9: memref<1x8xf32, #tpu.memory_space<vmem>>, %arg10: memref<1x4x4x8xf32, #tpu.memory_space<vmem>>, %arg11: memref<1x20x20x14xf32, #tpu.memory_space<vmem>>, %arg12: memref<1x8x8x5xf32, #tpu.memory_space<vmem>>, %arg13: memref<1x8x8x8xf32, #tpu.memory_space<vmem>>) attributes {dimension_semantics = [#tpu.dimension_semantics<parallel>], iteration_bounds = array<i64: 2>, scalar_prefetch = 0 : i64, scratch_operands = 3 : i64, tpu.core_type = #tpu.core_type<tc>, window_params = [{transform_indices = @transform_0, window_bounds = array<i64: 1, 16, 16, 14>}, {pipeline_mode = #tpu.pipeline_mode<synchronous>, transform_indices = @transform_1, window_bounds = array<i64: 350, 5>}, {pipeline_mode = #tpu.pipeline_mode<synchronous>, transform_indices = @transform_2, window_bounds = array<i64: 1, 5>}, {pipeline_mode = #tpu.pipeline_mode<synchronous>, transform_indices = @transform_3, window_bounds = array<i64: 4, 4, 5>}, {pipeline_mode = #tpu.pipeline_mode<synchronous>, transform_indices = @transform_4, window_bounds = array<i64: 4, 4, 5>}, {pipeline_mode = #tpu.pipeline_mode<synchronous>, transform_indices = @transform_5, window_bounds = array<i64: 125, 8>}, {pipeline_mode = #tpu.pipeline_mode<synchronous>, transform_indices = @transform_6, window_bounds = array<i64: 1, 8>}, {pipeline_mode = #tpu.pipeline_mode<synchronous>, transform_indices = @transform_7, window_bounds = array<i64: 200, 8>}, {pipeline_mode = #tpu.pipeline_mode<synchronous>, transform_indices = @transform_8, window_bounds = array<i64: 1, 8>}, {transform_indices = @transform_9, window_bounds = array<i64: 1, 4, 4, 8>}]} {
    %cst = arith.constant 0.000000e+00 : f32
    %0 = vector.broadcast %cst : f32 to vector<1x20x20x14xf32>
    %c0 = arith.constant 0 : index
    %c0_0 = arith.constant 0 : index
    %c0_1 = arith.constant 0 : index
    %c0_2 = arith.constant 0 : index
    %1 = vector.load %arg11[%c0, %c0_0, %c0_1, %c0_2] : memref<1x20x20x14xf32, #tpu.memory_space<vmem>>, vector<1x20x20x14xf32>
    tpu.vector_store %arg11[%c0, %c0_0, %c0_1, %c0_2], %0 {strides = array<i32>} : memref<1x20x20x14xf32, #tpu.memory_space<vmem>>, vector<1x20x20x14xf32>,
    %c0_3 = arith.constant 0 : index
    %c0_4 = arith.constant 0 : index
    %c0_5 = arith.constant 0 : index
    %c0_6 = arith.constant 0 : index
    %2 = vector.load %arg1[%c0_3, %c0_4, %c0_5, %c0_6] : memref<1x16x16x14xf32, #tpu.memory_space<vmem>>, vector<1x16x16x14xf32>
    %c0_7 = arith.constant 0 : index
    %c2 = arith.constant 2 : index
    %c2_8 = arith.constant 2 : index
    %c0_9 = arith.constant 0 : index
    %3 = vector.load %arg11[%c0_7, %c2, %c2_8, %c0_9] : memref<1x20x20x14xf32, #tpu.memory_space<vmem>>, vector<1x16x16x14xf32>
    tpu.vector_store %arg11[%c0_7, %c2, %c2_8, %c0_9], %2 {strides = array<i32>} : memref<1x20x20x14xf32, #tpu.memory_space<vmem>>, vector<1x16x16x14xf32>,
    %c0_10 = arith.constant 0 : index
    %c0_11 = arith.constant 0 : index
    %c0_12 = arith.constant 0 : index
    %c0_13 = arith.constant 0 : index
    %4 = vector.load %arg11[%c0_10, %c0_11, %c0_12, %c0_13] : memref<1x20x20x14xf32, #tpu.memory_space<vmem>>, vector<1x20x20x14xf32>
    %c0_14 = arith.constant 0 : index
    %c0_15 = arith.constant 0 : index
    %5 = vector.load %arg2[%c0_14, %c0_15] : memref<350x5xf32, #tpu.memory_space<vmem>>, vector<350x5xf32>
    %c0_16 = arith.constant 0 : index
    %c0_17 = arith.constant 0 : index
    %6 = vector.load %arg3[%c0_16, %c0_17] : memref<1x5xf32, #tpu.memory_space<vmem>>, vector<1x5xf32>
    %7 = vector.extract_strided_slice %4 {offsets = [0, 0, 0, 0], sizes = [1, 16, 16, 14], strides = [1, 1, 1, 1]} : vector<1x20x20x14xf32> to vector<1x16x16x14xf32>
    %8 = vector.extract_strided_slice %4 {offsets = [0, 0, 1, 0], sizes = [1, 16, 16, 14], strides = [1, 1, 1, 1]} : vector<1x20x20x14xf32> to vector<1x16x16x14xf32>
    %9 = vector.extract_strided_slice %4 {offsets = [0, 0, 2, 0], sizes = [1, 16, 16, 14], strides = [1, 1, 1, 1]} : vector<1x20x20x14xf32> to vector<1x16x16x14xf32>
    %10 = vector.extract_strided_slice %4 {offsets = [0, 0, 3, 0], sizes = [1, 16, 16, 14], strides = [1, 1, 1, 1]} : vector<1x20x20x14xf32> to vector<1x16x16x14xf32>
    %11 = vector.extract_strided_slice %4 {offsets = [0, 0, 4, 0], sizes = [1, 16, 16, 14], strides = [1, 1, 1, 1]} : vector<1x20x20x14xf32> to vector<1x16x16x14xf32>
    %12 = vector.extract_strided_slice %4 {offsets = [0, 1, 0, 0], sizes = [1, 16, 16, 14], strides = [1, 1, 1, 1]} : vector<1x20x20x14xf32> to vector<1x16x16x14xf32>
    %13 = vector.extract_strided_slice %4 {offsets = [0, 1, 1, 0], sizes = [1, 16, 16, 14], strides = [1, 1, 1, 1]} : vector<1x20x20x14xf32> to vector<1x16x16x14xf32>
    %14 = vector.extract_strided_slice %4 {offsets = [0, 1, 2, 0], sizes = [1, 16, 16, 14], strides = [1, 1, 1, 1]} : vector<1x20x20x14xf32> to vector<1x16x16x14xf32>
    %15 = vector.extract_strided_slice %4 {offsets = [0, 1, 3, 0], sizes = [1, 16, 16, 14], strides = [1, 1, 1, 1]} : vector<1x20x20x14xf32> to vector<1x16x16x14xf32>
    %16 = vector.extract_strided_slice %4 {offsets = [0, 1, 4, 0], sizes = [1, 16, 16, 14], strides = [1, 1, 1, 1]} : vector<1x20x20x14xf32> to vector<1x16x16x14xf32>
    %17 = vector.extract_strided_slice %4 {offsets = [0, 2, 0, 0], sizes = [1, 16, 16, 14], strides = [1, 1, 1, 1]} : vector<1x20x20x14xf32> to vector<1x16x16x14xf32>
    %18 = vector.extract_strided_slice %4 {offsets = [0, 2, 1, 0], sizes = [1, 16, 16, 14], strides = [1, 1, 1, 1]} : vector<1x20x20x14xf32> to vector<1x16x16x14xf32>
    %19 = vector.extract_strided_slice %4 {offsets = [0, 2, 2, 0], sizes = [1, 16, 16, 14], strides = [1, 1, 1, 1]} : vector<1x20x20x14xf32> to vector<1x16x16x14xf32>
    %20 = vector.extract_strided_slice %4 {offsets = [0, 2, 3, 0], sizes = [1, 16, 16, 14], strides = [1, 1, 1, 1]} : vector<1x20x20x14xf32> to vector<1x16x16x14xf32>
    %21 = vector.extract_strided_slice %4 {offsets = [0, 2, 4, 0], sizes = [1, 16, 16, 14], strides = [1, 1, 1, 1]} : vector<1x20x20x14xf32> to vector<1x16x16x14xf32>
    %22 = vector.extract_strided_slice %4 {offsets = [0, 3, 0, 0], sizes = [1, 16, 16, 14], strides = [1, 1, 1, 1]} : vector<1x20x20x14xf32> to vector<1x16x16x14xf32>
    %23 = vector.extract_strided_slice %4 {offsets = [0, 3, 1, 0], sizes = [1, 16, 16, 14], strides = [1, 1, 1, 1]} : vector<1x20x20x14xf32> to vector<1x16x16x14xf32>
    %24 = vector.extract_strided_slice %4 {offsets = [0, 3, 2, 0], sizes = [1, 16, 16, 14], strides = [1, 1, 1, 1]} : vector<1x20x20x14xf32> to vector<1x16x16x14xf32>
    %25 = vector.extract_strided_slice %4 {offsets = [0, 3, 3, 0], sizes = [1, 16, 16, 14], strides = [1, 1, 1, 1]} : vector<1x20x20x14xf32> to vector<1x16x16x14xf32>
    %26 = vector.extract_strided_slice %4 {offsets = [0, 3, 4, 0], sizes = [1, 16, 16, 14], strides = [1, 1, 1, 1]} : vector<1x20x20x14xf32> to vector<1x16x16x14xf32>
    %27 = vector.extract_strided_slice %4 {offsets = [0, 4, 0, 0], sizes = [1, 16, 16, 14], strides = [1, 1, 1, 1]} : vector<1x20x20x14xf32> to vector<1x16x16x14xf32>
    %28 = vector.extract_strided_slice %4 {offsets = [0, 4, 1, 0], sizes = [1, 16, 16, 14], strides = [1, 1, 1, 1]} : vector<1x20x20x14xf32> to vector<1x16x16x14xf32>
    %29 = vector.extract_strided_slice %4 {offsets = [0, 4, 2, 0], sizes = [1, 16, 16, 14], strides = [1, 1, 1, 1]} : vector<1x20x20x14xf32> to vector<1x16x16x14xf32>
    %30 = vector.extract_strided_slice %4 {offsets = [0, 4, 3, 0], sizes = [1, 16, 16, 14], strides = [1, 1, 1, 1]} : vector<1x20x20x14xf32> to vector<1x16x16x14xf32>
    %31 = vector.extract_strided_slice %4 {offsets = [0, 4, 4, 0], sizes = [1, 16, 16, 14], strides = [1, 1, 1, 1]} : vector<1x20x20x14xf32> to vector<1x16x16x14xf32>
    %32 = tpu.concatenate %7, %8, %9, %10, %11, %12, %13, %14, %15, %16, %17, %18, %19, %20, %21, %22 in 3 : vector<1x16x16x14xf32>, vector<1x16x16x14xf32>, vector<1x16x16x14xf32>, vector<1x16x16x14xf32>, vector<1x16x16x14xf32>, vector<1x16x16x14xf32>, vector<1x16x16x14xf32>, vector<1x16x16x14xf32>, vector<1x16x16x14xf32>, vector<1x16x16x14xf32>, vector<1x16x16x14xf32>, vector<1x16x16x14xf32>, vector<1x16x16x14xf32>, vector<1x16x16x14xf32>, vector<1x16x16x14xf32>, vector<1x16x16x14xf32> -> vector<1x16x16x224xf32>
    %33 = tpu.concatenate %23, %24, %25, %26, %27, %28, %29, %30, %31 in 3 : vector<1x16x16x14xf32>, vector<1x16x16x14xf32>, vector<1x16x16x14xf32>, vector<1x16x16x14xf32>, vector<1x16x16x14xf32>, vector<1x16x16x14xf32>, vector<1x16x16x14xf32>, vector<1x16x16x14xf32>, vector<1x16x16x14xf32> -> vector<1x16x16x126xf32>
    %34 = tpu.concatenate %32, %33 in 3 : vector<1x16x16x224xf32>, vector<1x16x16x126xf32> -> vector<1x16x16x350xf32>
    %35 = vector.shape_cast %34 : vector<1x16x16x350xf32> to vector<256x350xf32>
    %cst_18 = arith.constant dense<0.000000e+00> : vector<256x5xf32>
    %36 = tpu.matmul %35, %5, %cst_18 {dimension_numbers = #tpu.dot_dimension_numbers<[1], [0], [0], [1], [0, 0, 1, 1], [], []>} : vector<256x350xf32>, vector<350x5xf32>, vector<256x5xf32> -> vector<256x5xf32>
    %37 = vector.broadcast %6 : vector<1x5xf32> to vector<256x5xf32>
    %38 = arith.addf %36, %37 : vector<256x5xf32>
    %cst_19 = arith.constant 0.000000e+00 : f32
    %39 = vector.broadcast %cst_19 : f32 to vector<256x5xf32>
    %40 = arith.maximumf %38, %39 : vector<256x5xf32>
    %41 = vector.shape_cast %40 : vector<256x5xf32> to vector<64x4x5xf32>
    %cst_20 = arith.constant dense<0xFF800000> : vector<64x5xf32>
    %42 = vector.multi_reduction <maximumf>, %41, %cst_20 [1] : vector<64x4x5xf32> to vector<64x5xf32>
    %43 = vector.shape_cast %42 : vector<64x5xf32> to vector<4x4x4x5xf32>
    %cst_21 = arith.constant dense<0xFF800000> : vector<4x4x5xf32>
    %44 = vector.multi_reduction <maximumf>, %43, %cst_21 [1] : vector<4x4x4x5xf32> to vector<4x4x5xf32>
    %45 = vector.shape_cast %44 : vector<4x4x5xf32> to vector<1x4x4x5xf32>
    %cst_22 = arith.constant dense<0.000000e+00> : vector<1x4x4xf32>
    %46 = vector.multi_reduction <add>, %45, %cst_22 [3] : vector<1x4x4x5xf32> to vector<1x4x4xf32>
    %47 = vector.shape_cast %46 : vector<1x4x4xf32> to vector<1x4x4x1xf32>
    %cst_23 = arith.constant dense<0.000000e+00> : vector<1x4x1xf32>
    %48 = vector.multi_reduction <add>, %47, %cst_23 [2] : vector<1x4x4x1xf32> to vector<1x4x1xf32>
    %49 = vector.shape_cast %48 : vector<1x4x1xf32> to vector<1x4x1x1xf32>
    %cst_24 = arith.constant dense<0.000000e+00> : vector<1x1x1xf32>
    %50 = vector.multi_reduction <add>, %49, %cst_24 [1] : vector<1x4x1x1xf32> to vector<1x1x1xf32>
    %51 = vector.shape_cast %50 : vector<1x1x1xf32> to vector<1x1x1x1xf32>
    %cst_25 = arith.constant 8.000000e+01 : f32
    %52 = vector.broadcast %cst_25 : f32 to vector<1x1x1x1xf32>
    %53 = arith.divf %51, %52 : vector<1x1x1x1xf32>
    %54 = vector.broadcast %53 : vector<1x1x1x1xf32> to vector<1x4x4x5xf32>
    %55 = arith.subf %45, %54 : vector<1x4x4x5xf32>
    %56 = arith.mulf %55, %55 : vector<1x4x4x5xf32>
    %cst_26 = arith.constant dense<0.000000e+00> : vector<1x4x4xf32>
    %57 = vector.multi_reduction <add>, %56, %cst_26 [3] : vector<1x4x4x5xf32> to vector<1x4x4xf32>
    %58 = vector.shape_cast %57 : vector<1x4x4xf32> to vector<1x4x4x1xf32>
    %cst_27 = arith.constant dense<0.000000e+00> : vector<1x4x1xf32>
    %59 = vector.multi_reduction <add>, %58, %cst_27 [2] : vector<1x4x4x1xf32> to vector<1x4x1xf32>
    %60 = vector.shape_cast %59 : vector<1x4x1xf32> to vector<1x4x1x1xf32>
    %cst_28 = arith.constant dense<0.000000e+00> : vector<1x1x1xf32>
    %61 = vector.multi_reduction <add>, %60, %cst_28 [1] : vector<1x4x1x1xf32> to vector<1x1x1xf32>
    %62 = vector.shape_cast %61 : vector<1x1x1xf32> to vector<1x1x1x1xf32>
    %cst_29 = arith.constant 8.000000e+01 : f32
    %63 = vector.broadcast %cst_29 : f32 to vector<1x1x1x1xf32>
    %64 = arith.divf %62, %63 : vector<1x1x1x1xf32>
    %cst_30 = arith.constant 9.99999974E-6 : f32
    %65 = vector.broadcast %cst_30 : f32 to vector<1x1x1x1xf32>
    %66 = arith.addf %64, %65 : vector<1x1x1x1xf32>
    %67 = math.rsqrt %66 : vector<1x1x1x1xf32>
    %68 = vector.broadcast %67 : vector<1x1x1x1xf32> to vector<1x4x4x5xf32>
    %69 = arith.mulf %55, %68 : vector<1x4x4x5xf32>
    %c0_31 = arith.constant 0 : index
    %c0_32 = arith.constant 0 : index
    %c0_33 = arith.constant 0 : index
    %70 = vector.load %arg4[%c0_31, %c0_32, %c0_33] : memref<4x4x5xf32, #tpu.memory_space<vmem>>, vector<4x4x5xf32>
    %71 = vector.shape_cast %70 : vector<4x4x5xf32> to vector<1x4x4x5xf32>
    %72 = arith.mulf %69, %71 : vector<1x4x4x5xf32>
    %c0_34 = arith.constant 0 : index
    %c0_35 = arith.constant 0 : index
    %c0_36 = arith.constant 0 : index
    %73 = vector.load %arg5[%c0_34, %c0_35, %c0_36] : memref<4x4x5xf32, #tpu.memory_space<vmem>>, vector<4x4x5xf32>
    %74 = vector.shape_cast %73 : vector<4x4x5xf32> to vector<1x4x4x5xf32>
    %75 = arith.addf %72, %74 : vector<1x4x4x5xf32>
    %cst_37 = arith.constant 0.000000e+00 : f32
    %76 = vector.broadcast %cst_37 : f32 to vector<1x8x8x5xf32>
    %c0_38 = arith.constant 0 : index
    %c0_39 = arith.constant 0 : index
    %c0_40 = arith.constant 0 : index
    %c0_41 = arith.constant 0 : index
    %77 = vector.load %arg12[%c0_38, %c0_39, %c0_40, %c0_41] : memref<1x8x8x5xf32, #tpu.memory_space<vmem>>, vector<1x8x8x5xf32>
    tpu.vector_store %arg12[%c0_38, %c0_39, %c0_40, %c0_41], %76 {strides = array<i32>} : memref<1x8x8x5xf32, #tpu.memory_space<vmem>>, vector<1x8x8x5xf32>,
    %c0_42 = arith.constant 0 : index
    %c2_43 = arith.constant 2 : index
    %c2_44 = arith.constant 2 : index
    %c0_45 = arith.constant 0 : index
    %78 = vector.load %arg12[%c0_42, %c2_43, %c2_44, %c0_45] : memref<1x8x8x5xf32, #tpu.memory_space<vmem>>, vector<1x4x4x5xf32>
    tpu.vector_store %arg12[%c0_42, %c2_43, %c2_44, %c0_45], %75 {strides = array<i32>} : memref<1x8x8x5xf32, #tpu.memory_space<vmem>>, vector<1x4x4x5xf32>,
    %c0_46 = arith.constant 0 : index
    %c0_47 = arith.constant 0 : index
    %c0_48 = arith.constant 0 : index
    %c0_49 = arith.constant 0 : index
    %79 = vector.load %arg12[%c0_46, %c0_47, %c0_48, %c0_49] : memref<1x8x8x5xf32, #tpu.memory_space<vmem>>, vector<1x8x8x5xf32>
    %c0_50 = arith.constant 0 : index
    %c0_51 = arith.constant 0 : index
    %80 = vector.load %arg6[%c0_50, %c0_51] : memref<125x8xf32, #tpu.memory_space<vmem>>, vector<125x8xf32>
    %c0_52 = arith.constant 0 : index
    %c0_53 = arith.constant 0 : index
    %81 = vector.load %arg7[%c0_52, %c0_53] : memref<1x8xf32, #tpu.memory_space<vmem>>, vector<1x8xf32>
    %82 = vector.extract_strided_slice %79 {offsets = [0, 0, 0, 0], sizes = [1, 4, 4, 5], strides = [1, 1, 1, 1]} : vector<1x8x8x5xf32> to vector<1x4x4x5xf32>
    %83 = vector.extract_strided_slice %79 {offsets = [0, 0, 1, 0], sizes = [1, 4, 4, 5], strides = [1, 1, 1, 1]} : vector<1x8x8x5xf32> to vector<1x4x4x5xf32>
    %84 = vector.extract_strided_slice %79 {offsets = [0, 0, 2, 0], sizes = [1, 4, 4, 5], strides = [1, 1, 1, 1]} : vector<1x8x8x5xf32> to vector<1x4x4x5xf32>
    %85 = vector.extract_strided_slice %79 {offsets = [0, 0, 3, 0], sizes = [1, 4, 4, 5], strides = [1, 1, 1, 1]} : vector<1x8x8x5xf32> to vector<1x4x4x5xf32>
    %86 = vector.extract_strided_slice %79 {offsets = [0, 0, 4, 0], sizes = [1, 4, 4, 5], strides = [1, 1, 1, 1]} : vector<1x8x8x5xf32> to vector<1x4x4x5xf32>
    %87 = vector.extract_strided_slice %79 {offsets = [0, 1, 0, 0], sizes = [1, 4, 4, 5], strides = [1, 1, 1, 1]} : vector<1x8x8x5xf32> to vector<1x4x4x5xf32>
    %88 = vector.extract_strided_slice %79 {offsets = [0, 1, 1, 0], sizes = [1, 4, 4, 5], strides = [1, 1, 1, 1]} : vector<1x8x8x5xf32> to vector<1x4x4x5xf32>
    %89 = vector.extract_strided_slice %79 {offsets = [0, 1, 2, 0], sizes = [1, 4, 4, 5], strides = [1, 1, 1, 1]} : vector<1x8x8x5xf32> to vector<1x4x4x5xf32>
    %90 = vector.extract_strided_slice %79 {offsets = [0, 1, 3, 0], sizes = [1, 4, 4, 5], strides = [1, 1, 1, 1]} : vector<1x8x8x5xf32> to vector<1x4x4x5xf32>
    %91 = vector.extract_strided_slice %79 {offsets = [0, 1, 4, 0], sizes = [1, 4, 4, 5], strides = [1, 1, 1, 1]} : vector<1x8x8x5xf32> to vector<1x4x4x5xf32>
    %92 = vector.extract_strided_slice %79 {offsets = [0, 2, 0, 0], sizes = [1, 4, 4, 5], strides = [1, 1, 1, 1]} : vector<1x8x8x5xf32> to vector<1x4x4x5xf32>
    %93 = vector.extract_strided_slice %79 {offsets = [0, 2, 1, 0], sizes = [1, 4, 4, 5], strides = [1, 1, 1, 1]} : vector<1x8x8x5xf32> to vector<1x4x4x5xf32>
    %94 = vector.extract_strided_slice %79 {offsets = [0, 2, 2, 0], sizes = [1, 4, 4, 5], strides = [1, 1, 1, 1]} : vector<1x8x8x5xf32> to vector<1x4x4x5xf32>
    %95 = vector.extract_strided_slice %79 {offsets = [0, 2, 3, 0], sizes = [1, 4, 4, 5], strides = [1, 1, 1, 1]} : vector<1x8x8x5xf32> to vector<1x4x4x5xf32>
    %96 = vector.extract_strided_slice %79 {offsets = [0, 2, 4, 0], sizes = [1, 4, 4, 5], strides = [1, 1, 1, 1]} : vector<1x8x8x5xf32> to vector<1x4x4x5xf32>
    %97 = vector.extract_strided_slice %79 {offsets = [0, 3, 0, 0], sizes = [1, 4, 4, 5], strides = [1, 1, 1, 1]} : vector<1x8x8x5xf32> to vector<1x4x4x5xf32>
    %98 = vector.extract_strided_slice %79 {offsets = [0, 3, 1, 0], sizes = [1, 4, 4, 5], strides = [1, 1, 1, 1]} : vector<1x8x8x5xf32> to vector<1x4x4x5xf32>
    %99 = vector.extract_strided_slice %79 {offsets = [0, 3, 2, 0], sizes = [1, 4, 4, 5], strides = [1, 1, 1, 1]} : vector<1x8x8x5xf32> to vector<1x4x4x5xf32>
    %100 = vector.extract_strided_slice %79 {offsets = [0, 3, 3, 0], sizes = [1, 4, 4, 5], strides = [1, 1, 1, 1]} : vector<1x8x8x5xf32> to vector<1x4x4x5xf32>
    %101 = vector.extract_strided_slice %79 {offsets = [0, 3, 4, 0], sizes = [1, 4, 4, 5], strides = [1, 1, 1, 1]} : vector<1x8x8x5xf32> to vector<1x4x4x5xf32>
    %102 = vector.extract_strided_slice %79 {offsets = [0, 4, 0, 0], sizes = [1, 4, 4, 5], strides = [1, 1, 1, 1]} : vector<1x8x8x5xf32> to vector<1x4x4x5xf32>
    %103 = vector.extract_strided_slice %79 {offsets = [0, 4, 1, 0], sizes = [1, 4, 4, 5], strides = [1, 1, 1, 1]} : vector<1x8x8x5xf32> to vector<1x4x4x5xf32>
    %104 = vector.extract_strided_slice %79 {offsets = [0, 4, 2, 0], sizes = [1, 4, 4, 5], strides = [1, 1, 1, 1]} : vector<1x8x8x5xf32> to vector<1x4x4x5xf32>
    %105 = vector.extract_strided_slice %79 {offsets = [0, 4, 3, 0], sizes = [1, 4, 4, 5], strides = [1, 1, 1, 1]} : vector<1x8x8x5xf32> to vector<1x4x4x5xf32>
    %106 = vector.extract_strided_slice %79 {offsets = [0, 4, 4, 0], sizes = [1, 4, 4, 5], strides = [1, 1, 1, 1]} : vector<1x8x8x5xf32> to vector<1x4x4x5xf32>
    %107 = tpu.concatenate %82, %83, %84, %85, %86, %87, %88, %89, %90, %91, %92, %93, %94, %95, %96, %97 in 3 : vector<1x4x4x5xf32>, vector<1x4x4x5xf32>, vector<1x4x4x5xf32>, vector<1x4x4x5xf32>, vector<1x4x4x5xf32>, vector<1x4x4x5xf32>, vector<1x4x4x5xf32>, vector<1x4x4x5xf32>, vector<1x4x4x5xf32>, vector<1x4x4x5xf32>, vector<1x4x4x5xf32>, vector<1x4x4x5xf32>, vector<1x4x4x5xf32>, vector<1x4x4x5xf32>, vector<1x4x4x5xf32>, vector<1x4x4x5xf32> -> vector<1x4x4x80xf32>
    %108 = tpu.concatenate %98, %99, %100, %101, %102, %103, %104, %105, %106 in 3 : vector<1x4x4x5xf32>, vector<1x4x4x5xf32>, vector<1x4x4x5xf32>, vector<1x4x4x5xf32>, vector<1x4x4x5xf32>, vector<1x4x4x5xf32>, vector<1x4x4x5xf32>, vector<1x4x4x5xf32>, vector<1x4x4x5xf32> -> vector<1x4x4x45xf32>
    %109 = tpu.concatenate %107, %108 in 3 : vector<1x4x4x80xf32>, vector<1x4x4x45xf32> -> vector<1x4x4x125xf32>
    %110 = vector.shape_cast %109 : vector<1x4x4x125xf32> to vector<16x125xf32>
    %cst_54 = arith.constant dense<0.000000e+00> : vector<16x8xf32>
    %111 = tpu.matmul %110, %80, %cst_54 {dimension_numbers = #tpu.dot_dimension_numbers<[1], [0], [0], [1], [0, 0, 1, 1], [], []>} : vector<16x125xf32>, vector<125x8xf32>, vector<16x8xf32> -> vector<16x8xf32>
    %112 = vector.broadcast %81 : vector<1x8xf32> to vector<16x8xf32>
    %113 = arith.addf %111, %112 : vector<16x8xf32>
    %cst_55 = arith.constant 0.000000e+00 : f32
    %114 = vector.broadcast %cst_55 : f32 to vector<16x8xf32>
    %115 = arith.maximumf %113, %114 : vector<16x8xf32>
    %cst_56 = arith.constant 0.000000e+00 : f32
    %116 = vector.broadcast %cst_56 : f32 to vector<1x8x8x8xf32>
    %c0_57 = arith.constant 0 : index
    %c0_58 = arith.constant 0 : index
    %c0_59 = arith.constant 0 : index
    %c0_60 = arith.constant 0 : index
    %117 = vector.load %arg13[%c0_57, %c0_58, %c0_59, %c0_60] : memref<1x8x8x8xf32, #tpu.memory_space<vmem>>, vector<1x8x8x8xf32>
    tpu.vector_store %arg13[%c0_57, %c0_58, %c0_59, %c0_60], %116 {strides = array<i32>} : memref<1x8x8x8xf32, #tpu.memory_space<vmem>>, vector<1x8x8x8xf32>,
    %118 = vector.shape_cast %115 : vector<16x8xf32> to vector<1x4x4x8xf32>
    %c0_61 = arith.constant 0 : index
    %c2_62 = arith.constant 2 : index
    %c2_63 = arith.constant 2 : index
    %c0_64 = arith.constant 0 : index
    %119 = vector.load %arg13[%c0_61, %c2_62, %c2_63, %c0_64] : memref<1x8x8x8xf32, #tpu.memory_space<vmem>>, vector<1x4x4x8xf32>
    tpu.vector_store %arg13[%c0_61, %c2_62, %c2_63, %c0_64], %118 {strides = array<i32>} : memref<1x8x8x8xf32, #tpu.memory_space<vmem>>, vector<1x4x4x8xf32>,
    %c0_65 = arith.constant 0 : index
    %c0_66 = arith.constant 0 : index
    %c0_67 = arith.constant 0 : index
    %c0_68 = arith.constant 0 : index
    %120 = vector.load %arg13[%c0_65, %c0_66, %c0_67, %c0_68] : memref<1x8x8x8xf32, #tpu.memory_space<vmem>>, vector<1x8x8x8xf32>
    %c0_69 = arith.constant 0 : index
    %c0_70 = arith.constant 0 : index
    %121 = vector.load %arg8[%c0_69, %c0_70] : memref<200x8xf32, #tpu.memory_space<vmem>>, vector<200x8xf32>
    %c0_71 = arith.constant 0 : index
    %c0_72 = arith.constant 0 : index
    %122 = vector.load %arg9[%c0_71, %c0_72] : memref<1x8xf32, #tpu.memory_space<vmem>>, vector<1x8xf32>
    %123 = vector.extract_strided_slice %120 {offsets = [0, 0, 0, 0], sizes = [1, 4, 4, 8], strides = [1, 1, 1, 1]} : vector<1x8x8x8xf32> to vector<1x4x4x8xf32>
    %124 = vector.extract_strided_slice %120 {offsets = [0, 0, 1, 0], sizes = [1, 4, 4, 8], strides = [1, 1, 1, 1]} : vector<1x8x8x8xf32> to vector<1x4x4x8xf32>
    %125 = vector.extract_strided_slice %120 {offsets = [0, 0, 2, 0], sizes = [1, 4, 4, 8], strides = [1, 1, 1, 1]} : vector<1x8x8x8xf32> to vector<1x4x4x8xf32>
    %126 = vector.extract_strided_slice %120 {offsets = [0, 0, 3, 0], sizes = [1, 4, 4, 8], strides = [1, 1, 1, 1]} : vector<1x8x8x8xf32> to vector<1x4x4x8xf32>
    %127 = vector.extract_strided_slice %120 {offsets = [0, 0, 4, 0], sizes = [1, 4, 4, 8], strides = [1, 1, 1, 1]} : vector<1x8x8x8xf32> to vector<1x4x4x8xf32>
    %128 = vector.extract_strided_slice %120 {offsets = [0, 1, 0, 0], sizes = [1, 4, 4, 8], strides = [1, 1, 1, 1]} : vector<1x8x8x8xf32> to vector<1x4x4x8xf32>
    %129 = vector.extract_strided_slice %120 {offsets = [0, 1, 1, 0], sizes = [1, 4, 4, 8], strides = [1, 1, 1, 1]} : vector<1x8x8x8xf32> to vector<1x4x4x8xf32>
    %130 = vector.extract_strided_slice %120 {offsets = [0, 1, 2, 0], sizes = [1, 4, 4, 8], strides = [1, 1, 1, 1]} : vector<1x8x8x8xf32> to vector<1x4x4x8xf32>
    %131 = vector.extract_strided_slice %120 {offsets = [0, 1, 3, 0], sizes = [1, 4, 4, 8], strides = [1, 1, 1, 1]} : vector<1x8x8x8xf32> to vector<1x4x4x8xf32>
    %132 = vector.extract_strided_slice %120 {offsets = [0, 1, 4, 0], sizes = [1, 4, 4, 8], strides = [1, 1, 1, 1]} : vector<1x8x8x8xf32> to vector<1x4x4x8xf32>
    %133 = vector.extract_strided_slice %120 {offsets = [0, 2, 0, 0], sizes = [1, 4, 4, 8], strides = [1, 1, 1, 1]} : vector<1x8x8x8xf32> to vector<1x4x4x8xf32>
    %134 = vector.extract_strided_slice %120 {offsets = [0, 2, 1, 0], sizes = [1, 4, 4, 8], strides = [1, 1, 1, 1]} : vector<1x8x8x8xf32> to vector<1x4x4x8xf32>
    %135 = vector.extract_strided_slice %120 {offsets = [0, 2, 2, 0], sizes = [1, 4, 4, 8], strides = [1, 1, 1, 1]} : vector<1x8x8x8xf32> to vector<1x4x4x8xf32>
    %136 = vector.extract_strided_slice %120 {offsets = [0, 2, 3, 0], sizes = [1, 4, 4, 8], strides = [1, 1, 1, 1]} : vector<1x8x8x8xf32> to vector<1x4x4x8xf32>
    %137 = vector.extract_strided_slice %120 {offsets = [0, 2, 4, 0], sizes = [1, 4, 4, 8], strides = [1, 1, 1, 1]} : vector<1x8x8x8xf32> to vector<1x4x4x8xf32>
    %138 = vector.extract_strided_slice %120 {offsets = [0, 3, 0, 0], sizes = [1, 4, 4, 8], strides = [1, 1, 1, 1]} : vector<1x8x8x8xf32> to vector<1x4x4x8xf32>
    %139 = vector.extract_strided_slice %120 {offsets = [0, 3, 1, 0], sizes = [1, 4, 4, 8], strides = [1, 1, 1, 1]} : vector<1x8x8x8xf32> to vector<1x4x4x8xf32>
    %140 = vector.extract_strided_slice %120 {offsets = [0, 3, 2, 0], sizes = [1, 4, 4, 8], strides = [1, 1, 1, 1]} : vector<1x8x8x8xf32> to vector<1x4x4x8xf32>
    %141 = vector.extract_strided_slice %120 {offsets = [0, 3, 3, 0], sizes = [1, 4, 4, 8], strides = [1, 1, 1, 1]} : vector<1x8x8x8xf32> to vector<1x4x4x8xf32>
    %142 = vector.extract_strided_slice %120 {offsets = [0, 3, 4, 0], sizes = [1, 4, 4, 8], strides = [1, 1, 1, 1]} : vector<1x8x8x8xf32> to vector<1x4x4x8xf32>
    %143 = vector.extract_strided_slice %120 {offsets = [0, 4, 0, 0], sizes = [1, 4, 4, 8], strides = [1, 1, 1, 1]} : vector<1x8x8x8xf32> to vector<1x4x4x8xf32>
    %144 = vector.extract_strided_slice %120 {offsets = [0, 4, 1, 0], sizes = [1, 4, 4, 8], strides = [1, 1, 1, 1]} : vector<1x8x8x8xf32> to vector<1x4x4x8xf32>
    %145 = vector.extract_strided_slice %120 {offsets = [0, 4, 2, 0], sizes = [1, 4, 4, 8], strides = [1, 1, 1, 1]} : vector<1x8x8x8xf32> to vector<1x4x4x8xf32>
    %146 = vector.extract_strided_slice %120 {offsets = [0, 4, 3, 0], sizes = [1, 4, 4, 8], strides = [1, 1, 1, 1]} : vector<1x8x8x8xf32> to vector<1x4x4x8xf32>
    %147 = vector.extract_strided_slice %120 {offsets = [0, 4, 4, 0], sizes = [1, 4, 4, 8], strides = [1, 1, 1, 1]} : vector<1x8x8x8xf32> to vector<1x4x4x8xf32>
    %148 = tpu.concatenate %123, %124, %125, %126, %127, %128, %129, %130, %131, %132, %133, %134, %135, %136, %137, %138 in 3 : vector<1x4x4x8xf32>, vector<1x4x4x8xf32>, vector<1x4x4x8xf32>, vector<1x4x4x8xf32>, vector<1x4x4x8xf32>, vector<1x4x4x8xf32>, vector<1x4x4x8xf32>, vector<1x4x4x8xf32>, vector<1x4x4x8xf32>, vector<1x4x4x8xf32>, vector<1x4x4x8xf32>, vector<1x4x4x8xf32>, vector<1x4x4x8xf32>, vector<1x4x4x8xf32>, vector<1x4x4x8xf32>, vector<1x4x4x8xf32> -> vector<1x4x4x128xf32>
    %149 = tpu.concatenate %139, %140, %141, %142, %143, %144, %145, %146, %147 in 3 : vector<1x4x4x8xf32>, vector<1x4x4x8xf32>, vector<1x4x4x8xf32>, vector<1x4x4x8xf32>, vector<1x4x4x8xf32>, vector<1x4x4x8xf32>, vector<1x4x4x8xf32>, vector<1x4x4x8xf32>, vector<1x4x4x8xf32> -> vector<1x4x4x72xf32>
    %150 = tpu.concatenate %148, %149 in 3 : vector<1x4x4x128xf32>, vector<1x4x4x72xf32> -> vector<1x4x4x200xf32>
    %151 = vector.shape_cast %150 : vector<1x4x4x200xf32> to vector<16x200xf32>
    %cst_73 = arith.constant dense<0.000000e+00> : vector<16x8xf32>
    %152 = tpu.matmul %151, %121, %cst_73 {dimension_numbers = #tpu.dot_dimension_numbers<[1], [0], [0], [1], [0, 0, 1, 1], [], []>} : vector<16x200xf32>, vector<200x8xf32>, vector<16x8xf32> -> vector<16x8xf32>
    %153 = vector.broadcast %122 : vector<1x8xf32> to vector<16x8xf32>
    %154 = arith.addf %152, %153 : vector<16x8xf32>
    %cst_74 = arith.constant 0.000000e+00 : f32
    %155 = vector.broadcast %cst_74 : f32 to vector<16x8xf32>
    %156 = arith.maximumf %154, %155 : vector<16x8xf32>
    %157 = vector.shape_cast %156 : vector<16x8xf32> to vector<1x4x4x8xf32>
    %c0_75 = arith.constant 0 : index
    %c0_76 = arith.constant 0 : index
    %c0_77 = arith.constant 0 : index
    %c0_78 = arith.constant 0 : index
    %158 = vector.load %arg10[%c0_75, %c0_76, %c0_77, %c0_78] : memref<1x4x4x8xf32, #tpu.memory_space<vmem>>, vector<1x4x4x8xf32>
    tpu.vector_store %arg10[%c0_75, %c0_76, %c0_77, %c0_78], %157 {strides = array<i32>} : memref<1x4x4x8xf32, #tpu.memory_space<vmem>>, vector<1x4x4x8xf32>,
    return
  }
  func.func @transform_0(%arg0: i32) -> (i32, i32, i32, i32) {
    %c0_i32 = arith.constant 0 : i32
    %c0_i32_0 = arith.constant 0 : i32
    %c0_i32_1 = arith.constant 0 : i32
    %c0_i32_2 = arith.constant 0 : i32
    return %arg0, %c0_i32, %c0_i32_0, %c0_i32_1 : i32, i32, i32, i32
  }
  func.func @transform_1(%arg0: i32) -> (i32, i32) {
    %c0_i32 = arith.constant 0 : i32
    %c0_i32_0 = arith.constant 0 : i32
    %c0_i32_1 = arith.constant 0 : i32
    return %c0_i32, %c0_i32_0 : i32, i32
  }
  func.func @transform_2(%arg0: i32) -> (i32, i32) {
    %c0_i32 = arith.constant 0 : i32
    %c0_i32_0 = arith.constant 0 : i32
    %c0_i32_1 = arith.constant 0 : i32
    return %c0_i32, %c0_i32_0 : i32, i32
  }
  func.func @transform_3(%arg0: i32) -> (i32, i32, i32) {
    %c0_i32 = arith.constant 0 : i32
    %c0_i32_0 = arith.constant 0 : i32
    %c0_i32_1 = arith.constant 0 : i32
    %c0_i32_2 = arith.constant 0 : i32
    return %c0_i32, %c0_i32_0, %c0_i32_1 : i32, i32, i32
  }
  func.func @transform_4(%arg0: i32) -> (i32, i32, i32) {
    %c0_i32 = arith.constant 0 : i32
    %c0_i32_0 = arith.constant 0 : i32
    %c0_i32_1 = arith.constant 0 : i32
    %c0_i32_2 = arith.constant 0 : i32
    return %c0_i32, %c0_i32_0, %c0_i32_1 : i32, i32, i32
  }
  func.func @transform_5(%arg0: i32) -> (i32, i32) {
    %c0_i32 = arith.constant 0 : i32
    %c0_i32_0 = arith.constant 0 : i32
    %c0_i32_1 = arith.constant 0 : i32
    return %c0_i32, %c0_i32_0 : i32, i32
  }
  func.func @transform_6(%arg0: i32) -> (i32, i32) {
    %c0_i32 = arith.constant 0 : i32
    %c0_i32_0 = arith.constant 0 : i32
    %c0_i32_1 = arith.constant 0 : i32
    return %c0_i32, %c0_i32_0 : i32, i32
  }
  func.func @transform_7(%arg0: i32) -> (i32, i32) {
    %c0_i32 = arith.constant 0 : i32
    %c0_i32_0 = arith.constant 0 : i32
    %c0_i32_1 = arith.constant 0 : i32
    return %c0_i32, %c0_i32_0 : i32, i32
  }
  func.func @transform_8(%arg0: i32) -> (i32, i32) {
    %c0_i32 = arith.constant 0 : i32
    %c0_i32_0 = arith.constant 0 : i32
    %c0_i32_1 = arith.constant 0 : i32
    return %c0_i32, %c0_i32_0 : i32, i32
  }
  func.func @transform_9(%arg0: i32) -> (i32, i32, i32, i32) {
    %c0_i32 = arith.constant 0 : i32
    %c0_i32_0 = arith.constant 0 : i32
    %c0_i32_1 = arith.constant 0 : i32
    %c0_i32_2 = arith.constant 0 : i32
    return %arg0, %c0_i32, %c0_i32_0, %c0_i32_1 : i32, i32, i32, i32
  }
}

</mosaic_0001>

<bundles_post_ra>
// kernel: tpu_custom_call.1
= control target key start
LH: loop header
LB: loop body
LE: loop exit
PB: predicated region body
PF: predicated region fallthrough
CT: control target
= control target key end

     0   :  { %s15237_s0 = inlined_call_operand.vmem [shape: f32[2,16,16,14], index: 0, kind: input, shape index: {}]   ;;  %s15238_s1 = inlined_call_operand.vmem [shape: f32[350,5], index: 1, kind: input, shape index: {}]   ;;  %s15239_s2 = inlined_call_operand.vmem [shape: f32[1,5], index: 2, kind: input, shape index: {}]   ;;  %s15240_s3 = inlined_call_operand.vmem [shape: f32[4,4,5], index: 3, kind: input, shape index: {}]   ;;  %s15241_s4 = inlined_call_operand.vmem [shape: f32[4,4,5], index: 4, kind: input, shape index: {}]   ;;  %s15242_s5 = inlined_call_operand.vmem [shape: f32[125,8], index: 5, kind: input, shape index: {}]   ;;  %s15243_s6 = inlined_call_operand.vmem [shape: f32[1,8], index: 6, kind: input, shape index: {}]   ;;  %s15244_s7 = inlined_call_operand.vmem [shape: f32[200,8], index: 7, kind: input, shape index: {}]   ;;  %s15245_s8 = inlined_call_operand.vmem [shape: f32[1,8], index: 8, kind: input, shape index: {}]   ;;  %s15246_s9 = inlined_call_operand.hbm [shape: f32[2,4,4,8], index: 9, kind: output, shape index: {}]  }
   0x1   :  { %15786 = sst [smem:[#allocation346_spill]] %s15237_s0 }
   0x2   :  { %14 = vsyncpa [#allocation6], 0 }
   0x3   :  { %16 = vsyncpa [#allocation6 + $0x1], 0  ;;  %s7985_s30 = smov 0   ;;  %s7987_s10 = smov 0  }
   0x4   :  { %s7989_s11 = smov 0   ;;  %s7991_s12 = smov 0  }
   0x5 LB: > { %s8006_s13 = sadd.s32 4294967295, %s7890_s12   ;;  %s6774_s14 = sadd.s32 4294967294, %s7890_s12   ;;  %s7890_s12 = sphi %s7991_s12, %s17163_s12   ;;  %s7886_s11 = sphi %s7989_s11, %s17162_s11   ;;  %s7882_s10 = sphi %s7987_s10, %s17161_s10   ;;  %s7878_s30 = sphi %s7985_s30, %s17160_s30  }
   0x6   : > { %s8010_s15 = sadd.s32 1, %s7890_s12   ;;  %s223_s16 = sadd.s32 1, %s7886_s11 }
   0x7   : > { %s220_s17 = ssub.s32 %s7890_s12, %s8010_s15  ;;  %p233_p0 = scmp.ne.s32.totalorder %s7886_s11, %s7882_s10 }
   0x8   : > { %p221_p1 = scmp.eq.s32.totalorder %s220_s17, 0  ;;  %p234_p2 = scmp.eq.s32.totalorder %s8006_s13, 1 }
   0x9   : > { %p239_p3 = scmp.ne.s32.totalorder %s7882_s10, %s7878_s30  ;;  %p240_p4 = scmp.eq.s32.totalorder %s6774_s14, 1 }
   0xa   : > { %s8021_s18 = scalar_select %p221_p1, %s7886_s11, %s223_s16  }
   0xb   : > { %p8023_p5 = por %p234_p2, %p233_p0  ;;  %p8027_p6 = por %p240_p4, %p239_p3 }
   0xc   : > { %15787 = sst [smem:[#allocation8_spill]] %s8021_s18  ;;  %p6777_p7 = scmp.ge.s32.totalorder %s7890_s12, 1 }
   0xd   : > { %p290_p8 = scmp.lt.s32.totalorder %s7890_s12, 3 }
   0xf   : > { %p291_p9 = pnand %p6777_p7, %p290_p8 }
  0x11   : > { %294 = sbr.rel (%p291_p9) target bundleno = 3395 (0xd43), region = 56 }
  0x16   : > { %vm331_vm0 = vcmask 113664   ;;  %vm334_vm1 = vcmask 109568   ;;  %v15247_v0 = vmov 0.0   ;;  %vm15776_vm2 = vcmask 1046528   ;;  %s7893_s21 = smov 14   ;;  %p326_p10 = scmp.lt.s32.totalorder %s8006_s13, 1 }
  0x17   : > { %332 = vst.msk [vmem:[#allocation2] sm:$0xff] %vm331_vm0, %v15247_v0  ;;  %s15791_s0 = sld [smem:[#allocation346_spill]]  ;;  %vm15772_vm3 = vcmask 1045504   ;;  %s7894_s27 = smov 28   ;;  %vm15756_vm4 = vcmask 1044480   ;;  %vm15754_vm5 = vcmask 1043456  }
  0x18   : > { %333 = vst.msk [vmem:[#allocation2 + $0x8] sm:$0xff] %vm331_vm0, %v15247_v0  ;;  %s327_s22 = scalar_select %p326_p10, %s8006_s13, 1  ;;  %vm2455_vm6 = vcmask 228352   ;;  %vm15774_vm7 = vcmask 343040   ;;  %vm15781_vm8 = vcmask 457728   ;;  %vm2554_vm9 = vcmask 572416  }
  0x19   : > { %335 = vst.msk [vmem:[#allocation2 + $0x10] sm:$0xf] %vm334_vm1, %v15247_v0  ;;  %s15765_s28 = smov 42   ;;  %s15763_s29 = smov 56   ;;  %vm2620_vm10 = vcmask 801792   ;;  %vm2587_vm11 = vcmask 687104  }
  0x1a   : > { %336 = vst.msk [vmem:[#allocation2 + $0x18] sm:$0xff] %vm331_vm0, %v15247_v0  ;;  %s6828_s23 = sshll.u32 %s327_s22, 8  ;;  %s15599_s14 = smov 70   ;;  %vm15779_vm12 = vcmask 916480   ;;  %vm2686_vm13 = vcmask 1031168   ;;  %vm2719_vm14 = vcmask 97280  }
  0x1b   : > { %337 = vst.msk [vmem:[#allocation2 + $0x20] sm:$0xff] %vm331_vm0, %v15247_v0  ;;  %s15601_s16 = smov 84   ;;  %s15605_s17 = smov 98   ;;  %vm2752_vm15 = vcmask 211968  }
  0x1c   : > { %338 = vst.msk [vmem:[#allocation2 + $0x28] sm:$0xf] %vm334_vm1, %v15247_v0  ;;  %s15597_s22 = smov 112   ;;  %s7902_s24 = smov 12  }
  0x1d   : > { %339 = vst.msk [vmem:[#allocation2 + $0x30] sm:$0xff] %vm331_vm0, %v15247_v0  ;;  %s8175_s26 = scalar_lea.vmem %s15791_s0, %s6828_s23  ;;  %s7901_s23 = smov 126  }
  0x1e   : > { %v8047_v1 = vld [vmem:[#allocation2] sm:$0xff]  ;;  %340 = vst.msk [vmem:[#allocation2 + $0x38] sm:$0xff] %vm331_vm0, %v15247_v0  ;;  %v395_v19 = vld [vmem:[%s8175_s26 + $0x10] sm:$0xff]  ;;  %v396_v20 = vld [vmem:[%s8175_s26 + $0x18] sm:$0xff]  ;;  %s15767_s25 = smov 96   ;;  %s16859_s0 = smov 96  }
  0x1f   : > { %v8051_v2 = vld [vmem:[#allocation2 + $0x8] sm:$0xff]  ;;  %v612_v3 = vrot.slane %v8047_v1, 1  ;;  %341 = vst.msk [vmem:[#allocation2 + $0x40] sm:$0xf] %vm334_vm1, %v15247_v0  ;;  %v393_v21 = vld [vmem:[%s8175_s26] sm:$0xff]  ;;  %v394_v22 = vld [vmem:[%s8175_s26 + $0x8] sm:$0xff] }
  0x20   : > { %v8056_v4 = vld [vmem:[#allocation2 + $0x10] sm:$0xf]  ;;  %v613_v5 = vrot.slane %v8051_v2, 1  ;;  %342 = vst.msk [vmem:[#allocation2 + $0x48] sm:$0xff] %vm331_vm0, %v15247_v0  ;;  %v397_v23 = vld [vmem:[%s8175_s26 + $0x20] sm:$0xff]  ;;  %v398_v24 = vld [vmem:[%s8175_s26 + $0x28] sm:$0xff] }
  0x21   : > { %v615_v6 = vrot.slane %v8056_v4, 1  ;;  %343 = vst.msk [vmem:[#allocation2 + $0x50] sm:$0xff] %vm331_vm0, %v15247_v0  ;;  %v8127_v10 = vld [vmem:[#allocation2 + $0x18] sm:$0xff]  ;;  %v399_v25 = vld [vmem:[%s8175_s26 + $0x30] sm:$0xff]  ;;  %v400_v26 = vld [vmem:[%s8175_s26 + $0x38] sm:$0xff]  ;;  %s7914_s18 = smov 25  }
  0x22   : > { %v614_v7 = vsel %vm15776_vm2, %v612_v3, %v613_v5  ;;  %344 = vst.msk [vmem:[#allocation2 + $0x58] sm:$0xf] %vm334_vm1, %v15247_v0  ;;  %v8129_v11 = vld [vmem:[#allocation2 + $0x20] sm:$0xff]  ;;  %v617_v13 = vrot.slane %v8127_v10, 1  ;;  %v401_v27 = vld [vmem:[%s8175_s26 + $0x40] sm:$0xff]  ;;  %v403_v29 = vld [vmem:[%s8175_s26 + $0x50] sm:$0xff] }
  0x23   : > { %v616_v8 = vsel %vm15776_vm2, %v613_v5, %v615_v6  ;;  %345 = vst.msk [vmem:[#allocation2 + $0x60] sm:$0xff] %vm331_vm0, %v15247_v0  ;;  %v8131_v12 = vld [vmem:[#allocation2 + $0x28] sm:$0xf]  ;;  %v618_v14 = vrot.slane %v8129_v11, 1  ;;  %v402_v28 = vld [vmem:[%s8175_s26 + $0x48] sm:$0xff]  ;;  %v404_v32 = vld [vmem:[%s8175_s26 + $0x58] sm:$0xff] }
  0x24   : > { %v6956_v9 = vpack.i.bf16 %v616_v8, %v614_v7  ;;  %346 = vst.msk [vmem:[#allocation2 + $0x68] sm:$0xff] %vm331_vm0, %v15247_v0  ;;  %v620_v15 = vrot.slane %v8131_v12, 1  ;;  %v405_v36 = vld [vmem:[%s8175_s26 + $0x60] sm:$0xff]  ;;  %v406_v40 = vld [vmem:[%s8175_s26 + $0x68] sm:$0xff]  ;;  %v407_v45 = vld [vmem:[%s8175_s26 + $0x70] sm:$0xff] }
  0x25   : > { %347 = vst.msk [vmem:[#allocation2 + $0x70] sm:$0xf] %vm334_vm1, %v15247_v0  ;;  %v619_v16 = vsel %vm15776_vm2, %v617_v13, %v618_v14  ;;  %v408_v49 = vld [vmem:[%s8175_s26 + $0x78] sm:$0xff]  ;;  %v409_v54 = vld [vmem:[%s8175_s26 + $0x80] sm:$0xff]  ;;  %v410_v57 = vld [vmem:[%s8175_s26 + $0x88] sm:$0xff] }
  0x26   : > { %6957 = vrot.lane.b32.xlu0 %v6956_v9, %s7893_s21  ;;  %348 = vst.msk [vmem:[#allocation2 + $0x78] sm:$0xff] %vm331_vm0, %v15247_v0  ;;  %v621_v17 = vsel %vm15776_vm2, %v618_v14, %v620_v15  ;;  %v411_v7 = vld [vmem:[%s8175_s26 + $0x90] sm:$0xff]  ;;  %v412_v8 = vld [vmem:[%s8175_s26 + $0x98] sm:$0xff] }
  0x27   : > { %349 = vst.msk [vmem:[#allocation2 + $0x80] sm:$0xff] %vm331_vm0, %v15247_v0  ;;  %v8147_v18 = vpack.i.bf16 %v621_v17, %v619_v16 }
  0x28   : > { %350 = vst.msk [vmem:[#allocation2 + $0x88] sm:$0xf] %vm334_vm1, %v15247_v0 }
  0x29   : > { %351 = vst.msk [vmem:[#allocation2 + $0x90] sm:$0xff] %vm331_vm0, %v15247_v0 }
  0x2a   : > { %352 = vst.msk [vmem:[#allocation2 + $0x98] sm:$0xff] %vm331_vm0, %v15247_v0 }
  0x2b   : > { %353 = vst.msk [vmem:[#allocation2 + $0xa0] sm:$0xf] %vm334_vm1, %v15247_v0 }
  0x2c   : > { %354 = vst.msk [vmem:[#allocation2 + $0xa8] sm:$0xff] %vm331_vm0, %v15247_v0 }
  0x2d   : > { %355 = vst.msk [vmem:[#allocation2 + $0xb0] sm:$0xff] %vm331_vm0, %v15247_v0 }
  0x2e   : > { %356 = vst.msk [vmem:[#allocation2 + $0xb8] sm:$0xf] %vm334_vm1, %v15247_v0  ;;  %6962 = vrot.lane.b32.xlu0 %v8147_v18, %s7893_s21 }
  0x2f   : > { %357 = vst.msk [vmem:[#allocation2 + $0xc0] sm:$0xff] %vm331_vm0, %v15247_v0 }
  0x30   : > { %358 = vst.msk [vmem:[#allocation2 + $0xc8] sm:$0xff] %vm331_vm0, %v15247_v0 }
  0x31   : > { %359 = vst.msk [vmem:[#allocation2 + $0xd0] sm:$0xf] %vm334_vm1, %v15247_v0 }
  0x32   : > { %360 = vst.msk [vmem:[#allocation2 + $0xd8] sm:$0xff] %vm331_vm0, %v15247_v0 }
  0x33   : > { %361 = vst.msk [vmem:[#allocation2 + $0xe0] sm:$0xff] %vm331_vm0, %v15247_v0 }
  0x34   : > { %362 = vst.msk [vmem:[#allocation2 + $0xe8] sm:$0xf] %vm334_vm1, %v15247_v0 }
  0x35   : > { %363 = vst.msk [vmem:[#allocation2 + $0xf0] sm:$0xff] %vm331_vm0, %v15247_v0 }
  0x36   : > { %364 = vst.msk [vmem:[#allocation2 + $0xf8] sm:$0xff] %vm331_vm0, %v15247_v0 }
  0x37   : > { %365 = vst.msk [vmem:[#allocation2 + $0x100] sm:$0xf] %vm334_vm1, %v15247_v0 }
  0x38   : > { %366 = vst.msk [vmem:[#allocation2 + $0x108] sm:$0xff] %vm331_vm0, %v15247_v0 }
  0x39   : > { %367 = vst.msk [vmem:[#allocation2 + $0x110] sm:$0xff] %vm331_vm0, %v15247_v0 }
  0x3a   : > { %368 = vst.msk [vmem:[#allocation2 + $0x118] sm:$0xf] %vm334_vm1, %v15247_v0 }
  0x3b   : > { %369 = vst.msk [vmem:[#allocation2 + $0x120] sm:$0xff] %vm331_vm0, %v15247_v0 }
  0x3c   : > { %370 = vst.msk [vmem:[#allocation2 + $0x128] sm:$0xff] %vm331_vm0, %v15247_v0 }
  0x3d   : > { %371 = vst.msk [vmem:[#allocation2 + $0x130] sm:$0xf] %vm334_vm1, %v15247_v0 }
  0x3e   : > { %372 = vst.msk [vmem:[#allocation2 + $0x138] sm:$0xff] %vm331_vm0, %v15247_v0 }
  0x3f   : > { %373 = vst.msk [vmem:[#allocation2 + $0x140] sm:$0xff] %vm331_vm0, %v15247_v0 }
  0x40   : > { %374 = vst.msk [vmem:[#allocation2 + $0x148] sm:$0xf] %vm334_vm1, %v15247_v0 }
  0x41   : > { %375 = vst.msk [vmem:[#allocation2 + $0x150] sm:$0xff] %vm331_vm0, %v15247_v0 }
  0x42   : > { %376 = vst.msk [vmem:[#allocation2 + $0x158] sm:$0xff] %vm331_vm0, %v15247_v0 }
  0x43   : > { %377 = vst.msk [vmem:[#allocation2 + $0x160] sm:$0xf] %vm334_vm1, %v15247_v0 }
  0x44   : > { %15790 = vst [vmem:[#allocation9_spill] sm:$0xff] %v8147_v18 }
  0x45   : > { %378 = vst.msk [vmem:[#allocation2 + $0x168] sm:$0xff] %vm331_vm0, %v15247_v0 }
  0x46   : > { %379 = vst.msk [vmem:[#allocation2 + $0x170] sm:$0xff] %vm331_vm0, %v15247_v0 }
  0x47   : > { %380 = vst.msk [vmem:[#allocation2 + $0x178] sm:$0xf] %vm334_vm1, %v15247_v0 }
  0x48   : > { %381 = vst.msk [vmem:[#allocation2 + $0x180] sm:$0xff] %vm331_vm0, %v15247_v0 }
  0x49   : > { %382 = vst.msk [vmem:[#allocation2 + $0x188] sm:$0xff] %vm331_vm0, %v15247_v0 }
  0x4a   : > { %383 = vst.msk [vmem:[#allocation2 + $0x190] sm:$0xf] %vm334_vm1, %v15247_v0 }
  0x4b   : > { %384 = vst.msk [vmem:[#allocation2 + $0x198] sm:$0xff] %vm331_vm0, %v15247_v0 }
  0x4c   : > { %385 = vst.msk [vmem:[#allocation2 + $0x1a0] sm:$0xff] %vm331_vm0, %v15247_v0 }
  0x4d   : > { %386 = vst.msk [vmem:[#allocation2 + $0x1a8] sm:$0xf] %vm334_vm1, %v15247_v0 }
  0x4e   : > { %387 = vst.msk [vmem:[#allocation2 + $0x1b0] sm:$0xff] %vm331_vm0, %v15247_v0 }
  0x4f   : > { %388 = vst.msk [vmem:[#allocation2 + $0x1b8] sm:$0xff] %vm331_vm0, %v15247_v0 }
  0x50   : > { %389 = vst.msk [vmem:[#allocation2 + $0x1c0] sm:$0xf] %vm334_vm1, %v15247_v0 }
  0x51   : > { %390 = vst.msk [vmem:[#allocation2 + $0x1c8] sm:$0xff] %vm331_vm0, %v15247_v0 }
  0x52   : > { %391 = vst.msk [vmem:[#allocation2 + $0x1d0] sm:$0xff] %vm331_vm0, %v15247_v0 }
  0x53   : > { %392 = vst.msk [vmem:[#allocation2 + $0x1d8] sm:$0xf] %vm334_vm1, %v15247_v0  ;;  %vm2785_vm1 = vcmask 326656  }
  0x54   : > { %428 = vst.msk [vmem:[#allocation2 + $0x4a] sm:$0xff] %vm331_vm0, %v395_v19  ;;  %v413_v19 = vld [vmem:[%s8175_s26 + $0xa0] sm:$0xff] }
  0x55   : > { %429 = vst.msk [vmem:[#allocation2 + $0x52] sm:$0xff] %vm331_vm0, %v396_v20  ;;  %v414_v20 = vld [vmem:[%s8175_s26 + $0xa8] sm:$0xff] }
  0x56   : > { %426 = vst.msk [vmem:[#allocation2 + $0x32] sm:$0xff] %vm331_vm0, %v393_v21 }
  0x57   : > { %427 = vst.msk [vmem:[#allocation2 + $0x3a] sm:$0xff] %vm331_vm0, %v394_v22 }
  0x58   : > { %430 = vst.msk [vmem:[#allocation2 + $0x62] sm:$0xff] %vm331_vm0, %v397_v23 }
  0x59   : > { %431 = vst.msk [vmem:[#allocation2 + $0x6a] sm:$0xff] %vm331_vm0, %v398_v24 }
  0x5a   : > { %432 = vst.msk [vmem:[#allocation2 + $0x7a] sm:$0xff] %vm331_vm0, %v399_v25 }
  0x5b   : > { %433 = vst.msk [vmem:[#allocation2 + $0x82] sm:$0xff] %vm331_vm0, %v400_v26  ;;  %v8255_v56 = vld [vmem:[#allocation2 + $0x48] sm:$0xff] }
  0x5c   : > { %v8206_v30 = vld [vmem:[#allocation2 + $0x50] sm:$0xff]  ;;  %v8208_v31 = vld [vmem:[#allocation2 + $0x58] sm:$0xf]  ;;  %434 = vst.msk [vmem:[#allocation2 + $0x92] sm:$0xff] %vm331_vm0, %v401_v27  ;;  %v627_v62 = vrot.slane %v8255_v56, 1  ;;  %v415_v26 = vld [vmem:[%s8175_s26 + $0xb0] sm:$0xff] }
  0x5d   : > { %15792 = vst [vmem:[#allocation10_spill] sm:$0xff] %v8208_v31  ;;  %v628_v33 = vrot.slane %v8206_v30, 1  ;;  %v15249_v34 = vrot.slane %v8208_v31, 1  ;;  %v8214_v35 = vld [vmem:[#allocation2 + $0x30] sm:$0xff] }
  0x5e   : > { %435 = vst.msk [vmem:[#allocation2 + $0x9a] sm:$0xff] %vm331_vm0, %v402_v28  ;;  %v8218_v37 = vld [vmem:[#allocation2 + $0x38] sm:$0xff]  ;;  %v8220_v38 = vld [vmem:[#allocation2 + $0x40] sm:$0xf]  ;;  %v622_v39 = vrot.slane %v8214_v35, 1  ;;  %v416_v27 = vld [vmem:[%s8175_s26 + $0xb8] sm:$0xff] }
  0x5f   : > { %15793 = vst [vmem:[#allocation11_spill] sm:$0xff] %v8218_v37  ;;  %v8228_v41 = vsel %vm15776_vm2, %v628_v33, %v15249_v34  ;;  %v623_v42 = vrot.slane %v8218_v37, 1  ;;  %v625_v43 = vrot.slane %v8220_v38, 1  ;;  %v8232_v44 = vld [vmem:[#allocation2 + $0x60] sm:$0xff]  ;;  %v8291_v9 = vsel %vm15776_vm2, %v627_v62, %v628_v33 }
  0x60   : > { %15794 = vst [vmem:[#allocation12_spill] sm:$0xff] %v8220_v38  ;;  %706 = vrot.lane.b32.xlu2 %v8228_v41, %s7893_s21  ;;  %v8238_v46 = vld [vmem:[#allocation2 + $0x68] sm:$0xff]  ;;  %v632_v47 = vrot.slane %v8232_v44, 1  ;;  %v8241_v48 = vld [vmem:[#allocation2 + $0x70] sm:$0xf] }
  0x61   : > { %436 = vst.msk [vmem:[#allocation2 + $0xaa] sm:$0xff] %vm331_vm0, %v403_v29  ;;  %v624_v50 = vsel %vm15776_vm2, %v622_v39, %v623_v42  ;;  %v626_v51 = vsel %vm15776_vm2, %v623_v42, %v625_v43  ;;  %v633_v52 = vrot.slane %v8238_v46, 1  ;;  %v8249_v53 = vrot.slane %v8241_v48, 1  ;;  %v8300_v16 = vld [vmem:[#allocation2 + $0x78] sm:$0xff] }
  0x62   : > { %15795 = vst [vmem:[#allocation13_spill] sm:$0xff] %v8228_v41  ;;  %v8253_v55 = vpack.i.bf16 %v626_v51, %v624_v50  ;;  %v8280_v5 = vld [vmem:[#allocation2 + $0x80] sm:$0xff]  ;;  %v8282_v6 = vld [vmem:[#allocation2 + $0x88] sm:$0xf]  ;;  %v637_v23 = vrot.slane %v8300_v16, 1  ;;  %v417_v51 = vld [vmem:[%s8175_s26 + $0xc0] sm:$0xff] }
  0x63   : > { %437 = vst.msk [vmem:[#allocation2 + $0xb2] sm:$0xff] %vm331_vm0, %v404_v32  ;;  %v8261_v58 = vsel %vm15776_vm2, %v633_v52, %v8249_v53  ;;  %v8263_v59 = vld [vmem:[#allocation2 + $0x90] sm:$0xff]  ;;  %v8274_v61 = vsel %vm15776_vm2, %v632_v47, %v633_v52  ;;  %v638_v13 = vrot.slane %v8280_v5, 1  ;;  %v8295_v14 = vrot.slane %v8282_v6, 1  ;;  %v418_v52 = vld [vmem:[%s8175_s26 + $0xc8] sm:$0xff] }
  0x64   : > { %438 = vst.msk [vmem:[#allocation2 + $0xc2] sm:$0xff] %vm331_vm0, %v405_v36  ;;  %6967 = vrot.lane.b32.xlu1 %v8253_v55, %s7893_s21  ;;  %710 = vrot.lane.b32.xlu0 %v8261_v58, %s7893_s21  ;;  %v642_v63 = vrot.slane %v8263_v59, 1 }
  0x65   : > { %15796 = vst [vmem:[#allocation14_spill] sm:$0xff] %v8249_v53  ;;  %v8270_v60 = vld [vmem:[#allocation2 + $0x98] sm:$0xff]  ;;  %v8316_v22 = vsel %vm15776_vm2, %v638_v13, %v8295_v14  ;;  %v8332_v29 = vsel %vm15776_vm2, %v637_v23, %v638_v13  ;;  %v8339_v36 = vld [vmem:[#allocation2 + $0xa0] sm:$0xf]  ;;  %v419_v13 = vld [vmem:[%s8175_s26 + $0xd0] sm:$0xff]  ;;  %v794_v53 = vrot.slane %v8127_v10, 2 }
  0x66   : > { %439 = vst.msk [vmem:[#allocation2 + $0xca] sm:$0xff] %vm331_vm0, %v406_v40  ;;  %v643_v3 = vrot.slane %v8270_v60, 1  ;;  %v8353_v43 = vrot.slane %v8339_v36, 1 }
  0x67   : > { %15797 = vst [vmem:[#allocation15_spill] sm:$0xff] %v8253_v55 }
  0x68   : > { %440 = vst.msk [vmem:[#allocation2 + $0xda] sm:$0xff] %vm331_vm0, %v407_v45  ;;  %708 = vrot.lane.b32.xlu2 %v8274_v61, %s7893_s21  ;;  %v8298_v15 = vsel %vm15776_vm2, %v642_v63, %v643_v3  ;;  %v8322_v25 = vld [vmem:[#allocation2 + $0xa8] sm:$0xff] }
  0x69   : > { %15798 = vst [vmem:[#allocation16_spill] sm:$0xff] %v8261_v58  ;;  %v647_v32 = vrot.slane %v8322_v25, 1 }
  0x6a   : > { %441 = vst.msk [vmem:[#allocation2 + $0xe2] sm:$0xff] %vm331_vm0, %v408_v49  ;;  %v8302_v17 = vld [vmem:[#allocation2 + $0xb8] sm:$0xf]  ;;  %v8311_v21 = vld [vmem:[#allocation2 + $0xb0] sm:$0xff] }
  0x6b   : > { %442 = vst.msk [vmem:[#allocation2 + $0xf2] sm:$0xff] %vm331_vm0, %v409_v54  ;;  %v8320_v24 = vrot.slane %v8302_v17, 1  ;;  %v648_v28 = vrot.slane %v8311_v21, 1  ;;  %v8369_v54 = vsel %vm15776_vm2, %v643_v3, %v8353_v43  ;;  %v8375_v63 = vld [vmem:[#allocation2 + $0xc0] sm:$0xff] }
  0x6c   : > { %15799 = vst [vmem:[#allocation17_spill] sm:$0xff] %v8274_v61  ;;  %704 = vrot.lane.b32.xlu1 %v8291_v9, %s7893_s21  ;;  %716 = vrot.lane.b32.xlu0 %v8298_v15, %s7893_s21  ;;  %v652_v23 = vrot.slane %v8375_v63, 1 }
  0x6d   : > { %443 = vst.msk [vmem:[#allocation2 + $0xfa] sm:$0xff] %vm331_vm0, %v410_v57  ;;  %v8337_v33 = vsel %vm15776_vm2, %v648_v28, %v8320_v24  ;;  %v8350_v42 = vsel %vm15776_vm2, %v647_v32, %v648_v28  ;;  %v8355_v45 = vld [vmem:[#allocation2 + $0xc8] sm:$0xff]  ;;  %v8359_v50 = vld [vmem:[#allocation2 + $0xd0] sm:$0xf] }
  0x6e   : > { %444 = vst.msk [vmem:[#allocation2 + $0x10a] sm:$0xff] %vm331_vm0, %v411_v7  ;;  %v653_v57 = vrot.slane %v8355_v45, 1  ;;  %v8373_v62 = vrot.slane %v8359_v50, 1 }
  0x6f   : > { %445 = vst.msk [vmem:[#allocation2 + $0x112] sm:$0xff] %vm331_vm0, %v412_v8  ;;  %v8341_v39 = vld [vmem:[#allocation2 + $0xd8] sm:$0xff] }
  0x70   : > { %15800 = vst [vmem:[#allocation18_spill] sm:$0xff] %v8291_v9  ;;  %714 = vrot.lane.b32.xlu2 %v8316_v22, %s7893_s21  ;;  %v657_v47 = vrot.slane %v8341_v39, 1  ;;  %v8406_v32 = vsel %vm15776_vm2, %v652_v23, %v653_v57 }
  0x71   : > { %15801 = vst [vmem:[#allocation19_spill] sm:$0xff] %v8295_v14  ;;  %v8343_v40 = vld [vmem:[#allocation2 + $0xe0] sm:$0xff]  ;;  %v795_v14 = vrot.slane %v8129_v11, 2 }
  0x72   : > { %15802 = vst [vmem:[#allocation20_spill] sm:$0xff] %v8298_v15  ;;  %v658_v49 = vrot.slane %v8343_v40, 1 }
  0x73   : > { %446 = vst.msk [vmem:[#allocation2 + $0x122] sm:$0xff] %vm331_vm0, %v413_v19  ;;  %v420_v19 = vld [vmem:[%s8175_s26 + $0xd8] sm:$0xff] }
  0x74   : > { %447 = vst.msk [vmem:[#allocation2 + $0x12a] sm:$0xff] %vm331_vm0, %v414_v20  ;;  %712 = vrot.lane.b32.xlu1 %v8332_v29, %s7893_s21  ;;  %722 = vrot.lane.b32.xlu0 %v8337_v33, %s7893_s21  ;;  %v8378_v7 = vsel %vm15776_vm2, %v657_v47, %v658_v49  ;;  %v8380_v8 = vld [vmem:[#allocation2 + $0x100] sm:$0xf]  ;;  %v8389_v3 = vld [vmem:[#allocation2 + $0xf8] sm:$0xff]  ;;  %v8394_v20 = vsel %vm15776_vm2, %v653_v57, %v8373_v62 }
  0x75   : > { %15803 = vst [vmem:[#allocation21_spill] sm:$0xff] %v8316_v22  ;;  %v663_v28 = vrot.slane %v8389_v3, 1 }
  0x76   : > { %15804 = vst [vmem:[#allocation22_spill] sm:$0xff] %v8320_v24  ;;  %v8429_v23 = vld [vmem:[#allocation2 + $0x110] sm:$0xff]  ;;  %v8431_v34 = vld [vmem:[#allocation2 + $0x118] sm:$0xf] }
  0x77   : > { %448 = vst.msk [vmem:[#allocation2 + $0x13a] sm:$0xff] %vm331_vm0, %v415_v26  ;;  %v8398_v26 = vrot.slane %v8380_v8, 1 }
  0x78   : > { %449 = vst.msk [vmem:[#allocation2 + $0x142] sm:$0xff] %vm331_vm0, %v416_v27  ;;  %720 = vrot.lane.b32.xlu2 %v8350_v42, %s7893_s21  ;;  %v8400_v27 = vld [vmem:[#allocation2 + $0xf0] sm:$0xff] }
  0x79   : > { %15805 = vst [vmem:[#allocation23_spill] sm:$0xff] %v8332_v29  ;;  %v662_v47 = vrot.slane %v8400_v27, 1 }
  0x7a   : > { %15806 = vst [vmem:[#allocation24_spill] sm:$0xff] %v8337_v33 }
  0x7b   : > { %15807 = vst [vmem:[#allocation25_spill] sm:$0xff] %v8350_v42  ;;  %v8427_v57 = vsel %vm15776_vm2, %v662_v47, %v663_v28 }
  0x7c   : > { %15808 = vst [vmem:[#allocation26_spill] sm:$0xff] %v8353_v43  ;;  %718 = vrot.lane.b32.xlu1 %v8369_v54, %s7893_s21  ;;  %728 = vrot.lane.b32.xlu0 %v8378_v7, %s7893_s21 }
  0x7d   : > { %450 = vst.msk [vmem:[#allocation2 + $0x152] sm:$0xff] %vm331_vm0, %v417_v51  ;;  %v8409_v51 = vld [vmem:[#allocation2 + $0xe8] sm:$0xf] }
  0x7e   : > { %451 = vst.msk [vmem:[#allocation2 + $0x15a] sm:$0xff] %vm331_vm0, %v418_v52  ;;  %v8413_v52 = vsel %vm15776_vm2, %v663_v28, %v8398_v26  ;;  %v8422_v0 = vrot.slane %v8409_v51, 1  ;;  %v8443_v28 = vrot.slane %v8431_v34, 1  ;;  %v8470_v15 = vld [vmem:[#allocation2 + $0x138] sm:$0xff] }
  0x7f   : > { %15809 = vst [vmem:[#allocation27_spill] sm:$0xff] %v8369_v54 }
  0x80   : > { %15810 = vst [vmem:[#allocation28_spill] sm:$0xff] %v8373_v62  ;;  %726 = vrot.lane.b32.xlu2 %v8394_v20, %s7893_s21  ;;  %v8439_v24 = vsel %vm15776_vm2, %v658_v49, %v8422_v0  ;;  %v668_v62 = vrot.slane %v8429_v23, 1  ;;  %v796_v49 = vsel %vm15772_vm3, %v794_v53, %v795_v14 }
  0x81   : > { %15811 = vst [vmem:[#allocation29_spill] sm:$0xff] %v8378_v7  ;;  %v8451_v7 = vld [vmem:[#allocation2 + $0x108] sm:$0xff] }
  0x82   : > { %452 = vst.msk [vmem:[#allocation2 + $0x16a] sm:$0xff] %vm331_vm0, %v419_v13  ;;  %v8415_v13 = vld [vmem:[#allocation2 + $0x120] sm:$0xff] }
  0x83   : > { %453 = vst.msk [vmem:[#allocation2 + $0x172] sm:$0xff] %vm331_vm0, %v420_v19  ;;  %v8417_v19 = vld [vmem:[#allocation2 + $0x128] sm:$0xff] }
  0x84   : > { %15812 = vst [vmem:[#allocation30_spill] sm:$0xff] %v8394_v20  ;;  %724 = vrot.lane.b32.xlu1 %v8406_v32, %s7893_s21  ;;  %734 = vrot.lane.b32.xlu0 %v8413_v52, %s7893_s21  ;;  %v673_v43 = vrot.slane %v8417_v19, 1  ;;  %v667_v20 = vrot.slane %v8451_v7, 1  ;;  %v8527_v61 = vld [vmem:[#allocation2 + $0x150] sm:$0xff] }
  0x85   : > { %15813 = vst [vmem:[#allocation31_spill] sm:$0xff] %v8398_v26  ;;  %v672_v26 = vrot.slane %v8415_v13, 1 }
  0x86   : > { %15814 = vst [vmem:[#allocation32_spill] sm:$0xff] %v8406_v32  ;;  %v8467_v32 = vsel %vm15776_vm2, %v668_v62, %v8443_v28 }
  0x87   : > { %15815 = vst [vmem:[#allocation33_spill] sm:$0xff] %v8413_v52  ;;  %v8446_v47 = vsel %vm15776_vm2, %v672_v26, %v673_v43  ;;  %v797_v52 = vrot.slane %v8131_v12, 2  ;;  %v8461_v26 = vld [vmem:[#allocation2 + $0x140] sm:$0xff] }
  0x88   : > { %15816 = vst [vmem:[#allocation34_spill] sm:$0xff] %v8422_v0  ;;  %732 = vrot.lane.b32.xlu2 %v8427_v57, %s7893_s21 }
  0x89   : > { %15817 = vst [vmem:[#allocation35_spill] sm:$0xff] %v8427_v57  ;;  %v8453_v57 = vld [vmem:[#allocation2 + $0x148] sm:$0xf]  ;;  %v798_v0 = vsel %vm15772_vm3, %v795_v14, %v797_v52  ;;  %v678_v14 = vrot.slane %v8461_v26, 1  ;;  %v677_v52 = vrot.slane %v8470_v15, 1 }
  0x8a   : > { %15818 = vst [vmem:[#allocation36_spill] sm:$0xff] %v8439_v24  ;;  %v8463_v33 = vpack.i.bf16 %v798_v0, %v796_v49  ;;  %v8473_v53 = vrot.slane %v8453_v57, 1  ;;  %v8480_v0 = vsel %vm15776_vm2, %v667_v20, %v668_v62  ;;  %v8482_v49 = vld [vmem:[#allocation2 + $0x130] sm:$0xf]  ;;  %v8490_v54 = vld [vmem:[#allocation2 + $0x168] sm:$0xff] }
  0x8b   : > { %15819 = vst [vmem:[#allocation37_spill] sm:$0xff] %v8443_v28  ;;  %v8492_v42 = vld [vmem:[#allocation2 + $0x170] sm:$0xff]  ;;  %v8498_v62 = vsel %vm15776_vm2, %v677_v52, %v678_v14  ;;  %v8501_v20 = vrot.slane %v8482_v49, 1  ;;  %v8551_v41 = vld [vmem:[#allocation2 + $0x178] sm:$0xf] }
  0x8c   : > { %15820 = vst [vmem:[#allocation38_spill] sm:$0xff] %v8446_v47  ;;  %730 = vrot.lane.b32.xlu1 %v8439_v24, %s7893_s21  ;;  %740 = vrot.lane.b32.xlu0 %v8446_v47, %s7893_s21  ;;  %v8486_v28 = vsel %vm15776_vm2, %v678_v14, %v8473_v53  ;;  %v804_v47 = vrot.slane %v8255_v56, 2  ;;  %v805_v24 = vrot.slane %v8206_v30, 2  ;;  %v688_v58 = vrot.slane %v8492_v42, 1  ;;  %v8513_v14 = vld [vmem:[#allocation2 + $0x160] sm:$0xf] }
  0x8d   : > { %15821 = vst [vmem:[#allocation39_spill] sm:$0xff] %v8463_v33  ;;  %v8558_v9 = vrot.slane %v8551_v41, 1 }
  0x8e   : > { %15822 = vst [vmem:[#allocation40_spill] sm:$0xff] %v8467_v32  ;;  %v806_v29 = vsel %vm15772_vm3, %v804_v47, %v805_v24  ;;  %v8525_v47 = vrot.slane %v8513_v14, 1 }
  0x8f   : > { %15823 = vst [vmem:[#allocation41_spill] sm:$0xff] %v8473_v53  ;;  %v687_v53 = vrot.slane %v8490_v54, 1 }
  0x90   : > { %738 = vrot.lane.b32.xlu2 %v8467_v32, %s7893_s21  ;;  %15824 = vst [vmem:[#allocation42_spill] sm:$0xff] %v8480_v0  ;;  %v15306_v32 = vrot.slane %v8208_v31, 2 }
  0x91   : > { %15825 = vst [vmem:[#allocation43_spill] sm:$0xff] %v8486_v28 }
  0x92   : > { %15826 = vst [vmem:[#allocation44_spill] sm:$0xff] %v8498_v62  ;;  %v808_v22 = vsel %vm15772_vm3, %v805_v24, %v15306_v32  ;;  %v8530_v24 = vsel %vm15776_vm2, %v687_v53, %v688_v58  ;;  %v682_v32 = vrot.slane %v8527_v61, 1 }
  0x93   : > { %15827 = vst [vmem:[#allocation45_spill] sm:$0xff] %v8501_v20  ;;  %v8515_v52 = vpack.i.bf16 %v808_v22, %v806_v29 }
  0x94   : > { %736 = vrot.lane.b32.xlu1 %v8480_v0, %s7893_s21  ;;  %746 = vrot.lane.b32.xlu0 %v8486_v28, %s7893_s21  ;;  %v8511_v0 = vld [vmem:[#allocation2 + $0x158] sm:$0xff]  ;;  %v8521_v28 = vsel %vm15776_vm2, %v673_v43, %v8501_v20  ;;  %15830 = vst [vmem:[#allocation48_spill] sm:$0xff] %v8525_v47  ;;  %v789_v20 = vrot.slane %v8047_v1, 2 }
  0x95   : > { %15828 = vst [vmem:[#allocation46_spill] sm:$0xff] %v8515_v52  ;;  %v683_v55 = vrot.slane %v8511_v0, 1  ;;  %v790_v52 = vrot.slane %v8051_v2, 2 }
  0x96   : > { %15829 = vst [vmem:[#allocation47_spill] sm:$0xff] %v8521_v28 }
  0x97   : > { %15831 = vst [vmem:[#allocation49_spill] sm:$0xff] %v8530_v24  ;;  %v8539_v43 = vsel %vm15776_vm2, %v683_v55, %v8525_v47  ;;  %v8547_v53 = vsel %vm15776_vm2, %v682_v32, %v683_v55  ;;  %v8563_v55 = vsel %vm15776_vm2, %v688_v58, %v8558_v9  ;;  %v799_v32 = vrot.slane %v8214_v35, 2 }
  0x98   : > { %744 = vrot.lane.b32.xlu2 %v8498_v62, %s7893_s21  ;;  %15832 = vst [vmem:[#allocation50_spill] sm:$0xff] %v8539_v43  ;;  %v792_v62 = vrot.slane %v8056_v4, 2  ;;  %v815_v58 = vrot.slane %v8280_v5, 2 }
  0x99   : > { %15833 = vst [vmem:[#allocation51_spill] sm:$0xff] %v8547_v53 }
  0x9a   : > { %15834 = vst [vmem:[#allocation52_spill] sm:$0xff] %v8558_v9  ;;  %v810_v9 = vrot.slane %v8238_v46, 2 }
  0x9b   : > { %15835 = vst [vmem:[#allocation53_spill] sm:$0xff] %v8563_v55 }
  0x9c   : > { %742 = vrot.lane.b32.xlu1 %v8521_v28, %s7893_s21  ;;  %752 = vrot.lane.b32.xlu0 %v8530_v24, %s7893_s21  ;;  %v791_v28 = vsel %vm15772_vm3, %v789_v20, %v790_v52  ;;  %v793_v24 = vsel %vm15772_vm3, %v790_v52, %v792_v62  ;;  %v800_v62 = vrot.slane %v8218_v37, 2  ;;  %v802_v20 = vrot.slane %v8220_v38, 2 }
  0x9d   : > { %v6971_v47 = vpack.i.bf16 %v793_v24, %v791_v28 }
  0x9e   : > { %v801_v28 = vsel %vm15772_vm3, %v799_v32, %v800_v62  ;;  %v803_v52 = vsel %vm15772_vm3, %v800_v62, %v802_v20  ;;  %v8595_v32 = vrot.slane %v8339_v36, 2  ;;  %v820_v62 = vrot.slane %v8270_v60, 2 }
  0x9f   : > { %v8576_v24 = vpack.i.bf16 %v803_v52, %v801_v28  ;;  %v819_v28 = vrot.slane %v8263_v59, 2 }
  0xa0   : > { %750 = vrot.lane.b32.xlu2 %v8539_v43, %s7893_s21  ;;  %15840 = vst [vmem:[#allocation58_spill] sm:$0xff] %v8595_v32  ;;  %v8606_v52 = vsel %vm15772_vm3, %v820_v62, %v8595_v32  ;;  %v849_v43 = vrot.slane %v8415_v13, 2 }
  0xa1   : > { %15836 = vst [vmem:[#allocation54_spill] sm:$0xff] %v8576_v24 }
  0xa2   : > { %15842 = vst [vmem:[#allocation60_spill] sm:$0xff] %v8606_v52 }
  0xa4   : > { %748 = vrot.lane.b32.xlu1 %v8547_v53, %s7893_s21  ;;  %6977 = vrot.lane.b32.xlu0 %v8463_v33, %s7894_s27  ;;  %v8580_v33 = vrot.slane %v8241_v48, 2 }
  0xa6   : > { %15837 = vst [vmem:[#allocation55_spill] sm:$0xff] %v8580_v33 }
  0xa8   : > { %6972 = vrot.lane.b32.xlu2 %v6971_v47, %s7894_s27  ;;  %v814_v47 = vrot.slane %v8300_v16, 2 }
  0xac   : > { %754 = vrot.lane.b32.xlu1 %v8563_v55, %s7893_s21  ;;  %883 = vrot.lane.b32.xlu0 %v808_v22, %s7894_s27  ;;  %v8583_v55 = vsel %vm15772_vm3, %v814_v47, %v815_v58  ;;  %v8591_v22 = vsel %vm15772_vm3, %v810_v9, %v8580_v33  ;;  %v8615_v33 = vsel %vm15772_vm3, %v819_v28, %v820_v62 }
  0xad   : > { %15838 = vst [vmem:[#allocation56_spill] sm:$0xff] %v8583_v55 }
  0xae   : > { %15839 = vst [vmem:[#allocation57_spill] sm:$0xff] %v8591_v22 }
  0xaf   : > { %15844 = vst [vmem:[#allocation62_spill] sm:$0xff] %v8615_v33 }
  0xb0   : > { %881 = vrot.lane.b32.xlu2 %v806_v29, %s7894_s27  ;;  %v809_v29 = vrot.slane %v8232_v44, 2 }
  0xb2   : > { %v8601_v20 = vsel %vm15772_vm3, %v809_v29, %v810_v9  ;;  %v8618_v9 = vrot.slane %v8282_v6, 2  ;;  %v829_v29 = vrot.slane %v8375_v63, 2 }
  0xb3   : > { %15841 = vst [vmem:[#allocation59_spill] sm:$0xff] %v8601_v20 }
  0xb4   : > { %6982 = vrot.lane.b32.xlu1 %v8576_v24, %s7894_s27  ;;  %889 = vrot.lane.b32.xlu0 %v8583_v55, %s7894_s27  ;;  %15845 = vst [vmem:[#allocation63_spill] sm:$0xff] %v8618_v9  ;;  %v830_v55 = vrot.slane %v8355_v45, 2  ;;  %v8626_v32 = vsel %vm15772_vm3, %v815_v58, %v8618_v9  ;;  %v824_v9 = vrot.slane %v8322_v25, 2 }
  0xb5   : > { %15846 = vst [vmem:[#allocation64_spill] sm:$0xff] %v8626_v32 }
  0xb6   : > { %v8633_v62 = vsel %vm15772_vm3, %v829_v29, %v830_v55  ;;  %v835_v29 = vrot.slane %v8343_v40, 2 }
  0xb7   : > { %15848 = vst [vmem:[#allocation66_spill] sm:$0xff] %v8633_v62 }
  0xb8   : > { %887 = vrot.lane.b32.xlu2 %v8591_v22, %s7894_s27 }
  0xba   : > { %v8608_v47 = vpop.permute.xlu2 %706 }
  0xbb   : > { %15843 = vst [vmem:[#allocation61_spill] sm:$0xff] %v8608_v47  ;;  %v825_v47 = vrot.slane %v8311_v21, 2 }
  0xbc   : > { %885 = vrot.lane.b32.xlu1 %v8601_v20, %s7894_s27  ;;  %895 = vrot.lane.b32.xlu0 %v8606_v52, %s7894_s27  ;;  %v8630_v52 = vrot.slane %v8302_v17, 2  ;;  %v8637_v20 = vpop.permute.xlu0 %6957 }
  0xbd   : > { %15850 = vst [vmem:[#allocation68_spill] sm:$0xff] %v8637_v20  ;;  %v834_v20 = vrot.slane %v8341_v39, 2 }
  0xbe   : > { %15847 = vst [vmem:[#allocation65_spill] sm:$0xff] %v8630_v52  ;;  %v8645_v58 = vsel %vm15772_vm3, %v825_v47, %v8630_v52 }
  0xbf   : > { %15851 = vst [vmem:[#allocation69_spill] sm:$0xff] %v8645_v58 }
  0xc0   : > { %893 = vrot.lane.b32.xlu2 %v8615_v33, %s7894_s27  ;;  %v8649_v33 = vrot.slane %v8409_v51, 2 }
  0xc2   : > { %v8635_v28 = vpop.permute.xlu2 %708  ;;  %15852 = vst [vmem:[#allocation70_spill] sm:$0xff] %v8649_v33 }
  0xc3   : > { %15849 = vst [vmem:[#allocation67_spill] sm:$0xff] %v8635_v28  ;;  %v8655_v28 = vsel %vm15772_vm3, %v824_v9, %v825_v47  ;;  %v8674_v47 = vrot.slane %v8359_v50, 2  ;;  %v844_v9 = vrot.slane %v8451_v7, 2 }
  0xc4   : > { %891 = vrot.lane.b32.xlu1 %v8626_v32, %s7894_s27  ;;  %901 = vrot.lane.b32.xlu0 %v8633_v62, %s7894_s27  ;;  %15853 = vst [vmem:[#allocation71_spill] sm:$0xff] %v8655_v28  ;;  %v8660_v62 = vsel %vm15772_vm3, %v835_v29, %v8649_v33  ;;  %v8668_v32 = vpop.permute.xlu0 %6962  ;;  %v845_v33 = vrot.slane %v8429_v23, 2 }
  0xc5   : > { %15854 = vst [vmem:[#allocation72_spill] sm:$0xff] %v8660_v62 }
  0xc6   : > { %15856 = vst [vmem:[#allocation74_spill] sm:$0xff] %v8668_v32  ;;  %v8686_v32 = vsel %vm15772_vm3, %v830_v55, %v8674_v47  ;;  %v8703_v55 = vrot.slane %v8482_v49, 2 }
  0xc7   : > { %15858 = vst [vmem:[#allocation76_spill] sm:$0xff] %v8674_v47  ;;  %v972_v47 = vrot.slane %v8129_v11, 3 }
  0xc8   : > { %899 = vrot.lane.b32.xlu2 %v8645_v58, %s7894_s27  ;;  %v8671_v58 = vsel %vm15772_vm3, %v834_v20, %v835_v29  ;;  %15860 = vst [vmem:[#allocation78_spill] sm:$0xff] %v8686_v32  ;;  %v8689_v20 = vsel %vm15772_vm3, %v844_v9, %v845_v33  ;;  %v971_v9 = vrot.slane %v8127_v10, 3 }
  0xc9   : > { %15857 = vst [vmem:[#allocation75_spill] sm:$0xff] %v8671_v58 }
  0xca   : > { %v8662_v52 = vpop.permute.xlu2 %714  ;;  %15861 = vst [vmem:[#allocation79_spill] sm:$0xff] %v8689_v20 }
  0xcb   : > { %15855 = vst [vmem:[#allocation73_spill] sm:$0xff] %v8662_v52  ;;  %v840_v52 = vrot.slane %v8389_v3, 2 }
  0xcc   : > { %897 = vrot.lane.b32.xlu1 %v8655_v28, %s7894_s27  ;;  %907 = vrot.lane.b32.xlu0 %v8660_v62, %s7894_s27  ;;  %v8682_v28 = vrot.slane %v8380_v8, 2  ;;  %15864 = vst [vmem:[#allocation82_spill] sm:$0xff] %v8703_v55 }
  0xce   : > { %15859 = vst [vmem:[#allocation77_spill] sm:$0xff] %v8682_v28  ;;  %v8697_v62 = vsel %vm15772_vm3, %v840_v52, %v8682_v28  ;;  %v850_v28 = vrot.slane %v8417_v19, 2 }
  0xcf   : > { %15863 = vst [vmem:[#allocation81_spill] sm:$0xff] %v8697_v62 }
  0xd0   : > { %905 = vrot.lane.b32.xlu2 %v8671_v58, %s7894_s27  ;;  %v839_v58 = vrot.slane %v8400_v27, 2 }
  0xd2   : > { %v8691_v29 = vpop.permute.xlu2 %720  ;;  %v8718_v53 = vsel %vm15772_vm3, %v839_v58, %v840_v52  ;;  %v8737_v52 = vsel %vm15772_vm3, %v849_v43, %v850_v28  ;;  %v859_v58 = vrot.slane %v8527_v61, 2  ;;  %v15391_v43 = vrot.slane %v8208_v31, 3 }
  0xd3   : > { %15862 = vst [vmem:[#allocation80_spill] sm:$0xff] %v8691_v29  ;;  %v974_v29 = vrot.slane %v8131_v12, 3 }
  0xd4   : > { %903 = vrot.lane.b32.xlu1 %v8686_v32, %s7894_s27  ;;  %913 = vrot.lane.b32.xlu0 %v8689_v20, %s7894_s27  ;;  %v973_v20 = vsel %vm15756_vm4, %v971_v9, %v972_v47  ;;  %15867 = vst [vmem:[#allocation85_spill] sm:$0xff] %v8718_v53  ;;  %v8732_v9 = vrot.slane %v8431_v34, 2 }
  0xd5   : > { %v975_v24 = vsel %vm15756_vm4, %v972_v47, %v974_v29  ;;  %15871 = vst [vmem:[#allocation89_spill] sm:$0xff] %v8737_v52  ;;  %v860_v47 = vrot.slane %v8511_v0, 2 }
  0xd6   : > { %v8708_v22 = vpop.permute.xlu1 %6967  ;;  %v8710_v32 = vpop.permute.xlu0 %710  ;;  %15870 = vst [vmem:[#allocation88_spill] sm:$0xff] %v8732_v9  ;;  %v8749_v29 = vsel %vm15772_vm3, %v845_v33, %v8732_v9  ;;  %v854_v33 = vrot.slane %v8470_v15, 2 }
  0xd7   : > { %15865 = vst [vmem:[#allocation83_spill] sm:$0xff] %v8708_v22  ;;  %v8723_v22 = vsel %vm15772_vm3, %v850_v28, %v8703_v55  ;;  %v982_v55 = vrot.slane %v8206_v30, 3  ;;  %v855_v28 = vrot.slane %v8461_v26, 2 }
  0xd8   : > { %15866 = vst [vmem:[#allocation84_spill] sm:$0xff] %v8710_v32  ;;  %911 = vrot.lane.b32.xlu2 %v8697_v62, %s7894_s27  ;;  %v8725_v32 = vpack.i.bf16 %v975_v24, %v973_v20 }
  0xd9   : > { %15868 = vst [vmem:[#allocation86_spill] sm:$0xff] %v8723_v22  ;;  %v985_v9 = vsel %vm15756_vm4, %v982_v55, %v15391_v43 }
  0xda   : > { %v8727_v18 = vpop.permute.xlu2 %726  ;;  %15874 = vst [vmem:[#allocation92_spill] sm:$0xff] %v8749_v29 }
  0xdb   : > { %15869 = vst [vmem:[#allocation87_spill] sm:$0xff] %v8727_v18  ;;  %v8755_v18 = vrot.slane %v8453_v57, 2 }
  0xdc   : > { %909 = vrot.lane.b32.xlu1 %v8718_v53, %s7894_s27  ;;  %919 = vrot.lane.b32.xlu0 %v8723_v22, %s7894_s27 }
  0xdd   : > { %15875 = vst [vmem:[#allocation93_spill] sm:$0xff] %v8755_v18 }
  0xde   : > { %v8741_v24 = vpop.permute.xlu1 %704  ;;  %v8743_v20 = vpop.permute.xlu0 %716 }
  0xdf   : > { %15872 = vst [vmem:[#allocation90_spill] sm:$0xff] %v8741_v24  ;;  %v8758_v24 = vsel %vm15772_vm3, %v859_v58, %v860_v47  ;;  %v8774_v58 = vsel %vm15772_vm3, %v855_v28, %v8755_v18  ;;  %v976_v18 = vrot.slane %v8214_v35, 3 }
  0xe0   : > { %15873 = vst [vmem:[#allocation91_spill] sm:$0xff] %v8743_v20  ;;  %917 = vrot.lane.b32.xlu2 %v8737_v52, %s7894_s27  ;;  %v981_v20 = vrot.slane %v8255_v56, 3 }
  0xe1   : > { %15876 = vst [vmem:[#allocation94_spill] sm:$0xff] %v8758_v24 }
  0xe2   : > { %v8761_v22 = vpop.permute.xlu2 %732  ;;  %v983_v52 = vsel %vm15756_vm4, %v981_v20, %v982_v55  ;;  %15878 = vst [vmem:[#allocation96_spill] sm:$0xff] %v8774_v58  ;;  %v8789_v55 = vsel %vm15772_vm3, %v854_v33, %v855_v28  ;;  %v864_v20 = vrot.slane %v8490_v54, 2  ;;  %v8809_v33 = vrot.slane %v8513_v14, 2 }
  0xe3   : > { %15877 = vst [vmem:[#allocation95_spill] sm:$0xff] %v8761_v22  ;;  %v8777_v22 = vrot.slane %v8551_v41, 2  ;;  %v8779_v53 = vpack.i.bf16 %v985_v9, %v983_v52 }
  0xe4   : > { %915 = vrot.lane.b32.xlu1 %v8749_v29, %s7894_s27  ;;  %925 = vrot.lane.b32.xlu0 %v8758_v24, %s7894_s27  ;;  %v865_v24 = vrot.slane %v8492_v42, 2  ;;  %15883 = vst [vmem:[#allocation101_spill] sm:$0xff] %v8789_v55 }
  0xe5   : > { %15879 = vst [vmem:[#allocation97_spill] sm:$0xff] %v8777_v22 }
  0xe6   : > { %15880 = vst [vmem:[#allocation98_spill] sm:$0xff] %v8779_v53  ;;  %v8781_v29 = vpop.permute.xlu1 %712  ;;  %v8783_v62 = vpop.permute.xlu0 %722  ;;  %v8794_v43 = vsel %vm15772_vm3, %v865_v24, %v8777_v22  ;;  %v8806_v28 = vsel %vm15772_vm3, %v864_v20, %v865_v24  ;;  %v8823_v24 = vsel %vm15772_vm3, %v860_v47, %v8809_v33  ;;  %v966_v20 = vrot.slane %v8047_v1, 3 }
  0xe7   : > { %15881 = vst [vmem:[#allocation99_spill] sm:$0xff] %v8781_v29  ;;  %v977_v29 = vrot.slane %v8218_v37, 3  ;;  %v987_v1 = vrot.slane %v8238_v46, 3 }
  0xe8   : > { %15882 = vst [vmem:[#allocation100_spill] sm:$0xff] %v8783_v62  ;;  %923 = vrot.lane.b32.xlu2 %v8774_v58, %s7894_s27  ;;  %v979_v62 = vrot.slane %v8220_v38, 3 }
  0xe9   : > { %15884 = vst [vmem:[#allocation102_spill] sm:$0xff] %v8794_v43  ;;  %v978_v22 = vsel %vm15756_vm4, %v976_v18, %v977_v29  ;;  %v969_v18 = vrot.slane %v8056_v4, 3 }
  0xea   : > { %v8799_v53 = vpop.permute.xlu2 %738  ;;  %15886 = vst [vmem:[#allocation104_spill] sm:$0xff] %v8806_v28  ;;  %v980_v58 = vsel %vm15756_vm4, %v977_v29, %v979_v62  ;;  %v986_v29 = vrot.slane %v8232_v44, 3 }
  0xeb   : > { %15885 = vst [vmem:[#allocation103_spill] sm:$0xff] %v8799_v53  ;;  %v8819_v53 = vpack.i.bf16 %v980_v58, %v978_v22 }
  0xec   : > { %921 = vrot.lane.b32.xlu1 %v8789_v55, %s7894_s27  ;;  %931 = vrot.lane.b32.xlu0 %v8794_v43, %s7894_s27  ;;  %15887 = vst [vmem:[#allocation105_spill] sm:$0xff] %v8809_v33  ;;  %v967_v43 = vrot.slane %v8051_v2, 3  ;;  %v8845_v33 = vsel %vm15756_vm4, %v986_v29, %v987_v1 }
  0xed   : > { %15890 = vst [vmem:[#allocation108_spill] sm:$0xff] %v8819_v53 }
  0xee   : > { %v8813_v37 = vpop.permute.xlu1 %718  ;;  %v8815_v38 = vpop.permute.xlu0 %728  ;;  %15891 = vst [vmem:[#allocation109_spill] sm:$0xff] %v8823_v24  ;;  %v968_v22 = vsel %vm15756_vm4, %v966_v20, %v967_v43  ;;  %v970_v47 = vsel %vm15756_vm4, %v967_v43, %v969_v18  ;;  %v8853_v43 = vrot.slane %v8282_v6, 3 }
  0xef   : > { %15888 = vst [vmem:[#allocation106_spill] sm:$0xff] %v8813_v37  ;;  %v6986_v58 = vpack.i.bf16 %v970_v47, %v968_v22  ;;  %v991_v22 = vrot.slane %v8300_v16, 3 }
  0xf0   : > { %15889 = vst [vmem:[#allocation107_spill] sm:$0xff] %v8815_v38  ;;  %929 = vrot.lane.b32.xlu2 %v8806_v28, %s7894_s27 }
  0xf1   : > { %15895 = vst [vmem:[#allocation113_spill] sm:$0xff] %v8845_v33 }
  0xf2   : > { %v8828_v62 = vpop.permute.xlu2 %744  ;;  %15897 = vst [vmem:[#allocation115_spill] sm:$0xff] %v8853_v43 }
  0xf3   : > { %15892 = vst [vmem:[#allocation110_spill] sm:$0xff] %v8828_v62 }
  0xf4   : > { %927 = vrot.lane.b32.xlu1 %v8823_v24, %s7894_s27  ;;  %6997 = vrot.lane.b32.xlu0 %v8819_v53, %s15765_s28 }
  0xf6   : > { %v8838_v2 = vpop.permute.xlu1 %724  ;;  %v8840_v4 = vpop.permute.xlu0 %734 }
  0xf7   : > { %15893 = vst [vmem:[#allocation111_spill] sm:$0xff] %v8838_v2 }
  0xf8   : > { %15894 = vst [vmem:[#allocation112_spill] sm:$0xff] %v8840_v4  ;;  %6992 = vrot.lane.b32.xlu2 %v8725_v32, %s15765_s28  ;;  %v992_v4 = vrot.slane %v8280_v5, 3 }
  0xfa   : > { %v8847_v38 = vpop.permute.xlu2 %750  ;;  %v8864_v47 = vsel %vm15756_vm4, %v992_v4, %v8853_v43 }
  0xfb   : > { %15896 = vst [vmem:[#allocation114_spill] sm:$0xff] %v8847_v38 }
  0xfc   : > { %6987 = vrot.lane.b32.xlu1 %v6986_v58, %s15765_s28  ;;  %1062 = vrot.lane.b32.xlu0 %v8845_v33, %s15765_s28  ;;  %15900 = vst [vmem:[#allocation118_spill] sm:$0xff] %v8864_v47  ;;  %v8872_v58 = vsel %vm15756_vm4, %v991_v22, %v992_v4  ;;  %v997_v4 = vrot.slane %v8270_v60, 3  ;;  %v8891_v22 = vrot.slane %v8339_v36, 3 }
  0xfd   : > { %15902 = vst [vmem:[#allocation120_spill] sm:$0xff] %v8872_v58 }
  0xfe   : > { %v8855_v20 = vpop.permute.xlu1 %730  ;;  %v8857_v18 = vpop.permute.xlu0 %740  ;;  %15907 = vst [vmem:[#allocation125_spill] sm:$0xff] %v8891_v22 }
  0xff   : > { %15898 = vst [vmem:[#allocation116_spill] sm:$0xff] %v8855_v20  ;;  %v1002_v20 = vrot.slane %v8311_v21, 3 }
 0x100   : > { %15899 = vst [vmem:[#allocation117_spill] sm:$0xff] %v8857_v18  ;;  %1060 = vrot.lane.b32.xlu2 %v985_v9, %s15765_s28  ;;  %v8875_v18 = vrot.slane %v8241_v48, 3  ;;  %v1001_v9 = vrot.slane %v8322_v25, 3 }
 0x102   : > { %v8866_v29 = vpop.permute.xlu2 %6972  ;;  %15903 = vst [vmem:[#allocation121_spill] sm:$0xff] %v8875_v18  ;;  %v8894_v37 = vsel %vm15756_vm4, %v1001_v9, %v1002_v20 }
 0x103   : > { %15901 = vst [vmem:[#allocation119_spill] sm:$0xff] %v8866_v29 }
 0x104   : > { %1058 = vrot.lane.b32.xlu1 %v983_v52, %s15765_s28  ;;  %1068 = vrot.lane.b32.xlu0 %v8864_v47, %s15765_s28  ;;  %v8887_v52 = vsel %vm15756_vm4, %v987_v1, %v8875_v18  ;;  %15908 = vst [vmem:[#allocation126_spill] sm:$0xff] %v8894_v37  ;;  %v8904_v1 = vsel %vm15756_vm4, %v997_v4, %v8891_v22  ;;  %v996_v18 = vrot.slane %v8263_v59, 3  ;;  %v1006_v22 = vrot.slane %v8375_v63, 3 }
 0x105   : > { %15906 = vst [vmem:[#allocation124_spill] sm:$0xff] %v8887_v52 }
 0x106   : > { %v8879_v2 = vpop.permute.xlu1 %736  ;;  %v8881_v43 = vpop.permute.xlu0 %746  ;;  %15910 = vst [vmem:[#allocation128_spill] sm:$0xff] %v8904_v1  ;;  %v8918_v62 = vsel %vm15756_vm4, %v996_v18, %v997_v4  ;;  %v8935_v18 = vrot.slane %v8302_v17, 3  ;;  %v1016_v4 = vrot.slane %v8400_v27, 3 }
 0x107   : > { %15904 = vst [vmem:[#allocation122_spill] sm:$0xff] %v8879_v2  ;;  %v8908_v2 = vrot.slane %v8359_v50, 3 }
 0x108   : > { %15905 = vst [vmem:[#allocation123_spill] sm:$0xff] %v8881_v43  ;;  %1066 = vrot.lane.b32.xlu2 %v8872_v58, %s15765_s28 }
 0x109   : > { %15911 = vst [vmem:[#allocation129_spill] sm:$0xff] %v8908_v2 }
 0x10a   : > { %v8896_v38 = vpop.permute.xlu2 %881  ;;  %15914 = vst [vmem:[#allocation132_spill] sm:$0xff] %v8918_v62 }
 0x10b   : > { %15909 = vst [vmem:[#allocation127_spill] sm:$0xff] %v8896_v38  ;;  %v1007_v38 = vrot.slane %v8355_v45, 3 }
 0x10c   : > { %1064 = vrot.lane.b32.xlu1 %v8887_v52, %s15765_s28  ;;  %1074 = vrot.lane.b32.xlu0 %v8894_v37, %s15765_s28  ;;  %15918 = vst [vmem:[#allocation136_spill] sm:$0xff] %v8935_v18 }
 0x10d   : > { %v8923_v29 = vsel %vm15756_vm4, %v1007_v38, %v8908_v2 }
 0x10e   : > { %v8910_v43 = vpop.permute.xlu1 %742  ;;  %v8912_v9 = vpop.permute.xlu0 %752  ;;  %15915 = vst [vmem:[#allocation133_spill] sm:$0xff] %v8923_v29 }
 0x10f   : > { %15912 = vst [vmem:[#allocation130_spill] sm:$0xff] %v8910_v43  ;;  %v8932_v43 = vsel %vm15756_vm4, %v1006_v22, %v1007_v38  ;;  %v1012_v38 = vrot.slane %v8343_v40, 3  ;;  %v8951_v22 = vrot.slane %v8409_v51, 3 }
 0x110   : > { %15913 = vst [vmem:[#allocation131_spill] sm:$0xff] %v8912_v9  ;;  %1072 = vrot.lane.b32.xlu2 %v8904_v1, %s15765_s28  ;;  %v1017_v9 = vrot.slane %v8389_v3, 3  ;;  %v9014_v1 = vrot.slane %v8482_v49, 3 }
 0x111   : > { %15917 = vst [vmem:[#allocation135_spill] sm:$0xff] %v8932_v43 }
 0x112   : > { %v8925_v37 = vpop.permute.xlu2 %887  ;;  %15922 = vst [vmem:[#allocation140_spill] sm:$0xff] %v8951_v22 }
 0x113   : > { %15916 = vst [vmem:[#allocation134_spill] sm:$0xff] %v8925_v37  ;;  %v8947_v37 = vsel %vm15756_vm4, %v1002_v20, %v8935_v18  ;;  %v8964_v20 = vsel %vm15756_vm4, %v1012_v38, %v8951_v22  ;;  %v1011_v18 = vrot.slane %v8341_v39, 3  ;;  %v1021_v22 = vrot.slane %v8451_v7, 3 }
 0x114   : > { %1070 = vrot.lane.b32.xlu1 %v8918_v62, %s15765_s28  ;;  %1080 = vrot.lane.b32.xlu0 %v8923_v29, %s15765_s28  ;;  %15921 = vst [vmem:[#allocation139_spill] sm:$0xff] %v8947_v37  ;;  %v8954_v29 = vsel %vm15756_vm4, %v1016_v4, %v1017_v9 }
 0x115   : > { %15923 = vst [vmem:[#allocation141_spill] sm:$0xff] %v8954_v29 }
 0x116   : > { %v8939_v2 = vpop.permute.xlu1 %748  ;;  %v8941_v47 = vpop.permute.xlu0 %6977  ;;  %15925 = vst [vmem:[#allocation143_spill] sm:$0xff] %v8964_v20 }
 0x117   : > { %15919 = vst [vmem:[#allocation137_spill] sm:$0xff] %v8939_v2  ;;  %v8968_v2 = vrot.slane %v8431_v34, 3 }
 0x118   : > { %15920 = vst [vmem:[#allocation138_spill] sm:$0xff] %v8941_v47  ;;  %1078 = vrot.lane.b32.xlu2 %v8932_v43, %s15765_s28 }
 0x119   : > { %15926 = vst [vmem:[#allocation144_spill] sm:$0xff] %v8968_v2 }
 0x11a   : > { %v8956_v62 = vpop.permute.xlu2 %893  ;;  %15937 = vst [vmem:[#allocation155_spill] sm:$0xff] %v9014_v1 }
 0x11b   : > { %15924 = vst [vmem:[#allocation142_spill] sm:$0xff] %v8956_v62  ;;  %v1022_v62 = vrot.slane %v8429_v23, 3 }
 0x11c   : > { %1076 = vrot.lane.b32.xlu1 %v8947_v37, %s15765_s28  ;;  %1086 = vrot.lane.b32.xlu0 %v8954_v29, %s15765_s28  ;;  %v8978_v29 = vsel %vm15756_vm4, %v1011_v18, %v1012_v38  ;;  %v1031_v38 = vrot.slane %v8470_v15, 3 }
 0x11d   : > { %15929 = vst [vmem:[#allocation147_spill] sm:$0xff] %v8978_v29  ;;  %v8983_v37 = vsel %vm15756_vm4, %v1022_v62, %v8968_v2  ;;  %v8995_v18 = vsel %vm15756_vm4, %v1021_v22, %v1022_v62  ;;  %v1149_v62 = vrot.slane %v8129_v11, 4  ;;  %v1151_v22 = vrot.slane %v8131_v12, 4 }
 0x11e   : > { %v8970_v47 = vpop.permute.xlu1 %754  ;;  %v8972_v4 = vpop.permute.xlu0 %883  ;;  %15930 = vst [vmem:[#allocation148_spill] sm:$0xff] %v8983_v37  ;;  %v1026_v11 = vrot.slane %v8415_v13, 3 }
 0x11f   : > { %15927 = vst [vmem:[#allocation145_spill] sm:$0xff] %v8970_v47  ;;  %v8990_v47 = vrot.slane %v8380_v8, 3 }
 0x120   : > { %15928 = vst [vmem:[#allocation146_spill] sm:$0xff] %v8972_v4  ;;  %1084 = vrot.lane.b32.xlu2 %v8964_v20, %s15765_s28  ;;  %v1032_v4 = vrot.slane %v8461_v26, 3 }
 0x121   : > { %15932 = vst [vmem:[#allocation150_spill] sm:$0xff] %v8990_v47 }
 0x122   : > { %v8985_v43 = vpop.permute.xlu2 %899  ;;  %15933 = vst [vmem:[#allocation151_spill] sm:$0xff] %v8995_v18 }
 0x123   : > { %15931 = vst [vmem:[#allocation149_spill] sm:$0xff] %v8985_v43  ;;  %v9007_v43 = vsel %vm15756_vm4, %v1017_v9, %v8990_v47  ;;  %v1152_v47 = vsel %vm15754_vm5, %v1149_v62, %v1151_v22 }
 0x124   : > { %1082 = vrot.lane.b32.xlu1 %v8978_v29, %s15765_s28  ;;  %1092 = vrot.lane.b32.xlu0 %v8983_v37, %s15765_s28  ;;  %15936 = vst [vmem:[#allocation154_spill] sm:$0xff] %v9007_v43  ;;  %v1148_v37 = vrot.slane %v8127_v10, 4  ;;  %v1027_v29 = vrot.slane %v8417_v19, 3 }
 0x126   : > { %v8999_v2 = vpop.permute.xlu1 %6982  ;;  %v9001_v20 = vpop.permute.xlu0 %889  ;;  %v1150_v9 = vsel %vm15754_vm5, %v1148_v37, %v1149_v62  ;;  %v9032_v12 = vsel %vm15756_vm4, %v1027_v29, %v9014_v1  ;;  %v9045_v22 = vsel %vm15756_vm4, %v1026_v11, %v1027_v29  ;;  %v9057_v29 = vrot.slane %v8453_v57, 3 }
 0x127   : > { %15934 = vst [vmem:[#allocation152_spill] sm:$0xff] %v8999_v2  ;;  %v9023_v10 = vpack.i.bf16 %v1152_v47, %v1150_v9  ;;  %v1037_v47 = vrot.slane %v8511_v0, 3  ;;  %v1036_v9 = vrot.slane %v8527_v61, 3 }
 0x128   : > { %15935 = vst [vmem:[#allocation153_spill] sm:$0xff] %v9001_v20  ;;  %1090 = vrot.lane.b32.xlu2 %v8995_v18, %s15765_s28  ;;  %v9017_v20 = vsel %vm15756_vm4, %v1031_v38, %v1032_v4  ;;  %v9035_v38 = vrot.slane %v8513_v14, 3  ;;  %v7710_v18 = vld [vmem:[#allocation2 + $0x10] sm:$0xf] }
 0x129   : > { %15938 = vst [vmem:[#allocation156_spill] sm:$0xff] %v9017_v20  ;;  %v9062_v11 = vsel %vm15756_vm4, %v1036_v9, %v1037_v47 }
 0x12a   : > { %v9019_v2 = vpop.permute.xlu2 %905  ;;  %15940 = vst [vmem:[#allocation158_spill] sm:$0xff] %v9032_v12  ;;  %v9050_v1 = vsel %vm15756_vm4, %v1037_v47, %v9035_v38  ;;  %v9078_v47 = vrot.slane %v8551_v41, 3 }
 0x12b   : > { %15939 = vst [vmem:[#allocation157_spill] sm:$0xff] %v9019_v2  ;;  %v7708_v2 = vld [vmem:[#allocation2] sm:$0xff] }
 0x12c   : > { %1088 = vrot.lane.b32.xlu1 %v9007_v43, %s15765_s28  ;;  %1098 = vrot.lane.b32.xlu0 %v9017_v20, %s15765_s28  ;;  %15941 = vst [vmem:[#allocation159_spill] sm:$0xff] %v9035_v38  ;;  %v1143_v20 = vrot.slane %v7708_v2, 4  ;;  %v7709_v43 = vld [vmem:[#allocation2 + $0x8] sm:$0xff] }
 0x12d   : > { %15944 = vst [vmem:[#allocation162_spill] sm:$0xff] %v9045_v22 }
 0x12e   : > { %v9037_v37 = vpop.permute.xlu1 %885  ;;  %v9039_v62 = vpop.permute.xlu0 %895  ;;  %15945 = vst [vmem:[#allocation163_spill] sm:$0xff] %v9050_v1 }
 0x12f   : > { %15942 = vst [vmem:[#allocation160_spill] sm:$0xff] %v9037_v37  ;;  %v1144_v37 = vrot.slane %v7709_v43, 4 }
 0x130   : > { %15943 = vst [vmem:[#allocation161_spill] sm:$0xff] %v9039_v62  ;;  %1096 = vrot.lane.b32.xlu2 %v9032_v12, %s15765_s28  ;;  %v1146_v62 = vrot.slane %v7710_v18, 4 }
 0x131   : > { %15947 = vst [vmem:[#allocation165_spill] sm:$0xff] %v9057_v29  ;;  %v1145_v2 = vsel %vm15754_vm5, %v1143_v20, %v1144_v37  ;;  %v1158_v20 = vrot.slane %v8255_v56, 4 }
 0x132   : > { %v9052_v33 = vpop.permute.xlu2 %911  ;;  %15948 = vst [vmem:[#allocation166_spill] sm:$0xff] %v9062_v11  ;;  %v1147_v43 = vsel %vm15754_vm5, %v1144_v37, %v1146_v62  ;;  %v1159_v37 = vrot.slane %v8206_v30, 4  ;;  %v1161_v62 = vrot.slane %v8208_v31, 4  ;;  %v15956_v30 = vld [vmem:[#allocation12_spill] sm:$0xff] }
 0x133   : > { %15946 = vst [vmem:[#allocation164_spill] sm:$0xff] %v9052_v33  ;;  %v9074_v33 = vsel %vm15756_vm4, %v1032_v4, %v9057_v29  ;;  %v1041_v4 = vrot.slane %v8490_v54, 3  ;;  %v1156_v31 = vrot.slane %v15956_v30, 4 }
 0x134   : > { %1094 = vrot.lane.b32.xlu1 %v9045_v22, %s15765_s28  ;;  %1104 = vrot.lane.b32.xlu0 %v9050_v1, %s15765_s28  ;;  %15951 = vst [vmem:[#allocation169_spill] sm:$0xff] %v9074_v33  ;;  %v1042_v1 = vrot.slane %v8492_v42, 3  ;;  %v7001_v22 = vpack.i.bf16 %v1147_v43, %v1145_v2  ;;  %v1153_v2 = vrot.slane %v8214_v35, 4  ;;  %v15954_v43 = vld [vmem:[#allocation11_spill] sm:$0xff] }
 0x135   : > { %15952 = vst [vmem:[#allocation170_spill] sm:$0xff] %v9078_v47  ;;  %v1154_v29 = vrot.slane %v15954_v43, 4 }
 0x136   : > { %v9066_v38 = vpop.permute.xlu1 %891  ;;  %v9068_v18 = vpop.permute.xlu0 %901  ;;  %v9093_v56 = vsel %vm15756_vm4, %v1042_v1, %v9078_v47  ;;  %v9105_v35 = vsel %vm15756_vm4, %v1041_v4, %v1042_v1 }
 0x137   : > { %15949 = vst [vmem:[#allocation167_spill] sm:$0xff] %v9066_v38  ;;  %v1157_v30 = vsel %vm15754_vm5, %v1154_v29, %v1156_v31  ;;  %v1171_v31 = vrot.slane %v8282_v6, 4 }
 0x138   : > { %15950 = vst [vmem:[#allocation168_spill] sm:$0xff] %v9068_v18  ;;  %1102 = vrot.lane.b32.xlu2 %v9062_v11, %s15765_s28  ;;  %v1162_v18 = vsel %vm15754_vm5, %v1159_v37, %v1161_v62  ;;  %v1176_v62 = vrot.slane %v8339_v36, 4 }
 0x139   : > { %15955 = vst [vmem:[#allocation11_spill] sm:$0xff] %v9093_v56 }
 0x13a   : > { %v9083_v9 = vpop.permute.xlu2 %917  ;;  %15959 = vst [vmem:[#allocation173_spill] sm:$0xff] %v9105_v35 }
 0x13b   : > { %15953 = vst [vmem:[#allocation171_spill] sm:$0xff] %v9083_v9  ;;  %v1160_v9 = vsel %vm15754_vm5, %v1158_v20, %v1159_v37  ;;  %v1173_v20 = vrot.slane %v8263_v59, 4  ;;  %v1174_v37 = vrot.slane %v8270_v60, 4 }
 0x13c   : > { %1100 = vrot.lane.b32.xlu1 %v9074_v33, %s15765_s28  ;;  %7002 = vrot.lane.b32.xlu0 %v7001_v22, %s15763_s29  ;;  %v1155_v22 = vsel %vm15754_vm5, %v1153_v2, %v1154_v29  ;;  %v9108_v43 = vpack.i.bf16 %v1162_v18, %v1160_v9  ;;  %v1164_v18 = vrot.slane %v8238_v46, 4  ;;  %v1166_v9 = vrot.slane %v8241_v48, 4 }
 0x13d   : > { %v9120_v1 = vpack.i.bf16 %v1157_v30, %v1155_v22  ;;  %v1175_v59 = vsel %vm15754_vm5, %v1173_v20, %v1174_v37  ;;  %v1177_v60 = vsel %vm15754_vm5, %v1174_v37, %v1176_v62  ;;  %v1188_v2 = vrot.slane %v8341_v39, 4 }
 0x13e   : > { %v9098_v38 = vpop.permute.xlu1 %897  ;;  %v9100_v33 = vpop.permute.xlu0 %907  ;;  %15960 = vst [vmem:[#allocation174_spill] sm:$0xff] %v9108_v43  ;;  %v9137_v6 = vpack.i.bf16 %v1177_v60, %v1175_v59  ;;  %v1189_v22 = vrot.slane %v8343_v40, 4  ;;  %v1191_v30 = vrot.slane %v8409_v51, 4  ;;  %v1183_v20 = vrot.slane %v8375_v63, 4 }
 0x13f   : > { %15957 = vst [vmem:[#allocation12_spill] sm:$0xff] %v9098_v38  ;;  %v1169_v38 = vrot.slane %v8280_v5, 4  ;;  %v1186_v39 = vrot.slane %v8359_v50, 4  ;;  %v1178_v59 = vrot.slane %v8322_v25, 4  ;;  %v1179_v60 = vrot.slane %v8311_v21, 4 }
 0x140   : > { %15958 = vst [vmem:[#allocation172_spill] sm:$0xff] %v9100_v33  ;;  %1108 = vrot.lane.b32.xlu2 %v9093_v56, %s15765_s28  ;;  %v1168_v33 = vrot.slane %v8300_v16, 4  ;;  %v1163_v16 = vrot.slane %v8232_v44, 4  ;;  %v1184_v44 = vrot.slane %v8355_v45, 4  ;;  %v1190_v40 = vsel %vm15754_vm5, %v1188_v2, %v1189_v22 }
 0x141   : > { %15962 = vst [vmem:[#allocation176_spill] sm:$0xff] %v9120_v1  ;;  %v1172_v4 = vsel %vm15754_vm5, %v1169_v38, %v1171_v31  ;;  %v1192_v51 = vsel %vm15754_vm5, %v1189_v22, %v1191_v30  ;;  %v1181_v50 = vrot.slane %v8302_v17, 4  ;;  %v1198_v22 = vrot.slane %v8451_v7, 4 }
 0x142   : > { %v9114_v47 = vpop.permute.xlu2 %923  ;;  %v1170_v5 = vsel %vm15754_vm5, %v1168_v33, %v1169_v38  ;;  %15965 = vst [vmem:[#allocation179_spill] sm:$0xff] %v9137_v6  ;;  %v1165_v48 = vsel %vm15754_vm5, %v1163_v16, %v1164_v18  ;;  %v1167_v38 = vsel %vm15754_vm5, %v1164_v18, %v1166_v9  ;;  %v1185_v31 = vsel %vm15754_vm5, %v1183_v20, %v1184_v44 }
 0x143   : > { %15961 = vst [vmem:[#allocation175_spill] sm:$0xff] %v9114_v47  ;;  %v9149_v46 = vpack.i.bf16 %v1172_v4, %v1170_v5  ;;  %v9162_v62 = vpack.i.bf16 %v1167_v38, %v1165_v48  ;;  %v9170_v5 = vpack.i.bf16 %v1192_v51, %v1190_v40  ;;  %v1187_v16 = vsel %vm15754_vm5, %v1184_v44, %v1186_v39 }
 0x144   : > { %1106 = vrot.lane.b32.xlu1 %v9105_v35, %s15765_s28  ;;  %7017 = vrot.lane.b32.xlu0 %v9108_v43, %s15763_s29  ;;  %v1203_v18 = vrot.slane %v8415_v13, 4  ;;  %v1204_v9 = vrot.slane %v8417_v19, 4  ;;  %v1206_v4 = vrot.slane %v8482_v49, 4  ;;  %v1199_v25 = vrot.slane %v8429_v23, 4 }
 0x145   : > { %15967 = vst [vmem:[#allocation181_spill] sm:$0xff] %v9149_v46  ;;  %v9182_v17 = vpack.i.bf16 %v1187_v16, %v1185_v31  ;;  %v1180_v21 = vsel %vm15754_vm5, %v1178_v59, %v1179_v60  ;;  %v1182_v30 = vsel %vm15754_vm5, %v1179_v60, %v1181_v50  ;;  %v1201_v13 = vrot.slane %v8431_v34, 4 }
 0x146   : > { %v9127_v36 = vpop.permute.xlu1 %903  ;;  %v9129_v29 = vpop.permute.xlu0 %913  ;;  %15970 = vst [vmem:[#allocation184_spill] sm:$0xff] %v9162_v62  ;;  %v1205_v19 = vsel %vm15754_vm5, %v1203_v18, %v1204_v9  ;;  %v1207_v49 = vsel %vm15754_vm5, %v1204_v9, %v1206_v4  ;;  %v9195_v44 = vpack.i.bf16 %v1182_v30, %v1180_v21  ;;  %v1200_v48 = vsel %vm15754_vm5, %v1198_v22, %v1199_v25 }
 0x147   : > { %15963 = vst [vmem:[#allocation177_spill] sm:$0xff] %v9127_v36  ;;  %v1202_v38 = vsel %vm15754_vm5, %v1199_v25, %v1201_v13  ;;  %v1193_v39 = vrot.slane %v8400_v27, 4  ;;  %v1194_v34 = vrot.slane %v8389_v3, 4  ;;  %v9203_v40 = vpack.i.bf16 %v1207_v49, %v1205_v19 }
 0x148   : > { %15964 = vst [vmem:[#allocation178_spill] sm:$0xff] %v9129_v29  ;;  %7012 = vrot.lane.b32.xlu2 %v9120_v1, %s15763_s29  ;;  %v1196_v51 = vrot.slane %v8380_v8, 4  ;;  %v1218_v31 = vrot.slane %v8490_v54, 4  ;;  %v1219_v59 = vrot.slane %v8492_v42, 4  ;;  %v1221_v60 = vrot.slane %v8551_v41, 4 }
 0x149   : > { %15971 = vst [vmem:[#allocation185_spill] sm:$0xff] %v9170_v5  ;;  %v9213_v16 = vpack.i.bf16 %v1202_v38, %v1200_v48  ;;  %v1195_v27 = vsel %vm15754_vm5, %v1193_v39, %v1194_v34  ;;  %v1213_v8 = vrot.slane %v8527_v61, 4  ;;  %v1214_v3 = vrot.slane %v8511_v0, 4 }
 0x14a   : > { %v9143_v33 = vpop.permute.xlu2 %929  ;;  %15973 = vst [vmem:[#allocation187_spill] sm:$0xff] %v9182_v17  ;;  %v1197_v18 = vsel %vm15754_vm5, %v1194_v34, %v1196_v51  ;;  %v1216_v41 = vrot.slane %v8513_v14, 4  ;;  %v1220_v9 = vsel %vm15754_vm5, %v1218_v31, %v1219_v59  ;;  %v1222_v4 = vsel %vm15754_vm5, %v1219_v59, %v1221_v60  ;;  %v7711_v60 = vld [vmem:[#allocation2 + $0x50] sm:$0xff] }
 0x14b   : > { %15966 = vst [vmem:[#allocation180_spill] sm:$0xff] %v9143_v33  ;;  %v9230_v21 = vpack.i.bf16 %v1197_v18, %v1195_v27  ;;  %v1215_v30 = vsel %vm15754_vm5, %v1213_v8, %v1214_v3  ;;  %v9233_v13 = vpack.i.bf16 %v1222_v4, %v1220_v9  ;;  %v1208_v14 = vrot.slane %v8470_v15, 4  ;;  %v7712_v27 = vld [vmem:[#allocation2 + $0x48] sm:$0xff]  ;;  %v7713_v18 = vld [vmem:[#allocation2 + $0x30] sm:$0xff]  ;;  %v9359_v33 = vld [vmem:[#allocation2 + $0xf8] sm:$0xff] }
 0x14c   : > { %7007 = vrot.lane.b32.xlu1 %v9023_v10, %s15763_s29  ;;  %7032 = vrot.lane.b32.xlu0 %v9137_v6, %s15763_s29  ;;  %15976 = vst [vmem:[#allocation190_spill] sm:$0xff] %v9195_v44  ;;  %v1217_v19 = vsel %vm15754_vm5, %v1214_v3, %v1216_v41  ;;  %v1209_v49 = vrot.slane %v8461_v26, 4  ;;  %v1211_v48 = vrot.slane %v8453_v57, 4  ;;  %v9257_v8 = vpack.i.bf16 %v7711_v60, %v7712_v27  ;;  %v7714_v41 = vld [vmem:[#allocation2 + $0x38] sm:$0xff]  ;;  %v9287_v27 = vld [vmem:[#allocation2 + $0x68] sm:$0xff] }
 0x14d   : > { %15977 = vst [vmem:[#allocation191_spill] sm:$0xff] %v9203_v40  ;;  %v9243_v39 = vpack.i.bf16 %v1217_v19, %v1215_v30  ;;  %v9263_v9 = vpack.i.bf16 %v7714_v41, %v7713_v18  ;;  %v9273_v19 = vld [vmem:[#allocation2 + $0x18] sm:$0xff]  ;;  %v9293_v41 = vld [vmem:[#allocation2 + $0x60] sm:$0xff] }
 0x14e   : > { %v9158_v37 = vpop.permute.xlu1 %909  ;;  %v9160_v45 = vpop.permute.xlu0 %919  ;;  %15979 = vst [vmem:[#allocation193_spill] sm:$0xff] %v9213_v16  ;;  %v1210_v34 = vsel %vm15754_vm5, %v1208_v14, %v1209_v49  ;;  %v1212_v51 = vsel %vm15754_vm5, %v1209_v49, %v1211_v48  ;;  %v7716_v14 = vld [vmem:[#allocation2 + $0x20] sm:$0xff] }
 0x14f   : > { %15968 = vst [vmem:[#allocation182_spill] sm:$0xff] %v9158_v37  ;;  %v9255_v57 = vpack.i.bf16 %v1212_v51, %v1210_v34  ;;  %v7081_v49 = vpack.i.bf16 %v7716_v14, %v9273_v19  ;;  %v9279_v34 = vld [vmem:[#allocation2 + $0x78] sm:$0xff]  ;;  %v9311_v37 = vld [vmem:[#allocation2 + $0x80] sm:$0xff] }
 0x150   : > { %15969 = vst [vmem:[#allocation183_spill] sm:$0xff] %v9160_v45  ;;  %7027 = vrot.lane.b32.xlu2 %v9149_v46, %s15763_s29  ;;  %v9297_v14 = vld [vmem:[#allocation2 + $0x98] sm:$0xff] }
 0x151   : > { %15982 = vst [vmem:[#allocation196_spill] sm:$0xff] %v9230_v21 }
 0x152   : > { %v9176_v2 = vpop.permute.xlu2 %6992  ;;  %15983 = vst [vmem:[#allocation197_spill] sm:$0xff] %v9233_v13 }
 0x153   : > { %15972 = vst [vmem:[#allocation186_spill] sm:$0xff] %v9176_v2  ;;  %v16044_v2 = vld [vmem:[#allocation32_spill] sm:$0xff] }
 0x154   : > { %7022 = vrot.lane.b32.xlu1 %v9162_v62, %s15763_s29  ;;  %7047 = vrot.lane.b32.xlu0 %v9170_v5, %s15763_s29  ;;  %15985 = vst [vmem:[#allocation199_spill] sm:$0xff] %v9243_v39 }
 0x155   : > { %15988 = vst [vmem:[#allocation202_spill] sm:$0xff] %v9255_v57 }
 0x156   : > { %v9191_v20 = vpop.permute.xlu1 %915  ;;  %v9193_v23 = vpop.permute.xlu0 %925  ;;  %15992 = vst [vmem:[#allocation206_spill] sm:$0xff] %v9273_v19 }
 0x157   : > { %15974 = vst [vmem:[#allocation188_spill] sm:$0xff] %v9191_v20  ;;  %v9305_v20 = vld [vmem:[#allocation2 + $0x90] sm:$0xff] }
 0x158   : > { %15975 = vst [vmem:[#allocation189_spill] sm:$0xff] %v9193_v23  ;;  %7042 = vrot.lane.b32.xlu2 %v9182_v17, %s15763_s29 }
 0x15a   : > { %v9209_v50 = vpop.permute.xlu2 %1060 }
 0x15b   : > { %15978 = vst [vmem:[#allocation192_spill] sm:$0xff] %v9209_v50 }
 0x15c   : > { %7037 = vrot.lane.b32.xlu1 %v9195_v44, %s15763_s29  ;;  %7062 = vrot.lane.b32.xlu0 %v9203_v40, %s15763_s29 }
 0x15e   : > { %v9224_v22 = vpop.permute.xlu1 %921  ;;  %v9226_v25 = vpop.permute.xlu0 %931 }
 0x15f   : > { %15980 = vst [vmem:[#allocation194_spill] sm:$0xff] %v9224_v22 }
 0x160   : > { %15981 = vst [vmem:[#allocation195_spill] sm:$0xff] %v9226_v25  ;;  %7057 = vrot.lane.b32.xlu2 %v9213_v16, %s15763_s29 }
 0x162   : > { %v9239_v38 = vpop.permute.xlu2 %1066 }
 0x163   : > { %15984 = vst [vmem:[#allocation198_spill] sm:$0xff] %v9239_v38  ;;  %v9349_v38 = vld [vmem:[#allocation2 + $0xc8] sm:$0xff] }
 0x164   : > { %7052 = vrot.lane.b32.xlu1 %v9230_v21, %s15763_s29  ;;  %7077 = vrot.lane.b32.xlu0 %v9233_v13, %s15763_s29 }
 0x166   : > { %v9249_v31 = vpop.permute.xlu1 %927  ;;  %v9251_v59 = vpop.permute.xlu0 %6997 }
 0x167   : > { %15986 = vst [vmem:[#allocation200_spill] sm:$0xff] %v9249_v31  ;;  %v9383_v31 = vld [vmem:[#allocation2 + $0x110] sm:$0xff] }
 0x168   : > { %15987 = vst [vmem:[#allocation201_spill] sm:$0xff] %v9251_v59  ;;  %7072 = vrot.lane.b32.xlu2 %v9243_v39, %s15763_s29  ;;  %v16038_v59 = vld [vmem:[#allocation27_spill] sm:$0xff] }
 0x16a   : > { %v9259_v3 = vpop.permute.xlu2 %1072 }
 0x16b   : > { %15989 = vst [vmem:[#allocation203_spill] sm:$0xff] %v9259_v3  ;;  %v9331_v3 = vld [vmem:[#allocation2 + $0xe0] sm:$0xff] }
 0x16c   : > { %7067 = vrot.lane.b32.xlu1 %v9255_v57, %s15763_s29  ;;  %7092 = vrot.lane.b32.xlu0 %v9257_v8, %s15599_s14 }
 0x16e   : > { %v9267_v4 = vpop.permute.xlu1 %6987  ;;  %v9269_v30 = vpop.permute.xlu0 %1062 }
 0x16f   : > { %15990 = vst [vmem:[#allocation204_spill] sm:$0xff] %v9267_v4  ;;  %v16050_v4 = vld [vmem:[#allocation36_spill] sm:$0xff] }
 0x170   : > { %15991 = vst [vmem:[#allocation205_spill] sm:$0xff] %v9269_v30  ;;  %7087 = vrot.lane.b32.xlu2 %v9263_v9, %s15599_s14 }
 0x172   : > { %v9276_v48 = vpop.permute.xlu2 %1078 }
 0x173   : > { %15993 = vst [vmem:[#allocation207_spill] sm:$0xff] %v9276_v48  ;;  %v9321_v48 = vld [vmem:[#allocation2 + $0xb0] sm:$0xff] }
 0x174   : > { %7082 = vrot.lane.b32.xlu1 %v7081_v49, %s15599_s14  ;;  %1337 = vrot.lane.b32.xlu0 %v9279_v34, %s15599_s14 }
 0x176   : > { %v9283_v51 = vpop.permute.xlu1 %1058  ;;  %v9285_v60 = vpop.permute.xlu0 %1068 }
 0x177   : > { %15994 = vst [vmem:[#allocation208_spill] sm:$0xff] %v9283_v51  ;;  %v16032_v51 = vld [vmem:[#allocation23_spill] sm:$0xff] }
 0x178   : > { %15995 = vst [vmem:[#allocation209_spill] sm:$0xff] %v9285_v60  ;;  %1335 = vrot.lane.b32.xlu2 %v9287_v27, %s15599_s14  ;;  %v422_v60 = vld [vmem:[%s8175_s26 + $0xe8] sm:$0xff] }
 0x179   : > { %455 = vst.msk [vmem:[#allocation2 + $0x18a] sm:$0xff] %vm331_vm0, %v422_v60  ;;  %v9365_v60 = vld [vmem:[#allocation2 + $0xf0] sm:$0xff] }
 0x17a   : > { %v9291_v18 = vpop.permute.xlu2 %1084 }
 0x17b   : > { %15996 = vst [vmem:[#allocation210_spill] sm:$0xff] %v9291_v18 }
 0x17c   : > { %1333 = vrot.lane.b32.xlu1 %v9293_v41, %s15599_s14  ;;  %1343 = vrot.lane.b32.xlu0 %v9297_v14, %s15599_s14 }
 0x17e   : > { %v9301_v49 = vpop.permute.xlu1 %1064  ;;  %v9303_v45 = vpop.permute.xlu0 %1074 }
 0x17f   : > { %15997 = vst [vmem:[#allocation211_spill] sm:$0xff] %v9301_v49  ;;  %v9369_v49 = vld [vmem:[#allocation2 + $0x128] sm:$0xff] }
 0x180   : > { %15998 = vst [vmem:[#allocation212_spill] sm:$0xff] %v9303_v45  ;;  %1341 = vrot.lane.b32.xlu2 %v9305_v20, %s15599_s14  ;;  %v9327_v45 = vld [vmem:[#allocation2 + $0xa8] sm:$0xff] }
 0x182   : > { %v9309_v29 = vpop.permute.xlu2 %1090 }
 0x183   : > { %15999 = vst [vmem:[#allocation213_spill] sm:$0xff] %v9309_v29 }
 0x184   : > { %1339 = vrot.lane.b32.xlu1 %v9311_v37, %s15599_s14  ;;  %1349 = vrot.lane.b32.xlu0 %v8375_v63, %s15599_s14 }
 0x186   : > { %v9317_v18 = vpop.permute.xlu1 %1070  ;;  %v9319_v36 = vpop.permute.xlu0 %1080 }
 0x187   : > { %16000 = vst [vmem:[#allocation214_spill] sm:$0xff] %v9317_v18  ;;  %v9339_v18 = vld [vmem:[#allocation2 + $0xd8] sm:$0xff] }
 0x188   : > { %16001 = vst [vmem:[#allocation215_spill] sm:$0xff] %v9319_v36  ;;  %1347 = vrot.lane.b32.xlu2 %v9321_v48, %s15599_s14 }
 0x18a   : > { %v9325_v29 = vpop.permute.xlu2 %1096 }
 0x18b   : > { %16002 = vst [vmem:[#allocation216_spill] sm:$0xff] %v9325_v29  ;;  %v421_v29 = vld [vmem:[%s8175_s26 + $0xe0] sm:$0xff] }
 0x18c   : > { %1345 = vrot.lane.b32.xlu1 %v9327_v45, %s15599_s14  ;;  %1355 = vrot.lane.b32.xlu0 %v9331_v3, %s15599_s14  ;;  %454 = vst.msk [vmem:[#allocation2 + $0x182] sm:$0xff] %vm331_vm0, %v421_v29 }
 0x18e   : > { %v9335_v63 = vpop.permute.xlu1 %1076  ;;  %v9337_v36 = vpop.permute.xlu0 %1086 }
 0x18f   : > { %16003 = vst [vmem:[#allocation217_spill] sm:$0xff] %v9335_v63 }
 0x190   : > { %16004 = vst [vmem:[#allocation218_spill] sm:$0xff] %v9337_v36  ;;  %1353 = vrot.lane.b32.xlu2 %v9339_v18, %s15599_s14 }
 0x192   : > { %v9345_v25 = vpop.permute.xlu2 %1102 }
 0x193   : > { %16005 = vst [vmem:[#allocation219_spill] sm:$0xff] %v9345_v25 }
 0x194   : > { %1351 = vrot.lane.b32.xlu1 %v9349_v38, %s15599_s14  ;;  %1361 = vrot.lane.b32.xlu0 %v8451_v7, %s15599_s14 }
 0x196   : > { %v9355_v36 = vpop.permute.xlu1 %1082  ;;  %v9357_v63 = vpop.permute.xlu0 %1092 }
 0x197   : > { %16006 = vst [vmem:[#allocation220_spill] sm:$0xff] %v9355_v36  ;;  %v9377_v36 = vld [vmem:[#allocation2 + $0x120] sm:$0xff] }
 0x198   : > { %16007 = vst [vmem:[#allocation221_spill] sm:$0xff] %v9357_v63  ;;  %1359 = vrot.lane.b32.xlu2 %v9359_v33, %s15599_s14 }
 0x19a   : > { %v9363_v29 = vpop.permute.xlu2 %1108 }
 0x19b   : > { %16008 = vst [vmem:[#allocation222_spill] sm:$0xff] %v9363_v29 }
 0x19c   : > { %1357 = vrot.lane.b32.xlu1 %v9365_v60, %s15599_s14  ;;  %1367 = vrot.lane.b32.xlu0 %v9369_v49, %s15599_s14 }
 0x19e   : > { %v9373_v7 = vpop.permute.xlu1 %1088  ;;  %v9375_v63 = vpop.permute.xlu0 %1098 }
 0x19f   : > { %16009 = vst [vmem:[#allocation223_spill] sm:$0xff] %v9373_v7 }
 0x1a0   : > { %16010 = vst [vmem:[#allocation224_spill] sm:$0xff] %v9375_v63  ;;  %1365 = vrot.lane.b32.xlu2 %v9377_v36, %s15599_s14  ;;  %v16029_v63 = vld [vmem:[#allocation21_spill] sm:$0xff] }
 0x1a2   : > { %v9381_v29 = vpop.permute.xlu2 %7012 }
 0x1a3   : > { %16011 = vst [vmem:[#allocation225_spill] sm:$0xff] %v9381_v29 }
 0x1a4   : > { %1363 = vrot.lane.b32.xlu1 %v9383_v31, %s15599_s14  ;;  %1373 = vrot.lane.b32.xlu0 %v8527_v61, %s15599_s14 }
 0x1a6   : > { %v9389_v25 = vpop.permute.xlu1 %1094  ;;  %v9391_v7 = vpop.permute.xlu0 %1104 }
 0x1a7   : > { %16012 = vst [vmem:[#allocation226_spill] sm:$0xff] %v9389_v25 }
 0x1a8   : > { %16013 = vst [vmem:[#allocation227_spill] sm:$0xff] %v9391_v7  ;;  %1371 = vrot.lane.b32.xlu2 %v8461_v26, %s15599_s14  ;;  %v16018_v26 = vld [vmem:[#allocation9_spill] sm:$0xff] }
 0x1aa   : > { %v9395_v30 = vpop.permute.xlu2 %7027 }
 0x1ab   : > { %16014 = vst [vmem:[#allocation228_spill] sm:$0xff] %v9395_v30  ;;  %v9421_v30 = vld [vmem:[#allocation2 + $0x180] sm:$0xff] }
 0x1ac   : > { %1369 = vrot.lane.b32.xlu1 %v8470_v15, %s15599_s14  ;;  %1379 = vrot.lane.b32.xlu0 %v8492_v42, %s15599_s14  ;;  %v9413_v15 = vld [vmem:[#allocation2 + $0x188] sm:$0xff] }
 0x1ae   : > { %v9401_v23 = vpop.permute.xlu1 %1100  ;;  %v9403_v50 = vpop.permute.xlu0 %7002 }
 0x1af   : > { %16015 = vst [vmem:[#allocation229_spill] sm:$0xff] %v9401_v23 }
 0x1b0   : > { %16016 = vst [vmem:[#allocation230_spill] sm:$0xff] %v9403_v50  ;;  %1377 = vrot.lane.b32.xlu2 %v8490_v54, %s15599_s14 }
 0x1b2   : > { %v9407_v61 = vpop.permute.xlu2 %7042 }
 0x1b3   : > { %16017 = vst [vmem:[#allocation231_spill] sm:$0xff] %v9407_v61  ;;  %v16023_v61 = vld [vmem:[#allocation13_spill] sm:$0xff] }
 0x1b4   : > { %1375 = vrot.lane.b32.xlu1 %v8511_v0, %s15599_s14  ;;  %7097 = vrot.lane.b32.xlu0 %v16018_v26, %s15601_s16  ;;  %v16022_v0 = vld [vmem:[#allocation18_spill] sm:$0xff]  ;;  %v16024_v26 = vld [vmem:[#allocation17_spill] sm:$0xff] }
 0x1b5   : > { %v9429_v7 = vpack.i.bf16 %v16023_v61, %v16022_v0 }
 0x1b6   : > { %v9415_v25 = vpop.permute.xlu1 %1106  ;;  %v9417_v42 = vpop.permute.xlu0 %7017 }
 0x1b7   : > { %16019 = vst [vmem:[#allocation9_spill] sm:$0xff] %v9415_v25 }
 0x1b8   : > { %16020 = vst [vmem:[#allocation232_spill] sm:$0xff] %v9417_v42  ;;  %1383 = vrot.lane.b32.xlu2 %v9413_v15, %s15599_s14 }
 0x1ba   : > { %v9423_v54 = vpop.permute.xlu2 %7057 }
 0x1bb   : > { %16021 = vst [vmem:[#allocation233_spill] sm:$0xff] %v9423_v54  ;;  %v16028_v54 = vld [vmem:[#allocation15_spill] sm:$0xff] }
 0x1bc   : > { %1381 = vrot.lane.b32.xlu1 %v9421_v30, %s15599_s14  ;;  %1435 = vrot.lane.b32.xlu0 %v16024_v26, %s15601_s16  ;;  %s16864_s14 = smov 56  }
 0x1be   : > { %v9433_v25 = vpop.permute.xlu1 %7007  ;;  %v9435_v23 = vpop.permute.xlu0 %7032 }
 0x1bf   : > { %16025 = vst [vmem:[#allocation18_spill] sm:$0xff] %v9433_v25 }
 0x1c0   : > { %16026 = vst [vmem:[#allocation13_spill] sm:$0xff] %v9435_v23  ;;  %7107 = vrot.lane.b32.xlu2 %v9429_v7, %s15601_s16  ;;  %v16034_v23 = vld [vmem:[#allocation16_spill] sm:$0xff] }
 0x1c2   : > { %v9439_v47 = vpop.permute.xlu2 %7072 }
 0x1c3   : > { %16027 = vst [vmem:[#allocation17_spill] sm:$0xff] %v9439_v47  ;;  %v16035_v47 = vld [vmem:[#allocation25_spill] sm:$0xff] }
 0x1c4   : > { %7102 = vrot.lane.b32.xlu1 %v16028_v54, %s15601_s16  ;;  %1441 = vrot.lane.b32.xlu0 %v16029_v63, %s15601_s16 }
 0x1c6   : > { %v9445_v61 = vpop.permute.xlu1 %7022  ;;  %v9447_v0 = vpop.permute.xlu0 %7047 }
 0x1c7   : > { %16030 = vst [vmem:[#allocation15_spill] sm:$0xff] %v9445_v61 }
 0x1c8   : > { %16031 = vst [vmem:[#allocation21_spill] sm:$0xff] %v9447_v0  ;;  %1439 = vrot.lane.b32.xlu2 %v16032_v51, %s15601_s16  ;;  %v16040_v0 = vld [vmem:[#allocation20_spill] sm:$0xff] }
 0x1ca   : > { %v9451_v22 = vpop.permute.xlu2 %7087 }
 0x1cb   : > { %16033 = vst [vmem:[#allocation23_spill] sm:$0xff] %v9451_v22  ;;  %v16041_v22 = vld [vmem:[#allocation30_spill] sm:$0xff] }
 0x1cc   : > { %1437 = vrot.lane.b32.xlu1 %v16034_v23, %s15601_s16  ;;  %1447 = vrot.lane.b32.xlu0 %v16035_v47, %s15601_s16 }
 0x1ce   : > { %v9457_v42 = vpop.permute.xlu1 %7037  ;;  %v9459_v29 = vpop.permute.xlu0 %7062 }
 0x1cf   : > { %16036 = vst [vmem:[#allocation16_spill] sm:$0xff] %v9457_v42 }
 0x1d0   : > { %16037 = vst [vmem:[#allocation234_spill] sm:$0xff] %v9459_v29  ;;  %1445 = vrot.lane.b32.xlu2 %v16038_v59, %s15601_s16  ;;  %v16046_v29 = vld [vmem:[#allocation24_spill] sm:$0xff] }
 0x1d2   : > { %v9463_v61 = vpop.permute.xlu2 %1335 }
 0x1d3   : > { %16039 = vst [vmem:[#allocation27_spill] sm:$0xff] %v9463_v61  ;;  %v16047_v61 = vld [vmem:[#allocation35_spill] sm:$0xff] }
 0x1d4   : > { %1443 = vrot.lane.b32.xlu1 %v16040_v0, %s15601_s16  ;;  %1453 = vrot.lane.b32.xlu0 %v16041_v22, %s15601_s16 }
 0x1d6   : > { %v9469_v25 = vpop.permute.xlu1 %7052  ;;  %v9471_v19 = vpop.permute.xlu0 %7077 }
 0x1d7   : > { %16042 = vst [vmem:[#allocation20_spill] sm:$0xff] %v9469_v25 }
 0x1d8   : > { %16043 = vst [vmem:[#allocation235_spill] sm:$0xff] %v9471_v19  ;;  %1451 = vrot.lane.b32.xlu2 %v16044_v2, %s15601_s16  ;;  %v16052_v19 = vld [vmem:[#allocation29_spill] sm:$0xff] }
 0x1da   : > { %v9475_v42 = vpop.permute.xlu2 %1341 }
 0x1db   : > { %16045 = vst [vmem:[#allocation236_spill] sm:$0xff] %v9475_v42  ;;  %v16053_v42 = vld [vmem:[#allocation40_spill] sm:$0xff] }
 0x1dc   : > { %1449 = vrot.lane.b32.xlu1 %v16046_v29, %s15601_s16  ;;  %1459 = vrot.lane.b32.xlu0 %v16047_v61, %s15601_s16  ;;  %v16056_v61 = vld [vmem:[#allocation42_spill] sm:$0xff] }
 0x1de   : > { %v9481_v50 = vpop.permute.xlu1 %7067  ;;  %v9483_v47 = vpop.permute.xlu0 %7092 }
 0x1df   : > { %16048 = vst [vmem:[#allocation237_spill] sm:$0xff] %v9481_v50 }
 0x1e0   : > { %16049 = vst [vmem:[#allocation238_spill] sm:$0xff] %v9483_v47  ;;  %1457 = vrot.lane.b32.xlu2 %v16050_v4, %s15601_s16  ;;  %v16058_v47 = vld [vmem:[#allocation33_spill] sm:$0xff] }
 0x1e2   : > { %v9487_v25 = vpop.permute.xlu2 %1347 }
 0x1e3   : > { %16051 = vst [vmem:[#allocation239_spill] sm:$0xff] %v9487_v25  ;;  %v16059_v25 = vld [vmem:[#allocation44_spill] sm:$0xff] }
 0x1e4   : > { %1455 = vrot.lane.b32.xlu1 %v16052_v19, %s15601_s16  ;;  %1465 = vrot.lane.b32.xlu0 %v16053_v42, %s15601_s16  ;;  %v16062_v42 = vld [vmem:[#allocation47_spill] sm:$0xff] }
 0x1e6   : > { %v9493_v22 = vpop.permute.xlu1 %7082  ;;  %v9495_v29 = vpop.permute.xlu0 %1337 }
 0x1e7   : > { %16054 = vst [vmem:[#allocation240_spill] sm:$0xff] %v9493_v22 }
 0x1e8   : > { %16055 = vst [vmem:[#allocation241_spill] sm:$0xff] %v9495_v29  ;;  %1463 = vrot.lane.b32.xlu2 %v16056_v61, %s15601_s16  ;;  %v16064_v29 = vld [vmem:[#allocation38_spill] sm:$0xff]  ;;  %v1419_v61 = vrot.slane %v9413_v15, 1 }
 0x1ea   : > { %v9499_v50 = vpop.permute.xlu2 %1353 }
 0x1eb   : > { %16057 = vst [vmem:[#allocation242_spill] sm:$0xff] %v9499_v50  ;;  %v16065_v50 = vld [vmem:[#allocation50_spill] sm:$0xff] }
 0x1ec   : > { %1461 = vrot.lane.b32.xlu1 %v16058_v47, %s15601_s16  ;;  %1471 = vrot.lane.b32.xlu0 %v16059_v25, %s15601_s16  ;;  %v1418_v47 = vrot.slane %v9421_v30, 1 }
 0x1ee   : > { %v9505_v2 = vpop.permute.xlu1 %1333  ;;  %v9507_v4 = vpop.permute.xlu0 %1343 }
 0x1ef   : > { %16060 = vst [vmem:[#allocation243_spill] sm:$0xff] %v9505_v2 }
 0x1f0   : > { %16061 = vst [vmem:[#allocation244_spill] sm:$0xff] %v9507_v4  ;;  %1469 = vrot.lane.b32.xlu2 %v16062_v42, %s15601_s16  ;;  %v16068_v4 = vld [vmem:[#allocation51_spill] sm:$0xff]  ;;  %v9526_v42 = vsel %vm15776_vm2, %v1418_v47, %v1419_v61  ;;  %v16076_v47 = vld [vmem:[#allocation49_spill] sm:$0xff] }
 0x1f1   : > { %16069 = vst [vmem:[#allocation248_spill] sm:$0xff] %v9526_v42 }
 0x1f2   : > { %v9511_v22 = vpop.permute.xlu2 %1359 }
 0x1f3   : > { %16063 = vst [vmem:[#allocation245_spill] sm:$0xff] %v9511_v22 }
 0x1f4   : > { %1467 = vrot.lane.b32.xlu1 %v16064_v29, %s15601_s16  ;;  %1477 = vrot.lane.b32.xlu0 %v16065_v50, %s15601_s16  ;;  %v16071_v29 = vld [vmem:[#allocation43_spill] sm:$0xff] }
 0x1f6   : > { %v9519_v25 = vpop.permute.xlu1 %1339  ;;  %v9521_v2 = vpop.permute.xlu0 %1349 }
 0x1f7   : > { %16066 = vst [vmem:[#allocation246_spill] sm:$0xff] %v9519_v25 }
 0x1f8   : > { %16067 = vst [vmem:[#allocation247_spill] sm:$0xff] %v9521_v2  ;;  %1475 = vrot.lane.b32.xlu2 %v16068_v4, %s15601_s16  ;;  %v16074_v2 = vld [vmem:[#allocation53_spill] sm:$0xff]  ;;  %v9542_v4 = vld [vmem:[#allocation2 + $0x190] sm:$0xf] }
 0x1fa   : > { %v9528_v22 = vpop.permute.xlu2 %1365 }
 0x1fb   : > { %16070 = vst [vmem:[#allocation249_spill] sm:$0xff] %v9528_v22  ;;  %v16077_v22 = vld [vmem:[#allocation54_spill] sm:$0xff] }
 0x1fc   : > { %1473 = vrot.lane.b32.xlu1 %v16071_v29, %s15601_s16  ;;  %1483 = vrot.lane.b32.xlu0 %v9526_v42, %s15601_s16  ;;  %v9549_v42 = vrot.slane %v9542_v4, 1  ;;  %v16081_v29 = vld [vmem:[#allocation39_spill] sm:$0xff] }
 0x1fe   : > { %v9534_v50 = vpop.permute.xlu1 %1345  ;;  %v9536_v19 = vpop.permute.xlu0 %1355  ;;  %16078 = vst [vmem:[#allocation253_spill] sm:$0xff] %v9549_v42 }
 0x1ff   : > { %16072 = vst [vmem:[#allocation250_spill] sm:$0xff] %v9534_v50 }
 0x200   : > { %16073 = vst [vmem:[#allocation251_spill] sm:$0xff] %v9536_v19  ;;  %1481 = vrot.lane.b32.xlu2 %v16074_v2, %s15601_s16 }
 0x202   : > { %v9540_v25 = vpop.permute.xlu2 %1371 }
 0x203   : > { %16075 = vst [vmem:[#allocation252_spill] sm:$0xff] %v9540_v25  ;;  %v9559_v25 = vsel %vm15776_vm2, %v1419_v61, %v9549_v42  ;;  %v16089_v61 = vld [vmem:[#allocation46_spill] sm:$0xff] }
 0x204   : > { %1479 = vrot.lane.b32.xlu1 %v16076_v47, %s15601_s16  ;;  %7117 = vrot.lane.b32.xlu0 %v16077_v22, %s15605_s17  ;;  %16082 = vst [vmem:[#allocation39_spill] sm:$0xff] %v9559_v25  ;;  %v16084_v22 = vld [vmem:[#allocation57_spill] sm:$0xff]  ;;  %v16090_v42 = vld [vmem:[#allocation62_spill] sm:$0xff] }
 0x206   : > { %v9551_v50 = vpop.permute.xlu1 %1351  ;;  %v9553_v19 = vpop.permute.xlu0 %1361 }
 0x207   : > { %16079 = vst [vmem:[#allocation254_spill] sm:$0xff] %v9551_v50 }
 0x208   : > { %16080 = vst [vmem:[#allocation255_spill] sm:$0xff] %v9553_v19  ;;  %7112 = vrot.lane.b32.xlu2 %v16081_v29, %s15605_s17  ;;  %v16087_v19 = vld [vmem:[#allocation59_spill] sm:$0xff] }
 0x20a   : > { %v9561_v2 = vpop.permute.xlu2 %1377 }
 0x20b   : > { %16083 = vst [vmem:[#allocation256_spill] sm:$0xff] %v9561_v2 }
 0x20c   : > { %1485 = vrot.lane.b32.xlu1 %v9559_v25, %s15601_s16  ;;  %1538 = vrot.lane.b32.xlu0 %v16084_v22, %s15605_s17  ;;  %v16093_v22 = vld [vmem:[#allocation64_spill] sm:$0xff]  ;;  %s7907_s16 = smov 82  }
 0x20e   : > { %v9567_v47 = vpop.permute.xlu1 %1357  ;;  %v9569_v50 = vpop.permute.xlu0 %1367 }
 0x20f   : > { %16085 = vst [vmem:[#allocation257_spill] sm:$0xff] %v9567_v47 }
 0x210   : > { %16086 = vst [vmem:[#allocation258_spill] sm:$0xff] %v9569_v50  ;;  %1536 = vrot.lane.b32.xlu2 %v16087_v19, %s15605_s17  ;;  %v16095_v50 = vld [vmem:[#allocation56_spill] sm:$0xff] }
 0x212   : > { %v9573_v29 = vpop.permute.xlu2 %1383 }
 0x213   : > { %16088 = vst [vmem:[#allocation259_spill] sm:$0xff] %v9573_v29  ;;  %v16096_v29 = vld [vmem:[#allocation69_spill] sm:$0xff] }
 0x214   : > { %7122 = vrot.lane.b32.xlu1 %v16089_v61, %s15605_s17  ;;  %1544 = vrot.lane.b32.xlu0 %v16090_v42, %s15605_s17  ;;  %v16099_v42 = vld [vmem:[#allocation71_spill] sm:$0xff] }
 0x216   : > { %v9579_v2 = vpop.permute.xlu1 %1363  ;;  %v9581_v25 = vpop.permute.xlu0 %1373 }
 0x217   : > { %16091 = vst [vmem:[#allocation260_spill] sm:$0xff] %v9579_v2 }
 0x218   : > { %16092 = vst [vmem:[#allocation261_spill] sm:$0xff] %v9581_v25  ;;  %1542 = vrot.lane.b32.xlu2 %v16093_v22, %s15605_s17  ;;  %v16101_v25 = vld [vmem:[#allocation60_spill] sm:$0xff] }
 0x21a   : > { %v9585_v47 = vpop.permute.xlu2 %7107 }
 0x21b   : > { %16094 = vst [vmem:[#allocation262_spill] sm:$0xff] %v9585_v47  ;;  %v16102_v47 = vld [vmem:[#allocation75_spill] sm:$0xff] }
 0x21c   : > { %1540 = vrot.lane.b32.xlu1 %v16095_v50, %s15605_s17  ;;  %1550 = vrot.lane.b32.xlu0 %v16096_v29, %s15605_s17  ;;  %v16105_v29 = vld [vmem:[#allocation78_spill] sm:$0xff] }
 0x21e   : > { %v9591_v19 = vpop.permute.xlu1 %1369  ;;  %v9593_v61 = vpop.permute.xlu0 %1379 }
 0x21f   : > { %16097 = vst [vmem:[#allocation263_spill] sm:$0xff] %v9591_v19 }
 0x220   : > { %16098 = vst [vmem:[#allocation264_spill] sm:$0xff] %v9593_v61  ;;  %1548 = vrot.lane.b32.xlu2 %v16099_v42, %s15605_s17  ;;  %v16107_v61 = vld [vmem:[#allocation66_spill] sm:$0xff] }
 0x222   : > { %v9597_v2 = vpop.permute.xlu2 %1439 }
 0x223   : > { %16100 = vst [vmem:[#allocation265_spill] sm:$0xff] %v9597_v2  ;;  %v16108_v2 = vld [vmem:[#allocation81_spill] sm:$0xff] }
 0x224   : > { %1546 = vrot.lane.b32.xlu1 %v16101_v25, %s15605_s17  ;;  %1556 = vrot.lane.b32.xlu0 %v16102_v47, %s15605_s17  ;;  %v16111_v47 = vld [vmem:[#allocation85_spill] sm:$0xff] }
 0x226   : > { %v9603_v22 = vpop.permute.xlu1 %1375  ;;  %v9605_v50 = vpop.permute.xlu0 %7097 }
 0x227   : > { %16103 = vst [vmem:[#allocation266_spill] sm:$0xff] %v9603_v22 }
 0x228   : > { %16104 = vst [vmem:[#allocation267_spill] sm:$0xff] %v9605_v50  ;;  %1554 = vrot.lane.b32.xlu2 %v16105_v29, %s15605_s17  ;;  %v16113_v50 = vld [vmem:[#allocation72_spill] sm:$0xff] }
 0x22a   : > { %v9609_v19 = vpop.permute.xlu2 %1445 }
 0x22b   : > { %16106 = vst [vmem:[#allocation268_spill] sm:$0xff] %v9609_v19  ;;  %v16114_v19 = vld [vmem:[#allocation89_spill] sm:$0xff] }
 0x22c   : > { %1552 = vrot.lane.b32.xlu1 %v16107_v61, %s15605_s17  ;;  %1562 = vrot.lane.b32.xlu0 %v16108_v2, %s15605_s17  ;;  %v16116_v2 = vld [vmem:[#allocation92_spill] sm:$0xff] }
 0x22e   : > { %v9615_v42 = vpop.permute.xlu1 %1381  ;;  %v9617_v25 = vpop.permute.xlu0 %1435 }
 0x22f   : > { %16109 = vst [vmem:[#allocation269_spill] sm:$0xff] %v9615_v42 }
 0x230   : > { %16110 = vst [vmem:[#allocation270_spill] sm:$0xff] %v9617_v25  ;;  %1560 = vrot.lane.b32.xlu2 %v16111_v47, %s15605_s17  ;;  %v16118_v25 = vld [vmem:[#allocation79_spill] sm:$0xff] }
 0x232   : > { %v9621_v22 = vpop.permute.xlu2 %1451 }
 0x233   : > { %16112 = vst [vmem:[#allocation271_spill] sm:$0xff] %v9621_v22  ;;  %v16119_v22 = vld [vmem:[#allocation96_spill] sm:$0xff] }
 0x234   : > { %1558 = vrot.lane.b32.xlu1 %v16113_v50, %s15605_s17  ;;  %1568 = vrot.lane.b32.xlu0 %v16114_v19, %s15605_s17 }
 0x236   : > { %v9627_v29 = vpop.permute.xlu1 %7102  ;;  %v9629_v61 = vpop.permute.xlu0 %1441 }
 0x237   : > { %16115 = vst [vmem:[#allocation272_spill] sm:$0xff] %v9629_v61  ;;  %v16123_v61 = vld [vmem:[#allocation86_spill] sm:$0xff] }
 0x238   : > { %1566 = vrot.lane.b32.xlu2 %v16116_v2, %s15605_s17 }
 0x23a   : > { %v9633_v42 = vpop.permute.xlu2 %1457 }
 0x23b   : > { %16117 = vst [vmem:[#allocation273_spill] sm:$0xff] %v9633_v42  ;;  %v9652_v42 = vrot.slane %v9542_v4, 2 }
 0x23c   : > { %1564 = vrot.lane.b32.xlu1 %v16118_v25, %s15605_s17  ;;  %1574 = vrot.lane.b32.xlu0 %v16119_v22, %s15605_s17 }
 0x23d   : > { %16124 = vst [vmem:[#allocation276_spill] sm:$0xff] %v9652_v42 }
 0x23e   : > { %v9639_v47 = vpop.permute.xlu1 %1437  ;;  %v9641_v50 = vpop.permute.xlu0 %1447 }
 0x23f   : > { %16120 = vst [vmem:[#allocation79_spill] sm:$0xff] %v9639_v47 }
 0x240   : > { %16121 = vst [vmem:[#allocation274_spill] sm:$0xff] %v9641_v50  ;;  %1572 = vrot.lane.b32.xlu2 %v8789_v55, %s15605_s17  ;;  %v1520_v50 = vrot.slane %v9413_v15, 2 }
 0x242   : > { %v9645_v19 = vpop.permute.xlu2 %1463  ;;  %v9664_v47 = vsel %vm15772_vm3, %v1520_v50, %v9652_v42 }
 0x243   : > { %16122 = vst [vmem:[#allocation275_spill] sm:$0xff] %v9645_v19  ;;  %v1519_v19 = vrot.slane %v9421_v30, 2 }
 0x244   : > { %1570 = vrot.lane.b32.xlu1 %v16123_v61, %s15605_s17  ;;  %1580 = vrot.lane.b32.xlu0 %v8806_v28, %s15605_s17  ;;  %16127 = vst [vmem:[#allocation279_spill] sm:$0xff] %v9664_v47  ;;  %v16129_v28 = vld [vmem:[#allocation94_spill] sm:$0xff] }
 0x246   : > { %v9654_v2 = vpop.permute.xlu1 %1443  ;;  %v9656_v22 = vpop.permute.xlu0 %1453 }
 0x247   : > { %16125 = vst [vmem:[#allocation277_spill] sm:$0xff] %v9654_v2 }
 0x248   : > { %16126 = vst [vmem:[#allocation278_spill] sm:$0xff] %v9656_v22  ;;  %1578 = vrot.lane.b32.xlu2 %v8823_v24, %s15605_s17  ;;  %v9673_v22 = vsel %vm15772_vm3, %v1519_v19, %v1520_v50  ;;  %v16135_v24 = vld [vmem:[#allocation98_spill] sm:$0xff] }
 0x249   : > { %16130 = vst [vmem:[#allocation94_spill] sm:$0xff] %v9673_v22 }
 0x24a   : > { %v9666_v61 = vpop.permute.xlu2 %1469 }
 0x24b   : > { %16128 = vst [vmem:[#allocation280_spill] sm:$0xff] %v9666_v61  ;;  %v16134_v61 = vld [vmem:[#allocation102_spill] sm:$0xff] }
 0x24c   : > { %1576 = vrot.lane.b32.xlu1 %v16129_v28, %s15605_s17  ;;  %1586 = vrot.lane.b32.xlu0 %v9664_v47, %s15605_s17 }
 0x24e   : > { %v9675_v2 = vpop.permute.xlu1 %1449  ;;  %v9677_v55 = vpop.permute.xlu0 %1459 }
 0x24f   : > { %16131 = vst [vmem:[#allocation281_spill] sm:$0xff] %v9675_v2 }
 0x250   : > { %16132 = vst [vmem:[#allocation282_spill] sm:$0xff] %v9677_v55  ;;  %1584 = vrot.lane.b32.xlu2 %v9673_v22, %s15605_s17  ;;  %v16164_v22 = vld [vmem:[#allocation141_spill] sm:$0xff] }
 0x252   : > { %v9681_v42 = vpop.permute.xlu2 %1475 }
 0x253   : > { %16133 = vst [vmem:[#allocation283_spill] sm:$0xff] %v9681_v42 }
 0x254   : > { %1582 = vrot.lane.b32.xlu1 %v16134_v61, %s15605_s17  ;;  %7137 = vrot.lane.b32.xlu0 %v16135_v24, %s15597_s22  ;;  %v16148_v24 = vld [vmem:[#allocation135_spill] sm:$0xff]  ;;  %v16153_v61 = vld [vmem:[#allocation126_spill] sm:$0xff]  ;;  %s15761_s17 = smov 40  }
 0x256   : > { %v9687_v47 = vpop.permute.xlu1 %1455  ;;  %v9689_v50 = vpop.permute.xlu0 %1465 }
 0x257   : > { %16136 = vst [vmem:[#allocation284_spill] sm:$0xff] %v9687_v47 }
 0x258   : > { %16137 = vst [vmem:[#allocation285_spill] sm:$0xff] %v9689_v50  ;;  %7132 = vrot.lane.b32.xlu2 %v8819_v53, %s15597_s22  ;;  %v16141_v50 = vld [vmem:[#allocation113_spill] sm:$0xff] }
 0x25a   : > { %v9693_v19 = vpop.permute.xlu2 %1481 }
 0x25b   : > { %16138 = vst [vmem:[#allocation286_spill] sm:$0xff] %v9693_v19  ;;  %v16142_v19 = vld [vmem:[#allocation128_spill] sm:$0xff] }
 0x25c   : > { %7127 = vrot.lane.b32.xlu1 %v8725_v32, %s15597_s22  ;;  %1641 = vrot.lane.b32.xlu0 %v8872_v58, %s15597_s22  ;;  %v16145_v58 = vld [vmem:[#allocation132_spill] sm:$0xff] }
 0x25e   : > { %v9699_v55 = vpop.permute.xlu1 %1461  ;;  %v9701_v2 = vpop.permute.xlu0 %1471 }
 0x25f   : > { %16139 = vst [vmem:[#allocation287_spill] sm:$0xff] %v9699_v55 }
 0x260   : > { %16140 = vst [vmem:[#allocation288_spill] sm:$0xff] %v9701_v2  ;;  %1639 = vrot.lane.b32.xlu2 %v8887_v52, %s15597_s22  ;;  %v16147_v2 = vld [vmem:[#allocation118_spill] sm:$0xff] }
 0x262   : > { %v9705_v47 = vpop.permute.xlu2 %7112 }
 0x264   : > { %1637 = vrot.lane.b32.xlu1 %v16141_v50, %s15597_s22  ;;  %1647 = vrot.lane.b32.xlu0 %v16142_v19, %s15597_s22  ;;  %v16151_v19 = vld [vmem:[#allocation139_spill] sm:$0xff] }
 0x266   : > { %v9711_v53 = vpop.permute.xlu1 %1467  ;;  %v9713_v32 = vpop.permute.xlu0 %1477 }
 0x267   : > { %16143 = vst [vmem:[#allocation289_spill] sm:$0xff] %v9711_v53 }
 0x268   : > { %16144 = vst [vmem:[#allocation290_spill] sm:$0xff] %v9713_v32  ;;  %1645 = vrot.lane.b32.xlu2 %v16145_v58, %s15597_s22  ;;  %v16154_v58 = vld [vmem:[#allocation143_spill] sm:$0xff] }
 0x26a   : > { %v9717_v55 = vpop.permute.xlu2 %1536 }
 0x26b   : > { %16146 = vst [vmem:[#allocation291_spill] sm:$0xff] %v9717_v55 }
 0x26c   : > { %1643 = vrot.lane.b32.xlu1 %v16147_v2, %s15597_s22  ;;  %1653 = vrot.lane.b32.xlu0 %v16148_v24, %s15597_s22  ;;  %v16156_v24 = vld [vmem:[#allocation147_spill] sm:$0xff] }
 0x26e   : > { %v9723_v52 = vpop.permute.xlu1 %1473  ;;  %v9725_v50 = vpop.permute.xlu0 %1483 }
 0x26f   : > { %16149 = vst [vmem:[#allocation292_spill] sm:$0xff] %v9723_v52 }
 0x270   : > { %16150 = vst [vmem:[#allocation293_spill] sm:$0xff] %v9725_v50  ;;  %1651 = vrot.lane.b32.xlu2 %v16151_v19, %s15597_s22  ;;  %v16158_v50 = vld [vmem:[#allocation133_spill] sm:$0xff] }
 0x272   : > { %v9729_v53 = vpop.permute.xlu2 %1542 }
 0x273   : > { %16152 = vst [vmem:[#allocation294_spill] sm:$0xff] %v9729_v53  ;;  %v16159_v53 = vld [vmem:[#allocation151_spill] sm:$0xff] }
 0x274   : > { %1649 = vrot.lane.b32.xlu1 %v16153_v61, %s15597_s22  ;;  %1659 = vrot.lane.b32.xlu0 %v16154_v58, %s15597_s22  ;;  %v16162_v58 = vld [vmem:[#allocation154_spill] sm:$0xff] }
 0x276   : > { %v9735_v32 = vpop.permute.xlu1 %1479  ;;  %v9737_v2 = vpop.permute.xlu0 %7117 }
 0x277   : > { %16155 = vst [vmem:[#allocation295_spill] sm:$0xff] %v9735_v32 }
 0x278   : > { %1657 = vrot.lane.b32.xlu2 %v16156_v24, %s15597_s22  ;;  %v16168_v24 = vld [vmem:[#allocation148_spill] sm:$0xff] }
 0x27a   : > { %v9741_v52 = vpop.permute.xlu2 %1548 }
 0x27b   : > { %16157 = vst [vmem:[#allocation296_spill] sm:$0xff] %v9741_v52 }
 0x27c   : > { %1655 = vrot.lane.b32.xlu1 %v16158_v50, %s15597_s22  ;;  %1665 = vrot.lane.b32.xlu0 %v16159_v53, %s15597_s22  ;;  %v16166_v53 = vld [vmem:[#allocation162_spill] sm:$0xff] }
 0x27e   : > { %v9747_v19 = vpop.permute.xlu1 %1485  ;;  %v9749_v61 = vpop.permute.xlu0 %1538 }
 0x27f   : > { %16160 = vst [vmem:[#allocation297_spill] sm:$0xff] %v9747_v19 }
 0x280   : > { %16161 = vst [vmem:[#allocation298_spill] sm:$0xff] %v9749_v61  ;;  %1663 = vrot.lane.b32.xlu2 %v16162_v58, %s15597_s22 }
 0x282   : > { %v9753_v32 = vpop.permute.xlu2 %1554 }
 0x283   : > { %16163 = vst [vmem:[#allocation299_spill] sm:$0xff] %v9753_v32 }
 0x284   : > { %1661 = vrot.lane.b32.xlu1 %v16164_v22, %s15597_s22  ;;  %1671 = vrot.lane.b32.xlu0 %v9032_v12, %s15597_s22  ;;  %v16171_v12 = vld [vmem:[#allocation169_spill] sm:$0xff] }
 0x286   : > { %v9759_v52 = vpop.permute.xlu1 %7122  ;;  %v9761_v50 = vpop.permute.xlu0 %1544 }
 0x287   : > { %16165 = vst [vmem:[#allocation300_spill] sm:$0xff] %v9761_v50  ;;  %v16173_v50 = vld [vmem:[#allocation156_spill] sm:$0xff] }
 0x288   : > { %1669 = vrot.lane.b32.xlu2 %v16166_v53, %s15597_s22 }
 0x28a   : > { %v9765_v19 = vpop.permute.xlu2 %1560 }
 0x28b   : > { %16167 = vst [vmem:[#allocation301_spill] sm:$0xff] %v9765_v19 }
 0x28c   : > { %1667 = vrot.lane.b32.xlu1 %v16168_v24, %s15597_s22  ;;  %1677 = vrot.lane.b32.xlu0 %v9062_v11, %s15597_s22  ;;  %v9791_v11 = vrot.slane %v9542_v4, 3 }
 0x28e   : > { %v9771_v32 = vpop.permute.xlu1 %1540  ;;  %v9773_v58 = vpop.permute.xlu0 %1550  ;;  %16176 = vst [vmem:[#allocation305_spill] sm:$0xff] %v9791_v11 }
 0x28f   : > { %16169 = vst [vmem:[#allocation302_spill] sm:$0xff] %v9771_v32 }
 0x290   : > { %16170 = vst [vmem:[#allocation303_spill] sm:$0xff] %v9773_v58  ;;  %1675 = vrot.lane.b32.xlu2 %v16171_v12, %s15597_s22  ;;  %v1621_v58 = vrot.slane %v9413_v15, 3 }
 0x292   : > { %v9777_v22 = vpop.permute.xlu2 %1566 }
 0x293   : > { %16172 = vst [vmem:[#allocation169_spill] sm:$0xff] %v9777_v22  ;;  %v16178_v22 = vld [vmem:[#allocation163_spill] sm:$0xff] }
 0x294   : > { %1673 = vrot.lane.b32.xlu1 %v16173_v50, %s15597_s22  ;;  %1683 = vrot.lane.b32.xlu0 %v9093_v56, %s15597_s22  ;;  %v1620_v56 = vrot.slane %v9421_v30, 3 }
 0x296   : > { %v9783_v19 = vpop.permute.xlu1 %1546  ;;  %v9785_v24 = vpop.permute.xlu0 %1556 }
 0x297   : > { %16174 = vst [vmem:[#allocation156_spill] sm:$0xff] %v9783_v19 }
 0x298   : > { %16175 = vst [vmem:[#allocation304_spill] sm:$0xff] %v9785_v24  ;;  %1681 = vrot.lane.b32.xlu2 %v9105_v35, %s15597_s22  ;;  %v9801_v24 = vsel %vm15756_vm4, %v1621_v58, %v9791_v11 }
 0x299   : > { %16179 = vst [vmem:[#allocation307_spill] sm:$0xff] %v9801_v24 }
 0x29a   : > { %v9793_v53 = vpop.permute.xlu2 %1572 }
 0x29b   : > { %16177 = vst [vmem:[#allocation306_spill] sm:$0xff] %v9793_v53  ;;  %v9811_v53 = vsel %vm15756_vm4, %v1620_v56, %v1621_v58 }
 0x29c   : > { %1679 = vrot.lane.b32.xlu1 %v16178_v22, %s15597_s22  ;;  %7142 = vrot.lane.b32.xlu0 %v9023_v10, %s7901_s23  ;;  %16182 = vst [vmem:[#allocation310_spill] sm:$0xff] %v9811_v53 }
 0x29e   : > { %v9804_v35 = vpop.permute.xlu1 %1552  ;;  %v9806_v19 = vpop.permute.xlu0 %1562 }
 0x29f   : > { %16180 = vst [vmem:[#allocation308_spill] sm:$0xff] %v9804_v35 }
 0x2a0   : > { %16181 = vst [vmem:[#allocation309_spill] sm:$0xff] %v9806_v19  ;;  %1687 = vrot.lane.b32.xlu2 %v9801_v24, %s15597_s22 }
 0x2a2   : > { %v9813_v22 = vpop.permute.xlu2 %1578 }
 0x2a3   : > { %16183 = vst [vmem:[#allocation311_spill] sm:$0xff] %v9813_v22 }
 0x2a4   : > { %1685 = vrot.lane.b32.xlu1 %v9811_v53, %s15597_s22  ;;  %7157 = vrot.lane.b32.xlu0 %v9162_v62, %s7901_s23  ;;  %s7903_s22 = smov 26  }
 0x2a6   : > { %v9819_v10 = vpop.permute.xlu1 %1558  ;;  %v9821_v11 = vpop.permute.xlu0 %1568 }
 0x2a7   : > { %16184 = vst [vmem:[#allocation312_spill] sm:$0xff] %v9819_v10 }
 0x2a8   : > { %16185 = vst [vmem:[#allocation313_spill] sm:$0xff] %v9821_v11  ;;  %7152 = vrot.lane.b32.xlu2 %v9108_v43, %s7901_s23  ;;  %v16235_v43 = vld [vmem:[#allocation40_spill] sm:$0xff] }
 0x2aa   : > { %v9825_v19 = vpop.permute.xlu2 %1584 }
 0x2ab   : > { %16186 = vst [vmem:[#allocation314_spill] sm:$0xff] %v9825_v19 }
 0x2ac   : > { %7147 = vrot.lane.b32.xlu1 %v9120_v1, %s7901_s23  ;;  %7172 = vrot.lane.b32.xlu0 %v9195_v44, %s7901_s23  ;;  %v1724_v44 = vrot.slane %v9542_v4, 4  ;;  %v16234_v1 = vld [vmem:[#allocation42_spill] sm:$0xff] }
 0x2ae   : > { %v9831_v58 = vpop.permute.xlu1 %1564  ;;  %v9833_v56 = vpop.permute.xlu0 %1574 }
 0x2af   : > { %16187 = vst [vmem:[#allocation315_spill] sm:$0xff] %v9831_v58  ;;  %v1722_v58 = vrot.slane %v9413_v15, 4 }
 0x2b0   : > { %16188 = vst [vmem:[#allocation316_spill] sm:$0xff] %v9833_v56  ;;  %7167 = vrot.lane.b32.xlu2 %v9137_v6, %s7901_s23  ;;  %v1721_v56 = vrot.slane %v9421_v30, 4 }
 0x2b2   : > { %v9837_v10 = vpop.permute.xlu2 %7132 }
 0x2b4   : > { %7162 = vrot.lane.b32.xlu1 %v9149_v46, %s7901_s23  ;;  %7187 = vrot.lane.b32.xlu0 %v9230_v21, %s7901_s23  ;;  %v1725_v21 = vsel %vm15754_vm5, %v1722_v58, %v1724_v44 }
 0x2b6   : > { %v9843_v11 = vpop.permute.xlu1 %1570  ;;  %v9845_v62 = vpop.permute.xlu0 %1580 }
 0x2b7   : > { %16189 = vst [vmem:[#allocation317_spill] sm:$0xff] %v9843_v11  ;;  %v1723_v11 = vsel %vm15754_vm5, %v1721_v56, %v1722_v58 }
 0x2b8   : > { %16190 = vst [vmem:[#allocation318_spill] sm:$0xff] %v9845_v62  ;;  %7182 = vrot.lane.b32.xlu2 %v9170_v5, %s7901_s23  ;;  %v9866_v4 = vpack.i.bf16 %v1725_v21, %v1723_v11  ;;  %v7231_v11 = vpack.i.bf16 %v9287_v27, %v9293_v41  ;;  %v424_v27 = vld [vmem:[%s8175_s26 + $0xf8] sm:$0xff] }
 0x2b9   : > { %457 = vst.msk [vmem:[#allocation2 + $0x1a2] sm:$0xff] %vm331_vm0, %v424_v27 }
 0x2ba   : > { %v9852_v35 = vpop.permute.xlu2 %1639  ;;  %16194 = vst [vmem:[#allocation322_spill] sm:$0xff] %v9866_v4 }
 0x2bb   : > { %16191 = vst [vmem:[#allocation319_spill] sm:$0xff] %v9852_v35 }
 0x2bc   : > { %7177 = vrot.lane.b32.xlu1 %v9182_v17, %s7901_s23  ;;  %7202 = vrot.lane.b32.xlu0 %v9255_v57, %s7901_s23  ;;  %v7246_v57 = vpack.i.bf16 %v9321_v48, %v9327_v45  ;;  %v7236_v45 = vpack.i.bf16 %v9311_v37, %v9279_v34  ;;  %v7733_v34 = vld [vmem:[#allocation2 + $0xc0] sm:$0xff] }
 0x2be   : > { %v9860_v46 = vpop.permute.xlu1 %1576  ;;  %v9862_v5 = vpop.permute.xlu0 %1586 }
 0x2bf   : > { %16192 = vst [vmem:[#allocation320_spill] sm:$0xff] %v9860_v46 }
 0x2c0   : > { %16193 = vst [vmem:[#allocation321_spill] sm:$0xff] %v9862_v5  ;;  %7197 = vrot.lane.b32.xlu2 %v9203_v40, %s7901_s23 }
 0x2c2   : > { %v9868_v6 = vpop.permute.xlu2 %1645 }
 0x2c3   : > { %16195 = vst [vmem:[#allocation323_spill] sm:$0xff] %v9868_v6  ;;  %v16255_v6 = vld [vmem:[#allocation23_spill] sm:$0xff] }
 0x2c4   : > { %7192 = vrot.lane.b32.xlu1 %v9213_v16, %s7901_s23  ;;  %7217 = vrot.lane.b32.xlu0 %v9866_v4, %s7901_s23 }
 0x2c6   : > { %v9874_v44 = vpop.permute.xlu1 %1582  ;;  %v9876_v58 = vpop.permute.xlu0 %7137 }
 0x2c7   : > { %16196 = vst [vmem:[#allocation324_spill] sm:$0xff] %v9874_v44 }
 0x2c8   : > { %7212 = vrot.lane.b32.xlu2 %v9233_v13, %s7901_s23  ;;  %v423_v13 = vld [vmem:[%s8175_s26 + $0xf0] sm:$0xff]  ;;  %s16785_s26 = smov 70  }
 0x2c9   : > { %456 = vst.msk [vmem:[#allocation2 + $0x19a] sm:$0xff] %vm331_vm0, %v423_v13  ;;  %v7261_v13 = vpack.i.bf16 %v9359_v33, %v9365_v60  ;;  %v532_v33 = vld [vmem:[%s15238_s1 + $0x70] sm:$0xff]  ;;  %v9938_v60 = vld [vmem:[#allocation2 + $0x138] sm:$0xff] }
 0x2ca   : > { %v9882_v21 = vpop.permute.xlu2 %1651 }
 0x2cb   : > { %16197 = vst [vmem:[#allocation325_spill] sm:$0xff] %v9882_v21  ;;  %v16233_v21 = vld [vmem:[#allocation240_spill] sm:$0xff] }
 0x2cc   : > { %7207 = vrot.lane.b32.xlu1 %v9243_v39, %s7901_s23  ;;  %7232 = vrot.lane.b32.xlu0 %v7231_v11, %s7902_s24  ;;  %v7241_v11 = vpack.i.bf16 %v9297_v14, %v9305_v20  ;;  %v7256_v20 = vpack.i.bf16 %v9331_v3, %v9339_v18  ;;  %v531_v3 = vld [vmem:[%s15238_s1 + $0x68] sm:$0xff]  ;;  %v7251_v18 = vpack.i.bf16 %v9349_v38, %v7733_v34  ;;  %s16788_s23 = smov 112  }
 0x2cd   : > { %v9936_v14 = vld [vmem:[#allocation2 + $0x140] sm:$0xff]  ;;  %v7271_v38 = vpack.i.bf16 %v9369_v49, %v9377_v36  ;;  %v7736_v49 = vld [vmem:[#allocation2 + $0x108] sm:$0xff]  ;;  %v7291_v34 = vpack.i.bf16 %v9413_v15, %v9421_v30  ;;  %v525_v30 = vld [vmem:[%s15238_s1 + $0x38] sm:$0xff] }
 0x2ce   : > { %v9887_v56 = vpop.permute.xlu1 %7127  ;;  %v9889_v4 = vpop.permute.xlu0 %1641  ;;  %v7276_v27 = vpack.i.bf16 %v9936_v14, %v9938_v60  ;;  %v527_v36 = vld [vmem:[%s15238_s1 + $0x48] sm:$0xff] }
 0x2cf   : > { %16198 = vst [vmem:[#allocation326_spill] sm:$0xff] %v9889_v4 }
 0x2d0   : > { %7227 = vrot.lane.b32.xlu2 %v9257_v8, %s7902_s24 }
 0x2d2   : > { %v9897_v41 = vpop.permute.xlu2 %1657 }
 0x2d3   : > { %16199 = vst [vmem:[#allocation327_spill] sm:$0xff] %v9897_v41 }
 0x2d4   : > { %7222 = vrot.lane.b32.xlu1 %v9263_v9, %s7902_s24  ;;  %7247 = vrot.lane.b32.xlu0 %v7246_v57, %s7902_s24  ;;  %v533_v57 = vld [vmem:[%s15238_s1 + $0x78] sm:$0xff] }
 0x2d5   : > { %4240 = vmatpush.msra.mxu0 %v533_v57  ;;  %6830 = vmatpush.msra.mxu3 %v533_v57 }
 0x2d6   : > { %v9906_v8 = vpop.permute.xlu1 %1637  ;;  %v9908_v39 = vpop.permute.xlu0 %1647 }
 0x2d7   : > { %16200 = vst [vmem:[#allocation328_spill] sm:$0xff] %v9906_v8  ;;  %4241 = vmatpush.msra.mxu0 %v532_v33  ;;  %6831 = vmatpush.msra.mxu3 %v532_v33  ;;  %v528_v33 = vld [vmem:[%s15238_s1 + $0x50] sm:$0xff] }
 0x2d8   : > { %16201 = vst [vmem:[#allocation329_spill] sm:$0xff] %v9908_v39  ;;  %7242 = vrot.lane.b32.xlu2 %v7241_v11, %s7902_s24  ;;  %v530_v11 = vld [vmem:[%s15238_s1 + $0x60] sm:$0xff] }
 0x2d9   : > { %4242 = vmatpush.msra.mxu0 %v531_v3  ;;  %6832 = vmatpush.msra.mxu3 %v531_v3  ;;  %v7266_v3 = vpack.i.bf16 %v9383_v31, %v7736_v49  ;;  %v9995_v49 = vld [vmem:[#allocation2 + $0x158] sm:$0xff] }
 0x2da   : > { %v9915_v48 = vpop.permute.xlu2 %1663 }
 0x2db   : > { %16202 = vst [vmem:[#allocation330_spill] sm:$0xff] %v9915_v48  ;;  %4243 = vmatpush.msra.mxu0 %v530_v11  ;;  %6833 = vmatpush.msra.mxu3 %v530_v11  ;;  %v9974_v11 = vld [vmem:[#allocation2 + $0x168] sm:$0xff]  ;;  %v16218_v48 = vld [vmem:[#allocation29_spill] sm:$0xff] }
 0x2dc   : > { %7237 = vrot.lane.b32.xlu1 %v7236_v45, %s7902_s24  ;;  %7262 = vrot.lane.b32.xlu0 %v7261_v13, %s7902_s24  ;;  %v529_v13 = vld [vmem:[%s15238_s1 + $0x58] sm:$0xff] }
 0x2dd   : > { %4244 = vmatpush.msra.mxu0 %v529_v13  ;;  %6834 = vmatpush.msra.mxu3 %v529_v13 }
 0x2de   : > { %v9924_v9 = vpop.permute.xlu1 %1643  ;;  %v9926_v37 = vpop.permute.xlu0 %1653 }
 0x2df   : > { %16203 = vst [vmem:[#allocation331_spill] sm:$0xff] %v9924_v9  ;;  %4245 = vmatpush.msra.mxu0 %v528_v33  ;;  %6835 = vmatpush.msra.mxu3 %v528_v33  ;;  %v524_v33 = vld [vmem:[%s15238_s1 + $0x30] sm:$0xff] }
 0x2e0   : > { %16204 = vst [vmem:[#allocation332_spill] sm:$0xff] %v9926_v37  ;;  %7257 = vrot.lane.b32.xlu2 %v7256_v20, %s7902_s24 }
 0x2e1   : > { %4246 = vmatpush.msra.mxu0 %v527_v36  ;;  %6836 = vmatpush.msra.mxu3 %v527_v36  ;;  %v523_v36 = vld [vmem:[%s15238_s1 + $0x28] sm:$0xff] }
 0x2e2   : > { %v9945_v45 = vpop.permute.xlu2 %1669 }
 0x2e3   : > { %16205 = vst [vmem:[#allocation333_spill] sm:$0xff] %v9945_v45 }
 0x2e4   : > { %7252 = vrot.lane.b32.xlu1 %v7251_v18, %s7902_s24  ;;  %7277 = vrot.lane.b32.xlu0 %v7276_v27, %s7902_s24  ;;  %v526_v18 = vld [vmem:[%s15238_s1 + $0x40] sm:$0xff] }
 0x2e5   : > { %4247 = vmatpush.msra.mxu0 %v526_v18  ;;  %6837 = vmatpush.msra.mxu3 %v526_v18  ;;  %v522_v18 = vld [vmem:[%s15238_s1 + $0x20] sm:$0xff] }
 0x2e6   : > { %v9954_v20 = vpop.permute.xlu1 %1649  ;;  %v9956_v57 = vpop.permute.xlu0 %1659 }
 0x2e7   : > { %16206 = vst [vmem:[#allocation334_spill] sm:$0xff] %v9954_v20  ;;  %4248 = vmatpush.msra.mxu0 %v525_v30  ;;  %6838 = vmatpush.msra.mxu3 %v525_v30  ;;  %v7346_v20 = vpack.i.bf16 %v16235_v43, %v16234_v1  ;;  %v7129_v43 = vunpack.i.l.bf16 %v9887_v56 }
 0x2e8   : > { %16207 = vst [vmem:[#allocation335_spill] sm:$0xff] %v9956_v57  ;;  %7272 = vrot.lane.b32.xlu2 %v7271_v38, %s7902_s24  ;;  %v9976_v38 = vld [vmem:[#allocation2 + $0x170] sm:$0xff]  ;;  %v16221_v57 = vld [vmem:[#allocation32_spill] sm:$0xff] }
 0x2e9   : > { %16209 = vst [vmem:[#allocation337_spill] sm:$0xff] %v9976_v38  ;;  %v7286_v31 = vpack.i.bf16 %v9976_v38, %v9974_v11  ;;  %4249 = vmatpush.msra.mxu0 %v524_v33  ;;  %6839 = vmatpush.msra.mxu3 %v524_v33  ;;  %v10012_v33 = vld [vmem:[#allocation2 + $0x198] sm:$0xff] }
 0x2ea   : > { %v9971_v27 = vpop.permute.xlu2 %1675 }
 0x2eb   : > { %16208 = vst [vmem:[#allocation336_spill] sm:$0xff] %v9971_v27  ;;  %4250 = vmatpush.msra.mxu0 %v523_v36  ;;  %6840 = vmatpush.msra.mxu3 %v523_v36  ;;  %v10014_v27 = vld [vmem:[#allocation2 + $0x1a0] sm:$0xff] }
 0x2ec   : > { %7267 = vrot.lane.b32.xlu1 %v7266_v3, %s7902_s24  ;;  %7292 = vrot.lane.b32.xlu0 %v7291_v34, %s7902_s24  ;;  %v9997_v3 = vld [vmem:[#allocation2 + $0x150] sm:$0xff] }
 0x2ed   : > { %v7281_v34 = vpack.i.bf16 %v9995_v49, %v9997_v3  ;;  %4251 = vmatpush.msra.mxu0 %v522_v18  ;;  %6841 = vmatpush.msra.mxu3 %v522_v18  ;;  %v7321_v18 = vpack.i.bf16 %v16038_v59, %v16040_v0  ;;  %v7311_v0 = vpack.i.bf16 %v16034_v23, %v16024_v26  ;;  %v16227_v26 = vld [vmem:[#allocation204_spill] sm:$0xff] }
 0x2ee   : > { %v9984_v15 = vpop.permute.xlu1 %1655  ;;  %v9986_v13 = vpop.permute.xlu0 %1665 }
 0x2ef   : > { %16210 = vst [vmem:[#allocation338_spill] sm:$0xff] %v9984_v15  ;;  %v16230_v15 = vld [vmem:[#allocation38_spill] sm:$0xff] }
 0x2f0   : > { %16211 = vst [vmem:[#allocation339_spill] sm:$0xff] %v9986_v13  ;;  %7287 = vrot.lane.b32.xlu2 %v7286_v31, %s7902_s24  ;;  %v521_v31 = vld [vmem:[%s15238_s1 + $0x18] sm:$0xff] }
 0x2f1   : > { %4252 = vmatpush.msra.mxu0 %v521_v31  ;;  %6842 = vmatpush.msra.mxu3 %v521_v31  ;;  %v7296_v31 = vpack.i.bf16 %v10014_v27, %v10012_v33 }
 0x2f2   : > { %v10004_v30 = vpop.permute.xlu2 %1681 }
 0x2f3   : > { %16212 = vst [vmem:[#allocation340_spill] sm:$0xff] %v10004_v30 }
 0x2f4   : > { %7282 = vrot.lane.b32.xlu1 %v7281_v34, %s7902_s24  ;;  %7307 = vrot.lane.b32.xlu0 %v9429_v7, %s7903_s22  ;;  %v520_v34 = vld [vmem:[%s15238_s1 + $0x10] sm:$0xff]  ;;  %v519_v7 = vld [vmem:[%s15238_s1 + $0x8] sm:$0xff] }
 0x2f5   : > { %4253 = vmatpush.msra.mxu0 %v520_v34  ;;  %6843 = vmatpush.msra.mxu3 %v520_v34  ;;  %v7316_v34 = vpack.i.bf16 %v16029_v63, %v16032_v51  ;;  %v16222_v51 = vld [vmem:[#allocation30_spill] sm:$0xff] }
 0x2f6   : > { %v10016_v36 = vpop.permute.xlu1 %1661  ;;  %v10018_v45 = vpop.permute.xlu0 %1671  ;;  %v7331_v63 = vpack.i.bf16 %v16222_v51, %v16221_v57  ;;  %v16231_v57 = vld [vmem:[#allocation47_spill] sm:$0xff] }
 0x2f7   : > { %16213 = vst [vmem:[#allocation341_spill] sm:$0xff] %v10016_v36  ;;  %4254 = vmatpush.msra.mxu0 %v519_v7  ;;  %6844 = vmatpush.msra.mxu3 %v519_v7  ;;  %v16219_v7 = vld [vmem:[#allocation36_spill] sm:$0xff]  ;;  %v7351_v51 = vpack.i.bf16 %v16231_v57, %v16230_v15 }
 0x2f8   : > { %16214 = vst [vmem:[#allocation342_spill] sm:$0xff] %v10018_v45  ;;  %7302 = vrot.lane.b32.xlu2 %v16028_v54, %s7903_s22  ;;  %v518_v45 = vld [vmem:[%s15238_s1] sm:$0xff]  ;;  %v7336_v36 = vpack.i.bf16 %v16219_v7, %v16218_v48  ;;  %v6989_v48 = vunpack.i.l.bf16 %v16227_v26 }
 0x2f9   : > { %4255 = vmatpush.msra.mxu0 %v518_v45  ;;  %6845 = vmatpush.msra.mxu3 %v518_v45  ;;  %v16229_v7 = vld [vmem:[#allocation24_spill] sm:$0xff] }
 0x2fa   : > { %v10035_v13 = vpop.permute.xlu2 %1687 }
 0x2fb   : > { %16215 = vst [vmem:[#allocation343_spill] sm:$0xff] %v10035_v13  ;;  %v16236_v13 = vld [vmem:[#allocation267_spill] sm:$0xff] }
 0x2fc   : > { %7297 = vrot.lane.b32.xlu1 %v7296_v31, %s7902_s24  ;;  %7322 = vrot.lane.b32.xlu0 %v7321_v18, %s7903_s22  ;;  %v16223_v18 = vld [vmem:[#allocation68_spill] sm:$0xff]  ;;  %s7905_s24 = smov 54  }
 0x2fd   : > { %v6959_v31 = vunpack.i.l.bf16 %v16223_v18  ;;  %v6960_v15 = vunpack.i.h.bf16 %v16223_v18 }
 0x2fe   : > { %v10041_v59 = vpop.permute.xlu1 %1667  ;;  %v10043_v54 = vpop.permute.xlu0 %1677 }
 0x2ff   : > { %16216 = vst [vmem:[#allocation344_spill] sm:$0xff] %v10041_v59  ;;  %v16224_v59 = vld [vmem:[#allocation119_spill] sm:$0xff] }
 0x300   : > { %16217 = vst [vmem:[#allocation345_spill] sm:$0xff] %v10043_v54  ;;  %7317 = vrot.lane.b32.xlu2 %v7316_v34, %s7903_s22  ;;  %v6974_v41 = vunpack.i.l.bf16 %v16224_v59  ;;  %v16228_v34 = vld [vmem:[#allocation25_spill] sm:$0xff]  ;;  %v6975_v1 = vunpack.i.h.bf16 %v16224_v59 }
 0x301   : > { %v7326_v40 = vpack.i.bf16 %v16229_v7, %v16228_v34  ;;  %v7099_v34 = vunpack.i.l.bf16 %v16236_v13 }
 0x302   : > { %v10050_v45 = vpop.permute.xlu2 %7152 }
 0x303   : > { %16220 = vst [vmem:[#allocation29_spill] sm:$0xff] %v10050_v45 }
 0x304   : > { %7312 = vrot.lane.b32.xlu1 %v7311_v0, %s7903_s22  ;;  %7337 = vrot.lane.b32.xlu0 %v7336_v36, %s7903_s22  ;;  %v16232_v0 = vld [vmem:[#allocation230_spill] sm:$0xff]  ;;  %v7741_v36 = vld [vmem:[#allocation2] sm:$0xff] }
 0x305   : > { %v7004_v17 = vunpack.i.l.bf16 %v16232_v0  ;;  %v2423_v37 = vsel %vm331_vm0, %v7741_v36, %v6959_v31  ;;  %v16240_v36 = vld [vmem:[#allocation53_spill] sm:$0xff] }
 0x306   : > { %v10058_v16 = vpop.permute.xlu1 %1673  ;;  %v10060_v23 = vpop.permute.xlu0 %1683  ;;  %v2456_v39 = vsel %vm2455_vm6, %v2423_v37, %v6974_v41  ;;  %v16237_v37 = vld [vmem:[#allocation35_spill] sm:$0xff] }
 0x307   : > { %16225 = vst [vmem:[#allocation36_spill] sm:$0xff] %v10058_v16  ;;  %v7084_v16 = vunpack.i.l.bf16 %v16233_v21  ;;  %v2489_v57 = vsel %vm15774_vm7, %v2456_v39, %v6989_v48  ;;  %v16238_v39 = vld [vmem:[#allocation33_spill] sm:$0xff] }
 0x308   : > { %16226 = vst [vmem:[#allocation32_spill] sm:$0xff] %v10060_v23  ;;  %7332 = vrot.lane.b32.xlu2 %v7331_v63, %s7903_s22  ;;  %v7114_v63 = vunpack.i.l.bf16 %v9705_v47  ;;  %v2522_v31 = vsel %vm15781_vm8, %v2489_v57, %v7004_v17  ;;  %v7341_v18 = vpack.i.bf16 %v16238_v39, %v16237_v37  ;;  %v16239_v48 = vld [vmem:[#allocation49_spill] sm:$0xff]  ;;  %v6990_v17 = vunpack.i.h.bf16 %v16227_v26 }
 0x309   : > { %v2555_v41 = vsel %vm2554_vm9, %v2522_v31, %v7084_v16  ;;  %v7366_v24 = vpack.i.bf16 %v16240_v36, %v16239_v48  ;;  %v7742_v31 = vld [vmem:[#allocation2 + $0x8] sm:$0xff]  ;;  %v7085_v39 = vunpack.i.h.bf16 %v16233_v21 }
 0x30a   : > { %v10075_v7 = vpop.permute.xlu2 %7167  ;;  %v2424_v37 = vsel %vm331_vm0, %v7742_v31, %v6960_v15  ;;  %v10111_v15 = vld [vmem:[#allocation2 + $0x1a8] sm:$0xf] }
 0x30b   : > { %v2457_v48 = vsel %vm2455_vm6, %v2424_v37, %v6975_v1  ;;  %v16245_v36 = vld [vmem:[#allocation50_spill] sm:$0xff]  ;;  %v1921_v37 = vrot.slane %v10012_v33, 1 }
 0x30c   : > { %7327 = vrot.lane.b32.xlu1 %v7326_v40, %s7903_s22  ;;  %7352 = vrot.lane.b32.xlu0 %v7351_v51, %s7903_s22  ;;  %v2588_v40 = vsel %vm2587_vm11, %v2555_v41, %v7099_v34  ;;  %v7005_v51 = vunpack.i.h.bf16 %v16232_v0  ;;  %v2490_v34 = vsel %vm15774_vm7, %v2457_v48, %v6990_v17  ;;  %v7130_v17 = vunpack.i.h.bf16 %v9887_v56 }
 0x30d   : > { %v2621_v59 = vsel %vm2620_vm10, %v2588_v40, %v7114_v63  ;;  %v7100_v63 = vunpack.i.h.bf16 %v16236_v13  ;;  %v16246_v40 = vld [vmem:[#allocation74_spill] sm:$0xff] }
 0x30e   : > { %v10091_v57 = vpop.permute.xlu1 %1679  ;;  %v10093_v53 = vpop.permute.xlu0 %7142  ;;  %v2654_v26 = vsel %vm15779_vm12, %v2621_v59, %v7129_v43  ;;  %v2523_v21 = vsel %vm15781_vm8, %v2490_v34, %v7005_v51  ;;  %v16244_v43 = vld [vmem:[#allocation51_spill] sm:$0xff]  ;;  %v6964_v59 = vunpack.i.l.bf16 %v16246_v40  ;;  %v1922_v51 = vrot.slane %v10014_v27, 1 }
 0x30f   : > { %16241 = vst [vmem:[#allocation30_spill] sm:$0xff] %v10091_v57  ;;  %v15630_v16 = vunpack.i.l.bf16 %v10093_v53  ;;  %v7361_v1 = vpack.i.bf16 %v16245_v36, %v16244_v43  ;;  %v2556_v31 = vsel %vm2554_vm9, %v2523_v21, %v7085_v39  ;;  %v16251_v34 = vld [vmem:[#allocation43_spill] sm:$0xff]  ;;  %v16252_v21 = vld [vmem:[#allocation186_spill] sm:$0xff] }
 0x310   : > { %16242 = vst [vmem:[#allocation68_spill] sm:$0xff] %v10093_v53  ;;  %7347 = vrot.lane.b32.xlu2 %v7346_v20, %s7903_s22  ;;  %v7115_v20 = vunpack.i.h.bf16 %v9705_v47  ;;  %v10126_v47 = vrot.slane %v10111_v15, 1  ;;  %v2589_v56 = vsel %vm2587_vm11, %v2556_v31, %v7100_v63  ;;  %v6994_v43 = vunpack.i.l.bf16 %v16252_v21 }
 0x311   : > { %v2687_v0 = vsel %vm2686_vm13, %v2654_v26, %v15630_v16  ;;  %v16248_v26 = vld [vmem:[#allocation138_spill] sm:$0xff]  ;;  %v10145_v63 = vsel %vm15776_vm2, %v1921_v37, %v1922_v51  ;;  %v7119_v37 = vunpack.i.l.bf16 %v9737_v2 }
 0x312   : > { %v10109_v41 = vpop.permute.xlu2 %7182  ;;  %4256 = vmatmul.f32.vlgmr.msra.gmra.mxu0 %v2687_v0  ;;  %16247 = vst [vmem:[#allocation204_spill] sm:$0xff] %v10126_v47  ;;  %v6979_v48 = vunpack.i.l.bf16 %v16248_v26  ;;  %v2622_v36 = vsel %vm2620_vm10, %v2589_v56, %v7115_v20  ;;  %v16253_v16 = vld [vmem:[#allocation206_spill] sm:$0xff]  ;;  %v10149_v31 = vsel %vm15776_vm2, %v1922_v51, %v10126_v47  ;;  %v16258_v20 = vunpack.i.h.bf16 %v10093_v53 }
 0x313   : > { %16243 = vst [vmem:[#allocation119_spill] sm:$0xff] %v10109_v41  ;;  %v2425_v13 = vsel %vm331_vm0, %v16253_v16, %v6964_v59  ;;  %v16254_v41 = vld [vmem:[#allocation18_spill] sm:$0xff]  ;;  %v2655_v38 = vsel %vm15779_vm12, %v2622_v36, %v7130_v17  ;;  %v7104_v59 = vunpack.i.l.bf16 %v9627_v29  ;;  %v7134_v51 = vunpack.i.l.bf16 %v9837_v10 }
 0x314   : > { %7342 = vrot.lane.b32.xlu1 %v7341_v18, %s7903_s22  ;;  %7367 = vrot.lane.b32.xlu0 %v7366_v24, %s7903_s22  ;;  %v16250_v18 = vld [vmem:[#allocation44_spill] sm:$0xff]  ;;  %v7009_v5 = vunpack.i.l.bf16 %v16254_v41  ;;  %16256 = vst [vmem:[#allocation24_spill] sm:$0xff] %v10145_v63  ;;  %v2688_v56 = vsel %vm2686_vm13, %v2655_v38, %v16258_v20  ;;  %v2458_v16 = vsel %vm2455_vm6, %v2425_v13, %v6979_v48  ;;  %v16259_v13 = vld [vmem:[#allocation54_spill] sm:$0xff]  ;;  %v6965_v48 = vunpack.i.h.bf16 %v16246_v40 }
 0x315   : > { %v7356_v24 = vpack.i.bf16 %v16251_v34, %v16250_v18  ;;  %16257 = vst [vmem:[#allocation38_spill] sm:$0xff] %v10149_v31  ;;  %v2491_v17 = vsel %vm15774_vm7, %v2458_v16, %v6994_v43  ;;  %v7376_v38 = vpack.i.bf16 %v10149_v31, %v10145_v63  ;;  %v6980_v43 = vunpack.i.h.bf16 %v16248_v26  ;;  %v7743_v63 = vld [vmem:[#allocation2 + $0x20] sm:$0xff]  ;;  %v16273_v31 = vld [vmem:[#allocation238_spill] sm:$0xff] }
 0x316   : > { %v10129_v0 = vpop.permute.xlu1 %1685  ;;  %v10131_v39 = vpop.permute.xlu0 %7157  ;;  %v2524_v18 = vsel %vm15781_vm8, %v2491_v17, %v7009_v5  ;;  %v16261_v17 = vld [vmem:[#allocation56_spill] sm:$0xff]  ;;  %v7010_v40 = vunpack.i.h.bf16 %v16254_v41  ;;  %v7105_v41 = vunpack.i.h.bf16 %v9627_v29 }
 0x317   : > { %16249 = vst [vmem:[#allocation25_spill] sm:$0xff] %v10129_v0  ;;  %v7089_v0 = vunpack.i.l.bf16 %v16255_v6 }
 0x318   : > { %7362 = vrot.lane.b32.xlu2 %v7361_v1, %s7903_s22 }
 0x319   : > { %v2557_v34 = vsel %vm2554_vm9, %v2524_v18, %v7089_v0  ;;  %v16263_v0 = vld [vmem:[#allocation248_spill] sm:$0xff]  ;;  %v16264_v18 = vld [vmem:[#allocation39_spill] sm:$0xff] }
 0x31a   : > { %v10156_v1 = vpop.permute.xlu2 %7197  ;;  %4259 = vmatmul.f32.gmra.mxu0 %v2688_v56  ;;  %v2590_v20 = vsel %vm2587_vm11, %v2557_v34, %v7104_v59  ;;  %v7371_v26 = vpack.i.bf16 %v16264_v18, %v16263_v0  ;;  %v2426_v59 = vsel %vm331_vm0, %v7743_v63, %v6965_v48  ;;  %v7135_v48 = vunpack.i.h.bf16 %v9837_v10 }
 0x31b   : > { %v2623_v16 = vsel %vm2620_vm10, %v2590_v20, %v7119_v37  ;;  %v2459_v34 = vsel %vm2455_vm6, %v2426_v59, %v6980_v43  ;;  %v7094_v0 = vunpack.i.l.bf16 %v16273_v31 }
 0x31c   : > { %7357 = vrot.lane.b32.xlu1 %v7356_v24, %s7903_s22  ;;  %7382 = vrot.lane.b32.xlu0 %v16259_v13, %s15761_s17  ;;  %v6995_v24 = vunpack.i.h.bf16 %v16252_v21  ;;  %v16262_v13 = vld [vmem:[#allocation64_spill] sm:$0xff]  ;;  %v2656_v47 = vsel %vm15779_vm12, %v2623_v16, %v7134_v51  ;;  %v7090_v21 = vunpack.i.h.bf16 %v16255_v6  ;;  %v7120_v51 = vunpack.i.h.bf16 %v9737_v2  ;;  %v16265_v16 = vld [vmem:[#allocation59_spill] sm:$0xff] }
 0x31d   : > { %v7396_v53 = vpack.i.bf16 %v16262_v13, %v16261_v17  ;;  %v16266_v17 = vld [vmem:[#allocation57_spill] sm:$0xff] }
 0x31e   : > { %v10170_v36 = vpop.permute.xlu1 %7147  ;;  %v10172_v5 = vpop.permute.xlu0 %7172  ;;  %v7391_v63 = vpack.i.bf16 %v16266_v17, %v16265_v16  ;;  %v16272_v17 = vld [vmem:[#allocation225_spill] sm:$0xff] }
 0x31f   : > { %16260 = vst [vmem:[#allocation47_spill] sm:$0xff] %v10170_v36  ;;  %v15642_v56 = vunpack.i.l.bf16 %v10170_v36 }
 0x320   : > { %7377 = vrot.lane.b32.xlu2 %v7376_v38, %s7903_s22  ;;  %v2492_v38 = vsel %vm15774_vm7, %v2459_v34, %v6995_v24  ;;  %v16268_v24 = vld [vmem:[#allocation152_spill] sm:$0xff]  ;;  %v16269_v34 = vld [vmem:[#allocation201_spill] sm:$0xff] }
 0x321   : > { %v2689_v37 = vsel %vm2686_vm13, %v2656_v47, %v15642_v56  ;;  %v2525_v6 = vsel %vm15781_vm8, %v2492_v38, %v7010_v40  ;;  %v16267_v47 = vld [vmem:[#allocation83_spill] sm:$0xff]  ;;  %v6984_v59 = vunpack.i.l.bf16 %v16268_v24  ;;  %v6999_v10 = vunpack.i.l.bf16 %v16269_v34  ;;  %v16270_v38 = vld [vmem:[#allocation66_spill] sm:$0xff] }
 0x322   : > { %v10192_v20 = vpop.permute.xlu2 %7212  ;;  %4262 = vmatmul.f32.gmra.mxu0 %v2689_v37  ;;  %v6969_v29 = vunpack.i.l.bf16 %v16267_v47  ;;  %v2558_v43 = vsel %vm2554_vm9, %v2525_v6, %v7090_v21  ;;  %v7014_v56 = vunpack.i.l.bf16 %v16272_v17  ;;  %v7744_v6 = vld [vmem:[#allocation2 + $0x30] sm:$0xff] }
 0x323   : > { %v2591_v40 = vsel %vm2587_vm11, %v2558_v43, %v7105_v41  ;;  %v16274_v41 = vunpack.i.h.bf16 %v10170_v36  ;;  %v7139_v36 = vunpack.i.l.bf16 %v9876_v58 }
 0x324   : > { %7372 = vrot.lane.b32.xlu1 %v7371_v26, %s7903_s22  ;;  %7397 = vrot.lane.b32.xlu0 %v7396_v53, %s15761_s17  ;;  %v2624_v26 = vsel %vm2620_vm10, %v2591_v40, %v7120_v51  ;;  %v16271_v53 = vld [vmem:[#allocation78_spill] sm:$0xff]  ;;  %v2427_v13 = vsel %vm331_vm0, %v7744_v6, %v6969_v29  ;;  %s7906_s22 = smov 68  }
 0x325   : > { %v7411_v16 = vpack.i.bf16 %v16271_v53, %v16270_v38  ;;  %v2657_v21 = vsel %vm15779_vm12, %v2624_v26, %v7135_v48  ;;  %v2460_v51 = vsel %vm2455_vm6, %v2427_v13, %v6984_v59  ;;  %v16275_v40 = vld [vmem:[#allocation262_spill] sm:$0xff]  ;;  %v7124_v48 = vunpack.i.l.bf16 %v9759_v52  ;;  %v16277_v26 = vld [vmem:[#allocation71_spill] sm:$0xff]  ;;  %v16278_v53 = vld [vmem:[#allocation69_spill] sm:$0xff] }
 0x326   : > { %v10206_v2 = vpop.permute.xlu1 %7162  ;;  %v10208_v37 = vpop.permute.xlu0 %7187  ;;  %v2690_v43 = vsel %vm2686_vm13, %v2657_v21, %v16274_v41  ;;  %v7109_v18 = vunpack.i.l.bf16 %v16275_v40  ;;  %v7406_v29 = vpack.i.bf16 %v16278_v53, %v16277_v26  ;;  %v16279_v21 = vld [vmem:[#allocation46_spill] sm:$0xff]  ;;  %v6970_v13 = vunpack.i.h.bf16 %v16267_v47  ;;  %v16282_v47 = vld [vmem:[#allocation92_spill] sm:$0xff] }
 0x327   : > { %v6985_v41 = vunpack.i.h.bf16 %v16268_v24  ;;  %v16280_v53 = vld [vmem:[#allocation62_spill] sm:$0xff] }
 0x328   : > { %7392 = vrot.lane.b32.xlu2 %v7391_v63, %s15761_s17  ;;  %v2493_v63 = vsel %vm15774_vm7, %v2460_v51, %v6999_v10  ;;  %v7745_v10 = vld [vmem:[#allocation2 + $0x38] sm:$0xff] }
 0x329   : > { %v2526_v6 = vsel %vm15781_vm8, %v2493_v63, %v7014_v56  ;;  %v7000_v63 = vunpack.i.h.bf16 %v16269_v34  ;;  %v16283_v34 = vunpack.i.l.bf16 %v10050_v45 }
 0x32a   : > { %v10225_v38 = vpop.permute.xlu2 %7227  ;;  %4265 = vmatmul.f32.gmra.mxu0 %v2690_v43  ;;  %v2559_v59 = vsel %vm2554_vm9, %v2526_v6, %v7094_v0  ;;  %v7426_v0 = vpack.i.bf16 %v16282_v47, %v16118_v25  ;;  %v7015_v6 = vunpack.i.h.bf16 %v16272_v17 }
 0x32b   : > { %16276 = vst [vmem:[#allocation230_spill] sm:$0xff] %v10225_v38  ;;  %v2592_v56 = vsel %vm2587_vm11, %v2559_v59, %v7109_v18  ;;  %v2428_v38 = vsel %vm331_vm0, %v7745_v10, %v6970_v13  ;;  %v7095_v18 = vunpack.i.h.bf16 %v16273_v31  ;;  %v7140_v10 = vunpack.i.h.bf16 %v9876_v58  ;;  %v16288_v58 = vld [vmem:[#allocation90_spill] sm:$0xff] }
 0x32c   : > { %7387 = vrot.lane.b32.xlu1 %v16279_v21, %s15761_s17  ;;  %7412 = vrot.lane.b32.xlu0 %v7411_v16, %s15761_s17  ;;  %v2625_v26 = vsel %vm2620_vm10, %v2592_v56, %v7124_v48  ;;  %v16281_v16 = vld [vmem:[#allocation60_spill] sm:$0xff]  ;;  %v2461_v59 = vsel %vm2455_vm6, %v2428_v38, %v6985_v41  ;;  %v7110_v56 = vunpack.i.h.bf16 %v16275_v40  ;;  %v15648_v38 = vunpack.i.h.bf16 %v10050_v45  ;;  %v16286_v41 = vld [vmem:[#allocation75_spill] sm:$0xff] }
 0x32d   : > { %v7401_v21 = vpack.i.bf16 %v16281_v16, %v16280_v53  ;;  %v2658_v24 = vsel %vm15779_vm12, %v2625_v26, %v7139_v36  ;;  %v2494_v17 = vsel %vm15774_vm7, %v2461_v59, %v7000_v63  ;;  %v7125_v36 = vunpack.i.h.bf16 %v9759_v52  ;;  %v16285_v26 = vld [vmem:[#allocation81_spill] sm:$0xff]  ;;  %v16287_v53 = vld [vmem:[#allocation72_spill] sm:$0xff]  ;;  %v16291_v59 = vld [vmem:[#allocation110_spill] sm:$0xff] }
 0x32e   : > { %v10240_v43 = vpop.permute.xlu1 %7177  ;;  %v10242_v51 = vpop.permute.xlu0 %7202  ;;  %v2691_v48 = vsel %vm2686_vm13, %v2658_v24, %v16283_v34  ;;  %v2527_v31 = vsel %vm15781_vm8, %v2494_v17, %v7015_v6  ;;  %v7416_v63 = vpack.i.bf16 %v16287_v53, %v16286_v41  ;;  %v10280_v6 = vld [vmem:[#allocation2 + $0x48] sm:$0xff]  ;;  %v2449_v17 = vsel %vm331_vm0, %v9938_v60, %v16291_v59  ;;  %v16300_v59 = vld [vmem:[#allocation101_spill] sm:$0xff] }
 0x32f   : > { %v2560_v40 = vsel %vm2554_vm9, %v2527_v31, %v7095_v18  ;;  %v16290_v18 = vld [vmem:[#allocation232_spill] sm:$0xff]  ;;  %v2022_v41 = vrot.slane %v10012_v33, 2  ;;  %v10303_v53 = vrot.slane %v10111_v15, 2  ;;  %v16295_v60 = vld [vmem:[#allocation194_spill] sm:$0xff] }
 0x330   : > { %7407 = vrot.lane.b32.xlu2 %v7406_v29, %s15761_s17  ;;  %v16284_v29 = vld [vmem:[#allocation85_spill] sm:$0xff]  ;;  %v2593_v47 = vsel %vm2587_vm11, %v2560_v40, %v7110_v56  ;;  %v7019_v34 = vunpack.i.l.bf16 %v16290_v18 }
 0x331   : > { %v7421_v13 = vpack.i.bf16 %v16285_v26, %v16284_v29  ;;  %v16292_v29 = vld [vmem:[#allocation127_spill] sm:$0xff]  ;;  %v16293_v26 = vld [vmem:[#allocation237_spill] sm:$0xff]  ;;  %16294 = vst [vmem:[#allocation240_spill] sm:$0xff] %v10303_v53 }
 0x332   : > { %v10261_v25 = vpop.permute.xlu2 %7242  ;;  %4268 = vmatmul.f32.gmra.mxu0 %v2691_v48  ;;  %v2626_v48 = vsel %vm2620_vm10, %v2593_v47, %v7125_v36  ;;  %v7069_v31 = vunpack.i.l.bf16 %v16293_v26  ;;  %v2023_v36 = vrot.slane %v10014_v27, 2  ;;  %v2482_v47 = vsel %vm2455_vm6, %v2449_v17, %v16295_v60 }
 0x333   : > { %v2659_v40 = vsel %vm15779_vm12, %v2626_v48, %v7140_v10  ;;  %v16298_v10 = vld [vmem:[#allocation224_spill] sm:$0xff] }
 0x334   : > { %7402 = vrot.lane.b32.xlu1 %v7401_v21, %s15761_s17  ;;  %7427 = vrot.lane.b32.xlu0 %v7426_v0, %s15761_s17  ;;  %v2429_v21 = vsel %vm331_vm0, %v10280_v6, %v16288_v58  ;;  %v16289_v0 = vld [vmem:[#allocation109_spill] sm:$0xff]  ;;  %v16296_v58 = vld [vmem:[#allocation208_spill] sm:$0xff] }
 0x335   : > { %v7441_v24 = vpack.i.bf16 %v16289_v0, %v16129_v28  ;;  %v2462_v56 = vsel %vm2455_vm6, %v2429_v21, %v16292_v29  ;;  %v2692_v28 = vsel %vm2686_vm13, %v2659_v40, %v15648_v38  ;;  %v10315_v0 = vsel %vm15774_vm7, %v2482_v47, %v16298_v10  ;;  %v16301_v29 = vld [vmem:[#allocation96_spill] sm:$0xff]  ;;  %v16302_v38 = vld [vmem:[#allocation243_spill] sm:$0xff]  ;;  %v16306_v10 = vld [vmem:[#allocation89_spill] sm:$0xff] }
 0x336   : > { %v10275_v16 = vpop.permute.xlu1 %7192  ;;  %v10277_v52 = vpop.permute.xlu0 %7217  ;;  %v10309_v21 = vsel %vm15774_vm7, %v2462_v56, %v16296_v58  ;;  %16299 = vst [vmem:[#allocation40_spill] sm:$0xff] %v10315_v0  ;;  %v7436_v40 = vpack.i.bf16 %v16301_v29, %v16300_v59  ;;  %v2548_v56 = vsel %vm15781_vm8, %v10315_v0, %v7069_v31  ;;  %v10335_v58 = vsel %vm15772_vm3, %v2023_v36, %v10303_v53  ;;  %v16308_v31 = vld [vmem:[#allocation270_spill] sm:$0xff]  ;;  %v16316_v0 = vld [vmem:[#allocation175_spill] sm:$0xff] }
 0x337   : > { %16297 = vst [vmem:[#allocation42_spill] sm:$0xff] %v10309_v21  ;;  %v2528_v48 = vsel %vm15781_vm8, %v10309_v21, %v7019_v34  ;;  %v10331_v34 = vsel %vm15772_vm3, %v2022_v41, %v2023_v36  ;;  %v7020_v41 = vunpack.i.h.bf16 %v16290_v18  ;;  %v16483_v21 = vld [vmem:[#allocation187_spill] sm:$0xff] }
 0x338   : > { %7422 = vrot.lane.b32.xlu2 %v7421_v13, %s15761_s17  ;;  %v2561_v17 = vsel %vm2554_vm9, %v2528_v48, %v16302_v38  ;;  %16304 = vst [vmem:[#allocation267_spill] sm:$0xff] %v10331_v34  ;;  %v16307_v48 = vld [vmem:[#allocation86_spill] sm:$0xff]  ;;  %v7456_v18 = vpack.i.bf16 %v10335_v58, %v10331_v34  ;;  %v16471_v38 = vld [vmem:[#allocation149_spill] sm:$0xff] }
 0x339   : > { %16305 = vst [vmem:[#allocation35_spill] sm:$0xff] %v10335_v58  ;;  %v7431_v59 = vpack.i.bf16 %v16307_v48, %v16306_v10  ;;  %v7070_v48 = vunpack.i.h.bf16 %v16293_v26  ;;  %v16312_v10 = vld [vmem:[#allocation123_spill] sm:$0xff] }
 0x33a   : > { %v10311_v13 = vpop.permute.xlu2 %7257  ;;  %4271 = vmatmul.f32.gmra.mxu0 %v2692_v28  ;;  %v16303_v28 = vld [vmem:[#allocation261_spill] sm:$0xff]  ;;  %v2450_v26 = vsel %vm331_vm0, %v9936_v14, %v16312_v10 }
 0x33b   : > { %v2581_v60 = vsel %vm2554_vm9, %v2548_v56, %v16303_v28  ;;  %v2483_v45 = vsel %vm2455_vm6, %v2450_v26, %v16316_v0  ;;  %v16319_v10 = vld [vmem:[#allocation229_spill] sm:$0xff]  ;;  %v16322_v0 = vld [vmem:[#allocation279_spill] sm:$0xff] }
 0x33c   : > { %7417 = vrot.lane.b32.xlu1 %v7416_v63, %s15761_s17  ;;  %7442 = vrot.lane.b32.xlu0 %v7441_v24, %s15761_s17  ;;  %v2594_v63 = vsel %vm2587_vm11, %v2561_v17, %v16308_v31  ;;  %v2614_v24 = vsel %vm2587_vm11, %v2581_v60, %v9681_v42  ;;  %v10361_v42 = vld [vmem:[#allocation2 + $0x50] sm:$0xff] }
 0x33d   : > { %v2627_v47 = vsel %vm2620_vm10, %v2594_v63, %v9717_v55  ;;  %v2647_v36 = vsel %vm2620_vm10, %v2614_v24, %v9860_v46  ;;  %v16311_v63 = vld [vmem:[#allocation61_spill] sm:$0xff]  ;;  %v16315_v46 = vld [vmem:[#allocation146_spill] sm:$0xff]  ;;  %v16323_v26 = vld [vmem:[#allocation27_spill] sm:$0xff] }
 0x33e   : > { %v10343_v29 = vpop.permute.xlu1 %7207  ;;  %v10345_v56 = vpop.permute.xlu0 %7232  ;;  %v2680_v17 = vsel %vm15779_vm12, %v2647_v36, %v10043_v54  ;;  %v2660_v60 = vsel %vm15779_vm12, %v2627_v47, %v9906_v8  ;;  %v2430_v24 = vsel %vm331_vm0, %v10361_v42, %v16311_v63  ;;  %v16314_v54 = vunpack.i.l.bf16 %v10131_v39  ;;  %v16329_v8 = vld [vmem:[#allocation102_spill] sm:$0xff]  ;;  %v16341_v55 = vld [vmem:[#allocation205_spill] sm:$0xff] }
 0x33f   : > { %16309 = vst [vmem:[#allocation33_spill] sm:$0xff] %v10343_v29  ;;  %v2463_v28 = vsel %vm2455_vm6, %v2430_v24, %v16315_v46 }
 0x340   : > { %16310 = vst [vmem:[#allocation49_spill] sm:$0xff] %v10345_v56  ;;  %7437 = vrot.lane.b32.xlu2 %v7436_v40, %s15761_s17  ;;  %v16313_v40 = vunpack.i.l.bf16 %v10343_v29  ;;  %v2693_v47 = vsel %vm2686_vm13, %v2660_v60, %v16314_v54  ;;  %v16317_v56 = vld [vmem:[#allocation192_spill] sm:$0xff]  ;;  %v16321_v60 = vld [vmem:[#allocation94_spill] sm:$0xff] }
 0x341   : > { %v10383_v14 = vsel %vm15774_vm7, %v2463_v28, %v16317_v56  ;;  %v7451_v24 = vpack.i.bf16 %v16322_v0, %v16321_v60  ;;  %v16324_v56 = vld [vmem:[#allocation266_spill] sm:$0xff]  ;;  %v16495_v0 = vld [vmem:[#allocation284_spill] sm:$0xff] }
 0x342   : > { %v2713_v36 = vsel %vm2686_vm13, %v2680_v17, %v16313_v40  ;;  %v10379_v63 = vpop.permute.xlu2 %7272  ;;  %4274 = vmatmul.f32.gmra.mxu0 %v2693_v47  ;;  %16318 = vst [vmem:[#allocation53_spill] sm:$0xff] %v10383_v14  ;;  %v10387_v17 = vsel %vm15774_vm7, %v2483_v45, %v16319_v10  ;;  %v2529_v54 = vsel %vm15781_vm8, %v10383_v14, %v7020_v41  ;;  %v16326_v47 = vld [vmem:[#allocation290_spill] sm:$0xff]  ;;  %v16331_v14 = vld [vmem:[#allocation124_spill] sm:$0xff] }
 0x343   : > { %4334 = vmatmul.f32.vlgmr.msra.gmra.mxu3 %v2713_v36  ;;  %16320 = vst [vmem:[#allocation51_spill] sm:$0xff] %v10387_v17  ;;  %v2549_v46 = vsel %vm15781_vm8, %v10387_v17, %v7070_v48  ;;  %v2562_v28 = vsel %vm2554_vm9, %v2529_v54, %v16323_v26  ;;  %v16325_v36 = vld [vmem:[#allocation79_spill] sm:$0xff]  ;;  %v16330_v26 = vld [vmem:[#allocation113_spill] sm:$0xff] }
 0x344   : > { %7432 = vrot.lane.b32.xlu1 %v7431_v59, %s15761_s17  ;;  %7457 = vrot.lane.b32.xlu0 %v7456_v18, %s15761_s17  ;;  %v2582_v45 = vsel %vm2554_vm9, %v2549_v46, %v16324_v56  ;;  %v2595_v48 = vsel %vm2587_vm11, %v2562_v28, %v16325_v36  ;;  %v16328_v18 = vld [vmem:[#allocation104_spill] sm:$0xff]  ;;  %v7471_v46 = vpack.i.bf16 %v16331_v14, %v16330_v26  ;;  %v16332_v28 = vld [vmem:[#allocation17_spill] sm:$0xff]  ;;  %v16333_v36 = vld [vmem:[#allocation15_spill] sm:$0xff] }
 0x345   : > { %v2615_v10 = vsel %vm2587_vm11, %v2582_v45, %v16326_v47  ;;  %v7446_v54 = vpack.i.bf16 %v16329_v8, %v16328_v18  ;;  %v2628_v40 = vsel %vm2620_vm10, %v2595_v48, %v9749_v61  ;;  %v7074_v56 = vunpack.i.l.bf16 %v16332_v28  ;;  %v10426_v18 = vld [vmem:[#allocation2 + $0x60] sm:$0xff]  ;;  %v16334_v14 = vld [vmem:[#allocation67_spill] sm:$0xff] }
 0x346   : > { %v10407_v17 = vpop.permute.xlu1 %7222  ;;  %v10409_v59 = vpop.permute.xlu0 %7247  ;;  %v2648_v41 = vsel %vm2620_vm10, %v2615_v10, %v9813_v22  ;;  %v7024_v45 = vunpack.i.l.bf16 %v16333_v36  ;;  %v2661_v8 = vsel %vm15779_vm12, %v2628_v40, %v9852_v35  ;;  %v2431_v26 = vsel %vm331_vm0, %v10426_v18, %v16334_v14  ;;  %v16335_v48 = vld [vmem:[#allocation137_spill] sm:$0xff] }
 0x347   : > { %16327 = vst [vmem:[#allocation50_spill] sm:$0xff] %v10407_v17  ;;  %v2681_v47 = vsel %vm15779_vm12, %v2648_v41, %v10091_v57  ;;  %v2451_v10 = vsel %vm331_vm0, %v9997_v3, %v16335_v48  ;;  %v16336_v22 = vunpack.i.h.bf16 %v10343_v29  ;;  %v16337_v17 = vunpack.i.h.bf16 %v10131_v39  ;;  %v16338_v57 = vld [vmem:[#allocation160_spill] sm:$0xff]  ;;  %v16339_v35 = vld [vmem:[#allocation189_spill] sm:$0xff]  ;;  %v16343_v48 = vld [vmem:[#allocation219_spill] sm:$0xff] }
 0x348   : > { %7452 = vrot.lane.b32.xlu2 %v7451_v24, %s15761_s17  ;;  %v2464_v40 = vsel %vm2455_vm6, %v2431_v26, %v16338_v57  ;;  %v2484_v61 = vsel %vm2455_vm6, %v2451_v10, %v16339_v35  ;;  %v16345_v35 = vld [vmem:[#allocation241_spill] sm:$0xff]  ;;  %v16487_v29 = vld [vmem:[#allocation168_spill] sm:$0xff] }
 0x349   : > { %v2714_v24 = vsel %vm2686_vm13, %v2681_v47, %v16336_v22  ;;  %v2694_v41 = vsel %vm2686_vm13, %v2661_v8, %v16337_v17  ;;  %v10448_v3 = vsel %vm15774_vm7, %v2464_v40, %v16341_v55  ;;  %v10452_v22 = vsel %vm15774_vm7, %v2484_v61, %v16343_v48  ;;  %v16346_v55 = vld [vmem:[#allocation256_spill] sm:$0xff]  ;;  %v16347_v10 = vld [vmem:[#allocation265_spill] sm:$0xff]  ;;  %v16350_v40 = vld [vmem:[#allocation139_spill] sm:$0xff] }
 0x34a   : > { %v10444_v14 = vpop.permute.xlu2 %7287  ;;  %4277 = vmatmul.f32.gmra.mxu0 %v2694_v41  ;;  %16342 = vst [vmem:[#allocation138_spill] sm:$0xff] %v10448_v3  ;;  %v2530_v17 = vsel %vm15781_vm8, %v10448_v3, %v7024_v45  ;;  %v2550_v57 = vsel %vm15781_vm8, %v10452_v22, %v7074_v56  ;;  %v16351_v61 = vld [vmem:[#allocation98_spill] sm:$0xff] }
 0x34b   : > { %4337 = vmatmul.f32.gmra.mxu3 %v2714_v24  ;;  %16340 = vst [vmem:[#allocation74_spill] sm:$0xff] %v10444_v14  ;;  %v2563_v47 = vsel %vm2554_vm9, %v2530_v17, %v16345_v35  ;;  %v2583_v8 = vsel %vm2554_vm9, %v2550_v57, %v16346_v55  ;;  %v16348_v24 = vld [vmem:[#allocation295_spill] sm:$0xff]  ;;  %v7075_v17 = vunpack.i.h.bf16 %v16332_v28  ;;  %v16352_v28 = vld [vmem:[#allocation84_spill] sm:$0xff]  ;;  %v16657_v14 = vunpack.i.l.bf16 %v10208_v37 }
 0x34c   : > { %16344 = vst [vmem:[#allocation44_spill] sm:$0xff] %v10452_v22  ;;  %7447 = vrot.lane.b32.xlu1 %v7446_v54, %s15761_s17  ;;  %7472 = vrot.lane.b32.xlu0 %v7471_v46, %s7905_s24  ;;  %v2596_v45 = vsel %vm2587_vm11, %v2563_v47, %v16347_v10  ;;  %v2616_v56 = vsel %vm2587_vm11, %v2583_v8, %v16348_v24  ;;  %v16349_v46 = vld [vmem:[#allocation126_spill] sm:$0xff]  ;;  %v7025_v47 = vunpack.i.h.bf16 %v16333_v36  ;;  %v16354_v36 = vunpack.i.l.bf16 %v10192_v20  ;;  %v16357_v55 = vld [vmem:[#allocation200_spill] sm:$0xff]  ;;  %s7915_s17 = smov 30  }
 0x34d   : > { %v7486_v48 = vpack.i.bf16 %v16350_v40, %v16349_v46  ;;  %v2629_v57 = vsel %vm2620_vm10, %v2596_v45, %v9771_v32  ;;  %v2649_v26 = vsel %vm2620_vm10, %v2616_v56, %v9845_v62  ;;  %v10488_v46 = vld [vmem:[#allocation2 + $0x68] sm:$0xff]  ;;  %v16355_v62 = vunpack.i.l.bf16 %v10206_v2 }
 0x34e   : > { %v10470_v54 = vpop.permute.xlu1 %7237  ;;  %v10472_v41 = vpop.permute.xlu0 %7262  ;;  %v2682_v8 = vsel %vm15779_vm12, %v2649_v26, %v10004_v30  ;;  %v2662_v24 = vsel %vm15779_vm12, %v2629_v57, %v9889_v4  ;;  %v2432_v45 = vsel %vm331_vm0, %v10488_v46, %v16352_v28  ;;  %v16353_v40 = vld [vmem:[#allocation114_spill] sm:$0xff]  ;;  %v16359_v4 = vld [vmem:[#allocation211_spill] sm:$0xff] }
 0x34f   : > { %v2452_v56 = vsel %vm331_vm0, %v9995_v49, %v16353_v40  ;;  %v2695_v26 = vsel %vm2686_vm13, %v2662_v24, %v16355_v62  ;;  %v16356_v30 = vld [vmem:[#allocation134_spill] sm:$0xff]  ;;  %v16361_v40 = vld [vmem:[#allocation227_spill] sm:$0xff]  ;;  %v16364_v62 = vld [vmem:[#allocation128_spill] sm:$0xff] }
 0x350   : > { %7467 = vrot.lane.b32.xlu2 %v16351_v61, %s7905_s24  ;;  %v2715_v61 = vsel %vm2686_vm13, %v2682_v8, %v16354_v36  ;;  %v2465_v57 = vsel %vm2455_vm6, %v2432_v45, %v16356_v30  ;;  %v2485_v22 = vsel %vm2455_vm6, %v2452_v56, %v16357_v55  ;;  %v16363_v36 = vld [vmem:[#allocation132_spill] sm:$0xff]  ;;  %v16373_v32 = vld [vmem:[#allocation154_spill] sm:$0xff] }
 0x351   : > { %v10510_v49 = vsel %vm15774_vm7, %v2465_v57, %v16359_v4  ;;  %v10514_v8 = vsel %vm15774_vm7, %v2485_v22, %v16361_v40  ;;  %v7481_v24 = vpack.i.bf16 %v16364_v62, %v16363_v36  ;;  %v16365_v45 = vld [vmem:[#allocation108_spill] sm:$0xff]  ;;  %v16366_v4 = vld [vmem:[#allocation246_spill] sm:$0xff] }
 0x352   : > { %v10506_v28 = vpop.permute.xlu2 %7302  ;;  %4280 = vmatmul.f32.gmra.mxu0 %v2695_v26  ;;  %16360 = vst [vmem:[#allocation186_spill] sm:$0xff] %v10510_v49  ;;  %v2531_v30 = vsel %vm15781_vm8, %v10510_v49, %v7025_v47  ;;  %v2551_v55 = vsel %vm15781_vm8, %v10514_v8, %v7075_v17  ;;  %v16368_v40 = vld [vmem:[#allocation272_spill] sm:$0xff]  ;;  %v16369_v36 = vld [vmem:[#allocation286_spill] sm:$0xff]  ;;  %v10733_v49 = vrot.slane %v10111_v15, 3 }
 0x353   : > { %4340 = vmatmul.f32.gmra.mxu3 %v2715_v61  ;;  %16358 = vst [vmem:[#allocation43_spill] sm:$0xff] %v10506_v28  ;;  %v2564_v56 = vsel %vm2554_vm9, %v2531_v30, %v16366_v4  ;;  %v16367_v61 = vld [vmem:[#allocation264_spill] sm:$0xff]  ;;  %v16372_v28 = vld [vmem:[#allocation141_spill] sm:$0xff]  ;;  %v16383_v4 = vld [vmem:[#allocation198_spill] sm:$0xff] }
 0x354   : > { %16362 = vst [vmem:[#allocation206_spill] sm:$0xff] %v10514_v8  ;;  %7462 = vrot.lane.b32.xlu1 %v16365_v45, %s7905_s24  ;;  %7487 = vrot.lane.b32.xlu0 %v7486_v48, %s7905_s24  ;;  %v2584_v22 = vsel %vm2554_vm9, %v2551_v55, %v16367_v61  ;;  %v2597_v47 = vsel %vm2587_vm11, %v2564_v56, %v16368_v40  ;;  %v16370_v48 = vld [vmem:[#allocation120_spill] sm:$0xff]  ;;  %v16371_v8 = vld [vmem:[#allocation118_spill] sm:$0xff]  ;;  %v16376_v40 = vld [vmem:[#allocation235_spill] sm:$0xff] }
 0x355   : > { %v2617_v17 = vsel %vm2587_vm11, %v2584_v22, %v16369_v36  ;;  %v7476_v30 = vpack.i.bf16 %v16371_v8, %v16370_v48  ;;  %v7501_v55 = vpack.i.bf16 %v16373_v32, %v16372_v28  ;;  %v16374_v61 = vld [vmem:[#allocation294_spill] sm:$0xff]  ;;  %v16375_v56 = vld [vmem:[#allocation228_spill] sm:$0xff]  ;;  %v7079_v22 = vunpack.i.l.bf16 %v16376_v40  ;;  %v16377_v32 = vld [vmem:[#allocation99_spill] sm:$0xff]  ;;  %16440 = vst [vmem:[#allocation57_spill] sm:$0xff] %v10733_v49 }
 0x356   : > { %v10535_v62 = vpop.permute.xlu1 %7252  ;;  %v10537_v45 = vpop.permute.xlu0 %7277  ;;  %v2630_v26 = vsel %vm2620_vm10, %v2597_v47, %v16374_v61  ;;  %v2650_v57 = vsel %vm2620_vm10, %v2617_v17, %v9874_v44  ;;  %v7029_v10 = vunpack.i.l.bf16 %v16375_v56  ;;  %v10554_v48 = vld [vmem:[#allocation2 + $0x78] sm:$0xff]  ;;  %v16378_v47 = vld [vmem:[#allocation131_spill] sm:$0xff]  ;;  %v16379_v44 = vunpack.i.h.bf16 %v10192_v20 }
 0x357   : > { %v2683_v36 = vsel %vm15779_vm12, %v2650_v57, %v10060_v23  ;;  %v2663_v8 = vsel %vm15779_vm12, %v2630_v26, %v9924_v9  ;;  %v2433_v28 = vsel %vm331_vm0, %v10554_v48, %v16377_v32  ;;  %v2453_v17 = vsel %vm331_vm0, %v9974_v11, %v16378_v47  ;;  %v16381_v23 = vld [vmem:[#allocation153_spill] sm:$0xff]  ;;  %v16382_v9 = vld [vmem:[#allocation180_spill] sm:$0xff] }
 0x358   : > { %7482 = vrot.lane.b32.xlu2 %v7481_v24, %s7905_s24  ;;  %v2716_v24 = vsel %vm2686_vm13, %v2683_v36, %v16379_v44  ;;  %v16380_v61 = vunpack.i.h.bf16 %v10206_v2  ;;  %v2466_v26 = vsel %vm2455_vm6, %v2433_v28, %v16381_v23  ;;  %v2486_v35 = vsel %vm2455_vm6, %v2453_v17, %v16382_v9  ;;  %v16385_v47 = vld [vmem:[#allocation9_spill] sm:$0xff]  ;;  %v16387_v36 = vld [vmem:[#allocation147_spill] sm:$0xff]  ;;  %v16389_v28 = vld [vmem:[#allocation236_spill] sm:$0xff] }
 0x359   : > { %v10576_v11 = vsel %vm15774_vm7, %v2466_v26, %v16383_v4  ;;  %v10580_v44 = vsel %vm15774_vm7, %v2486_v35, %v16385_v47  ;;  %v16390_v17 = vld [vmem:[#allocation269_spill] sm:$0xff] }
 0x35a   : > { %v2696_v57 = vsel %vm2686_vm13, %v2663_v8, %v16380_v61  ;;  %v10572_v32 = vpop.permute.xlu2 %7317  ;;  %16384 = vst [vmem:[#allocation18_spill] sm:$0xff] %v10576_v11  ;;  %v16388_v61 = vld [vmem:[#allocation143_spill] sm:$0xff]  ;;  %v2532_v23 = vsel %vm15781_vm8, %v10576_v11, %v7029_v10  ;;  %v2552_v9 = vsel %vm15781_vm8, %v10580_v44, %v7079_v22  ;;  %v16391_v26 = vld [vmem:[#allocation277_spill] sm:$0xff]  ;;  %v16421_v11 = vld [vmem:[#allocation310_spill] sm:$0xff] }
 0x35b   : > { %4343 = vmatmul.f32.gmra.mxu3 %v2716_v24  ;;  %4283 = vmatmul.f32.gmra.mxu0 %v2696_v57  ;;  %16386 = vst [vmem:[#allocation23_spill] sm:$0xff] %v10580_v44  ;;  %v7496_v8 = vpack.i.bf16 %v16388_v61, %v16387_v36  ;;  %v2565_v4 = vsel %vm2554_vm9, %v2532_v23, %v16389_v28  ;;  %v16392_v47 = vld [vmem:[#allocation293_spill] sm:$0xff] }
 0x35c   : > { %7477 = vrot.lane.b32.xlu1 %v7476_v30, %s7905_s24  ;;  %7502 = vrot.lane.b32.xlu0 %v7501_v55, %s7905_s24  ;;  %v2585_v35 = vsel %vm2554_vm9, %v2552_v9, %v16390_v17  ;;  %v2598_v10 = vsel %vm2587_vm11, %v2565_v4, %v16391_v26  ;;  %v16393_v55 = vld [vmem:[#allocation135_spill] sm:$0xff]  ;;  %v16394_v61 = vld [vmem:[#allocation133_spill] sm:$0xff]  ;;  %v7516_v9 = vpack.i.bf16 %v16171_v12, %v16173_v50  ;;  %v16395_v17 = vld [vmem:[#allocation300_spill] sm:$0xff]  ;;  %v7030_v4 = vunpack.i.h.bf16 %v16375_v56 }
 0x35d   : > { %v2618_v22 = vsel %vm2587_vm11, %v2585_v35, %v16392_v47  ;;  %v7491_v23 = vpack.i.bf16 %v16394_v61, %v16393_v55  ;;  %v2631_v24 = vsel %vm2620_vm10, %v2598_v10, %v16395_v17  ;;  %v7080_v35 = vunpack.i.h.bf16 %v16376_v40  ;;  %v16396_v47 = vld [vmem:[#allocation25_spill] sm:$0xff]  ;;  %v16397_v26 = vld [vmem:[#allocation323_spill] sm:$0xff] }
 0x35e   : > { %v10600_v36 = vpop.permute.xlu1 %7267  ;;  %v10602_v30 = vpop.permute.xlu0 %7292  ;;  %v2651_v57 = vsel %vm2620_vm10, %v2618_v22, %v9825_v19  ;;  %v2664_v55 = vsel %vm15779_vm12, %v2631_v24, %v16397_v26  ;;  %v10619_v61 = vld [vmem:[#allocation2 + $0x80] sm:$0xff]  ;;  %v16401_v40 = vunpack.i.l.bf16 %v10277_v52  ;;  %v16402_v19 = vunpack.i.l.bf16 %v10075_v7  ;;  %v16404_v26 = vld [vmem:[#allocation195_spill] sm:$0xff] }
 0x35f   : > { %v2684_v44 = vsel %vm15779_vm12, %v2651_v57, %v16396_v47  ;;  %v16398_v12 = vld [vmem:[#allocation73_spill] sm:$0xff]  ;;  %v16403_v47 = vld [vmem:[#allocation167_spill] sm:$0xff] }
 0x360   : > { %7497 = vrot.lane.b32.xlu2 %v7496_v8, %s7905_s24  ;;  %v2434_v50 = vsel %vm331_vm0, %v10619_v61, %v16398_v12  ;;  %v16399_v10 = vld [vmem:[#allocation145_spill] sm:$0xff]  ;;  %v2717_v8 = vsel %vm2686_vm13, %v2684_v44, %v16401_v40  ;;  %v2697_v57 = vsel %vm2686_vm13, %v2664_v55, %v16402_v19  ;;  %v16409_v40 = vld [vmem:[#allocation162_spill] sm:$0xff] }
 0x361   : > { %v16400_v22 = vld [vmem:[#allocation337_spill] sm:$0xff]  ;;  %v2467_v24 = vsel %vm2455_vm6, %v2434_v50, %v16403_v47  ;;  %v16410_v19 = vld [vmem:[#allocation158_spill] sm:$0xff]  ;;  %v16411_v50 = vld [vmem:[#allocation244_spill] sm:$0xff] }
 0x362   : > { %v2454_v56 = vsel %vm331_vm0, %v16400_v22, %v16399_v10  ;;  %v10637_v12 = vpop.permute.xlu2 %7332  ;;  %v16405_v28 = vld [vmem:[#allocation209_spill] sm:$0xff]  ;;  %v16407_v22 = vld [vmem:[#allocation222_spill] sm:$0xff]  ;;  %v7511_v55 = vpack.i.bf16 %v16410_v19, %v16409_v40  ;;  %v16417_v19 = vld [vmem:[#allocation148_spill] sm:$0xff] }
 0x363   : > { %v2487_v17 = vsel %vm2455_vm6, %v2454_v56, %v16404_v26  ;;  %4346 = vmatmul.f32.gmra.mxu3 %v2717_v8  ;;  %4286 = vmatmul.f32.gmra.mxu0 %v2697_v57  ;;  %v10641_v10 = vsel %vm15774_vm7, %v2467_v24, %v16405_v28  ;;  %v16412_v56 = vld [vmem:[#allocation259_spill] sm:$0xff]  ;;  %v16413_v24 = vld [vmem:[#allocation268_spill] sm:$0xff]  ;;  %v16420_v57 = vld [vmem:[#allocation13_spill] sm:$0xff] }
 0x364   : > { %16406 = vst [vmem:[#allocation54_spill] sm:$0xff] %v10641_v10  ;;  %v10645_v44 = vsel %vm15774_vm7, %v2487_v17, %v16407_v22  ;;  %v2533_v47 = vsel %vm15781_vm8, %v10641_v10, %v7030_v4  ;;  %7492 = vrot.lane.b32.xlu1 %v7491_v23, %s7905_s24  ;;  %7517 = vrot.lane.b32.xlu0 %v7516_v9, %s7905_s24  ;;  %v16414_v22 = vld [vmem:[#allocation297_spill] sm:$0xff]  ;;  %v16416_v9 = vld [vmem:[#allocation151_spill] sm:$0xff] }
 0x365   : > { %16408 = vst [vmem:[#allocation56_spill] sm:$0xff] %v10645_v44  ;;  %v2553_v26 = vsel %vm15781_vm8, %v10645_v44, %v7080_v35  ;;  %v2566_v28 = vsel %vm2554_vm9, %v2533_v47, %v16411_v50  ;;  %v7506_v47 = vpack.i.bf16 %v16417_v19, %v16416_v9  ;;  %v16418_v44 = vld [vmem:[#allocation156_spill] sm:$0xff]  ;;  %v7034_v50 = vunpack.i.l.bf16 %v16420_v57  ;;  %v10683_v9 = vld [vmem:[#allocation2 + $0x90] sm:$0xff] }
 0x366   : > { %v2586_v17 = vsel %vm2554_vm9, %v2553_v26, %v16412_v56  ;;  %v2599_v4 = vsel %vm2587_vm11, %v2566_v28, %v16413_v24  ;;  %v10665_v40 = vpop.permute.xlu1 %7282  ;;  %v10667_v23 = vpop.permute.xlu0 %7307  ;;  %v16419_v56 = vld [vmem:[#allocation321_spill] sm:$0xff]  ;;  %v16422_v28 = vld [vmem:[#allocation307_spill] sm:$0xff] }
 0x367   : > { %v2619_v35 = vsel %vm2587_vm11, %v2586_v17, %v16414_v22  ;;  %16415 = vst [vmem:[#allocation64_spill] sm:$0xff] %v10667_v23  ;;  %v2632_v26 = vsel %vm2620_vm10, %v2599_v4, %v16418_v44  ;;  %v7531_v24 = vpack.i.bf16 %v16422_v28, %v16421_v11  ;;  %v16423_v17 = vld [vmem:[#allocation343_spill] sm:$0xff]  ;;  %v16424_v23 = vld [vmem:[#allocation329_spill] sm:$0xff]  ;;  %v16427_v11 = vunpack.i.h.bf16 %v10075_v7  ;;  %v16428_v28 = vld [vmem:[#allocation142_spill] sm:$0xff] }
 0x368   : > { %v2652_v8 = vsel %vm2620_vm10, %v2619_v35, %v16419_v56  ;;  %7512 = vrot.lane.b32.xlu2 %v7511_v55, %s7905_s24  ;;  %v2665_v10 = vsel %vm15779_vm12, %v2632_v26, %v16424_v23  ;;  %v16425_v19 = vld [vmem:[#allocation91_spill] sm:$0xff]  ;;  %v16426_v35 = vunpack.i.h.bf16 %v10277_v52  ;;  %v16429_v26 = vld [vmem:[#allocation214_spill] sm:$0xff] }
 0x369   : > { %v2685_v22 = vsel %vm15779_vm12, %v2652_v8, %v16423_v17  ;;  %v2435_v4 = vsel %vm331_vm0, %v10683_v9, %v16425_v19  ;;  %v2698_v55 = vsel %vm2686_vm13, %v2665_v10, %v16427_v11  ;;  %v16431_v19 = vld [vmem:[#allocation173_spill] sm:$0xff]  ;;  %v16432_v44 = vld [vmem:[#allocation11_spill] sm:$0xff]  ;;  %v16433_v11 = vld [vmem:[#allocation250_spill] sm:$0xff] }
 0x36a   : > { %v2718_v56 = vsel %vm2686_vm13, %v2685_v22, %v16426_v35  ;;  %v2468_v8 = vsel %vm2455_vm6, %v2435_v4, %v16428_v28  ;;  %v10696_v17 = vpop.permute.xlu2 %7347  ;;  %v7526_v3 = vpack.i.bf16 %v16432_v44, %v16431_v19  ;;  %v16434_v28 = vld [vmem:[#allocation274_spill] sm:$0xff]  ;;  %v10717_v44 = vld [vmem:[#allocation2 + $0x98] sm:$0xff]  ;;  %v16438_v19 = vld [vmem:[#allocation163_spill] sm:$0xff] }
 0x36b   : > { %4349 = vmatmul.f32.gmra.mxu3 %v2718_v56  ;;  %4289 = vmatmul.f32.gmra.mxu0 %v2698_v55  ;;  %v10700_v23 = vsel %vm15774_vm7, %v2468_v8, %v16429_v26  ;;  %v16435_v8 = vld [vmem:[#allocation106_spill] sm:$0xff]  ;;  %v7035_v56 = vunpack.i.h.bf16 %v16420_v57 }
 0x36c   : > { %16430 = vst [vmem:[#allocation59_spill] sm:$0xff] %v10700_v23  ;;  %v2534_v22 = vsel %vm15781_vm8, %v10700_v23, %v7034_v50  ;;  %7507 = vrot.lane.b32.xlu1 %v7506_v47, %s7905_s24  ;;  %7532 = vrot.lane.b32.xlu0 %v7531_v24, %s7905_s24  ;;  %v2436_v50 = vsel %vm331_vm0, %v10717_v44, %v16435_v8  ;;  %v16436_v47 = vld [vmem:[#allocation296_spill] sm:$0xff]  ;;  %v16437_v26 = vld [vmem:[#allocation166_spill] sm:$0xff]  ;;  %v2124_v23 = vrot.slane %v10014_v27, 3  ;;  %v16441_v8 = vunpack.i.l.bf16 %v10172_v5 }
 0x36d   : > { %v2567_v10 = vsel %vm2554_vm9, %v2534_v22, %v16433_v11  ;;  %v7521_v22 = vpack.i.bf16 %v16438_v19, %v16437_v26  ;;  %v2123_v11 = vrot.slane %v10012_v33, 3  ;;  %v16445_v33 = vld [vmem:[#allocation174_spill] sm:$0xff] }
 0x36e   : > { %v2600_v4 = vsel %vm2587_vm11, %v2567_v10, %v16434_v28  ;;  %v10713_v35 = vpop.permute.xlu1 %7297  ;;  %v10715_v55 = vpop.permute.xlu0 %7322  ;;  %v16439_v10 = vld [vmem:[#allocation334_spill] sm:$0xff] }
 0x36f   : > { %v2633_v24 = vsel %vm2620_vm10, %v2600_v4, %v16436_v47  ;;  %v16442_v47 = vld [vmem:[#allocation161_spill] sm:$0xff] }
 0x370   : > { %7527 = vrot.lane.b32.xlu2 %v7526_v3, %s7905_s24  ;;  %v2666_v28 = vsel %vm15779_vm12, %v2633_v24, %v16439_v10  ;;  %v2469_v26 = vsel %vm2455_vm6, %v2436_v50, %v16442_v47  ;;  %v16443_v3 = vld [vmem:[#allocation203_spill] sm:$0xff]  ;;  %v10755_v47 = vsel %vm15756_vm4, %v2123_v11, %v2124_v23  ;;  %v16453_v50 = vld [vmem:[#allocation176_spill] sm:$0xff] }
 0x371   : > { %v2699_v4 = vsel %vm2686_vm13, %v2666_v28, %v16441_v8  ;;  %v10744_v24 = vsel %vm15774_vm7, %v2469_v26, %v16443_v3  ;;  %v16446_v28 = vld [vmem:[#allocation239_spill] sm:$0xff]  ;;  %16447 = vst [vmem:[#allocation152_spill] sm:$0xff] %v10755_v47  ;;  %v10759_v8 = vsel %vm15756_vm4, %v2124_v23, %v10733_v49  ;;  %v16454_v23 = vld [vmem:[#allocation325_spill] sm:$0xff]  ;;  %vm15759_vm4 = vcmask 670720  }
 0x372   : > { %v10740_v57 = vpop.permute.xlu2 %7362  ;;  %16444 = vst [vmem:[#allocation83_spill] sm:$0xff] %v10744_v24  ;;  %v2535_v27 = vsel %vm15781_vm8, %v10744_v24, %v7035_v56  ;;  %v16451_v3 = vld [vmem:[#allocation303_spill] sm:$0xff]  ;;  %v7536_v11 = vpack.i.bf16 %v10759_v8, %v10755_v47 }
 0x373   : > { %4292 = vmatmul.f32.gmra.mxu0 %v2699_v4  ;;  %v2568_v19 = vsel %vm2554_vm9, %v2535_v27, %v16446_v28  ;;  %16448 = vst [vmem:[#allocation201_spill] sm:$0xff] %v10759_v8  ;;  %v16449_v4 = vld [vmem:[#allocation281_spill] sm:$0xff]  ;;  %v16452_v27 = vld [vmem:[#allocation16_spill] sm:$0xff]  ;;  %v10776_v28 = vld [vmem:[#allocation2 + $0xa8] sm:$0xff] }
 0x374   : > { %7522 = vrot.lane.b32.xlu1 %v7521_v22, %s7905_s24  ;;  %7547 = vrot.lane.b32.xlu0 %v16445_v33, %s7906_s22  ;;  %v2601_v56 = vsel %vm2587_vm11, %v2568_v19, %v16449_v4  ;;  %v7039_v10 = vunpack.i.l.bf16 %v16452_v27  ;;  %v16455_v19 = vld [vmem:[#allocation80_spill] sm:$0xff]  ;;  %v16456_v4 = vunpack.i.h.bf16 %v10172_v5 }
 0x375   : > { %v2634_v33 = vsel %vm2620_vm10, %v2601_v56, %v16451_v3  ;;  %v16457_v3 = vld [vmem:[#allocation12_spill] sm:$0xff] }
 0x376   : > { %v10763_v22 = vpop.permute.xlu1 %7312  ;;  %v10765_v26 = vpop.permute.xlu0 %7337  ;;  %v2667_v49 = vsel %vm15779_vm12, %v2634_v33, %v16454_v23  ;;  %v16459_v8 = vld [vmem:[#allocation212_spill] sm:$0xff]  ;;  %v16462_v23 = vld [vmem:[#allocation247_spill] sm:$0xff] }
 0x377   : > { %16450 = vst [vmem:[#allocation66_spill] sm:$0xff] %v10763_v22  ;;  %v2437_v22 = vsel %vm331_vm0, %v10776_v28, %v16455_v19  ;;  %v2700_v56 = vsel %vm2686_vm13, %v2667_v49, %v16456_v4  ;;  %v16461_v19 = vld [vmem:[#allocation179_spill] sm:$0xff]  ;;  %v16469_v4 = vld [vmem:[#allocation100_spill] sm:$0xff] }
 0x378   : > { %7542 = vrot.lane.b32.xlu2 %v16453_v50, %s7906_s22  ;;  %v2470_v24 = vsel %vm2455_vm6, %v2437_v22, %v16457_v3  ;;  %v16463_v22 = vld [vmem:[#allocation271_spill] sm:$0xff] }
 0x379   : > { %v10790_v47 = vsel %vm15774_vm7, %v2470_v24, %v16459_v8  ;;  %v16466_v8 = vld [vmem:[#allocation308_spill] sm:$0xff] }
 0x37a   : > { %v10786_v50 = vpop.permute.xlu2 %7377  ;;  %16460 = vst [vmem:[#allocation225_spill] sm:$0xff] %v10790_v47  ;;  %v2536_v33 = vsel %vm15781_vm8, %v10790_v47, %v7039_v10  ;;  %v16467_v47 = vld [vmem:[#allocation181_spill] sm:$0xff] }
 0x37b   : > { %16458 = vst [vmem:[#allocation78_spill] sm:$0xff] %v10786_v50  ;;  %4295 = vmatmul.f32.gmra.mxu0 %v2700_v56  ;;  %v2569_v49 = vsel %vm2554_vm9, %v2536_v33, %v16462_v23  ;;  %v10813_v23 = vld [vmem:[#allocation2 + $0xb0] sm:$0xff] }
 0x37c   : > { %7537 = vrot.lane.b32.xlu1 %v7536_v11, %s7905_s24  ;;  %7562 = vrot.lane.b32.xlu0 %v16461_v19, %s7906_s22  ;;  %v2602_v3 = vsel %vm2587_vm11, %v2569_v49, %v16463_v22  ;;  %v7040_v11 = vunpack.i.h.bf16 %v16452_v27  ;;  %v16468_v19 = vld [vmem:[#allocation332_spill] sm:$0xff]  ;;  %v2438_v49 = vsel %vm331_vm0, %v10813_v23, %v16469_v4  ;;  %v16470_v22 = vunpack.i.l.bf16 %v10240_v43  ;;  %v16476_v4 = vld [vmem:[#allocation185_spill] sm:$0xff]  ;;  %s17131_s24 = smov 40  }
 0x37d   : > { %v2635_v10 = vsel %vm2620_vm10, %v2602_v3, %v16466_v8  ;;  %v2471_v3 = vsel %vm2455_vm6, %v2438_v49, %v16471_v38  ;;  %v16478_v49 = vld [vmem:[#allocation278_spill] sm:$0xff]  ;;  %v16485_v38 = vld [vmem:[#allocation111_spill] sm:$0xff] }
 0x37e   : > { %v10802_v56 = vpop.permute.xlu1 %7327  ;;  %v10804_v24 = vpop.permute.xlu0 %7352  ;;  %v2668_v33 = vsel %vm15779_vm12, %v2635_v10, %v16468_v19  ;;  %v16475_v19 = vld [vmem:[#allocation184_spill] sm:$0xff] }
 0x37f   : > { %16464 = vst [vmem:[#allocation238_spill] sm:$0xff] %v10802_v56  ;;  %v2701_v31 = vsel %vm2686_vm13, %v2668_v33, %v16470_v22  ;;  %v16477_v22 = vld [vmem:[#allocation254_spill] sm:$0xff]  ;;  %v16519_v56 = vld [vmem:[#allocation157_spill] sm:$0xff] }
 0x380   : > { %16465 = vst [vmem:[#allocation262_spill] sm:$0xff] %v10804_v24  ;;  %7557 = vrot.lane.b32.xlu2 %v16467_v47, %s7906_s22  ;;  %v16473_v47 = vld [vmem:[#allocation217_spill] sm:$0xff]  ;;  %v16515_v24 = vld [vmem:[#allocation199_spill] sm:$0xff] }
 0x381   : > { %v10827_v8 = vsel %vm15774_vm7, %v2471_v3, %v16473_v47  ;;  %v16481_v47 = vld [vmem:[#allocation299_spill] sm:$0xff] }
 0x382   : > { %v10823_v27 = vpop.permute.xlu2 %7392  ;;  %16474 = vst [vmem:[#allocation69_spill] sm:$0xff] %v10827_v8  ;;  %v2537_v10 = vsel %vm15781_vm8, %v10827_v8, %v7040_v11  ;;  %v16482_v8 = vld [vmem:[#allocation231_spill] sm:$0xff] }
 0x383   : > { %16472 = vst [vmem:[#allocation71_spill] sm:$0xff] %v10823_v27  ;;  %4298 = vmatmul.f32.gmra.mxu0 %v2701_v31  ;;  %v2570_v33 = vsel %vm2554_vm9, %v2537_v10, %v16477_v22  ;;  %v10851_v22 = vld [vmem:[#allocation2 + $0xc0] sm:$0xff] }
 0x384   : > { %7552 = vrot.lane.b32.xlu1 %v16475_v19, %s7906_s22  ;;  %7577 = vrot.lane.b32.xlu0 %v16476_v4, %s7906_s22  ;;  %v2603_v31 = vsel %vm2587_vm11, %v2570_v33, %v16478_v49  ;;  %v7044_v19 = vunpack.i.l.bf16 %v16482_v8  ;;  %v16484_v4 = vld [vmem:[#allocation338_spill] sm:$0xff]  ;;  %v2439_v33 = vsel %vm331_vm0, %v10851_v22, %v16485_v38  ;;  %v16486_v49 = vunpack.i.h.bf16 %v10240_v43  ;;  %v16492_v38 = vld [vmem:[#allocation191_spill] sm:$0xff] }
 0x385   : > { %v2636_v11 = vsel %vm2620_vm10, %v2603_v31, %v16481_v47  ;;  %v2472_v31 = vsel %vm2455_vm6, %v2439_v33, %v16487_v29  ;;  %v16494_v29 = vld [vmem:[#allocation119_spill] sm:$0xff]  ;;  %v16500_v33 = vld [vmem:[#allocation193_spill] sm:$0xff] }
 0x386   : > { %v10840_v27 = vpop.permute.xlu1 %7342  ;;  %v10842_v3 = vpop.permute.xlu0 %7367  ;;  %v2669_v10 = vsel %vm15779_vm12, %v2636_v11, %v16484_v4  ;;  %v16491_v4 = vld [vmem:[#allocation190_spill] sm:$0xff] }
 0x387   : > { %16479 = vst [vmem:[#allocation46_spill] sm:$0xff] %v10840_v27  ;;  %v2702_v58 = vsel %vm2686_vm13, %v2669_v10, %v16486_v49  ;;  %v16493_v49 = vld [vmem:[#allocation242_spill] sm:$0xff]  ;;  %v7760_v27 = vld [vmem:[#allocation2 + $0xd8] sm:$0xff] }
 0x388   : > { %16480 = vst [vmem:[#allocation62_spill] sm:$0xff] %v10842_v3  ;;  %7572 = vrot.lane.b32.xlu2 %v16483_v21, %s7906_s22  ;;  %v16489_v21 = vld [vmem:[#allocation207_spill] sm:$0xff] }
 0x389   : > { %v10865_v53 = vsel %vm15774_vm7, %v2472_v31, %v16489_v21  ;;  %v16498_v21 = vld [vmem:[#allocation304_spill] sm:$0xff] }
 0x38a   : > { %v10861_v47 = vpop.permute.xlu2 %7407  ;;  %16490 = vst [vmem:[#allocation92_spill] sm:$0xff] %v10865_v53  ;;  %v2538_v11 = vsel %vm15781_vm8, %v10865_v53, %v7044_v19  ;;  %v7045_v19 = vunpack.i.h.bf16 %v16482_v8  ;;  %v10885_v53 = vld [vmem:[#allocation2 + $0xc8] sm:$0xff]  ;;  %v16503_v8 = vunpack.i.l.bf16 %v16494_v29 }
 0x38b   : > { %16488 = vst [vmem:[#allocation60_spill] sm:$0xff] %v10861_v47  ;;  %4301 = vmatmul.f32.gmra.mxu0 %v2702_v58  ;;  %v2571_v10 = vsel %vm2554_vm9, %v2538_v11, %v16493_v49  ;;  %v16501_v49 = vld [vmem:[#allocation327_spill] sm:$0xff] }
 0x38c   : > { %7567 = vrot.lane.b32.xlu1 %v16491_v4, %s7906_s22  ;;  %7592 = vrot.lane.b32.xlu0 %v16492_v38, %s7906_s22  ;;  %v2604_v58 = vsel %vm2587_vm11, %v2571_v10, %v16495_v0  ;;  %v16499_v38 = vld [vmem:[#allocation87_spill] sm:$0xff]  ;;  %v16502_v0 = vld [vmem:[#allocation177_spill] sm:$0xff] }
 0x38d   : > { %v2637_v4 = vsel %vm2620_vm10, %v2604_v58, %v16498_v21  ;;  %v2440_v11 = vsel %vm331_vm0, %v10885_v53, %v16499_v38  ;;  %v16504_v58 = vld [vmem:[#allocation215_spill] sm:$0xff] }
 0x38e   : > { %v10878_v3 = vpop.permute.xlu1 %7357  ;;  %v10880_v31 = vpop.permute.xlu0 %7382  ;;  %v2670_v10 = vsel %vm15779_vm12, %v2637_v4, %v16501_v49  ;;  %v16507_v38 = vld [vmem:[#allocation251_spill] sm:$0xff]  ;;  %v16508_v49 = vld [vmem:[#allocation196_spill] sm:$0xff] }
 0x38f   : > { %16496 = vst [vmem:[#allocation85_spill] sm:$0xff] %v10878_v3  ;;  %v2703_v34 = vsel %vm2686_vm13, %v2670_v10, %v16503_v8  ;;  %v10914_v10 = vld [vmem:[#allocation2 + $0x198] sm:$0xff]  ;;  %v10917_v8 = vld [vmem:[#allocation2 + $0x1a0] sm:$0xff]  ;;  %v16516_v3 = vld [vmem:[#allocation335_spill] sm:$0xff] }
 0x390   : > { %16497 = vst [vmem:[#allocation81_spill] sm:$0xff] %v10880_v31  ;;  %7587 = vrot.lane.b32.xlu2 %v16500_v33, %s7906_s22  ;;  %v2473_v31 = vsel %vm2455_vm6, %v2440_v11, %v16502_v0  ;;  %v16509_v0 = vld [vmem:[#allocation197_spill] sm:$0xff] }
 0x391   : > { %v10901_v21 = vsel %vm15774_vm7, %v2473_v31, %v16504_v58  ;;  %v2224_v31 = vrot.slane %v10914_v10, 4  ;;  %v16510_v58 = vld [vmem:[#allocation273_spill] sm:$0xff] }
 0x392   : > { %16505 = vst [vmem:[#allocation75_spill] sm:$0xff] %v10901_v21  ;;  %v10903_v60 = vpop.permute.xlu2 %7422  ;;  %v2539_v33 = vsel %vm15781_vm8, %v10901_v21, %v7045_v19  ;;  %v2227_v19 = vrot.slane %v10111_v15, 4  ;;  %v16514_v21 = vld [vmem:[#allocation21_spill] sm:$0xff]  ;;  %v7621_v15 = vpack.i.bf16 %v10361_v42, %v10280_v6 }
 0x393   : > { %16506 = vst [vmem:[#allocation72_spill] sm:$0xff] %v10903_v60  ;;  %4304 = vmatmul.f32.gmra.mxu0 %v2703_v34  ;;  %v2572_v4 = vsel %vm2554_vm9, %v2539_v33, %v16507_v38  ;;  %v2225_v34 = vrot.slane %v10917_v8, 4  ;;  %v7049_v60 = vunpack.i.l.bf16 %v16514_v21 }
 0x394   : > { %7582 = vrot.lane.b32.xlu1 %v16508_v49, %s7906_s22  ;;  %7607 = vrot.lane.b32.xlu0 %v16509_v0, %s7906_s22  ;;  %v2605_v33 = vsel %vm2587_vm11, %v2572_v4, %v16510_v58  ;;  %v16513_v0 = vld [vmem:[#allocation312_spill] sm:$0xff]  ;;  %v16517_v4 = vld [vmem:[#allocation107_spill] sm:$0xff] }
 0x395   : > { %v2638_v11 = vsel %vm2620_vm10, %v2605_v33, %v16513_v0  ;;  %v2441_v58 = vsel %vm331_vm0, %v7760_v27, %v16517_v4  ;;  %v16518_v33 = vunpack.i.h.bf16 %v16494_v29 }
 0x396   : > { %v10923_v38 = vpop.permute.xlu1 %7372  ;;  %v10925_v49 = vpop.permute.xlu0 %7397  ;;  %v2671_v47 = vsel %vm15779_vm12, %v2638_v11, %v16516_v3  ;;  %v16520_v11 = vld [vmem:[#allocation220_spill] sm:$0xff] }
 0x397   : > { %16511 = vst [vmem:[#allocation90_spill] sm:$0xff] %v10923_v38  ;;  %v2228_v38 = vsel %vm15754_vm5, %v2225_v34, %v2227_v19  ;;  %v2704_v0 = vsel %vm2686_vm13, %v2671_v47, %v16518_v33  ;;  %v16523_v47 = vld [vmem:[#allocation257_spill] sm:$0xff]  ;;  %v15718_v19 = vunpack.i.l.bf16 %v10208_v37 }
 0x398   : > { %16512 = vst [vmem:[#allocation109_spill] sm:$0xff] %v10925_v49  ;;  %7602 = vrot.lane.b32.xlu2 %v16515_v24, %s7906_s22  ;;  %v2226_v49 = vsel %vm15754_vm5, %v2224_v31, %v2225_v34  ;;  %v2474_v24 = vsel %vm2455_vm6, %v2441_v58, %v16519_v56  ;;  %v16522_v31 = vld [vmem:[#allocation202_spill] sm:$0xff]  ;;  %vm15775_vm5 = vcmask 556032  }
 0x399   : > { %v10949_v42 = vsel %vm15774_vm7, %v2474_v24, %v16520_v11  ;;  %v7616_v34 = vpack.i.bf16 %v2228_v38, %v2226_v49  ;;  %v16524_v58 = vld [vmem:[#allocation282_spill] sm:$0xff]  ;;  %v7050_v38 = vunpack.i.h.bf16 %v16514_v21  ;;  %v16527_v49 = vld [vmem:[#allocation341_spill] sm:$0xff]  ;;  %v7636_v11 = vpack.i.bf16 %v10717_v44, %v10683_v9 }
 0x39a   : > { %v10945_v50 = vpop.permute.xlu2 %7437  ;;  %16521 = vst [vmem:[#allocation232_spill] sm:$0xff] %v10949_v42  ;;  %v2540_v6 = vsel %vm15781_vm8, %v10949_v42, %v7049_v60  ;;  %v16526_v60 = vld [vmem:[#allocation301_spill] sm:$0xff]  ;;  %v16532_v44 = vld [vmem:[#allocation322_spill] sm:$0xff] }
 0x39b   : > { %4307 = vmatmul.f32.gmra.mxu0 %v2704_v0  ;;  %v2573_v56 = vsel %vm2554_vm9, %v2540_v6, %v16523_v47  ;;  %v7761_v6 = vld [vmem:[#allocation2 + $0xe0] sm:$0xff]  ;;  %v16561_v42 = vld [vmem:[#allocation122_spill] sm:$0xff] }
 0x39c   : > { %7597 = vrot.lane.b32.xlu1 %v16522_v31, %s7906_s22  ;;  %7622 = vrot.lane.b32.xlu0 %v7621_v15, %s7907_s16  ;;  %v2606_v0 = vsel %vm2587_vm11, %v2573_v56, %v16524_v58  ;;  %v16528_v31 = vld [vmem:[#allocation116_spill] sm:$0xff] }
 0x39d   : > { %v2639_v24 = vsel %vm2620_vm10, %v2606_v0, %v16526_v60  ;;  %v2442_v56 = vsel %vm331_vm0, %v7761_v6, %v16528_v31  ;;  %v7631_v31 = vpack.i.bf16 %v10619_v61, %v10554_v48  ;;  %v7626_v48 = vpack.i.bf16 %v10488_v46, %v10426_v18  ;;  %v16537_v61 = vld [vmem:[#allocation330_spill] sm:$0xff] }
 0x39e   : > { %v10961_v4 = vpop.permute.xlu1 %7387  ;;  %v10963_v33 = vpop.permute.xlu0 %7412  ;;  %v2672_v15 = vsel %vm15779_vm12, %v2639_v24, %v16527_v49  ;;  %v16536_v49 = vld [vmem:[#allocation20_spill] sm:$0xff] }
 0x39f   : > { %16525 = vst [vmem:[#allocation110_spill] sm:$0xff] %v10961_v4  ;;  %v2705_v3 = vsel %vm2686_vm13, %v2672_v15, %v15718_v19  ;;  %v16529_v4 = vld [vmem:[#allocation172_spill] sm:$0xff]  ;;  %v16533_v15 = vld [vmem:[#allocation245_spill] sm:$0xff] }
 0x3a0   : > { %7617 = vrot.lane.b32.xlu2 %v7616_v34, %s7906_s22  ;;  %v2475_v0 = vsel %vm2455_vm6, %v2442_v56, %v16529_v4  ;;  %v16530_v34 = vld [vmem:[#allocation210_spill] sm:$0xff]  ;;  %v16534_v56 = vld [vmem:[#allocation287_spill] sm:$0xff] }
 0x3a1   : > { %v10984_v24 = vsel %vm15774_vm7, %v2475_v0, %v16530_v34 }
 0x3a2   : > { %v10980_v21 = vpop.permute.xlu2 %7452  ;;  %16531 = vst [vmem:[#allocation127_spill] sm:$0xff] %v10984_v24  ;;  %v2541_v9 = vsel %vm15781_vm8, %v10984_v24, %v7050_v38  ;;  %v16535_v38 = vld [vmem:[#allocation309_spill] sm:$0xff]  ;;  %v7054_v24 = vunpack.i.l.bf16 %v16536_v49 }
 0x3a3   : > { %4310 = vmatmul.f32.gmra.mxu0 %v2705_v3  ;;  %v2574_v4 = vsel %vm2554_vm9, %v2541_v9, %v16533_v15  ;;  %v7651_v9 = vpack.i.bf16 %v7761_v6, %v7760_v27  ;;  %v7762_v3 = vld [vmem:[#allocation2 + $0xf0] sm:$0xff]  ;;  %v16539_v15 = vunpack.i.h.bf16 %v10208_v37  ;;  %v7646_v27 = vpack.i.bf16 %v10885_v53, %v10851_v22 }
 0x3a4   : > { %7612 = vrot.lane.b32.xlu1 %v16532_v44, %s7906_s22  ;;  %7637 = vrot.lane.b32.xlu0 %v7636_v11, %s7907_s16  ;;  %v2607_v0 = vsel %vm2587_vm11, %v2574_v4, %v16534_v56  ;;  %v16538_v4 = vld [vmem:[#allocation95_spill] sm:$0xff]  ;;  %v7641_v53 = vpack.i.bf16 %v10813_v23, %v10776_v28  ;;  %s7916_s22 = smov 35  }
 0x3a5   : > { %v2640_v44 = vsel %vm2620_vm10, %v2607_v0, %v16535_v38  ;;  %v2443_v56 = vsel %vm331_vm0, %v7762_v3, %v16538_v4  ;;  %v16540_v0 = vld [vmem:[#allocation182_spill] sm:$0xff]  ;;  %v16544_v6 = vld [vmem:[#allocation255_spill] sm:$0xff]  ;;  %v7055_v4 = vunpack.i.h.bf16 %v16536_v49  ;;  %v16549_v49 = vunpack.i.l.bf16 %v10275_v16 }
 0x3a6   : > { %v10998_v34 = vpop.permute.xlu1 %7402  ;;  %v11000_v19 = vpop.permute.xlu0 %7427  ;;  %v2673_v11 = vsel %vm15779_vm12, %v2640_v44, %v16537_v61  ;;  %v2476_v38 = vsel %vm2455_vm6, %v2443_v56, %v16540_v0  ;;  %v16547_v22 = vld [vmem:[#allocation339_spill] sm:$0xff]  ;;  %v11046_v0 = vld [vmem:[#allocation2 + $0x120] sm:$0xff]  ;;  %v16548_v56 = vld [vmem:[#allocation112_spill] sm:$0xff] }
 0x3a7   : > { %v2706_v60 = vsel %vm2686_vm13, %v2673_v11, %v16539_v15  ;;  %v16560_v61 = vld [vmem:[#allocation344_spill] sm:$0xff] }
 0x3a8   : > { %7632 = vrot.lane.b32.xlu2 %v7631_v31, %s7907_s16  ;;  %v16542_v31 = vld [vmem:[#allocation218_spill] sm:$0xff] }
 0x3a9   : > { %v11021_v18 = vsel %vm15774_vm7, %v2476_v38, %v16542_v31  ;;  %v11048_v31 = vld [vmem:[#allocation2 + $0x128] sm:$0xff] }
 0x3aa   : > { %v11017_v58 = vpop.permute.xlu2 %7467  ;;  %16543 = vst [vmem:[#allocation194_spill] sm:$0xff] %v11021_v18  ;;  %v2542_v46 = vsel %vm15781_vm8, %v11021_v18, %v7054_v24  ;;  %v16546_v24 = vld [vmem:[#allocation315_spill] sm:$0xff] }
 0x3ab   : > { %16541 = vst [vmem:[#allocation237_spill] sm:$0xff] %v11017_v58  ;;  %4313 = vmatmul.f32.gmra.mxu0 %v2706_v60  ;;  %v2575_v15 = vsel %vm2554_vm9, %v2542_v46, %v16544_v6  ;;  %v16545_v60 = vld [vmem:[#allocation275_spill] sm:$0xff]  ;;  %v7666_v46 = vpack.i.bf16 %v11048_v31, %v11046_v0  ;;  %v7767_v6 = vld [vmem:[#allocation2 + $0x108] sm:$0xff] }
 0x3ac   : > { %7627 = vrot.lane.b32.xlu1 %v7626_v48, %s7907_s16  ;;  %7652 = vrot.lane.b32.xlu0 %v7651_v9, %s7907_s16  ;;  %v2608_v44 = vsel %vm2587_vm11, %v2575_v15, %v16545_v60  ;;  %v7765_v15 = vld [vmem:[#allocation2 + $0xf8] sm:$0xff] }
 0x3ad   : > { %v2641_v48 = vsel %vm2620_vm10, %v2608_v44, %v16546_v24  ;;  %v2444_v44 = vsel %vm331_vm0, %v7765_v15, %v16548_v56  ;;  %v16550_v24 = vld [vmem:[#allocation164_spill] sm:$0xff]  ;;  %v7766_v56 = vld [vmem:[#allocation2 + $0x110] sm:$0xff] }
 0x3ae   : > { %v11034_v38 = vpop.permute.xlu1 %7417  ;;  %v11036_v11 = vpop.permute.xlu0 %7442  ;;  %v2674_v9 = vsel %vm15779_vm12, %v2641_v48, %v16547_v22  ;;  %v2477_v28 = vsel %vm2455_vm6, %v2444_v44, %v16550_v24  ;;  %v16552_v48 = vld [vmem:[#allocation223_spill] sm:$0xff]  ;;  %v7661_v18 = vpack.i.bf16 %v7766_v56, %v7767_v6 }
 0x3af   : > { %v11063_v22 = vsel %vm15774_vm7, %v2477_v28, %v16552_v48  ;;  %v7769_v44 = vld [vmem:[#allocation2 + $0x170] sm:$0xff] }
 0x3b0   : > { %7647 = vrot.lane.b32.xlu2 %v7646_v27, %s7907_s16  ;;  %v2707_v27 = vsel %vm2686_vm13, %v2674_v9, %v16549_v49  ;;  %16553 = vst [vmem:[#allocation224_spill] sm:$0xff] %v11063_v22  ;;  %v2543_v60 = vsel %vm15781_vm8, %v11063_v22, %v7055_v4  ;;  %v16554_v9 = vld [vmem:[#allocation260_spill] sm:$0xff]  ;;  %v16555_v49 = vld [vmem:[#allocation285_spill] sm:$0xff] }
 0x3b1   : > { %v2576_v24 = vsel %vm2554_vm9, %v2543_v60, %v16554_v9  ;;  %v16558_v4 = vld [vmem:[#allocation169_spill] sm:$0xff]  ;;  %v7768_v9 = vld [vmem:[#allocation2 + $0x168] sm:$0xff] }
 0x3b2   : > { %v11059_v23 = vpop.permute.xlu2 %7482  ;;  %v16559_v22 = vld [vmem:[#allocation233_spill] sm:$0xff]  ;;  %v7681_v47 = vpack.i.bf16 %v7769_v44, %v7768_v9 }
 0x3b3   : > { %16551 = vst [vmem:[#allocation208_spill] sm:$0xff] %v11059_v23  ;;  %4316 = vmatmul.f32.gmra.mxu0 %v2707_v27  ;;  %v2609_v27 = vsel %vm2587_vm11, %v2576_v24, %v16555_v49  ;;  %v7059_v58 = vunpack.i.l.bf16 %v16559_v22  ;;  %v2445_v24 = vsel %vm331_vm0, %v7767_v6, %v16561_v42  ;;  %v16562_v49 = vunpack.i.h.bf16 %v10275_v16  ;;  %v7770_v42 = vld [vmem:[#allocation2 + $0x158] sm:$0xff]  ;;  %v7771_v6 = vld [vmem:[#allocation2 + $0x150] sm:$0xff]  ;;  %v16567_v44 = vld [vmem:[#allocation249_spill] sm:$0xff] }
 0x3b4   : > { %7642 = vrot.lane.b32.xlu1 %v7641_v53, %s7907_s16  ;;  %7667 = vrot.lane.b32.xlu0 %v7666_v46, %s7907_s16  ;;  %v2642_v53 = vsel %vm2620_vm10, %v2609_v27, %v16558_v4  ;;  %v7656_v46 = vpack.i.bf16 %v7765_v15, %v7762_v3  ;;  %v16565_v3 = vld [vmem:[#allocation213_spill] sm:$0xff]  ;;  %v7676_v9 = vpack.i.bf16 %v7770_v42, %v7771_v6  ;;  %v7773_v42 = vld [vmem:[#allocation2 + $0x138] sm:$0xff] }
 0x3b5   : > { %v2675_v60 = vsel %vm15779_vm12, %v2642_v53, %v16560_v61  ;;  %v11106_v53 = vld [vmem:[#allocation2 + $0x1b8] sm:$0xff]  ;;  %v16574_v61 = vunpack.i.l.bf16 %v10156_v1 }
 0x3b6   : > { %v11074_v28 = vpop.permute.xlu1 %7432  ;;  %v11076_v48 = vpop.permute.xlu0 %7457 }
 0x3b7   : > { %16556 = vst [vmem:[#allocation101_spill] sm:$0xff] %v11074_v28  ;;  %v16563_v28 = vld [vmem:[#allocation178_spill] sm:$0xff] }
 0x3b8   : > { %16557 = vst [vmem:[#allocation96_spill] sm:$0xff] %v11076_v48  ;;  %7662 = vrot.lane.b32.xlu2 %v7661_v18, %s7907_s16  ;;  %v2708_v48 = vsel %vm2686_vm13, %v2675_v60, %v16562_v49  ;;  %v2478_v27 = vsel %vm2455_vm6, %v2445_v24, %v16563_v28  ;;  %v16568_v60 = vld [vmem:[#allocation289_spill] sm:$0xff] }
 0x3b9   : > { %v11095_v18 = vsel %vm15774_vm7, %v2478_v27, %v16565_v3  ;;  %v16571_v27 = vld [vmem:[#allocation313_spill] sm:$0xff] }
 0x3ba   : > { %v11091_v4 = vpop.permute.xlu2 %7497  ;;  %16566 = vst [vmem:[#allocation86_spill] sm:$0xff] %v11095_v18  ;;  %v2544_v15 = vsel %vm15781_vm8, %v11095_v18, %v7059_v58  ;;  %v16572_v28 = vld [vmem:[#allocation333_spill] sm:$0xff] }
 0x3bb   : > { %16564 = vst [vmem:[#allocation89_spill] sm:$0xff] %v11091_v4  ;;  %4319 = vmatmul.f32.gmra.mxu0 %v2708_v48  ;;  %v2577_v49 = vsel %vm2554_vm9, %v2544_v15, %v16567_v44  ;;  %v11104_v48 = vld [vmem:[#allocation2 + $0x1b0] sm:$0xff]  ;;  %v7772_v15 = vld [vmem:[#allocation2 + $0x140] sm:$0xff]  ;;  %v16628_v4 = vunpack.i.l.bf16 %v10206_v2 }
 0x3bc   : > { %7657 = vrot.lane.b32.xlu1 %v7656_v46, %s7907_s16  ;;  %7682 = vrot.lane.b32.xlu0 %v7681_v47, %s7907_s16  ;;  %v2610_v24 = vsel %vm2587_vm11, %v2577_v49, %v16568_v60  ;;  %v7060_v47 = vunpack.i.h.bf16 %v16559_v22  ;;  %v7671_v6 = vpack.i.bf16 %v7772_v15, %v7773_v42  ;;  %v7696_v49 = vpack.i.bf16 %v11106_v53, %v11104_v48  ;;  %v16573_v60 = vld [vmem:[#allocation103_spill] sm:$0xff]  ;;  %v16577_v15 = vld [vmem:[#allocation221_spill] sm:$0xff] }
 0x3bd   : > { %v2643_v3 = vsel %vm2620_vm10, %v2610_v24, %v16571_v27  ;;  %v2446_v18 = vsel %vm331_vm0, %v7766_v56, %v16573_v60  ;;  %v16575_v27 = vld [vmem:[#allocation188_spill] sm:$0xff]  ;;  %v7691_v56 = vpack.i.bf16 %v10917_v8, %v10914_v10  ;;  %v7774_v10 = vld [vmem:[#allocation2 + $0x188] sm:$0xff]  ;;  %v7775_v8 = vld [vmem:[#allocation2 + $0x180] sm:$0xff] }
 0x3be   : > { %v11110_v58 = vpop.permute.xlu1 %7447  ;;  %v11112_v46 = vpop.permute.xlu0 %7472  ;;  %v2676_v44 = vsel %vm15779_vm12, %v2643_v3, %v16572_v28  ;;  %v2479_v22 = vsel %vm2455_vm6, %v2446_v18, %v16575_v27  ;;  %v16580_v60 = vld [vmem:[#allocation280_spill] sm:$0xff] }
 0x3bf   : > { %16569 = vst [vmem:[#allocation61_spill] sm:$0xff] %v11110_v58  ;;  %v2709_v24 = vsel %vm2686_vm13, %v2676_v44, %v16574_v61  ;;  %v11133_v42 = vsel %vm15774_vm7, %v2479_v22, %v16577_v15  ;;  %v16579_v61 = vld [vmem:[#allocation258_spill] sm:$0xff]  ;;  %v7275_v58 = vunpack.i.h.bf16 %v10379_v63 }
 0x3c0   : > { %16570 = vst [vmem:[#allocation123_spill] sm:$0xff] %v11112_v46  ;;  %7677 = vrot.lane.b32.xlu2 %v7676_v9, %s7907_s16  ;;  %v2545_v3 = vsel %vm15781_vm8, %v11133_v42, %v7060_v47  ;;  %v16582_v47 = vld [vmem:[#allocation317_spill] sm:$0xff]  ;;  %v16583_v15 = vld [vmem:[#allocation234_spill] sm:$0xff]  ;;  %v16587_v46 = vld [vmem:[#allocation171_spill] sm:$0xff] }
 0x3c1   : > { %16578 = vst [vmem:[#allocation175_spill] sm:$0xff] %v11133_v42  ;;  %v2578_v18 = vsel %vm2554_vm9, %v2545_v3, %v16579_v61  ;;  %v7064_v28 = vunpack.i.l.bf16 %v16583_v15  ;;  %v16584_v3 = vld [vmem:[#allocation342_spill] sm:$0xff]  ;;  %v16585_v61 = vld [vmem:[#allocation117_spill] sm:$0xff] }
 0x3c2   : > { %v11129_v9 = vpop.permute.xlu2 %7512  ;;  %v2611_v27 = vsel %vm2587_vm11, %v2578_v18, %v16580_v60  ;;  %v2447_v18 = vsel %vm331_vm0, %v11046_v0, %v16585_v61  ;;  %v16586_v60 = vunpack.i.h.bf16 %v10156_v1  ;;  %v16591_v0 = vld [vmem:[#allocation19_spill] sm:$0xff] }
 0x3c3   : > { %16576 = vst [vmem:[#allocation146_spill] sm:$0xff] %v11129_v9  ;;  %4322 = vmatmul.f32.gmra.mxu0 %v2709_v24  ;;  %v16592_v61 = vld [vmem:[#allocation263_spill] sm:$0xff]  ;;  %v7274_v9 = vunpack.i.l.bf16 %v10379_v63  ;;  %v16631_v63 = vunpack.i.l.bf16 %v10240_v43 }
 0x3c4   : > { %7672 = vrot.lane.b32.xlu1 %v7671_v6, %s7907_s16  ;;  %7697 = vrot.lane.b32.xlu0 %v7696_v49, %s7907_s16  ;;  %v2644_v6 = vsel %vm2620_vm10, %v2611_v27, %v16582_v47  ;;  %v7686_v49 = vpack.i.bf16 %v7774_v10, %v7775_v8  ;;  %v2480_v27 = vsel %vm2455_vm6, %v2447_v18, %v16587_v46  ;;  %v16598_v46 = vld [vmem:[#allocation130_spill] sm:$0xff] }
 0x3c5   : > { %v2677_v44 = vsel %vm15779_vm12, %v2644_v6, %v16584_v3  ;;  %v11189_v3 = vpop.f32.mrf.mxu0 }
 0x3c6   : > { %v11146_v24 = vpop.permute.xlu1 %7462  ;;  %v11148_v22 = vpop.permute.xlu0 %7487  ;;  %v2710_v42 = vsel %vm2686_vm13, %v2677_v44, %v16586_v60  ;;  %v16593_v60 = vld [vmem:[#allocation288_spill] sm:$0xff]  ;;  %16596 = vst [vmem:[#allocation102_spill] sm:$0xff] %v11189_v3 }
 0x3c7   : > { %16581 = vst [vmem:[#allocation192_spill] sm:$0xff] %v11146_v24  ;;  %v16600_v24 = vld [vmem:[#allocation183_spill] sm:$0xff] }
 0x3c8   : > { %7692 = vrot.lane.b32.xlu2 %v7691_v56, %s7907_s16  ;;  %v16589_v56 = vld [vmem:[#allocation226_spill] sm:$0xff] }
 0x3c9   : > { %v11168_v10 = vsel %vm15774_vm7, %v2480_v27, %v16589_v56  ;;  %v16594_v27 = vld [vmem:[#allocation306_spill] sm:$0xff]  ;;  %v16595_v56 = vld [vmem:[#allocation36_spill] sm:$0xff] }
 0x3ca   : > { %v11164_v47 = vpop.permute.xlu2 %7527  ;;  %16590 = vst [vmem:[#allocation104_spill] sm:$0xff] %v11168_v10  ;;  %v2546_v6 = vsel %vm15781_vm8, %v11168_v10, %v7064_v28 }
 0x3cb   : > { %16588 = vst [vmem:[#allocation229_spill] sm:$0xff] %v11164_v47  ;;  %4325 = vmatmul.f32.gmra.mxu0 %v2710_v42  ;;  %v2579_v44 = vsel %vm2554_vm9, %v2546_v6, %v16592_v61  ;;  %v16597_v6 = vld [vmem:[#allocation14_spill] sm:$0xff]  ;;  %v7259_v47 = vunpack.i.l.bf16 %v10311_v13 }
 0x3cc   : > { %7687 = vrot.lane.b32.xlu1 %v7686_v49, %s7907_s16  ;;  %2927 = vrot.lane.b32.xlu0 %v16591_v0, %s7893_s21  ;;  %v2612_v42 = vsel %vm2587_vm11, %v2579_v44, %v16593_v60  ;;  %v7065_v49 = vunpack.i.h.bf16 %v16583_v15  ;;  %v2448_v44 = vsel %vm331_vm0, %v11048_v31, %v16598_v46  ;;  %v16599_v60 = vunpack.i.l.bf16 %v10242_v51  ;;  %v16606_v46 = vld [vmem:[#allocation28_spill] sm:$0xff]  ;;  %s7911_s16 = smov 10  }
 0x3cd   : > { %v2645_v28 = vsel %vm2620_vm10, %v2612_v42, %v16594_v27  ;;  %v2481_v42 = vsel %vm2455_vm6, %v2448_v44, %v16600_v24  ;;  %v16604_v27 = vld [vmem:[#allocation10_spill] sm:$0xff]  ;;  %v7245_v0 = vunpack.i.h.bf16 %v10261_v25 }
 0x3ce   : > { %v11180_v8 = vpop.permute.xlu1 %7477  ;;  %v11182_v18 = vpop.permute.xlu0 %7502  ;;  %v2678_v10 = vsel %vm15779_vm12, %v2645_v28, %v16595_v56  ;;  %v16602_v28 = vld [vmem:[#allocation216_spill] sm:$0xff]  ;;  %v16605_v31 = vrot.slane %v16604_v27, 1 }
 0x3cf   : > { %v2711_v61 = vsel %vm2686_vm13, %v2678_v10, %v16599_v60  ;;  %v11205_v3 = vsel %vm15774_vm7, %v2481_v42, %v16602_v28  ;;  %v16607_v10 = vld [vmem:[#allocation252_spill] sm:$0xff]  ;;  %v15733_v60 = vunpack.i.h.bf16 %v10242_v51 }
 0x3d0   : > { %2925 = vrot.lane.b32.xlu2 %v16597_v6, %s7893_s21  ;;  %16603 = vst [vmem:[#allocation124_spill] sm:$0xff] %v11205_v3  ;;  %v2547_v56 = vsel %vm15781_vm8, %v11205_v3, %v7065_v49  ;;  %v16609_v49 = vld [vmem:[#allocation316_spill] sm:$0xff]  ;;  %v16624_v6 = vld [vmem:[#allocation45_spill] sm:$0xff] }
 0x3d1   : > { %v2580_v24 = vsel %vm2554_vm9, %v2547_v56, %v16607_v10  ;;  %v11232_v10 = vpop.f32.mrf.mxu0 }
 0x3d2   : > { %v11201_v15 = vpop.permute.xlu2 %7542  ;;  %16612 = vst [vmem:[#allocation17_spill] sm:$0xff] %v11232_v10 }
 0x3d3   : > { %16601 = vst [vmem:[#allocation113_spill] sm:$0xff] %v11201_v15  ;;  %4328 = vmatmul.f32.gmra.mxu0 %v2711_v61  ;;  %v16608_v61 = vld [vmem:[#allocation292_spill] sm:$0xff] }
 0x3d4   : > { %2923 = vrot.lane.b32.xlu1 %v16605_v31, %s7893_s21  ;;  %2933 = vrot.lane.b32.xlu0 %v16606_v46, %s7893_s21  ;;  %v2613_v44 = vsel %vm2587_vm11, %v2580_v24, %v16608_v61  ;;  %v16610_v15 = vld [vmem:[#allocation336_spill] sm:$0xff]  ;;  %v16611_v46 = vld [vmem:[#allocation22_spill] sm:$0xff] }
 0x3d5   : > { %v2646_v3 = vsel %vm2620_vm10, %v2613_v44, %v16609_v49  ;;  %v16613_v61 = vld [vmem:[#allocation26_spill] sm:$0xff]  ;;  %v16614_v44 = vld [vmem:[#allocation37_spill] sm:$0xff] }
 0x3d6   : > { %v11219_v42 = vpop.permute.xlu1 %7492  ;;  %v11221_v28 = vpop.permute.xlu0 %7517  ;;  %v2679_v31 = vsel %vm15779_vm12, %v2646_v3, %v16610_v15  ;;  %v16617_v15 = vld [vmem:[#allocation31_spill] sm:$0xff] }
 0x3d7   : > { %v2712_v56 = vsel %vm2686_vm13, %v2679_v31, %v15733_v60  ;;  %v16618_v31 = vld [vmem:[#allocation34_spill] sm:$0xff]  ;;  %vm2818_vm13 = vcmask 441344  }
 0x3d8   : > { %2931 = vrot.lane.b32.xlu2 %v16611_v46, %s7893_s21 }
 0x3da   : > { %v11234_v24 = vpop.permute.xlu2 %7557 }
 0x3db   : > { %4331 = vmatmul.f32.gmra.mxu0 %v2712_v56  ;;  %v16619_v56 = vld [vmem:[#allocation48_spill] sm:$0xff] }
 0x3dc   : > { %2929 = vrot.lane.b32.xlu1 %v16613_v61, %s7893_s21  ;;  %2939 = vrot.lane.b32.xlu0 %v16614_v44, %s7893_s21  ;;  %v16622_v44 = vld [vmem:[#allocation41_spill] sm:$0xff] }
 0x3de   : > { %v11240_v49 = vpop.permute.xlu1 %7507  ;;  %v11242_v3 = vpop.permute.xlu0 %7532 }
 0x3df   : > { %16615 = vst [vmem:[#allocation15_spill] sm:$0xff] %v11240_v49  ;;  %v7280_v49 = vunpack.i.h.bf16 %v10537_v45 }
 0x3e0   : > { %16616 = vst [vmem:[#allocation67_spill] sm:$0xff] %v11242_v3  ;;  %2937 = vrot.lane.b32.xlu2 %v16617_v15, %s7893_s21  ;;  %v7244_v15 = vunpack.i.l.bf16 %v10261_v25  ;;  %v7250_v25 = vunpack.i.h.bf16 %v10409_v59  ;;  %v7319_v3 = vunpack.i.l.bf16 %v10572_v32 }
 0x3e2   : > { %v11246_v46 = vpop.permute.xlu2 %7572 }
 0x3e4   : > { %2935 = vrot.lane.b32.xlu1 %v16618_v31, %s7893_s21  ;;  %2945 = vrot.lane.b32.xlu0 %v16619_v56, %s7893_s21  ;;  %v16625_v31 = vld [vmem:[#allocation39_spill] sm:$0xff]  ;;  %v7260_v56 = vunpack.i.h.bf16 %v10311_v13  ;;  %v16629_v13 = vunpack.i.h.bf16 %v10206_v2  ;;  %v7239_v2 = vunpack.i.l.bf16 %v10470_v54 }
 0x3e6   : > { %v11252_v60 = vpop.permute.xlu1 %7522  ;;  %v11254_v10 = vpop.permute.xlu0 %7547 }
 0x3e7   : > { %16620 = vst [vmem:[#allocation137_spill] sm:$0xff] %v11252_v60  ;;  %v11284_v60 = vsel %vm2719_vm14, %v16629_v13, %v7245_v0  ;;  %v7265_v0 = vunpack.i.h.bf16 %v10472_v41  ;;  %v7254_v13 = vunpack.i.l.bf16 %v10535_v62 }
 0x3e8   : > { %16621 = vst [vmem:[#allocation160_spill] sm:$0xff] %v11254_v10  ;;  %2943 = vrot.lane.b32.xlu2 %v16622_v44, %s7893_s21 }
 0x3ea   : > { %v11258_v61 = vpop.permute.xlu2 %7587 }
 0x3eb   : > { %16623 = vst [vmem:[#allocation189_spill] sm:$0xff] %v11258_v61  ;;  %v16632_v61 = vunpack.i.h.bf16 %v10240_v43  ;;  %v16635_v43 = vunpack.i.l.bf16 %v10275_v16 }
 0x3ec   : > { %2941 = vrot.lane.b32.xlu1 %v16624_v6, %s7893_s21  ;;  %2951 = vrot.lane.b32.xlu0 %v16625_v31, %s7893_s21  ;;  %v7249_v6 = vunpack.i.l.bf16 %v10409_v59  ;;  %v11279_v31 = vsel %vm2719_vm14, %v16628_v4, %v7244_v15  ;;  %v11292_v59 = vsel %vm2719_vm14, %v16631_v63, %v7259_v47  ;;  %v7255_v15 = vunpack.i.h.bf16 %v10535_v62  ;;  %v11307_v47 = vld [vmem:[#allocation2 + $0x1c0] sm:$0xf] }
 0x3ed   : > { %v11297_v4 = vsel %vm2719_vm14, %v16632_v61, %v7260_v56  ;;  %16634 = vst [vmem:[#allocation139_spill] sm:$0xff] %v11307_v47  ;;  %v11312_v61 = vsel %vm2719_vm14, %v16635_v43, %v7274_v9  ;;  %v16639_v62 = vunpack.i.h.bf16 %v10075_v7  ;;  %v16640_v63 = vunpack.i.l.bf16 %v10075_v7 }
 0x3ee   : > { %v11268_v10 = vpop.permute.xlu1 %7537  ;;  %v11270_v44 = vpop.permute.xlu0 %7562  ;;  %16636 = vst [vmem:[#allocation98_spill] sm:$0xff] %v11312_v61  ;;  %v16641_v43 = vunpack.i.h.bf16 %v10131_v39  ;;  %v16644_v7 = vunpack.i.l.bf16 %v10131_v39  ;;  %v16648_v9 = vunpack.i.l.bf16 %v10172_v5  ;;  %v7300_v61 = vunpack.i.h.bf16 %v10713_v35 }
 0x3ef   : > { %16626 = vst [vmem:[#allocation205_spill] sm:$0xff] %v11268_v10  ;;  %v7240_v10 = vunpack.i.h.bf16 %v10470_v54  ;;  %v16637_v54 = vunpack.i.h.bf16 %v10275_v16 }
 0x3f0   : > { %16627 = vst [vmem:[#allocation219_spill] sm:$0xff] %v11270_v44  ;;  %v16630_v44 = vld [vmem:[#allocation248_spill] sm:$0xff]  ;;  %v2732_v39 = vsel %vm2719_vm14, %v16648_v9, %v7254_v13  ;;  %v7269_v13 = vunpack.i.l.bf16 %v10600_v36 }
 0x3f1   : > { %2949 = vrot.lane.b32.xlu2 %v16630_v44, %s7893_s21  ;;  %v7264_v44 = vunpack.i.l.bf16 %v10472_v41  ;;  %v11317_v56 = vsel %vm2719_vm14, %v16637_v54, %v7275_v58  ;;  %v11322_v41 = vsel %vm2719_vm14, %v16639_v62, %v7250_v25  ;;  %v2727_v16 = vsel %vm2719_vm14, %v16641_v43, %v7240_v10  ;;  %v16642_v54 = vld [vmem:[#allocation52_spill] sm:$0xff]  ;;  %v16643_v25 = vld [vmem:[#allocation38_spill] sm:$0xff] }
 0x3f2   : > { %v11305_v23 = vpop.permute.xlu2 %7602  ;;  %16638 = vst [vmem:[#allocation84_spill] sm:$0xff] %v11317_v56  ;;  %v7279_v58 = vunpack.i.l.bf16 %v10537_v45  ;;  %v16645_v62 = vunpack.i.h.bf16 %v16494_v29  ;;  %v11349_v10 = vrot.slane %v11307_v47, 1  ;;  %v16647_v45 = vunpack.i.h.bf16 %v10172_v5 }
 0x3f3   : > { %16633 = vst [vmem:[#allocation126_spill] sm:$0xff] %v11305_v23  ;;  %v11327_v23 = vsel %vm2719_vm14, %v16640_v63, %v7249_v6  ;;  %v2726_v6 = vsel %vm2719_vm14, %v16644_v7, %v7239_v2  ;;  %v16649_v2 = vunpack.i.l.bf16 %v16494_v29  ;;  %v7270_v5 = vunpack.i.h.bf16 %v10600_v36 }
 0x3f4   : > { %2947 = vrot.lane.b32.xlu1 %v16642_v54, %s7893_s21  ;;  %2957 = vrot.lane.b32.xlu0 %v16643_v25, %s7893_s21  ;;  %v11345_v63 = vsel %vm2719_vm14, %v16645_v62, %v7265_v0  ;;  %16646 = vst [vmem:[#allocation114_spill] sm:$0xff] %v11349_v10  ;;  %v2733_v43 = vsel %vm2719_vm14, %v16647_v45, %v7255_v15  ;;  %v16650_v0 = vunpack.i.h.bf16 %v10156_v1  ;;  %v7320_v15 = vunpack.i.h.bf16 %v10572_v32 }
 0x3f5   : > { %v11360_v7 = vsel %vm2719_vm14, %v16649_v2, %v7264_v44  ;;  %v2919_v29 = vrot.slane %v11106_v53, 1  ;;  %v16652_v44 = vunpack.i.l.bf16 %v10156_v1  ;;  %v7295_v45 = vunpack.i.h.bf16 %v10602_v30 }
 0x3f6   : > { %v11365_v62 = vsel %vm2719_vm14, %v16650_v0, %v7280_v49  ;;  %v11367_v54 = vpop.permute.xlu1 %7552  ;;  %v11369_v25 = vpop.permute.xlu0 %7577  ;;  %v7334_v49 = vunpack.i.l.bf16 %v10637_v12  ;;  %v7294_v2 = vunpack.i.l.bf16 %v10602_v30  ;;  %v16653_v0 = vld [vmem:[#allocation24_spill] sm:$0xff]  ;;  %v11386_v32 = vsel %vm2752_vm15, %v2726_v6, %v7319_v3 }
 0x3f7   : > { %16651 = vst [vmem:[#allocation134_spill] sm:$0xff] %v11367_v54  ;;  %v11378_v9 = vsel %vm2719_vm14, %v16652_v44, %v7279_v58  ;;  %v7335_v36 = vunpack.i.h.bf16 %v10637_v12  ;;  %v2918_v54 = vrot.slane %v11104_v48, 1  ;;  %v11392_v1 = vsel %vm15776_vm2, %v2919_v29, %v11349_v10 }
 0x3f8   : > { %16654 = vst [vmem:[#allocation200_spill] sm:$0xff] %v11392_v1  ;;  %v7285_v58 = vunpack.i.h.bf16 %v10665_v40  ;;  %v7284_v44 = vunpack.i.l.bf16 %v10665_v40  ;;  %v7350_v30 = vunpack.i.h.bf16 %v10696_v17  ;;  %v7349_v47 = vunpack.i.l.bf16 %v10696_v17 }
 0x3f9   : > { %2955 = vrot.lane.b32.xlu2 %v16653_v0, %s7893_s21  ;;  %v11401_v3 = vsel %vm2752_vm15, %v2727_v16, %v7320_v15  ;;  %v16656_v12 = vunpack.i.h.bf16 %v10208_v37  ;;  %v2738_v56 = vsel %vm2719_vm14, %v16657_v14, %v7269_v13  ;;  %v11411_v40 = vsel %vm2752_vm15, %v2732_v39, %v7334_v49  ;;  %v16660_v37 = vld [vmem:[#allocation253_spill] sm:$0xff] }
 0x3fa   : > { %v11398_v0 = vpop.permute.xlu2 %7617  ;;  %v16658_v17 = vunpack.i.h.bf16 %v10192_v20  ;;  %v16659_v16 = vunpack.i.l.bf16 %v10192_v20  ;;  %v11429_v14 = vsel %vm2752_vm15, %v2733_v43, %v7335_v36  ;;  %v7325_v39 = vunpack.i.h.bf16 %v10715_v55 }
 0x3fb   : > { %16655 = vst [vmem:[#allocation211_spill] sm:$0xff] %v11398_v0  ;;  %v2739_v6 = vsel %vm2719_vm14, %v16656_v12, %v7270_v5  ;;  %v7299_v5 = vunpack.i.l.bf16 %v10713_v35  ;;  %v7324_v13 = vunpack.i.l.bf16 %v10715_v55  ;;  %v11434_v20 = vsel %vm15776_vm2, %v2918_v54, %v2919_v29 }
 0x3fc   : > { %v11416_v0 = vsel %vm2719_vm14, %v16658_v17, %v7295_v45  ;;  %v11421_v15 = vsel %vm2719_vm14, %v16659_v16, %v7294_v2  ;;  %2953 = vrot.lane.b32.xlu1 %v16660_v37, %s7893_s21  ;;  %2963 = vrot.lane.b32.xlu0 %v11392_v1, %s7893_s21  ;;  %16661 = vst [vmem:[#allocation227_spill] sm:$0xff] %v11434_v20  ;;  %v16662_v49 = vunpack.i.h.bf16 %v10242_v51  ;;  %v16663_v45 = vunpack.i.l.bf16 %v10242_v51 }
 0x3fd   : > { %v11443_v12 = vsel %vm2752_vm15, %v2738_v56, %v7349_v47  ;;  %v11446_v43 = vsel %vm2752_vm15, %v2739_v6, %v7350_v30  ;;  %v16664_v54 = vunpack.i.h.bf16 %v10277_v52  ;;  %v7364_v51 = vunpack.i.l.bf16 %v10740_v57  ;;  %v16666_v30 = vld [vmem:[#allocation78_spill] sm:$0xff] }
 0x3fe   : > { %v2745_v35 = vsel %vm2719_vm14, %v16662_v49, %v7285_v58  ;;  %v2744_v2 = vsel %vm2719_vm14, %v16663_v45, %v7284_v44  ;;  %v11448_v36 = vpop.permute.xlu1 %7567  ;;  %v11450_v55 = vpop.permute.xlu0 %7592  ;;  %v7365_v58 = vunpack.i.h.bf16 %v10740_v57  ;;  %v7339_v44 = vunpack.i.l.bf16 %v10765_v26  ;;  %v16668_v45 = vld [vmem:[#allocation46_spill] sm:$0xff] }
 0x3ff   : > { %v2751_v29 = vsel %vm2719_vm14, %v16664_v54, %v7300_v61  ;;  %v16665_v47 = vunpack.i.l.bf16 %v10277_v52  ;;  %v7380_v6 = vunpack.i.h.bf16 %v16666_v30  ;;  %v7379_v17 = vunpack.i.l.bf16 %v16666_v30  ;;  %v16667_v52 = vld [vmem:[#allocation238_spill] sm:$0xff] }
 0x400   : > { %v7340_v16 = vunpack.i.h.bf16 %v10765_v26  ;;  %v11468_v61 = vsel %vm2752_vm15, %v11279_v31, %v7324_v13  ;;  %v11472_v57 = vsel %vm2752_vm15, %v11284_v60, %v7325_v39  ;;  %v7330_v49 = vunpack.i.h.bf16 %v16667_v52  ;;  %v16669_v26 = vld [vmem:[#allocation60_spill] sm:$0xff]  ;;  %v16671_v13 = vld [vmem:[#allocation85_spill] sm:$0xff] }
 0x401   : > { %v2750_v56 = vsel %vm2719_vm14, %v16665_v47, %v7299_v5  ;;  %2961 = vrot.lane.b32.xlu2 %v11434_v20, %s7893_s21  ;;  %v7329_v5 = vunpack.i.l.bf16 %v16667_v52  ;;  %v7345_v54 = vunpack.i.h.bf16 %v16668_v45  ;;  %v7344_v47 = vunpack.i.l.bf16 %v16668_v45 }
 0x402   : > { %v7410_v30 = vunpack.i.h.bf16 %v16669_v26  ;;  %v7409_v37 = vunpack.i.l.bf16 %v16669_v26  ;;  %v11480_v20 = vpop.permute.xlu2 %7632  ;;  %v11483_v31 = vsel %vm2752_vm15, %v2744_v2, %v7364_v51  ;;  %v11486_v60 = vsel %vm2752_vm15, %v2745_v35, %v7365_v58  ;;  %v16672_v35 = vld [vmem:[#allocation204_spill] sm:$0xff] }
 0x403   : > { %16670 = vst [vmem:[#allocation132_spill] sm:$0xff] %v11480_v20  ;;  %v11490_v39 = vsel %vm2752_vm15, %v11292_v59, %v7339_v44  ;;  %v7360_v52 = vunpack.i.h.bf16 %v16671_v13  ;;  %v11494_v45 = vsel %vm2752_vm15, %v2750_v56, %v7379_v17  ;;  %v11497_v1 = vsel %vm2752_vm15, %v2751_v29, %v7380_v6  ;;  %v16673_v59 = vld [vmem:[#allocation55_spill] sm:$0xff]  ;;  %v16674_v29 = vld [vmem:[#allocation262_spill] sm:$0xff] }
 0x404   : > { %v11501_v26 = vsel %vm2752_vm15, %v11297_v4, %v7340_v16  ;;  %v7359_v2 = vunpack.i.l.bf16 %v16671_v13  ;;  %2959 = vrot.lane.b32.xlu1 %v16672_v35, %s7893_s21  ;;  %2996 = vrot.lane.b32.xlu0 %v16673_v59, %s7894_s27  ;;  %v2764_v58 = vsel %vm2752_vm15, %v11322_v41, %v7330_v49  ;;  %v2763_v51 = vsel %vm2752_vm15, %v11327_v23, %v7329_v5 }
 0x405   : > { %v2770_v4 = vsel %vm2752_vm15, %v11345_v63, %v7345_v54  ;;  %v2769_v6 = vsel %vm2752_vm15, %v11360_v7, %v7344_v47  ;;  %v2796_v17 = vsel %vm2785_vm1, %v2763_v51, %v7409_v37  ;;  %v2797_v16 = vsel %vm2785_vm1, %v2764_v58, %v7410_v30  ;;  %v16675_v7 = vld [vmem:[#allocation72_spill] sm:$0xff] }
 0x406   : > { %v11520_v13 = vpop.permute.xlu1 %7582  ;;  %v11522_v41 = vpop.permute.xlu0 %7607  ;;  %v2776_v23 = vsel %vm2752_vm15, %v11365_v62, %v7360_v52  ;;  %v7490_v49 = vunpack.i.h.bf16 %v11148_v22  ;;  %v7489_v5 = vunpack.i.l.bf16 %v11148_v22  ;;  %v2775_v63 = vsel %vm2752_vm15, %v11378_v9, %v7359_v2  ;;  %v16677_v52 = vld [vmem:[#allocation90_spill] sm:$0xff]  ;;  %v16678_v22 = vld [vmem:[#allocation109_spill] sm:$0xff] }
 0x407   : > { %v7425_v54 = vunpack.i.h.bf16 %v16675_v7  ;;  %v7570_v37 = vunpack.i.h.bf16 %v11448_v36  ;;  %v7569_v47 = vunpack.i.l.bf16 %v11448_v36  ;;  %v16676_v30 = vrot.slane %v16604_v27, 2 }
 0x408   : > { %v7424_v62 = vunpack.i.l.bf16 %v16675_v7  ;;  %v7375_v58 = vunpack.i.h.bf16 %v16677_v52  ;;  %v7374_v51 = vunpack.i.l.bf16 %v16677_v52  ;;  %v7400_v44 = vunpack.i.h.bf16 %v16678_v22  ;;  %v16679_v52 = vld [vmem:[#allocation65_spill] sm:$0xff] }
 0x409   : > { %2994 = vrot.lane.b32.xlu2 %v16676_v30, %s7894_s27  ;;  %v7440_v9 = vunpack.i.h.bf16 %v10945_v50  ;;  %v7439_v2 = vunpack.i.l.bf16 %v10945_v50  ;;  %v7399_v56 = vunpack.i.l.bf16 %v16678_v22  ;;  %v2829_v30 = vsel %vm2818_vm13, %v2796_v17, %v7489_v5 }
 0x40a   : > { %v7648_v35 = vpop.permute.xlu2 %7647  ;;  %v2830_v7 = vsel %vm2818_vm13, %v2797_v16, %v7490_v49  ;;  %v7415_v59 = vunpack.i.h.bf16 %v10963_v33  ;;  %v2862_v50 = vsel %vm15775_vm5, %v2829_v30, %v7569_v47  ;;  %v7454_v27 = vunpack.i.l.bf16 %v10980_v21 }
 0x40b   : > { %v7650_v36 = vunpack.i.h.bf16 %v7648_v35  ;;  %v7649_v20 = vunpack.i.l.bf16 %v7648_v35  ;;  %v2863_v22 = vsel %vm15775_vm5, %v2830_v7, %v7570_v37  ;;  %v7414_v35 = vunpack.i.l.bf16 %v10963_v33 }
 0x40c   : > { %2965 = vrot.lane.b32.xlu1 %v11349_v10, %s7893_s21  ;;  %3002 = vrot.lane.b32.xlu0 %v16679_v52, %s7894_s27  ;;  %v2802_v49 = vsel %vm2785_vm1, %v2769_v6, %v7424_v62  ;;  %v2803_v5 = vsel %vm2785_vm1, %v2770_v4, %v7425_v54  ;;  %v2782_v10 = vsel %vm2752_vm15, %v11416_v0, %v7375_v58  ;;  %v7455_v47 = vunpack.i.h.bf16 %v10980_v21  ;;  %v16682_v62 = vld [vmem:[#allocation58_spill] sm:$0xff]  ;;  %s16778_s21 = smov 98  }
 0x40d   : > { %v11555_v17 = vsel %vm15759_vm4, %v2862_v50, %v7649_v20  ;;  %v11558_v16 = vsel %vm15759_vm4, %v2863_v22, %v7650_v36  ;;  %v2781_v33 = vsel %vm2752_vm15, %v11421_v15, %v7374_v51  ;;  %v2792_v20 = vsel %vm2785_vm1, %v11386_v32, %v7399_v56 }
 0x40e   : > { %16680 = vst [vmem:[#allocation128_spill] sm:$0xff] %v11555_v17  ;;  %v11565_v37 = vpop.permute.xlu1 %7597  ;;  %v11567_v30 = vpop.permute.xlu0 %7622  ;;  %v7505_v36 = vunpack.i.h.bf16 %v11182_v18  ;;  %v7504_v6 = vunpack.i.l.bf16 %v11182_v18  ;;  %v2808_v4 = vsel %vm2785_vm1, %v2775_v63, %v7439_v2  ;;  %v2793_v0 = vsel %vm2785_vm1, %v11401_v3, %v7400_v44  ;;  %v16816_v17 = vld [vmem:[#allocation291_spill] sm:$0xff] }
 0x40f   : > { %16681 = vst [vmem:[#allocation108_spill] sm:$0xff] %v11558_v16  ;;  %v7585_v21 = vunpack.i.h.bf16 %v11520_v13  ;;  %v7584_v54 = vunpack.i.l.bf16 %v11520_v13  ;;  %v2809_v15 = vsel %vm2785_vm1, %v2776_v23, %v7440_v9  ;;  %v11584_v32 = vsel %vm2785_vm1, %v2781_v33, %v7454_v27 }
 0x410   : > { %v11588_v18 = vsel %vm2785_vm1, %v11411_v40, %v7414_v35  ;;  %v11592_v56 = vsel %vm2785_vm1, %v11429_v14, %v7415_v59  ;;  %v11595_v3 = vsel %vm2785_vm1, %v2782_v10, %v7455_v47  ;;  %v7404_v44 = vunpack.i.l.bf16 %v10998_v34  ;;  %v16683_v10 = vld [vmem:[#allocation63_spill] sm:$0xff]  ;;  %v16684_v59 = vld [vmem:[#allocation77_spill] sm:$0xff] }
 0x411   : > { %3000 = vrot.lane.b32.xlu2 %v16682_v62, %s7894_s27  ;;  %v7480_v13 = vunpack.i.h.bf16 %v11180_v8  ;;  %v7479_v23 = vunpack.i.l.bf16 %v11180_v8  ;;  %v2835_v51 = vsel %vm2818_vm13, %v2802_v49, %v7504_v6  ;;  %v2836_v40 = vsel %vm2818_vm13, %v2803_v5, %v7505_v36 }
 0x412   : > { %v7663_v63 = vpop.permute.xlu2 %7662  ;;  %v7560_v9 = vunpack.i.h.bf16 %v11234_v24  ;;  %v7559_v14 = vunpack.i.l.bf16 %v11234_v24  ;;  %v2868_v2 = vsel %vm15775_vm5, %v2835_v51, %v7584_v54  ;;  %v2869_v8 = vsel %vm15775_vm5, %v2836_v40, %v7585_v21 }
 0x413   : > { %v7665_v27 = vunpack.i.h.bf16 %v7663_v63  ;;  %v7664_v58 = vunpack.i.l.bf16 %v7663_v63  ;;  %v7405_v7 = vunpack.i.h.bf16 %v10998_v34  ;;  %v7429_v50 = vunpack.i.l.bf16 %v11000_v19 }
 0x414   : > { %2998 = vrot.lane.b32.xlu1 %v16683_v10, %s7894_s27  ;;  %3008 = vrot.lane.b32.xlu0 %v16684_v59, %s7894_s27  ;;  %v11620_v24 = vsel %vm2785_vm1, %v11468_v61, %v7404_v44  ;;  %v7430_v49 = vunpack.i.h.bf16 %v11000_v19  ;;  %v2825_v33 = vsel %vm2818_vm13, %v2792_v20, %v7479_v23  ;;  %v2826_v34 = vsel %vm2818_vm13, %v2793_v0, %v7480_v13  ;;  %v16687_v44 = vld [vmem:[#allocation70_spill] sm:$0xff] }
 0x415   : > { %v11613_v22 = vsel %vm15759_vm4, %v2868_v2, %v7664_v58  ;;  %v11616_v35 = vsel %vm15759_vm4, %v2869_v8, %v7665_v27  ;;  %v7520_v36 = vunpack.i.h.bf16 %v11221_v28  ;;  %v7519_v6 = vunpack.i.l.bf16 %v11221_v28 }
 0x416   : > { %16685 = vst [vmem:[#allocation120_spill] sm:$0xff] %v11613_v22  ;;  %v11623_v5 = vpop.permute.xlu1 %7612  ;;  %v7638_v47 = vpop.permute.xlu0 %7637  ;;  %v7600_v63 = vunpack.i.h.bf16 %v11565_v37  ;;  %v7599_v61 = vunpack.i.l.bf16 %v11565_v37  ;;  %v2858_v19 = vsel %vm15775_vm5, %v2825_v33, %v7559_v14  ;;  %v2859_v27 = vsel %vm15775_vm5, %v2826_v34, %v7560_v9  ;;  %v16693_v34 = vld [vmem:[#allocation67_spill] sm:$0xff] }
 0x417   : > { %16686 = vst [vmem:[#allocation118_spill] sm:$0xff] %v11616_v35  ;;  %v7640_v21 = vunpack.i.h.bf16 %v7638_v47  ;;  %v7639_v54 = vunpack.i.l.bf16 %v7638_v47  ;;  %v11637_v20 = vsel %vm2785_vm1, %v11472_v57, %v7405_v7  ;;  %v11641_v28 = vsel %vm2785_vm1, %v11443_v12, %v7429_v50  ;;  %v16689_v7 = vld [vmem:[#allocation76_spill] sm:$0xff] }
 0x418   : > { %v7419_v13 = vunpack.i.l.bf16 %v11034_v38  ;;  %v2805_v23 = vsel %vm2785_vm1, %v11446_v43, %v7430_v49  ;;  %v7495_v58 = vunpack.i.h.bf16 %v11219_v42  ;;  %v7494_v57 = vunpack.i.l.bf16 %v11219_v42  ;;  %v16690_v43 = vld [vmem:[#allocation93_spill] sm:$0xff] }
 0x419   : > { %3006 = vrot.lane.b32.xlu2 %v16687_v44, %s7894_s27  ;;  %v11644_v0 = vsel %vm15759_vm4, %v2858_v19, %v7639_v54  ;;  %v11647_v37 = vsel %vm15759_vm4, %v2859_v27, %v7640_v21  ;;  %v2841_v12 = vsel %vm2818_vm13, %v2808_v4, %v7519_v6  ;;  %v2842_v14 = vsel %vm2818_vm13, %v2809_v15, %v7520_v36 }
 0x41a   : > { %16688 = vst [vmem:[#allocation141_spill] sm:$0xff] %v11647_v37  ;;  %v7678_v51 = vpop.permute.xlu2 %7677  ;;  %v7575_v2 = vunpack.i.h.bf16 %v11246_v46  ;;  %v7574_v8 = vunpack.i.l.bf16 %v11246_v46  ;;  %v2874_v50 = vsel %vm15775_vm5, %v2841_v12, %v7599_v61  ;;  %v2875_v42 = vsel %vm15775_vm5, %v2842_v14, %v7600_v63 }
 0x41b   : > { %v7680_v40 = vunpack.i.h.bf16 %v7678_v51  ;;  %v7679_v9 = vunpack.i.l.bf16 %v7678_v51  ;;  %v7420_v49 = vunpack.i.h.bf16 %v11034_v38  ;;  %v11674_v46 = vsel %vm2785_vm1, %v11490_v39, %v7419_v13  ;;  %v16694_v13 = vld [vmem:[#allocation82_spill] sm:$0xff] }
 0x41c   : > { %3004 = vrot.lane.b32.xlu1 %v16689_v7, %s7894_s27  ;;  %3014 = vrot.lane.b32.xlu0 %v16690_v43, %s7894_s27  ;;  %v7444_v33 = vunpack.i.l.bf16 %v11036_v11  ;;  %v7535_v36 = vunpack.i.h.bf16 %v16693_v34  ;;  %v7534_v6 = vunpack.i.l.bf16 %v16693_v34  ;;  %v2831_v61 = vsel %vm2818_vm13, %v11588_v18, %v7494_v57 }
 0x41d   : > { %v11667_v15 = vsel %vm15759_vm4, %v2874_v50, %v7679_v9  ;;  %v11670_v47 = vsel %vm15759_vm4, %v2875_v42, %v7680_v40  ;;  %v2832_v19 = vsel %vm2818_vm13, %v11592_v56, %v7495_v58  ;;  %v7615_v39 = vunpack.i.h.bf16 %v11623_v5  ;;  %v16695_v9 = vld [vmem:[#allocation208_spill] sm:$0xff]  ;;  %v16698_v58 = vld [vmem:[#allocation15_spill] sm:$0xff]  ;;  %v16699_v42 = vld [vmem:[#allocation189_spill] sm:$0xff] }
 0x41e   : > { %16691 = vst [vmem:[#allocation154_spill] sm:$0xff] %v11667_v15  ;;  %v11679_v21 = vpop.permute.xlu1 %7627  ;;  %v7653_v38 = vpop.permute.xlu0 %7652  ;;  %v7614_v27 = vunpack.i.l.bf16 %v11623_v5  ;;  %v2864_v51 = vsel %vm15775_vm5, %v2831_v61, %v7574_v8  ;;  %v2865_v40 = vsel %vm15775_vm5, %v2832_v19, %v7575_v2  ;;  %v7485_v12 = vunpack.i.h.bf16 %v16695_v9  ;;  %v16700_v19 = vld [vmem:[#allocation219_spill] sm:$0xff] }
 0x41f   : > { %16692 = vst [vmem:[#allocation228_spill] sm:$0xff] %v11670_v47  ;;  %v7655_v54 = vunpack.i.h.bf16 %v7653_v38  ;;  %v7654_v63 = vunpack.i.l.bf16 %v7653_v38  ;;  %v7484_v14 = vunpack.i.l.bf16 %v16695_v9  ;;  %v7510_v57 = vunpack.i.h.bf16 %v16698_v58  ;;  %v16702_v9 = vld [vmem:[#allocation94_spill] sm:$0xff] }
 0x420   : > { %v7509_v5 = vunpack.i.l.bf16 %v16698_v58  ;;  %v2847_v8 = vsel %vm2818_vm13, %v11584_v32, %v7534_v6  ;;  %v2848_v2 = vsel %vm2818_vm13, %v11595_v3, %v7535_v36  ;;  %v7590_v34 = vunpack.i.h.bf16 %v16699_v42 }
 0x421   : > { %3012 = vrot.lane.b32.xlu2 %v16694_v13, %s7894_s27  ;;  %v11694_v18 = vsel %vm15759_vm4, %v2864_v51, %v7654_v63  ;;  %v11697_v56 = vsel %vm15759_vm4, %v2865_v40, %v7655_v54  ;;  %v7589_v38 = vunpack.i.l.bf16 %v16699_v42  ;;  %v7565_v54 = vunpack.i.h.bf16 %v16700_v19  ;;  %v16701_v40 = vld [vmem:[#allocation88_spill] sm:$0xff]  ;;  %v16705_v42 = vld [vmem:[#allocation137_spill] sm:$0xff] }
 0x422   : > { %16696 = vst [vmem:[#allocation235_spill] sm:$0xff] %v11694_v18  ;;  %v7693_v50 = vpop.permute.xlu2 %7692  ;;  %v7564_v51 = vunpack.i.l.bf16 %v16700_v19  ;;  %v2880_v32 = vsel %vm15775_vm5, %v2847_v8, %v7614_v27  ;;  %v2881_v3 = vsel %vm15775_vm5, %v2848_v2, %v7615_v39  ;;  %v2801_v36 = vsel %vm2785_vm1, %v11501_v26, %v7420_v49  ;;  %v16706_v2 = vld [vmem:[#allocation97_spill] sm:$0xff]  ;;  %v16814_v18 = vld [vmem:[#allocation243_spill] sm:$0xff] }
 0x423   : > { %16697 = vst [vmem:[#allocation99_spill] sm:$0xff] %v11697_v56  ;;  %v7695_v63 = vunpack.i.h.bf16 %v7693_v50  ;;  %v7694_v61 = vunpack.i.l.bf16 %v7693_v50  ;;  %v2827_v6 = vsel %vm2818_vm13, %v11620_v24, %v7484_v14  ;;  %v7524_v19 = vunpack.i.l.bf16 %v16705_v42 }
 0x424   : > { %3010 = vrot.lane.b32.xlu1 %v16701_v40, %s7894_s27  ;;  %3020 = vrot.lane.b32.xlu0 %v16702_v9, %s7894_s27  ;;  %v2828_v27 = vsel %vm2818_vm13, %v11637_v20, %v7485_v12  ;;  %v2837_v39 = vsel %vm2818_vm13, %v11641_v28, %v7509_v5  ;;  %v2838_v26 = vsel %vm2818_vm13, %v2805_v23, %v7510_v57  ;;  %v16711_v57 = vld [vmem:[#allocation89_spill] sm:$0xff] }
 0x425   : > { %v11720_v58 = vsel %vm15759_vm4, %v2880_v32, %v7694_v61  ;;  %v11723_v50 = vsel %vm15759_vm4, %v2881_v3, %v7695_v63  ;;  %v2860_v63 = vsel %vm15775_vm5, %v2827_v6, %v7564_v51  ;;  %v2861_v61 = vsel %vm15775_vm5, %v2828_v27, %v7565_v54  ;;  %v16712_v51 = vld [vmem:[#allocation126_spill] sm:$0xff]  ;;  %v16713_v6 = vld [vmem:[#allocation101_spill] sm:$0xff] }
 0x426   : > { %16703 = vst [vmem:[#allocation131_spill] sm:$0xff] %v11720_v58  ;;  %v7643_v4 = vpop.permute.xlu1 %7642  ;;  %v7668_v9 = vpop.permute.xlu0 %7667  ;;  %v2870_v32 = vsel %vm15775_vm5, %v2837_v39, %v7589_v38  ;;  %v2871_v20 = vsel %vm15775_vm5, %v2838_v26, %v7590_v34  ;;  %v7500_v5 = vunpack.i.h.bf16 %v16711_v57  ;;  %v7499_v54 = vunpack.i.l.bf16 %v16711_v57 }
 0x427   : > { %16704 = vst [vmem:[#allocation153_spill] sm:$0xff] %v11723_v50  ;;  %v7645_v49 = vunpack.i.h.bf16 %v7643_v4  ;;  %v7644_v24 = vunpack.i.l.bf16 %v7643_v4  ;;  %v7670_v14 = vunpack.i.h.bf16 %v7668_v9  ;;  %v7669_v8 = vunpack.i.l.bf16 %v7668_v9  ;;  %v16718_v50 = vld [vmem:[#allocation276_spill] sm:$0xff] }
 0x428   : > { %v7525_v38 = vunpack.i.h.bf16 %v16705_v42  ;;  %v7604_v34 = vunpack.i.l.bf16 %v16712_v51  ;;  %v7435_v9 = vunpack.i.h.bf16 %v16713_v6  ;;  %v2810_v27 = vsel %vm2785_vm1, %v11483_v31, %v7444_v33  ;;  %v16717_v33 = vld [vmem:[#allocation96_spill] sm:$0xff] }
 0x429   : > { %3018 = vrot.lane.b32.xlu2 %v16706_v2, %s7894_s27  ;;  %v11738_v12 = vsel %vm15759_vm4, %v2860_v63, %v7644_v24  ;;  %v11741_v28 = vsel %vm15759_vm4, %v2861_v61, %v7645_v49  ;;  %v11744_v23 = vsel %vm15759_vm4, %v2870_v32, %v7669_v8  ;;  %v11747_v4 = vsel %vm15759_vm4, %v2871_v20, %v7670_v14  ;;  %v16715_v14 = vld [vmem:[#allocation105_spill] sm:$0xff]  ;;  %v16716_v8 = vld [vmem:[#allocation267_spill] sm:$0xff]  ;;  %v7779_v2 = vld [vmem:[#allocation2 + $0x78] sm:$0xff] }
 0x42a   : > { %16707 = vst [vmem:[#allocation180_spill] sm:$0xff] %v11738_v12  ;;  %v11753_v3 = vpop.permute.xlu2 %2925  ;;  %v16714_v39 = vunpack.i.h.bf16 %v11036_v11  ;;  %v7605_v49 = vunpack.i.h.bf16 %v16712_v51  ;;  %v7580_v42 = vunpack.i.h.bf16 %v11369_v25  ;;  %v7579_v24 = vunpack.i.l.bf16 %v11369_v25 }
 0x42b   : > { %16708 = vst [vmem:[#allocation198_spill] sm:$0xff] %v11741_v28  ;;  %v2989_v63 = vrot.slane %v11104_v48, 2  ;;  %v7434_v11 = vunpack.i.l.bf16 %v16713_v6  ;;  %v7459_v61 = vunpack.i.l.bf16 %v16717_v33  ;;  %v2843_v32 = vsel %vm2818_vm13, %v2810_v27, %v7524_v19  ;;  %v16817_v28 = vld [vmem:[#allocation53_spill] sm:$0xff] }
 0x42c   : > { %16709 = vst [vmem:[#allocation9_spill] sm:$0xff] %v11744_v23  ;;  %v2811_v26 = vsel %vm2785_vm1, %v11486_v60, %v16714_v39  ;;  %3016 = vrot.lane.b32.xlu1 %v16715_v14, %s7894_s27  ;;  %3026 = vrot.lane.b32.xlu0 %v16716_v8, %s7894_s27  ;;  %v7460_v60 = vunpack.i.h.bf16 %v16717_v33  ;;  %v2833_v51 = vsel %vm2818_vm13, %v11674_v46, %v7499_v54  ;;  %v16719_v19 = vrot.slane %v11106_v53, 2  ;;  %v7777_v23 = vld [vmem:[#allocation2 + $0x68] sm:$0xff]  ;;  %v16872_v14 = vld [vmem:[#allocation301_spill] sm:$0xff] }
 0x42d   : > { %16710 = vst [vmem:[#allocation147_spill] sm:$0xff] %v11747_v4  ;;  %v2844_v25 = vsel %vm2818_vm13, %v2811_v26, %v7525_v38  ;;  %v2834_v39 = vsel %vm2818_vm13, %v2801_v36, %v7500_v5  ;;  %v2876_v48 = vsel %vm15775_vm5, %v2843_v32, %v7604_v34  ;;  %v2866_v27 = vsel %vm15775_vm5, %v2833_v51, %v7579_v24  ;;  %v16725_v32 = vld [vmem:[#allocation205_spill] sm:$0xff]  ;;  %v16773_v4 = vld [vmem:[#allocation159_spill] sm:$0xff] }
 0x42e   : > { %v7658_v20 = vpop.permute.xlu1 %7657  ;;  %v7683_v57 = vpop.permute.xlu0 %7682  ;;  %v11787_v38 = vsel %vm15772_vm3, %v2989_v63, %v16719_v19  ;;  %v2867_v46 = vsel %vm15775_vm5, %v2834_v39, %v7580_v42  ;;  %v2877_v36 = vsel %vm15775_vm5, %v2844_v25, %v7605_v49  ;;  %v16724_v63 = vld [vmem:[#allocation146_spill] sm:$0xff]  ;;  %v7540_v42 = vunpack.i.h.bf16 %v16725_v32  ;;  %v16731_v19 = vld [vmem:[#allocation211_spill] sm:$0xff] }
 0x42f   : > { %v7660_v31 = vunpack.i.h.bf16 %v7658_v20  ;;  %v7659_v47 = vunpack.i.l.bf16 %v7658_v20  ;;  %v7685_v6 = vunpack.i.h.bf16 %v7683_v57  ;;  %v7684_v15 = vunpack.i.l.bf16 %v7683_v57  ;;  %v16729_v57 = vld [vmem:[#allocation84_spill] sm:$0xff]  ;;  %v16730_v39 = vld [vmem:[#allocation62_spill] sm:$0xff] }
 0x430   : > { %v7515_v33 = vunpack.i.h.bf16 %v16724_v63  ;;  %v7514_v24 = vunpack.i.l.bf16 %v16724_v63  ;;  %v7539_v49 = vunpack.i.l.bf16 %v16725_v32  ;;  %v7594_v63 = vunpack.i.l.bf16 %v11450_v55  ;;  %v16732_v32 = vld [vmem:[#allocation279_spill] sm:$0xff] }
 0x431   : > { %3024 = vrot.lane.b32.xlu2 %v16718_v50, %s7894_s27  ;;  %v11793_v5 = vsel %vm15759_vm4, %v2866_v27, %v7659_v47  ;;  %v11796_v54 = vsel %vm15759_vm4, %v2867_v46, %v7660_v31  ;;  %v11799_v34 = vsel %vm15759_vm4, %v2876_v48, %v7684_v15  ;;  %v11802_v26 = vsel %vm15759_vm4, %v2877_v36, %v7685_v6  ;;  %v16727_v31 = vld [vmem:[#allocation98_spill] sm:$0xff] }
 0x432   : > { %16720 = vst [vmem:[#allocation143_spill] sm:$0xff] %v11793_v5  ;;  %v11808_v25 = vpop.permute.xlu2 %2931  ;;  %v16726_v47 = vunpack.i.l.bf16 %v16674_v29  ;;  %v16728_v15 = vunpack.i.h.bf16 %v16674_v29  ;;  %v7370_v48 = vunpack.i.h.bf16 %v16730_v39  ;;  %v7369_v6 = vunpack.i.l.bf16 %v16730_v39  ;;  %v11999_v50 = vld [vmem:[#allocation2 + $0x88] sm:$0xf]  ;;  %v12017_v5 = vld [vmem:[#allocation2 + $0xa0] sm:$0xf] }
 0x433   : > { %16721 = vst [vmem:[#allocation135_spill] sm:$0xff] %v11796_v54  ;;  %v7620_v27 = vunpack.i.h.bf16 %v16731_v19  ;;  %v7619_v46 = vunpack.i.l.bf16 %v16731_v19  ;;  %v7595_v36 = vunpack.i.h.bf16 %v11450_v55  ;;  %v7778_v54 = vld [vmem:[#allocation2 + $0x80] sm:$0xff] }
 0x434   : > { %16722 = vst [vmem:[#allocation133_spill] sm:$0xff] %v11799_v34  ;;  %v2773_v20 = vsel %vm2752_vm15, %v16727_v31, %v16726_v47  ;;  %v2774_v51 = vsel %vm2752_vm15, %v16729_v57, %v16728_v15  ;;  %3022 = vrot.lane.b32.xlu1 %v16732_v32, %s7894_s27  ;;  %3032 = vrot.lane.b32.xlu0 %v11787_v38, %s7894_s27 }
 0x435   : > { %16723 = vst [vmem:[#allocation73_spill] sm:$0xff] %v11802_v26  ;;  %v2806_v29 = vsel %vm2785_vm1, %v2773_v20, %v7434_v11  ;;  %v2807_v47 = vsel %vm2785_vm1, %v2774_v51, %v7435_v9  ;;  %v2816_v31 = vsel %vm2785_vm1, %v11494_v45, %v7459_v61  ;;  %v2817_v15 = vsel %vm2785_vm1, %v11497_v1, %v7460_v60  ;;  %v16733_v51 = vld [vmem:[#allocation240_spill] sm:$0xff] }
 0x436   : > { %v7673_v57 = vpop.permute.xlu1 %7672  ;;  %v7698_v39 = vpop.permute.xlu0 %7697  ;;  %v2839_v55 = vsel %vm2818_vm13, %v2806_v29, %v7514_v24  ;;  %v2849_v19 = vsel %vm2818_vm13, %v2816_v31, %v7539_v49  ;;  %v2850_v32 = vsel %vm2818_vm13, %v2817_v15, %v7540_v42  ;;  %v2840_v26 = vsel %vm2818_vm13, %v2807_v47, %v7515_v33  ;;  %v16738_v29 = vld [vmem:[#allocation61_spill] sm:$0xff] }
 0x437   : > { %v7675_v34 = vunpack.i.h.bf16 %v7673_v57  ;;  %v7674_v11 = vunpack.i.l.bf16 %v7673_v57  ;;  %v7700_v20 = vunpack.i.h.bf16 %v7698_v39  ;;  %v7699_v9 = vunpack.i.l.bf16 %v7698_v39  ;;  %v16744_v57 = vld [vmem:[#allocation229_spill] sm:$0xff] }
 0x438   : > { %v2872_v45 = vsel %vm15775_vm5, %v2839_v55, %v7594_v63  ;;  %v2882_v1 = vsel %vm15775_vm5, %v2849_v19, %v7619_v46  ;;  %v2883_v60 = vsel %vm15775_vm5, %v2850_v32, %v7620_v27  ;;  %v2873_v61 = vsel %vm15775_vm5, %v2840_v26, %v7595_v36  ;;  %v16740_v27 = vld [vmem:[#allocation74_spill] sm:$0xff]  ;;  %v16742_v36 = vld [vmem:[#allocation33_spill] sm:$0xff] }
 0x439   : > { %3030 = vrot.lane.b32.xlu2 %v16733_v51, %s7894_s27  ;;  %v11845_v24 = vsel %vm15759_vm4, %v2872_v45, %v7674_v11  ;;  %v11848_v33 = vsel %vm15759_vm4, %v2882_v1, %v7699_v9  ;;  %v11851_v42 = vsel %vm15759_vm4, %v2883_v60, %v7700_v20  ;;  %v11854_v49 = vsel %vm15759_vm4, %v2873_v61, %v7675_v34  ;;  %v16747_v9 = vld [vmem:[#allocation35_spill] sm:$0xff]  ;;  %v16749_v60 = vld [vmem:[#allocation10_spill] sm:$0xff] }
 0x43a   : > { %16734 = vst [vmem:[#allocation145_spill] sm:$0xff] %v11845_v24  ;;  %v7450_v63 = vunpack.i.h.bf16 %v16738_v29  ;;  %v7449_v46 = vunpack.i.l.bf16 %v16738_v29  ;;  %v11858_v47 = vpop.permute.xlu2 %2937  ;;  %v16741_v26 = vunpack.i.l.bf16 %v16740_v27  ;;  %v16743_v31 = vunpack.i.l.bf16 %v16742_v36  ;;  %v16748_v45 = vld [vmem:[#allocation139_spill] sm:$0xff] }
 0x43b   : > { %16735 = vst [vmem:[#allocation337_spill] sm:$0xff] %v11848_v33  ;;  %v7530_v39 = vunpack.i.h.bf16 %v16744_v57  ;;  %v7529_v55 = vunpack.i.l.bf16 %v16744_v57  ;;  %v16745_v19 = vunpack.i.h.bf16 %v16740_v27  ;;  %v16746_v34 = vunpack.i.h.bf16 %v16742_v36 }
 0x43c   : > { %16736 = vst [vmem:[#allocation167_spill] sm:$0xff] %v11851_v42  ;;  %v2746_v15 = vsel %vm2719_vm14, %v16743_v31, %v16741_v26  ;;  %v7610_v11 = vunpack.i.h.bf16 %v11522_v41  ;;  %v7609_v20 = vunpack.i.l.bf16 %v11522_v41  ;;  %3028 = vrot.lane.b32.xlu1 %v16747_v9, %s7894_s27  ;;  %v11877_v1 = vrot.slane %v16748_v45, 2  ;;  %v16770_v42 = vld [vmem:[#allocation150_spill] sm:$0xff] }
 0x43d   : > { %16737 = vst [vmem:[#allocation195_spill] sm:$0xff] %v11854_v49  ;;  %v2747_v32 = vsel %vm2719_vm14, %v16746_v34, %v16745_v19  ;;  %v16750_v61 = vrot.slane %v16749_v60, 3  ;;  %v2779_v29 = vsel %vm2752_vm15, %v2746_v15, %v7369_v6 }
 0x43e   : > { %16739 = vst [vmem:[#allocation209_spill] sm:$0xff] %v11858_v47  ;;  %v2780_v27 = vsel %vm2752_vm15, %v2747_v32, %v7370_v48  ;;  %v2812_v26 = vsel %vm2785_vm1, %v2779_v29, %v7449_v46  ;;  %v7688_v31 = vpop.permute.xlu1 %7687  ;;  %v11886_v41 = vpop.permute.xlu0 %2927  ;;  %v16751_v46 = vrot.slane %v11106_v53, 2  ;;  %v16756_v32 = vld [vmem:[#allocation125_spill] sm:$0xff]  ;;  %v16760_v29 = vld [vmem:[#allocation140_spill] sm:$0xff] }
 0x43f   : > { %3065 = vrot.lane.b32.xlu0 %v16750_v61, %s15765_s28  ;;  %v2813_v36 = vsel %vm2785_vm1, %v2780_v27, %v7450_v63  ;;  %v2845_v57 = vsel %vm2818_vm13, %v2812_v26, %v7529_v55  ;;  %v7690_v19 = vunpack.i.h.bf16 %v7688_v31  ;;  %v7689_v34 = vunpack.i.l.bf16 %v7688_v31  ;;  %v16759_v61 = vld [vmem:[#allocation121_spill] sm:$0xff] }
 0x440   : > { %v2846_v45 = vsel %vm2818_vm13, %v2813_v36, %v7530_v39  ;;  %v2878_v6 = vsel %vm15775_vm5, %v2845_v57, %v7609_v20  ;;  %v11898_v63 = vsel %vm15772_vm3, %v16751_v46, %v11877_v1  ;;  %v16757_v20 = vld [vmem:[#allocation115_spill] sm:$0xff]  ;;  %v16762_v36 = vld [vmem:[#allocation129_spill] sm:$0xff]  ;;  %v16764_v57 = vld [vmem:[#allocation136_spill] sm:$0xff] }
 0x441   : > { %3036 = vrot.lane.b32.xlu2 %v11877_v1, %s7894_s27  ;;  %v2879_v48 = vsel %vm15775_vm5, %v2846_v45, %v7610_v11  ;;  %16752 = vst [vmem:[#allocation222_spill] sm:$0xff] %v11898_v63  ;;  %v11901_v15 = vsel %vm15759_vm4, %v2878_v6, %v7689_v34  ;;  %v16768_v6 = vld [vmem:[#allocation144_spill] sm:$0xff] }
 0x442   : > { %16753 = vst [vmem:[#allocation162_spill] sm:$0xff] %v11901_v15  ;;  %v11904_v55 = vsel %vm15759_vm4, %v2879_v48, %v7690_v19  ;;  %v11906_v39 = vpop.permute.xlu2 %2943  ;;  %v16765_v19 = vld [vmem:[#allocation155_spill] sm:$0xff]  ;;  %v7776_v48 = vld [vmem:[#allocation2 + $0x60] sm:$0xff]  ;;  %vm15773_vm4 = vcmask 1040384  }
 0x443   : > { %16754 = vst [vmem:[#allocation158_spill] sm:$0xff] %v11904_v55  ;;  %v3134_v46 = vrot.slane %v7776_v48, 7  ;;  %v3135_v55 = vrot.slane %v7777_v23, 7  ;;  %v16774_v48 = vld [vmem:[#allocation165_spill] sm:$0xff]  ;;  %v16779_v23 = vld [vmem:[#allocation55_spill] sm:$0xff] }
 0x444   : > { %16755 = vst [vmem:[#allocation151_spill] sm:$0xff] %v11906_v39  ;;  %3034 = vrot.lane.b32.xlu1 %v11898_v63, %s7894_s27  ;;  %v16777_v39 = vld [vmem:[#allocation170_spill] sm:$0xff]  ;;  %s16782_s27 = smov 84   ;;  %v16818_v63 = vld [vmem:[#allocation27_spill] sm:$0xff] }
 0x445   : > { %v3136_v35 = vsel %vm15773_vm4, %v3134_v46, %v3135_v55 }
 0x446   : > { %v11912_v11 = vpop.permute.xlu1 %2923  ;;  %v11914_v53 = vpop.permute.xlu0 %2933 }
 0x447   : > { %3071 = vrot.lane.b32.xlu0 %v16756_v32, %s15765_s28 }
 0x449   : > { %3069 = vrot.lane.b32.xlu2 %v16757_v20, %s15765_s28 }
 0x44b   : > { %v11918_v60 = vpop.permute.xlu2 %2949 }
 0x44c   : > { %16758 = vst [vmem:[#allocation148_spill] sm:$0xff] %v11918_v60  ;;  %3067 = vrot.lane.b32.xlu1 %v16759_v61, %s15765_s28 }
 0x44e   : > { %v11924_v27 = vpop.permute.xlu1 %2929  ;;  %v11926_v26 = vpop.permute.xlu0 %2939 }
 0x44f   : > { %3077 = vrot.lane.b32.xlu0 %v16760_v29, %s15765_s28  ;;  %16761 = vst [vmem:[#allocation13_spill] sm:$0xff] %v11926_v26 }
 0x451   : > { %3075 = vrot.lane.b32.xlu2 %v16762_v36, %s15765_s28 }
 0x453   : > { %v11930_v31 = vpop.permute.xlu2 %2955 }
 0x454   : > { %16763 = vst [vmem:[#allocation91_spill] sm:$0xff] %v11930_v31  ;;  %3073 = vrot.lane.b32.xlu1 %v16764_v57, %s15765_s28  ;;  %v16783_v31 = vld [vmem:[#allocation14_spill] sm:$0xff] }
 0x456   : > { %v11936_v34 = vpop.permute.xlu1 %2935  ;;  %v11938_v45 = vpop.permute.xlu0 %2945 }
 0x457   : > { %3083 = vrot.lane.b32.xlu0 %v16765_v19, %s15765_s28  ;;  %16766 = vst [vmem:[#allocation142_spill] sm:$0xff] %v11936_v34 }
 0x458   : > { %16767 = vst [vmem:[#allocation214_spill] sm:$0xff] %v11938_v45 }
 0x459   : > { %3081 = vrot.lane.b32.xlu2 %v16768_v6, %s15765_s28 }
 0x45b   : > { %v11942_v49 = vpop.permute.xlu2 %2961 }
 0x45c   : > { %16769 = vst [vmem:[#allocation173_spill] sm:$0xff] %v11942_v49  ;;  %3079 = vrot.lane.b32.xlu1 %v16770_v42, %s15765_s28  ;;  %v3138_v49 = vrot.slane %v7778_v54, 7 }
 0x45e   : > { %v11947_v33 = vpop.permute.xlu1 %2941  ;;  %v11949_v24 = vpop.permute.xlu0 %2951 }
 0x45f   : > { %3182 = vrot.lane.b32.xlu0 %v3134_v46, %s15763_s29  ;;  %16771 = vst [vmem:[#allocation11_spill] sm:$0xff] %v11947_v33 }
 0x460   : > { %16772 = vst [vmem:[#allocation106_spill] sm:$0xff] %v11949_v24 }
 0x461   : > { %3087 = vrot.lane.b32.xlu2 %v16773_v4, %s15765_s28 }
 0x463   : > { %v11953_v58 = vpop.permute.xlu2 %2994 }
 0x464   : > { %3085 = vrot.lane.b32.xlu1 %v16774_v48, %s15765_s28 }
 0x466   : > { %v11958_v15 = vpop.permute.xlu1 %2947  ;;  %v11960_v45 = vpop.permute.xlu0 %2957 }
 0x467   : > { %3186 = vrot.lane.b32.xlu0 %v3135_v55, %s15763_s29  ;;  %16775 = vst [vmem:[#allocation166_spill] sm:$0xff] %v11958_v15 }
 0x468   : > { %16776 = vst [vmem:[#allocation163_spill] sm:$0xff] %v11960_v45  ;;  %v3137_v45 = vrot.slane %v7779_v2, 7 }
 0x469   : > { %3089 = vrot.lane.b32.xlu2 %v16777_v39, %s15765_s28  ;;  %v11979_v39 = vld [vmem:[#allocation2 + $0x70] sm:$0xf]  ;;  %s7912_s28 = smov 15  }
 0x46a   : > { %v3139_v55 = vsel %vm15773_vm4, %v3137_v45, %v3138_v49 }
 0x46b   : > { %v11965_v22 = vpop.permute.xlu2 %3000 }
 0x46c   : > { %3184 = vrot.lane.b32.xlu1 %v3136_v35, %s15763_s29 }
 0x46e   : > { %v11970_v33 = vpop.permute.xlu1 %2953  ;;  %v11972_v15 = vpop.permute.xlu0 %2963 }
 0x46f   : > { %3469 = vrot.lane.b32.xlu0 %v16779_v23, %s16778_s21  ;;  %16780 = vst [vmem:[#allocation161_spill] sm:$0xff] %v11970_v33 }
 0x470   : > { %16781 = vst [vmem:[#allocation203_spill] sm:$0xff] %v11972_v15 }
 0x471   : > { %3398 = vrot.lane.b32.xlu2 %v16783_v31, %s16782_s27  ;;  %v16789_v31 = vld [vmem:[#allocation19_spill] sm:$0xff] }
 0x473   : > { %v11977_v46 = vpop.permute.xlu2 %3006 }
 0x474   : > { %16784 = vst [vmem:[#allocation174_spill] sm:$0xff] %v11977_v46  ;;  %3327 = vrot.lane.b32.xlu1 %v11979_v39, %s16785_s26 }
 0x476   : > { %v11984_v35 = vpop.permute.xlu1 %2959  ;;  %v11986_v54 = vpop.permute.xlu0 %2996 }
 0x477   : > { %3190 = vrot.lane.b32.xlu0 %v3139_v55, %s15763_s29  ;;  %16786 = vst [vmem:[#allocation16_spill] sm:$0xff] %v11984_v35  ;;  %v7782_v55 = vld [vmem:[#allocation2 + $0x90] sm:$0xff] }
 0x478   : > { %v3140_v35 = vrot.slane %v7782_v55, 7 }
 0x479   : > { %3188 = vrot.lane.b32.xlu2 %v3137_v45, %s15763_s29 }
 0x47b   : > { %v11989_v2 = vpop.permute.xlu2 %3012 }
 0x47c   : > { %16787 = vst [vmem:[#allocation176_spill] sm:$0xff] %v11989_v2  ;;  %3540 = vrot.lane.b32.xlu1 %v16759_v61, %s16788_s23  ;;  %v7783_v2 = vld [vmem:[#allocation2 + $0x98] sm:$0xff] }
 0x47d   : > { %v3141_v55 = vrot.slane %v7783_v2, 7 }
 0x47e   : > { %v11995_v23 = vpop.permute.xlu1 %2965  ;;  %v11997_v15 = vpop.permute.xlu0 %3002 }
 0x47f   : > { %3400 = vrot.lane.b32.xlu0 %v16789_v31, %s16782_s27  ;;  %16790 = vst [vmem:[#allocation80_spill] sm:$0xff] %v11995_v23 }
 0x481   : > { %3329 = vrot.lane.b32.xlu2 %v11999_v50, %s16785_s26 }
 0x483   : > { %v12003_v45 = vpop.permute.xlu2 %3018 }
 0x484   : > { %16791 = vst [vmem:[#allocation12_spill] sm:$0xff] %v12003_v45  ;;  %3192 = vrot.lane.b32.xlu1 %v3138_v49, %s15763_s29 }
 0x486   : > { %v12007_v61 = vpop.permute.xlu1 %2998  ;;  %v12009_v31 = vpop.permute.xlu0 %3008 }
 0x487   : > { %3194 = vrot.lane.b32.xlu0 %v3140_v35, %s15763_s29  ;;  %16792 = vst [vmem:[#allocation212_spill] sm:$0xff] %v12009_v31 }
 0x489   : > { %3542 = vrot.lane.b32.xlu2 %v16757_v20, %s16788_s23  ;;  %v3142_v20 = vsel %vm15773_vm4, %v3140_v35, %v3141_v55 }
 0x48b   : > { %v12013_v23 = vpop.permute.xlu2 %3024 }
 0x48c   : > { %16793 = vst [vmem:[#allocation179_spill] sm:$0xff] %v12013_v23  ;;  %3471 = vrot.lane.b32.xlu1 %v16683_v10, %s16778_s21  ;;  %v7785_v10 = vld [vmem:[#allocation2 + $0xb0] sm:$0xff]  ;;  %v7786_v23 = vld [vmem:[#allocation2 + $0xa8] sm:$0xff] }
 0x48d   : > { %v3144_v2 = vrot.slane %v7785_v10, 7  ;;  %v3143_v33 = vrot.slane %v7786_v23, 7  ;;  %v12051_v23 = vld [vmem:[#allocation2 + $0xb8] sm:$0xf] }
 0x48e   : > { %v12021_v49 = vpop.permute.xlu1 %3004  ;;  %v12023_v45 = vpop.permute.xlu0 %3014 }
 0x48f   : > { %3331 = vrot.lane.b32.xlu0 %v12017_v5, %s16785_s26  ;;  %16794 = vst [vmem:[#allocation181_spill] sm:$0xff] %v12023_v45  ;;  %v3145_v35 = vsel %vm15773_vm4, %v3143_v33, %v3144_v2 }
 0x491   : > { %3198 = vrot.lane.b32.xlu2 %v3141_v55, %s15763_s29 }
 0x493   : > { %v12027_v56 = vpop.permute.xlu2 %3030 }
 0x494   : > { %16795 = vst [vmem:[#allocation100_spill] sm:$0xff] %v12027_v56  ;;  %3196 = vrot.lane.b32.xlu1 %v3142_v20, %s15763_s29  ;;  %v16799_v20 = vld [vmem:[#allocation26_spill] sm:$0xff] }
 0x496   : > { %v12032_v60 = vpop.permute.xlu1 %3010  ;;  %v12034_v4 = vpop.permute.xlu0 %3020 }
 0x497   : > { %3544 = vrot.lane.b32.xlu0 %v16756_v32, %s16788_s23  ;;  %16796 = vst [vmem:[#allocation149_spill] sm:$0xff] %v12032_v60 }
 0x498   : > { %16797 = vst [vmem:[#allocation217_spill] sm:$0xff] %v12034_v4 }
 0x499   : > { %3473 = vrot.lane.b32.xlu2 %v16682_v62, %s16778_s21 }
 0x49b   : > { %v12039_v55 = vpop.permute.xlu2 %3036 }
 0x49c   : > { %16798 = vst [vmem:[#allocation184_spill] sm:$0xff] %v12039_v55  ;;  %3402 = vrot.lane.b32.xlu1 %v16799_v20, %s16782_s27  ;;  %v7788_v20 = vld [vmem:[#allocation2 + $0xc8] sm:$0xff] }
 0x49e   : > { %v12044_v32 = vpop.permute.xlu1 %3016  ;;  %v12046_v10 = vpop.permute.xlu0 %3026 }
 0x49f   : > { %3202 = vrot.lane.b32.xlu0 %v3145_v35, %s15763_s29  ;;  %16800 = vst [vmem:[#allocation185_spill] sm:$0xff] %v12044_v32 }
 0x4a0   : > { %16801 = vst [vmem:[#allocation231_spill] sm:$0xff] %v12046_v10  ;;  %v7789_v10 = vld [vmem:[#allocation2 + $0xc0] sm:$0xff] }
 0x4a1   : > { %3200 = vrot.lane.b32.xlu2 %v3143_v33, %s15763_s29  ;;  %v3147_v33 = vrot.slane %v7788_v20, 7  ;;  %v3146_v4 = vrot.slane %v7789_v10, 7 }
 0x4a3   : > { %v12049_v45 = vpop.permute.xlu2 %3069 }
 0x4a6   : > { %v12055_v62 = vpop.permute.xlu1 %3022  ;;  %v12057_v55 = vpop.permute.xlu0 %3032 }
 0x4a7   : > { %3333 = vrot.lane.b32.xlu0 %v12051_v23, %s16785_s26  ;;  %16802 = vst [vmem:[#allocation187_spill] sm:$0xff] %v12055_v62 }
 0x4a8   : > { %16803 = vst [vmem:[#allocation111_spill] sm:$0xff] %v12057_v55  ;;  %v3148_v55 = vsel %vm15773_vm4, %v3146_v4, %v3147_v33 }
 0x4a9   : > { %3204 = vrot.lane.b32.xlu2 %v3144_v2, %s15763_s29 }
 0x4ab   : > { %v12060_v35 = vpop.permute.xlu2 %3075 }
 0x4ae   : > { %v12064_v32 = vpop.permute.xlu1 %3028 }
 0x4af   : > { %3546 = vrot.lane.b32.xlu0 %v16764_v57, %s16788_s23  ;;  %16804 = vst [vmem:[#allocation168_spill] sm:$0xff] %v12064_v32  ;;  %v12081_v32 = vld [vmem:[#allocation2 + $0xd0] sm:$0xf] }
 0x4b1   : > { %v12066_v56 = vpop.permute.xlu0 %3065  ;;  %3475 = vrot.lane.b32.xlu2 %v16679_v52, %s16778_s21 }
 0x4b3   : > { %v12071_v62 = vpop.permute.xlu2 %3081 }
 0x4b4   : > { %16805 = vst [vmem:[#allocation207_spill] sm:$0xff] %v12071_v62  ;;  %v7792_v62 = vld [vmem:[#allocation2 + $0xd8] sm:$0xff] }
 0x4b5   : > { %v3149_v60 = vrot.slane %v7792_v62, 7 }
 0x4b6   : > { %v12074_v2 = vpop.permute.xlu1 %3034 }
 0x4b7   : > { %3208 = vrot.lane.b32.xlu0 %v3148_v55, %s15763_s29  ;;  %16806 = vst [vmem:[#allocation190_spill] sm:$0xff] %v12074_v2  ;;  %v7791_v2 = vld [vmem:[#allocation2 + $0xe0] sm:$0xff] }
 0x4b9   : > { %v12076_v57 = vpop.permute.xlu0 %3071  ;;  %3206 = vrot.lane.b32.xlu2 %v3146_v4, %s15763_s29  ;;  %v3150_v4 = vrot.slane %v7791_v2, 7  ;;  %v7793_v2 = vld [vmem:[#allocation2 + $0xe8] sm:$0xf] }
 0x4bb   : > { %v12079_v20 = vpop.permute.xlu2 %3087  ;;  %v3151_v26 = vsel %vm15773_vm4, %v3149_v60, %v3150_v4 }
 0x4bc   : > { %16807 = vst [vmem:[#allocation191_spill] sm:$0xff] %v12079_v20 }
 0x4be   : > { %v12085_v52 = vpop.permute.xlu1 %3067 }
 0x4bf   : > { %3335 = vrot.lane.b32.xlu0 %v12081_v32, %s16785_s26 }
 0x4c1   : > { %v12087_v10 = vpop.permute.xlu0 %3077  ;;  %3210 = vrot.lane.b32.xlu2 %v3147_v33, %s15763_s29 }
 0x4c2   : > { %16808 = vst [vmem:[#allocation119_spill] sm:$0xff] %v12087_v10 }
 0x4c3   : > { %v12090_v55 = vpop.permute.xlu2 %3089 }
 0x4c4   : > { %16809 = vst [vmem:[#allocation87_spill] sm:$0xff] %v12090_v55 }
 0x4c6   : > { %v12094_v24 = vpop.permute.xlu1 %3073 }
 0x4c7   : > { %3548 = vrot.lane.b32.xlu0 %v16762_v36, %s16788_s23 }
 0x4c9   : > { %v12096_v20 = vpop.permute.xlu0 %3083  ;;  %3477 = vrot.lane.b32.xlu2 %v16689_v7, %s16778_s21 }
 0x4ca   : > { %16810 = vst [vmem:[#allocation193_spill] sm:$0xff] %v12096_v20  ;;  %v16812_v20 = vld [vmem:[#allocation42_spill] sm:$0xff] }
 0x4cb   : > { %v3399_v31 = vpop.permute.xlu2 %3398 }
 0x4ce   : > { %v12102_v33 = vpop.permute.xlu1 %3079 }
 0x4cf   : > { %3214 = vrot.lane.b32.xlu0 %v3151_v26, %s15763_s29  ;;  %16811 = vst [vmem:[#allocation177_spill] sm:$0xff] %v12102_v33  ;;  %v16815_v33 = vld [vmem:[#allocation270_spill] sm:$0xff] }
 0x4d1   : > { %v3183_v55 = vpop.permute.xlu0 %3182  ;;  %3212 = vrot.lane.b32.xlu2 %v3149_v60, %s15763_s29 }
 0x4d2   : > { %v3672_v62 = vsel %vm15781_vm8, %v16812_v20, %v3183_v55 }
 0x4d3   : > { %v3189_v36 = vpop.permute.xlu2 %3188  ;;  %v3720_v48 = vsel %vm2554_vm9, %v3672_v62, %v16814_v18  ;;  %v7795_v62 = vld [vmem:[#allocation2 + $0xf0] sm:$0xff] }
 0x4d4   : > { %v3768_v60 = vsel %vm2587_vm11, %v3720_v48, %v16815_v33  ;;  %v16819_v48 = vld [vmem:[#allocation79_spill] sm:$0xff]  ;;  %v16820_v33 = vld [vmem:[#allocation328_spill] sm:$0xff] }
 0x4d5   : > { %v3816_v20 = vsel %vm2620_vm10, %v3768_v60, %v16816_v17  ;;  %v16821_v60 = vld [vmem:[#allocation298_spill] sm:$0xff] }
 0x4d6   : > { %v12108_v47 = vpop.permute.xlu1 %3085 }
 0x4d7   : > { %3337 = vrot.lane.b32.xlu0 %v7793_v2, %s16785_s26  ;;  %16813 = vst [vmem:[#allocation215_spill] sm:$0xff] %v12108_v47  ;;  %v7794_v2 = vld [vmem:[#allocation2 + $0xf8] sm:$0xff] }
 0x4d8   : > { %v3153_v16 = vrot.slane %v7794_v2, 7  ;;  %v3864_v2 = vsel %vm15779_vm12, %v3816_v20, %v16820_v33 }
 0x4d9   : > { %v3187_v7 = vpop.permute.xlu0 %3186  ;;  %3216 = vrot.lane.b32.xlu2 %v3150_v4, %s15763_s29  ;;  %v3152_v4 = vrot.slane %v7795_v62, 7 }
 0x4db   : > { %v12113_v26 = vpop.permute.xlu2 %3329  ;;  %v3154_v17 = vsel %vm15773_vm4, %v3152_v4, %v3153_v16 }
 0x4de   : > { %v3185_v55 = vpop.permute.xlu1 %3184 }
 0x4df   : > { %3550 = vrot.lane.b32.xlu0 %v16760_v29, %s16788_s23  ;;  %v3673_v18 = vsel %vm15781_vm8, %v16817_v28, %v3185_v55  ;;  %v16822_v55 = vld [vmem:[#allocation319_spill] sm:$0xff] }
 0x4e0   : > { %v3721_v12 = vsel %vm2554_vm9, %v3673_v18, %v16818_v63  ;;  %v7796_v63 = vld [vmem:[#allocation2 + $0x58] sm:$0xf]  ;;  %v3960_v18 = vrot.slane %v3864_v2, 1 }
 0x4e1   : > { %v3470_v47 = vpop.permute.xlu0 %3469  ;;  %3479 = vrot.lane.b32.xlu2 %v16687_v44, %s16778_s21  ;;  %v3769_v29 = vsel %vm2587_vm11, %v3721_v12, %v16819_v48  ;;  %v3606_v44 = vsel %vm331_vm0, %v7796_v63, %v11912_v11 }
 0x4e2   : > { %v3817_v10 = vsel %vm2620_vm10, %v3769_v29, %v16821_v60  ;;  %v3628_v12 = vsel %vm2455_vm6, %v3606_v44, %v11953_v58 }
 0x4e3   : > { %v12134_v28 = vpop.permute.xlu2 %3542  ;;  %v3865_v62 = vsel %vm15779_vm12, %v3817_v10, %v16822_v55  ;;  %v3650_v20 = vsel %vm15774_vm7, %v3628_v12, %v12066_v56  ;;  %v16825_v12 = vld [vmem:[#allocation246_spill] sm:$0xff] }
 0x4e4   : > { %v3961_v46 = vrot.slane %v3865_v62, 1  ;;  %v3674_v10 = vsel %vm15781_vm8, %v3650_v20, %v3187_v7  ;;  %v16823_v62 = vld [vmem:[#allocation186_spill] sm:$0xff] }
 0x4e6   : > { %v3328_v48 = vpop.permute.xlu1 %3327  ;;  %v3962_v29 = vsel %vm15776_vm2, %v3960_v18, %v3961_v46 }
 0x4e7   : > { %3220 = vrot.lane.b32.xlu0 %v3154_v17, %s15763_s29  ;;  %4040 = vrot.lane.b32.xlu1 %v3962_v29, %s15767_s25  ;;  %v3722_v11 = vsel %vm2554_vm9, %v3674_v10, %v3328_v48  ;;  %v7797_v17 = vld [vmem:[#allocation2 + $0x100] sm:$0xf]  ;;  %v7798_v10 = vld [vmem:[#allocation2 + $0x110] sm:$0xff] }
 0x4e8   : > { %v3770_v58 = vsel %vm2587_vm11, %v3722_v11, %v3399_v31  ;;  %v3607_v11 = vsel %vm331_vm0, %v11979_v39, %v11753_v3 }
 0x4e9   : > { %v3191_v33 = vpop.permute.xlu0 %3190  ;;  %3218 = vrot.lane.b32.xlu2 %v3152_v4, %s15763_s29  ;;  %v3818_v56 = vsel %vm2620_vm10, %v3770_v58, %v3470_v47  ;;  %v16824_v4 = vld [vmem:[#allocation138_spill] sm:$0xff]  ;;  %v16826_v47 = vld [vmem:[#allocation241_spill] sm:$0xff] }
 0x4ea   : > { %v3676_v63 = vsel %vm15781_vm8, %v16823_v62, %v3191_v33  ;;  %v3675_v18 = vsel %vm15781_vm8, %v16824_v4, %v3189_v36  ;;  %v16827_v33 = vld [vmem:[#allocation272_spill] sm:$0xff]  ;;  %v3156_v36 = vrot.slane %v7798_v10, 7  ;;  %v16830_v4 = vld [vmem:[#allocation302_spill] sm:$0xff] }
 0x4eb   : > { %v12150_v2 = vpop.permute.xlu2 %3198  ;;  %v3724_v31 = vsel %vm2554_vm9, %v3676_v63, %v16825_v12  ;;  %v3723_v29 = vsel %vm2554_vm9, %v3675_v18, %v16826_v47  ;;  %v16829_v63 = vld [vmem:[#allocation294_spill] sm:$0xff] }
 0x4ec   : > { %v16831_v12 = vld [vmem:[#allocation22_spill] sm:$0xff] }
 0x4ee   : > { %v3541_v60 = vpop.permute.xlu1 %3540 }
 0x4ef   : > { %3339 = vrot.lane.b32.xlu0 %v7797_v17, %s16785_s26  ;;  %v3866_v7 = vsel %vm15779_vm12, %v3818_v56, %v3541_v60  ;;  %v3629_v17 = vsel %vm2455_vm6, %v3607_v11, %v11986_v54  ;;  %v16828_v56 = vld [vmem:[#allocation265_spill] sm:$0xff] }
 0x4f0   : > { %v3963_v44 = vrot.slane %v3866_v7, 1  ;;  %v3771_v60 = vsel %vm2587_vm11, %v3723_v29, %v16828_v56  ;;  %v7799_v7 = vld [vmem:[#allocation2 + $0x108] sm:$0xff] }
 0x4f1   : > { %v3401_v55 = vpop.permute.xlu0 %3400  ;;  %3222 = vrot.lane.b32.xlu2 %v3153_v16, %s15763_s29  ;;  %v3772_v16 = vsel %vm2587_vm11, %v3724_v31, %v16827_v33  ;;  %v3155_v62 = vrot.slane %v7799_v7, 7  ;;  %v3819_v54 = vsel %vm2620_vm10, %v3771_v60, %v16830_v4  ;;  %v16832_v31 = vld [vmem:[#allocation331_spill] sm:$0xff]  ;;  %v7800_v60 = vld [vmem:[#allocation2 + $0x118] sm:$0xf] }
 0x4f2   : > { %v3964_v20 = vsel %vm15776_vm2, %v3961_v46, %v3963_v44  ;;  %v3820_v44 = vsel %vm2620_vm10, %v3772_v16, %v16829_v63  ;;  %v16834_v63 = vld [vmem:[#allocation54_spill] sm:$0xff] }
 0x4f3   : > { %v12164_v48 = vpop.permute.xlu2 %3473  ;;  %4042 = vrot.lane.b32.xlu1 %v3964_v20, %s15767_s25  ;;  %v3157_v39 = vsel %vm15773_vm4, %v3155_v62, %v3156_v36 }
 0x4f6   : > { %v3193_v46 = vpop.permute.xlu1 %3192 }
 0x4f7   : > { %3552 = vrot.lane.b32.xlu0 %v16770_v42, %s16788_s23  ;;  %v3651_v42 = vsel %vm15774_vm7, %v3629_v17, %v12085_v52  ;;  %v3868_v52 = vsel %vm15779_vm12, %v3820_v44, %v16832_v31 }
 0x4f8   : > { %v3677_v3 = vsel %vm15781_vm8, %v3651_v42, %v3193_v46  ;;  %v3966_v33 = vrot.slane %v3868_v52, 1  ;;  %v16838_v52 = vld [vmem:[#allocation268_spill] sm:$0xff] }
 0x4f9   : > { %v3195_v58 = vpop.permute.xlu0 %3194  ;;  %3481 = vrot.lane.b32.xlu2 %v16684_v59, %s16778_s21  ;;  %v3725_v20 = vsel %vm2554_vm9, %v3677_v3, %v12113_v26  ;;  %v16833_v59 = vld [vmem:[#allocation326_spill] sm:$0xff] }
 0x4fa   : > { %v3867_v47 = vsel %vm15779_vm12, %v3819_v54, %v16833_v59  ;;  %v3773_v10 = vsel %vm2587_vm11, %v3725_v20, %v3401_v55  ;;  %v12228_v20 = vld [vmem:[#allocation2 + $0x128] sm:$0xff] }
 0x4fb   : > { %v12190_v18 = vpop.permute.xlu2 %3200  ;;  %3404 = vrot.lane.b32.xlu1 %v16831_v12, %s16782_s27  ;;  %v3965_v46 = vrot.slane %v3867_v47, 1  ;;  %v16837_v12 = vld [vmem:[#allocation236_spill] sm:$0xff]  ;;  %v16839_v47 = vld [vmem:[#allocation277_spill] sm:$0xff] }
 0x4fd   : > { %v3967_v17 = vsel %vm15776_vm2, %v3965_v46, %v3966_v33  ;;  %v16840_v46 = vld [vmem:[#allocation156_spill] sm:$0xff] }
 0x4fe   : > { %v3472_v29 = vpop.permute.xlu1 %3471 }
 0x4ff   : > { %3226 = vrot.lane.b32.xlu0 %v3157_v39, %s15763_s29  ;;  %v3821_v11 = vsel %vm2620_vm10, %v3773_v10, %v3472_v29  ;;  %v16836_v39 = vld [vmem:[#allocation244_spill] sm:$0xff] }
 0x500   : > { %v3869_v26 = vsel %vm15779_vm12, %v3821_v11, %v12134_v28  ;;  %v3608_v11 = vsel %vm331_vm0, %v11999_v50, %v11886_v41 }
 0x501   : > { %v3332_v16 = vpop.permute.xlu0 %3331  ;;  %3224 = vrot.lane.b32.xlu2 %v3155_v62, %s15763_s29  ;;  %v3968_v7 = vrot.slane %v3869_v26, 1  ;;  %v16835_v62 = vld [vmem:[#allocation18_spill] sm:$0xff] }
 0x502   : > { %v3678_v3 = vsel %vm15781_vm8, %v16835_v62, %v3195_v58  ;;  %v15769_v58 = vrot.slane %v12228_v20, 7  ;;  %v549_v62 = vld [vmem:[%s15238_s1 + $0xf8] sm:$0xff] }
 0x503   : > { %v12205_v56 = vpop.permute.xlu2 %3204  ;;  %4044 = vrot.lane.b32.xlu1 %v3967_v17, %s15767_s25  ;;  %v3969_v28 = vsel %vm15776_vm2, %v3966_v33, %v3968_v7  ;;  %v3726_v31 = vsel %vm2554_vm9, %v3678_v3, %v16837_v12  ;;  %v7802_v33 = vld [vmem:[#allocation2 + $0x120] sm:$0xff]  ;;  %v3630_v17 = vsel %vm2455_vm6, %v3608_v11, %v12007_v61  ;;  %v16841_v7 = vld [vmem:[#allocation300_spill] sm:$0xff]  ;;  %4353 = vmatpush.msra.mxu1 %v549_v62 }
 0x504   : > { %v3774_v29 = vsel %vm2587_vm11, %v3726_v31, %v16839_v47  ;;  %v3158_v10 = vrot.slane %v7802_v33, 7  ;;  %v16843_v61 = vld [vmem:[#allocation329_spill] sm:$0xff]  ;;  %6846 = vmatpush.msrb.mxu3 %v549_v62  ;;  %v546_v33 = vld [vmem:[%s15238_s1 + $0xe0] sm:$0xff] }
 0x505   : > { %v547_v47 = vld [vmem:[%s15238_s1 + $0xe8] sm:$0xff] }
 0x506   : > { %v3197_v42 = vpop.permute.xlu1 %3196  ;;  %v3160_v26 = vsel %vm15773_vm4, %v3158_v10, %v15769_v58  ;;  %v16867_v58 = vld [vmem:[#allocation192_spill] sm:$0xff]  ;;  %vm15780_vm4 = vcmask 785408  }
 0x507   : > { %3341 = vrot.lane.b32.xlu0 %v7800_v60, %s16785_s26  ;;  %v3679_v44 = vsel %vm15781_vm8, %v16834_v63, %v3197_v42  ;;  %v3652_v60 = vsel %vm15774_vm7, %v3630_v17, %v12049_v45  ;;  %v3822_v42 = vsel %vm2620_vm10, %v3774_v29, %v16841_v7  ;;  %v16847_v17 = vld [vmem:[#allocation307_spill] sm:$0xff]  ;;  %vm16875_vm7 = vcmask 670720  }
 0x508   : > { %v3727_v4 = vsel %vm2554_vm9, %v3679_v44, %v16836_v39  ;;  %v3680_v63 = vsel %vm15781_vm8, %v3652_v60, %v12150_v2  ;;  %v16844_v39 = vld [vmem:[#allocation323_spill] sm:$0xff] }
 0x509   : > { %v3545_v55 = vpop.permute.xlu0 %3544  ;;  %3228 = vrot.lane.b32.xlu2 %v3156_v36, %s15763_s29  ;;  %v3775_v36 = vsel %vm2587_vm11, %v3727_v4, %v16838_v52  ;;  %v3728_v45 = vsel %vm2554_vm9, %v3680_v63, %v3332_v16  ;;  %v3870_v2 = vsel %vm15779_vm12, %v3822_v42, %v16844_v39  ;;  %v16849_v7 = vld [vmem:[#allocation239_spill] sm:$0xff]  ;;  %v543_v39 = vld [vmem:[%s15238_s1 + $0xc8] sm:$0xff] }
 0x50a   : > { %v3970_v31 = vrot.slane %v3870_v2, 1  ;;  %v16852_v2 = vld [vmem:[#allocation274_spill] sm:$0xff] }
 0x50b   : > { %v12219_v54 = vpop.permute.xlu2 %3475  ;;  %4046 = vrot.lane.b32.xlu1 %v3969_v28, %s15767_s25 }
 0x50e   : > { %v3403_v50 = vpop.permute.xlu1 %3402 }
 0x50f   : > { %3554 = vrot.lane.b32.xlu0 %v16768_v6, %s16788_s23  ;;  %v3823_v6 = vsel %vm2620_vm10, %v3775_v36, %v16840_v46  ;;  %v3776_v3 = vsel %vm2587_vm11, %v3728_v45, %v3403_v50  ;;  %v548_v36 = vld [vmem:[%s15238_s1 + $0xf0] sm:$0xff]  ;;  %v16845_v46 = vld [vmem:[#allocation83_spill] sm:$0xff] }
 0x510   : > { %v3871_v44 = vsel %vm15779_vm12, %v3823_v6, %v16843_v61  ;;  %v3824_v12 = vsel %vm2620_vm10, %v3776_v3, %v12164_v48  ;;  %4354 = vmatpush.msra.mxu1 %v548_v36  ;;  %v12284_v48 = vld [vmem:[%s15238_s1 + $0x158] sm:$0x3f]  ;;  %6847 = vmatpush.msrb.mxu3 %v548_v36  ;;  %v16851_v61 = vld [vmem:[#allocation281_spill] sm:$0xff]  ;;  %v544_v45 = vld [vmem:[%s15238_s1 + $0xd0] sm:$0xff] }
 0x511   : > { %v3203_v59 = vpop.permute.xlu0 %3202  ;;  %3483 = vrot.lane.b32.xlu2 %v16701_v40, %s16778_s21  ;;  %v16842_v40 = vld [vmem:[#allocation28_spill] sm:$0xff]  ;;  %v3971_v4 = vrot.slane %v3871_v44, 1  ;;  %v3872_v29 = vsel %vm15779_vm12, %v3824_v12, %v3545_v55  ;;  %6781 = vmatpush.msk.msra.mxu2 %vm15772_vm3, %v12284_v48  ;;  %v545_v55 = vld [vmem:[%s15238_s1 + $0xd8] sm:$0xff]  ;;  %v12327_v3 = vld [vmem:[%s15238_s1 + $0x148] sm:$0xff] }
 0x512   : > { %4355 = vmatpush.msra.mxu1 %v547_v47  ;;  %6848 = vmatpush.msrb.mxu3 %v547_v47  ;;  %v3682_v6 = vsel %vm15781_vm8, %v16845_v46, %v3203_v59  ;;  %v16850_v59 = vld [vmem:[#allocation250_spill] sm:$0xff]  ;;  %v12337_v12 = vld [vmem:[%s15238_s1 + $0x140] sm:$0xff] }
 0x513   : > { %v12249_v41 = vpop.permute.xlu2 %3206  ;;  %3406 = vrot.lane.b32.xlu1 %v16842_v40, %s16782_s27  ;;  %v3972_v16 = vsel %vm15776_vm2, %v3970_v31, %v3971_v4  ;;  %v3730_v42 = vsel %vm2554_vm9, %v3682_v6, %v16849_v7  ;;  %v16853_v31 = vld [vmem:[#allocation303_spill] sm:$0xff]  ;;  %v12341_v36 = vld [vmem:[#allocation2 + $0x198] sm:$0xff]  ;;  %v16855_v46 = vld [vmem:[#allocation34_spill] sm:$0xff] }
 0x514   : > { %4356 = vmatpush.msra.mxu1 %v546_v33  ;;  %6849 = vmatpush.msrb.mxu3 %v546_v33  ;;  %v3778_v44 = vsel %vm2587_vm11, %v3730_v42, %v16851_v61  ;;  %v542_v47 = vld [vmem:[%s15238_s1 + $0xc0] sm:$0xff]  ;;  %v16856_v6 = vld [vmem:[#allocation325_spill] sm:$0xff]  ;;  %v540_v7 = vld [vmem:[%s15238_s1 + $0xb0] sm:$0xff] }
 0x515   : > { %v16854_v33 = vld [vmem:[#allocation296_spill] sm:$0xff]  ;;  %v16857_v42 = vld [vmem:[#allocation334_spill] sm:$0xff] }
 0x516   : > { %4357 = vmatpush.msra.mxu1 %v545_v55  ;;  %6850 = vmatpush.msrb.mxu3 %v545_v55  ;;  %v541_v55 = vld [vmem:[%s15238_s1 + $0xb8] sm:$0xff] }
 0x517   : > { %3232 = vrot.lane.b32.xlu0 %v3160_v26, %s15763_s29  ;;  %v16848_v26 = vld [vmem:[#allocation59_spill] sm:$0xff] }
 0x518   : > { %v3681_v60 = vsel %vm15781_vm8, %v16848_v26, %v12190_v18  ;;  %v12316_v18 = vld [vmem:[%s15238_s1 + $0x150] sm:$0xff]  ;;  %4358 = vmatpush.msra.mxu1 %v544_v45  ;;  %6851 = vmatpush.msrb.mxu3 %v544_v45  ;;  %v554_v45 = vld [vmem:[%s15238_s1 + $0x120] sm:$0xff] }
 0x519   : > { %v12265_v28 = vpop.permute.xlu0 %3333  ;;  %3230 = vrot.lane.b32.xlu2 %v3158_v10, %s15763_s29  ;;  %v3973_v10 = vrot.slane %v3872_v29, 1  ;;  %s16846_s29 = smov 42   ;;  %v3729_v40 = vsel %vm2554_vm9, %v3681_v60, %v16850_v59  ;;  %4471 = vmatpush.msra.mxu2 %v12316_v18  ;;  %v12352_v29 = vld [vmem:[%s15238_s1 + $0x138] sm:$0xff]  ;;  %v556_v26 = vld [vmem:[%s15238_s1 + $0x130] sm:$0xff]  ;;  %v555_v59 = vld [vmem:[%s15238_s1 + $0x128] sm:$0xff] }
 0x51a   : > { %4359 = vmatpush.msra.mxu1 %v543_v39  ;;  %6852 = vmatpush.msrb.mxu3 %v543_v39 }
 0x51b   : > { %v12271_v52 = vpop.permute.xlu2 %3210  ;;  %4048 = vrot.lane.b32.xlu1 %v3972_v16, %s15767_s25  ;;  %v3974_v50 = vsel %vm15776_vm2, %v3971_v4, %v3973_v10  ;;  %v3777_v4 = vsel %vm2587_vm11, %v3729_v40, %v16852_v2  ;;  %v3826_v16 = vsel %vm2620_vm10, %v3778_v44, %v16853_v31  ;;  %4472 = vmatpush.msra.mxu2 %v12327_v3  ;;  %v539_v44 = vld [vmem:[%s15238_s1 + $0xa8] sm:$0xff]  ;;  %v16858_v2 = vld [vmem:[#allocation38_spill] sm:$0xff]  ;;  %v553_v31 = vld [vmem:[%s15238_s1 + $0x118] sm:$0xff] }
 0x51c   : > { %v3825_v10 = vsel %vm2620_vm10, %v3777_v4, %v16854_v33  ;;  %4360 = vmatpush.msra.mxu1 %v542_v47  ;;  %6853 = vmatpush.msrb.mxu3 %v542_v47  ;;  %v538_v4 = vld [vmem:[%s15238_s1 + $0xa0] sm:$0xff]  ;;  %v537_v47 = vld [vmem:[%s15238_s1 + $0x98] sm:$0xff]  ;;  %v552_v33 = vld [vmem:[%s15238_s1 + $0x110] sm:$0xff] }
 0x51d   : > { %4473 = vmatpush.msra.mxu2 %v12337_v12 }
 0x51e   : > { %4361 = vmatpush.msra.mxu1 %v541_v55  ;;  %6854 = vmatpush.msrb.mxu3 %v541_v55  ;;  %v551_v55 = vld [vmem:[%s15238_s1 + $0x108] sm:$0xff] }
 0x51f   : > { %4474 = vmatpush.msra.mxu2 %v12352_v29 }
 0x520   : > { %4362 = vmatpush.msra.mxu1 %v540_v7  ;;  %6855 = vmatpush.msrb.mxu3 %v540_v7  ;;  %v535_v7 = vld [vmem:[%s15238_s1 + $0x88] sm:$0xff] }
 0x521   : > { %v12291_v11 = vpop.permute.xlu0 %3546  ;;  %3093 = vrot.lane.b32.xlu2 %v16847_v17, %s16846_s29  ;;  %v12364_v17 = vsel %vm15779_vm12, %v3826_v16, %v16856_v6  ;;  %4475 = vmatpush.msra.mxu2 %v556_v26 }
 0x522   : > { %v15770_v40 = vrot.slane %v12364_v17, 1  ;;  %4363 = vmatpush.msra.mxu1 %v539_v44  ;;  %6856 = vmatpush.msrb.mxu3 %v539_v44 }
 0x523   : > { %v12306_v63 = vpop.permute.xlu2 %3477  ;;  %4050 = vrot.lane.b32.xlu1 %v3974_v50, %s15767_s25  ;;  %v3873_v50 = vsel %vm15779_vm12, %v3825_v10, %v16857_v42  ;;  %4476 = vmatpush.msra.mxu2 %v555_v59  ;;  %v536_v10 = vld [vmem:[%s15238_s1 + $0x90] sm:$0xff]  ;;  %v550_v42 = vld [vmem:[%s15238_s1 + $0x100] sm:$0xff]  ;;  %s7913_s25 = smov 20  }
 0x524   : > { %v3975_v39 = vrot.slane %v3873_v50, 1  ;;  %4364 = vmatpush.msra.mxu1 %v538_v4  ;;  %6857 = vmatpush.msrb.mxu3 %v538_v4  ;;  %v534_v50 = vld [vmem:[%s15238_s1 + $0x80] sm:$0xff] }
 0x525   : > { %4477 = vmatpush.msra.mxu2 %v554_v45 }
 0x526   : > { %v3977_v16 = vsel %vm15776_vm2, %v3975_v39, %v15770_v40  ;;  %4365 = vmatpush.msra.mxu1 %v537_v47  ;;  %6858 = vmatpush.msrb.mxu3 %v537_v47  ;;  %v16869_v40 = vld [vmem:[#allocation68_spill] sm:$0xff] }
 0x527   : > { %4478 = vmatpush.msra.mxu2 %v553_v31 }
 0x528   : > { %4366 = vmatpush.msra.mxu1 %v536_v10  ;;  %6859 = vmatpush.msrb.mxu3 %v536_v10  ;;  %v16862_v10 = vld [vmem:[#allocation50_spill] sm:$0xff] }
 0x529   : > { %v12318_v62 = vpop.permute.xlu0 %3208  ;;  %3353 = vrot.lane.b32.xlu2 %v12341_v36, %s16785_s26  ;;  %4479 = vmatpush.msra.mxu2 %v552_v33 }
 0x52a   : > { %4367 = vmatpush.msra.mxu1 %v535_v7  ;;  %6860 = vmatpush.msrb.mxu3 %v535_v7  ;;  %v16863_v7 = vld [vmem:[#allocation257_spill] sm:$0xff] }
 0x52b   : > { %3408 = vrot.lane.b32.xlu1 %v16855_v46, %s16782_s27  ;;  %v12369_v60 = vpop.permute.xlu2 %3212  ;;  %4480 = vmatpush.msra.mxu2 %v551_v55 }
 0x52c   : > { %4368 = vmatpush.msra.mxu1 %v534_v50  ;;  %6861 = vmatpush.msrb.mxu3 %v534_v50  ;;  %v16866_v50 = vld [vmem:[#allocation81_spill] sm:$0xff] }
 0x52d   : > { %4481 = vmatpush.msra.mxu2 %v550_v42 }
 0x52e   : > { %6862 = vmatpush.msk.msra.mxu3 %vm15772_vm3, %v12284_v48  ;;  %v16861_v48 = vld [vmem:[#allocation232_spill] sm:$0xff]  ;;  %vm4172_vm3 = vcmask 769024  }
 0x530   : > { %6863 = vmatpush.msra.mxu3 %v12316_v18 }
 0x531   : > { %v12381_v61 = vpop.permute.xlu0 %3335  ;;  %3426 = vrot.lane.b32.xlu2 %v16858_v2, %s16782_s27  ;;  %v16860_v2 = vld [vmem:[#allocation152_spill] sm:$0xff] }
 0x532   : > { %6864 = vmatpush.msra.mxu3 %v12327_v3 }
 0x533   : > { %4052 = vrot.lane.b32.xlu1 %v3977_v16, %s16859_s0  ;;  %v12413_v46 = vpop.permute.xlu2 %3216  ;;  %v12444_v16 = vld [vmem:[#allocation2 + $0x1a0] sm:$0xff] }
 0x534   : > { %6865 = vmatpush.msra.mxu3 %v12337_v12  ;;  %v15771_v47 = vrot.slane %v12444_v16, 7  ;;  %v7224_v12 = vunpack.i.l.bf16 %v16862_v10 }
 0x536   : > { %6866 = vmatpush.msra.mxu3 %v12352_v29  ;;  %v16865_v29 = vld [vmem:[#allocation43_spill] sm:$0xff] }
 0x538   : > { %6867 = vmatpush.msra.mxu3 %v556_v26  ;;  %v7304_v26 = vunpack.i.l.bf16 %v16865_v29 }
 0x539   : > { %v12415_v6 = vpop.permute.xlu0 %3548  ;;  %3495 = vrot.lane.b32.xlu2 %v16716_v8, %s16778_s21 }
 0x53a   : > { %6868 = vmatpush.msra.mxu3 %v555_v59  ;;  %v7384_v59 = vunpack.i.l.bf16 %v16866_v50 }
 0x53b   : > { %v12430_v39 = vpop.permute.xlu2 %3479 }
 0x53c   : > { %6869 = vmatpush.msra.mxu3 %v554_v45 }
 0x53e   : > { %6870 = vmatpush.msra.mxu3 %v553_v31  ;;  %v7624_v31 = vunpack.i.l.bf16 %v11567_v30 }
 0x540   : > { %6871 = vmatpush.msra.mxu3 %v552_v33 }
 0x541   : > { %v12428_v44 = vpop.permute.xlu0 %3214  ;;  %3566 = vrot.lane.b32.xlu2 %v16860_v2, %s16788_s23  ;;  %v16870_v2 = vunpack.i.l.bf16 %v16869_v40 }
 0x542   : > { %6872 = vmatpush.msra.mxu3 %v551_v55 }
 0x543   : > { %v3219_v4 = vpop.permute.xlu2 %3218  ;;  %v2720_v34 = vsel %vm2719_vm14, %v16870_v2, %v7224_v12  ;;  %v16874_v12 = vld [vmem:[#allocation245_spill] sm:$0xff] }
 0x544   : > { %v3690_v18 = vsel %vm15781_vm8, %v16861_v48, %v3219_v4  ;;  %v7464_v4 = vunpack.i.l.bf16 %v16867_v58  ;;  %v16868_v48 = vld [vmem:[#allocation282_spill] sm:$0xff]  ;;  %6873 = vmatpush.msra.mxu3 %v550_v42 }
 0x549   : > { %v12438_v8 = vpop.permute.xlu0 %3337  ;;  %3485 = vrot.lane.b32.xlu2 %v16694_v13, %s16778_s21  ;;  %v3738_v13 = vsel %vm2554_vm9, %v3690_v18, %v16863_v7  ;;  %v16871_v18 = vld [vmem:[#allocation113_spill] sm:$0xff] }
 0x54a   : > { %v3786_v45 = vsel %vm2587_vm11, %v3738_v13, %v16868_v48  ;;  %v7544_v7 = vunpack.i.l.bf16 %v16871_v18  ;;  %v16873_v48 = vld [vmem:[#allocation127_spill] sm:$0xff] }
 0x54b   : > { %v3834_v33 = vsel %vm2620_vm10, %v3786_v45, %v16872_v14  ;;  %v16877_v45 = vld [vmem:[#allocation341_spill] sm:$0xff] }
 0x54c   : > { %v3882_v42 = vsel %vm15779_vm12, %v3834_v33, %v16877_v45  ;;  %v7385_v33 = vunpack.i.h.bf16 %v16866_v50 }
 0x551   : > { %v12449_v3 = vpop.permute.xlu0 %3550  ;;  %3264 = vrot.lane.b32.xlu2 %v15771_v47, %s16864_s14  ;;  %v2753_v47 = vsel %vm2752_vm15, %v2720_v34, %v7304_v26 }
 0x552   : > { %v2786_v37 = vsel %vm2785_vm1, %v2753_v47, %v7384_v59  ;;  %v16876_v59 = vld [vmem:[#allocation287_spill] sm:$0xff] }
 0x553   : > { %v2819_v13 = vsel %vm2818_vm13, %v2786_v37, %v7464_v4  ;;  %v16878_v4 = vld [vmem:[#allocation309_spill] sm:$0xff] }
 0x554   : > { %v2852_v55 = vsel %vm15775_vm5, %v2819_v13, %v7544_v7  ;;  %v16879_v7 = vld [vmem:[#allocation330_spill] sm:$0xff] }
 0x555   : > { %v2885_v47 = vsel %vm16875_vm7, %v2852_v55, %v7624_v31  ;;  %v7225_v31 = vunpack.i.h.bf16 %v16862_v10  ;;  %v7305_v55 = vunpack.i.h.bf16 %v16865_v29  ;;  %v7545_v10 = vunpack.i.h.bf16 %v16871_v18 }
 0x556   : > { %v7625_v29 = vunpack.i.h.bf16 %v11567_v30  ;;  %v3609_v30 = vsel %vm331_vm0, %v12017_v5, %v11924_v27  ;;  %v16885_v27 = vld [vmem:[#allocation237_spill] sm:$0xff] }
 0x557   : > { %v3631_v18 = vsel %vm2455_vm6, %v3609_v30, %v11965_v22  ;;  %v7469_v22 = vunpack.i.l.bf16 %v16885_v27 }
 0x559   : > { %v3221_v19 = vpop.permute.xlu0 %3220  ;;  %v4041_v26 = vpop.permute.xlu1 %4040 }
 0x55a   : > { %v3691_v2 = vsel %vm15781_vm8, %v16873_v48, %v3221_v19  ;;  %6782 = vmatmul.msk.f32.vlgmr.msra.gmra.mxu2 %vm4172_vm3, %v4041_v26  ;;  %v4137_v37 = vsel %vm15780_vm4, %v2885_v47, %v4041_v26  ;;  %v3990_v48 = vrot.slane %v3882_v42, 1  ;;  %v16880_v26 = vunpack.i.h.bf16 %v16869_v40 }
 0x55b   : > { %v3739_v34 = vsel %vm2554_vm9, %v3691_v2, %v16874_v12  ;;  %4369 = vmatmul.f32.vlgmr.msra.gmra.mxu1 %v4137_v37 }
 0x55c   : > { %v3787_v14 = vsel %vm2587_vm11, %v3739_v34, %v16876_v59  ;;  %v7465_v34 = vunpack.i.h.bf16 %v16867_v58  ;;  %v2721_v47 = vsel %vm2719_vm14, %v16880_v26, %v7225_v31  ;;  %v16883_v31 = vld [vmem:[#allocation64_spill] sm:$0xff]  ;;  %v16887_v26 = vld [vmem:[#allocation47_spill] sm:$0xff] }
 0x55d   : > { %v3835_v19 = vsel %vm2620_vm10, %v3787_v14, %v16878_v4  ;;  %v2754_v59 = vsel %vm2752_vm15, %v2721_v47, %v7305_v55  ;;  %v16882_v4 = vld [vmem:[#allocation230_spill] sm:$0xff]  ;;  %v16888_v47 = vunpack.i.l.bf16 %v16887_v26 }
 0x55e   : > { %v12488_v13 = vsel %vm15779_vm12, %v3835_v19, %v16879_v7  ;;  %v2787_v50 = vsel %vm2785_vm1, %v2754_v59, %v7385_v33  ;;  %v7229_v19 = vunpack.i.l.bf16 %v16882_v4  ;;  %v16884_v33 = vld [vmem:[#allocation110_spill] sm:$0xff] }
 0x55f   : > { %v3991_v2 = vrot.slane %v12488_v13, 1  ;;  %v2820_v14 = vsel %vm2818_vm13, %v2787_v50, %v7465_v34  ;;  %v16886_v34 = vld [vmem:[#allocation201_spill] sm:$0xff] }
 0x560   : > { %v2853_v45 = vsel %vm15775_vm5, %v2820_v14, %v7545_v10  ;;  %vm16881_vm5 = vcmask 343040   ;;  %v2722_v10 = vsel %vm2719_vm14, %v16888_v47, %v7229_v19 }
 0x561   : > { %v3992_v12 = vsel %vm15776_vm2, %v3990_v48, %v3991_v2  ;;  %v2886_v58 = vsel %vm16875_vm7, %v2853_v45, %v7625_v29  ;;  %v3653_v37 = vsel %vm16881_vm5, %v3631_v18, %v12076_v57  ;;  %v7309_v48 = vunpack.i.l.bf16 %v16883_v31  ;;  %v16890_v29 = vld [vmem:[#allocation69_spill] sm:$0xff]  ;;  %v16892_v18 = vld [vmem:[#allocation254_spill] sm:$0xff] }
 0x562   : > { %4064 = vrot.lane.b32.xlu2 %v3992_v12, %s16859_s0  ;;  %v3683_v7 = vsel %vm15781_vm8, %v3653_v37, %v12205_v56  ;;  %v7389_v12 = vunpack.i.l.bf16 %v16884_v33  ;;  %v3173_v56 = vrot.slane %v12341_v36, 7  ;;  %v3685_v50 = vsel %vm15781_vm8, %v16890_v29, %v12318_v62 }
 0x563   : > { %v7629_v45 = vunpack.i.l.bf16 %v11679_v21  ;;  %v3733_v62 = vsel %vm2554_vm9, %v3685_v50, %v16892_v18  ;;  %vm16894_vm5 = vcmask 556032   ;;  %v16898_v50 = vld [vmem:[#allocation271_spill] sm:$0xff]  ;;  %v16950_v36 = vrot.slane %v12228_v20, 7 }
 0x564   : > { %3260 = vrot.lane.b32.xlu0 %v3173_v56, %s16864_s14  ;;  %v16901_v18 = vld [vmem:[#allocation31_spill] sm:$0xff] }
 0x565   : > { %v4043_v42 = vpop.permute.xlu1 %4042  ;;  %v12810_v20 = vld [vmem:[#allocation2 + $0x130] sm:$0xf] }
 0x566   : > { %6783 = vmatmul.msk.f32.gmra.mxu2 %vm4172_vm3, %v4043_v42  ;;  %v4138_v40 = vsel %vm15780_vm4, %v2886_v58, %v4043_v42 }
 0x567   : > { %4372 = vmatmul.f32.gmra.mxu1 %v4138_v40  ;;  %v16891_v40 = vld [vmem:[#allocation225_spill] sm:$0xff] }
 0x568   : > { %v3684_v30 = vsel %vm15781_vm8, %v16891_v40, %v12249_v41 }
 0x56a   : > { %3499 = vrot.lane.b32.xlu2 %v16733_v51, %s16778_s21  ;;  %v3731_v51 = vsel %vm2554_vm9, %v3683_v7, %v12265_v28  ;;  %v16889_v28 = vld [vmem:[#allocation160_spill] sm:$0xff]  ;;  %v7230_v7 = vunpack.i.h.bf16 %v16882_v4 }
 0x56b   : > { %v7549_v59 = vunpack.i.l.bf16 %v16889_v28  ;;  %v7550_v29 = vunpack.i.h.bf16 %v16889_v28 }
 0x56c   : > { %3355 = vrot.lane.b32.xlu0 %v12444_v16, %s16785_s26 }
 0x56d   : > { %v3405_v55 = vpop.permute.xlu1 %3404 }
 0x56e   : > { %v3779_v5 = vsel %vm2587_vm11, %v3731_v51, %v3405_v55  ;;  %v7310_v51 = vunpack.i.h.bf16 %v16883_v31  ;;  %v16895_v55 = vld [vmem:[#allocation247_spill] sm:$0xff] }
 0x56f   : > { %v3827_v57 = vsel %vm2620_vm10, %v3779_v5, %v12219_v54  ;;  %v2755_v54 = vsel %vm2752_vm15, %v2722_v10, %v7309_v48  ;;  %v3732_v41 = vsel %vm2554_vm9, %v3684_v30, %v16895_v55  ;;  %v12571_v10 = vpop.permute.xlu2 %3222  ;;  %v12573_v31 = vld [vmem:[#allocation2 + $0x1b0] sm:$0xff]  ;;  %v12593_v30 = vpop.permute.xlu0 %3339 }
 0x570   : > { %v3875_v14 = vsel %vm15779_vm12, %v3827_v57, %v12291_v11  ;;  %v2788_v58 = vsel %vm2785_vm1, %v2755_v54, %v7389_v12  ;;  %v16893_v11 = vrot.slane %v12364_v17, 1  ;;  %v7390_v17 = vunpack.i.h.bf16 %v16884_v33  ;;  %v16896_v57 = vld [vmem:[#allocation278_spill] sm:$0xff] }
 0x571   : > { %v3978_v42 = vrot.slane %v3875_v14, 1  ;;  %v2821_v19 = vsel %vm2818_vm13, %v2788_v58, %v7469_v22  ;;  %v3781_v47 = vsel %vm2587_vm11, %v3733_v62, %v16896_v57  ;;  %v7470_v22 = vunpack.i.h.bf16 %v16885_v27  ;;  %v16902_v62 = vld [vmem:[#allocation338_spill] sm:$0xff] }
 0x572   : > { %3099 = vrot.lane.b32.xlu2 %v16886_v34, %s16846_s29  ;;  %v2854_v48 = vsel %vm16894_vm5, %v2821_v19, %v7549_v59  ;;  %v16897_v59 = vunpack.i.h.bf16 %v16887_v26  ;;  %v3780_v14 = vsel %vm2587_vm11, %v3732_v41, %v16898_v50  ;;  %v7630_v27 = vunpack.i.h.bf16 %v11679_v21  ;;  %v16900_v26 = vld [vmem:[#allocation308_spill] sm:$0xff] }
 0x573   : > { %v3979_v37 = vsel %vm15776_vm2, %v16893_v11, %v3978_v42  ;;  %v2887_v5 = vsel %vm16875_vm7, %v2854_v48, %v7629_v45  ;;  %v16899_v45 = vld [vmem:[#allocation299_spill] sm:$0xff]  ;;  %v3828_v40 = vsel %vm2620_vm10, %v3780_v14, %v16900_v26  ;;  %v16903_v48 = vld [vmem:[#allocation332_spill] sm:$0xff]  ;;  %v16912_v26 = vld [vmem:[#allocation134_spill] sm:$0xff] }
 0x574   : > { %4054 = vrot.lane.b32.xlu1 %v3979_v37, %s16859_s0  ;;  %v2723_v33 = vsel %vm2719_vm14, %v16897_v59, %v7230_v7  ;;  %v3829_v42 = vsel %vm2620_vm10, %v3781_v47, %v16899_v45  ;;  %v16904_v41 = vld [vmem:[#allocation200_spill] sm:$0xff]  ;;  %v16905_v47 = vld [vmem:[#allocation49_spill] sm:$0xff]  ;;  %v16908_v14 = vld [vmem:[#allocation71_spill] sm:$0xff] }
 0x575   : > { %v4045_v12 = vpop.permute.xlu1 %4044  ;;  %v2756_v54 = vsel %vm2752_vm15, %v2723_v33, %v7310_v51  ;;  %v3877_v11 = vsel %vm15779_vm12, %v3829_v42, %v16902_v62  ;;  %v3876_v51 = vsel %vm15779_vm12, %v3828_v40, %v16903_v48  ;;  %v7554_v40 = vunpack.i.l.bf16 %v16912_v26 }
 0x576   : > { %6784 = vmatmul.msk.f32.gmra.mxu2 %vm4172_vm3, %v4045_v12  ;;  %v4139_v4 = vsel %vm15780_vm4, %v2887_v5, %v4045_v12  ;;  %v2789_v58 = vsel %vm2785_vm1, %v2756_v54, %v7390_v17  ;;  %v3981_v55 = vrot.slane %v3877_v11, 1  ;;  %v3610_v12 = vsel %vm331_vm0, %v12051_v23, %v11808_v25  ;;  %v12643_v11 = vld [vmem:[#allocation2 + $0x1b8] sm:$0xff] }
 0x577   : > { %4375 = vmatmul.f32.gmra.mxu1 %v4139_v4  ;;  %v2822_v28 = vsel %vm2818_vm13, %v2789_v58, %v7470_v22  ;;  %v12610_v5 = vpop.permute.xlu2 %3481  ;;  %v3980_v17 = vrot.slane %v3876_v51, 1  ;;  %v3632_v57 = vsel %vm2455_vm6, %v3610_v12, %v11997_v15  ;;  %v7234_v4 = vunpack.i.l.bf16 %v16905_v47  ;;  %v12625_v54 = vpop.permute.xlu0 %3552  ;;  %v16911_v58 = vld [vmem:[#allocation123_spill] sm:$0xff]  ;;  %v16915_v51 = vld [vmem:[#allocation92_spill] sm:$0xff] }
 0x578   : > { %v2855_v21 = vsel %vm16894_vm5, %v2822_v28, %v7550_v29  ;;  %vm16906_vm5 = vcmask 343040   ;;  %v16907_v29 = vld [vmem:[#allocation66_spill] sm:$0xff]  ;;  %v7394_v15 = vunpack.i.l.bf16 %v16908_v14  ;;  %v3060_v62 = vrot.slane %v12573_v31, 3 }
 0x579   : > { %v2888_v19 = vsel %vm16875_vm7, %v2855_v21, %v7630_v27  ;;  %v3654_v22 = vsel %vm16906_vm5, %v3632_v57, %v12094_v24  ;;  %v3982_v59 = vsel %vm15776_vm2, %v3980_v17, %v3981_v55  ;;  %v7314_v25 = vunpack.i.l.bf16 %v16907_v29  ;;  %v16909_v24 = vld [vmem:[#allocation29_spill] sm:$0xff] }
 0x57a   : > { %3359 = vrot.lane.b32.xlu2 %v12573_v31, %s16785_s26  ;;  %v3686_v33 = vsel %vm15781_vm8, %v3654_v22, %v12271_v52  ;;  %v16910_v45 = vunpack.i.l.bf16 %v16909_v24  ;;  %v7474_v52 = vunpack.i.l.bf16 %v16911_v58  ;;  %vm16917_vm7 = vcmask 556032  }
 0x57b   : > { %v3734_v23 = vsel %vm2554_vm9, %v3686_v33, %v12381_v61  ;;  %v16913_v61 = vld [vmem:[#allocation75_spill] sm:$0xff]  ;;  %vm16918_vm5 = vcmask 1044480   ;;  %v16919_v33 = vld [vmem:[#allocation242_spill] sm:$0xff] }
 0x57c   : > { %3410 = vrot.lane.b32.xlu1 %v16901_v18, %s16782_s27  ;;  %v2724_v42 = vsel %vm2719_vm14, %v16910_v45, %v7234_v4  ;;  %v3688_v18 = vsel %vm15781_vm8, %v16913_v61, %v12428_v44  ;;  %v3687_v44 = vsel %vm15781_vm8, %v16915_v51, %v12369_v60  ;;  %v7235_v4 = vunpack.i.h.bf16 %v16905_v47  ;;  %v16921_v47 = vld [vmem:[#allocation273_spill] sm:$0xff] }
 0x57d   : > { %v4047_v37 = vpop.permute.xlu1 %4046  ;;  %v7315_v60 = vunpack.i.h.bf16 %v16907_v29  ;;  %v7475_v45 = vunpack.i.h.bf16 %v16911_v58  ;;  %v16922_v29 = vunpack.i.h.bf16 %v16909_v24 }
 0x57e   : > { %6785 = vmatmul.msk.f32.gmra.mxu2 %vm4172_vm3, %v4047_v37  ;;  %v4140_v7 = vsel %vm15780_vm4, %v2888_v19, %v4047_v37  ;;  %v3061_v37 = vrot.slane %v12643_v11, 3  ;;  %v2757_v19 = vsel %vm2752_vm15, %v2724_v42, %v7314_v25  ;;  %v3735_v25 = vsel %vm2554_vm9, %v3687_v44, %v16919_v33  ;;  %v16929_v44 = vld [vmem:[#allocation335_spill] sm:$0xff] }
 0x57f   : > { %4378 = vmatmul.f32.gmra.mxu1 %v4140_v7  ;;  %v16914_v7 = vld [vmem:[#allocation132_spill] sm:$0xff]  ;;  %v3225_v12 = vpop.permute.xlu2 %3224  ;;  %v2725_v42 = vsel %vm2719_vm14, %v16922_v29, %v7235_v4  ;;  %vm16931_vm14 = vcmask 670720  }
 0x580   : > { %v2758_v61 = vsel %vm2752_vm15, %v2725_v42, %v7315_v60  ;;  %vm16936_vm15 = vcmask 343040  }
 0x582   : > { %3432 = vrot.lane.b32.xlu2 %v16904_v41, %s16782_s27  ;;  %v16916_v41 = vld [vmem:[#allocation251_spill] sm:$0xff] }
 0x584   : > { %4056 = vrot.lane.b32.xlu1 %v3982_v59, %s16859_s0  ;;  %v12662_v59 = vsel %vm16918_vm5, %v3060_v62, %v3061_v37 }
 0x585   : > { %v3407_v50 = vpop.permute.xlu1 %3406 }
 0x586   : > { %v3782_v27 = vsel %vm2587_vm11, %v3734_v23, %v3407_v50  ;;  %v7395_v50 = vunpack.i.h.bf16 %v16908_v14  ;;  %v16923_v14 = vld [vmem:[#allocation284_spill] sm:$0xff] }
 0x587   : > { %v3830_v28 = vsel %vm2620_vm10, %v3782_v27, %v12306_v63  ;;  %v7634_v63 = vunpack.i.l.bf16 %v16914_v7 }
 0x588   : > { %v3878_v21 = vsel %vm15779_vm12, %v3830_v28, %v12415_v6  ;;  %v3736_v6 = vsel %vm2554_vm9, %v3688_v18, %v16916_v41  ;;  %v3227_v28 = vpop.permute.xlu0 %3226  ;;  %v7635_v18 = vunpack.i.h.bf16 %v16914_v7  ;;  %v2791_v62 = vsel %vm2785_vm1, %v2758_v61, %v7395_v50  ;;  %v16930_v41 = vld [vmem:[#allocation194_spill] sm:$0xff] }
 0x589   : > { %v3983_v48 = vrot.slane %v3878_v21, 1  ;;  %v16924_v21 = vld [vmem:[#allocation312_spill] sm:$0xff] }
 0x58a   : > { %3501 = vrot.lane.b32.xlu2 %v11787_v38, %s16778_s21  ;;  %v2790_v38 = vsel %vm2785_vm1, %v2757_v19, %v7394_v15  ;;  %v3784_v15 = vsel %vm2587_vm11, %v3736_v6, %v16921_v47  ;;  %v16925_v19 = vld [vmem:[#allocation304_spill] sm:$0xff]  ;;  %v3693_v6 = vsel %vm15781_vm8, %v16930_v41, %v3225_v12  ;;  %v16934_v12 = vld [vmem:[#allocation255_spill] sm:$0xff]  ;;  %v3611_v47 = vsel %vm331_vm0, %v12081_v32, %v11914_v53  ;;  %v16939_v32 = vld [vmem:[#allocation169_spill] sm:$0xff] }
 0x58b   : > { %v3984_v17 = vsel %vm15776_vm2, %v3981_v55, %v3983_v48  ;;  %v2823_v57 = vsel %vm2818_vm13, %v2790_v38, %v7474_v52  ;;  %vm16920_vm2 = vcmask 670720   ;;  %v7555_v52 = vunpack.i.h.bf16 %v16912_v26  ;;  %v16927_v38 = vld [vmem:[#allocation37_spill] sm:$0xff] }
 0x58c   : > { %4058 = vrot.lane.b32.xlu1 %v3984_v17, %s16859_s0  ;;  %v2856_v22 = vsel %vm16917_vm7, %v2823_v57, %v7554_v40  ;;  %v3783_v40 = vsel %vm2587_vm11, %v3735_v25, %v16923_v14  ;;  %v3832_v58 = vsel %vm2620_vm10, %v3784_v15, %v16924_v21  ;;  %v2824_v26 = vsel %vm2818_vm13, %v2791_v62, %v7475_v45  ;;  %v12699_v17 = vpop.permute.xlu2 %3228  ;;  %v16933_v25 = vld [vmem:[#allocation327_spill] sm:$0xff]  ;;  %v16935_v15 = vld [vmem:[#allocation285_spill] sm:$0xff] }
 0x58d   : > { %v4049_v23 = vpop.permute.xlu1 %4048  ;;  %v2889_v55 = vsel %vm16920_vm2, %v2856_v22, %v7634_v63  ;;  %v3831_v24 = vsel %vm2620_vm10, %v3783_v40, %v16925_v19  ;;  %v16926_v63 = vld [vmem:[#allocation224_spill] sm:$0xff]  ;;  %vm16928_vm2 = vmmov %vm16917_vm7  ;;  %v3880_v7 = vsel %vm15779_vm12, %v3832_v58, %v16929_v44  ;;  %v3741_v50 = vsel %vm2554_vm9, %v3693_v6, %v16934_v12 }
 0x58e   : > { %6786 = vmatmul.msk.f32.gmra.mxu2 %vm4172_vm3, %v4049_v23  ;;  %v4141_v27 = vsel %vm15780_vm4, %v2889_v55, %v4049_v23  ;;  %v3694_v48 = vsel %vm15781_vm8, %v16926_v63, %v3227_v28  ;;  %v2857_v51 = vsel %vm16928_vm2, %v2824_v26, %v7555_v52  ;;  %v16932_v22 = vld [vmem:[#allocation260_spill] sm:$0xff]  ;;  %v3879_v23 = vsel %vm15779_vm12, %v3831_v24, %v16933_v25  ;;  %v16937_v52 = vld [vmem:[#allocation275_spill] sm:$0xff] }
 0x58f   : > { %4381 = vmatmul.f32.gmra.mxu1 %v4141_v27  ;;  %v2890_v4 = vsel %vm16931_vm14, %v2857_v51, %v7635_v18  ;;  %v3742_v60 = vsel %vm2554_vm9, %v3694_v48, %v16932_v22  ;;  %v3986_v55 = vrot.slane %v3880_v7, 1  ;;  %v3985_v45 = vrot.slane %v3879_v23, 1  ;;  %v16942_v63 = vld [vmem:[#allocation339_spill] sm:$0xff] }
 0x590   : > { %v3790_v27 = vsel %vm2587_vm11, %v3742_v60, %v16935_v15  ;;  %v3633_v29 = vsel %vm2455_vm6, %v3611_v47, %v12021_v49  ;;  %vm16938_vm13 = vcmask 1046528   ;;  %v3177_v40 = vrot.slane %v12643_v11, 7  ;;  %v12798_v60 = vld [vmem:[#allocation2 + $0x1c8] sm:$0xff]  ;;  %v12808_v23 = vpop.permute.xlu0 %3341  ;;  %v7810_v47 = vld [vmem:[#allocation2 + $0x138] sm:$0xff] }
 0x591   : > { %v3655_v42 = vsel %vm16936_vm15, %v3633_v29, %v12060_v35  ;;  %v3987_v14 = vsel %vm16938_vm13, %v3985_v45, %v3986_v55  ;;  %v3838_v28 = vsel %vm2620_vm10, %v3790_v27, %v16939_v32  ;;  %v16940_v35 = vld [vmem:[#allocation315_spill] sm:$0xff]  ;;  %vm16943_vm7 = vmmov %vm16938_vm13  ;;  %v16946_v6 = vrot.slane %v12444_v16, 7  ;;  %v16948_v16 = vld [vmem:[#allocation24_spill] sm:$0xff] }
 0x592   : > { %3572 = vrot.lane.b32.xlu2 %v12662_v59, %s16788_s23  ;;  %v3689_v53 = vsel %vm15781_vm8, %v3655_v42, %v12413_v46  ;;  %v16941_v46 = vld [vmem:[#allocation344_spill] sm:$0xff]  ;;  %vm16945_vm5 = vmmov %vm16943_vm7  ;;  %vm16947_vm2 = vcmask 1040384   ;;  %vm16949_vm14 = vcmask 1044480   ;;  %v3161_v15 = vrot.slane %v7810_v47, 7  ;;  %v16953_v29 = vld [vmem:[#allocation45_spill] sm:$0xff] }
 0x593   : > { %v3737_v49 = vsel %vm2554_vm9, %v3689_v53, %v12438_v8  ;;  %v12744_v19 = vsel %vm15779_vm12, %v3838_v28, %v16941_v46  ;;  %vm16952_vm15 = vmmov %vm16945_vm5  ;;  %v3464_v27 = vrot.slane %v12798_v60, 2  ;;  %vm16954_vm13 = vcmask 1045504   ;;  %v16956_v28 = vld [vmem:[#allocation155_spill] sm:$0xff] }
 0x594   : > { %3412 = vrot.lane.b32.xlu1 %v16927_v38, %s16782_s27  ;;  %v12735_v58 = vpop.permute.xlu2 %3483  ;;  %v3996_v26 = vrot.slane %v12744_v19, 1  ;;  %v3535_v53 = vrot.slane %v12798_v60, 3 }
 0x595   : > { %v4051_v57 = vpop.permute.xlu1 %4050 }
 0x596   : > { %6787 = vmatmul.msk.f32.gmra.mxu2 %vm4172_vm3, %v4051_v57  ;;  %v4142_v33 = vsel %vm15780_vm4, %v2890_v4, %v4051_v57  ;;  %v3175_v57 = vsel %vm16947_vm2, %v3173_v56, %v16946_v6  ;;  %v16951_v56 = vld [vmem:[#allocation305_spill] sm:$0xff]  ;;  %v16965_v6 = vld [vmem:[#allocation280_spill] sm:$0xff] }
 0x597   : > { %4384 = vmatmul.f32.gmra.mxu1 %v4142_v33  ;;  %v12802_v33 = vld [vmem:[#allocation2 + $0x1d8] sm:$0xf] }
 0x598   : > { %v15777_v25 = vrot.slane %v12802_v33, 1 }
 0x59a   : > { %3487 = vrot.lane.b32.xlu2 %v16690_v43, %s16778_s21  ;;  %v3789_v43 = vsel %vm2587_vm11, %v3741_v50, %v16937_v52  ;;  %v12834_v52 = vpop.permute.xlu0 %3554 }
 0x59b   : > { %v3837_v18 = vsel %vm2620_vm10, %v3789_v43, %v16940_v35 }
 0x59c   : > { %4060 = vrot.lane.b32.xlu1 %v3987_v14, %s16859_s0  ;;  %v3885_v48 = vsel %vm15779_vm12, %v3837_v18, %v16942_v63  ;;  %v3231_v41 = vpop.permute.xlu2 %3230  ;;  %v16955_v14 = vmov 0.0   ;;  %v3176_v18 = vrot.slane %v12573_v31, 7 }
 0x59d   : > { %v3409_v61 = vpop.permute.xlu1 %3408  ;;  %v3995_v51 = vrot.slane %v3885_v48, 1  ;;  %v7811_v48 = vld [vmem:[#allocation2 + $0x140] sm:$0xff] }
 0x59e   : > { %v3785_v21 = vsel %vm2587_vm11, %v3737_v49, %v3409_v61  ;;  %v16957_v49 = vld [vmem:[#allocation57_spill] sm:$0xff] }
 0x59f   : > { %v3833_v62 = vsel %vm2620_vm10, %v3785_v21, %v12430_v39  ;;  %v16944_v39 = vld [vmem:[#allocation310_spill] sm:$0xff]  ;;  %v3997_v7 = vsel %vm16945_vm5, %v3995_v51, %v3996_v26  ;;  %vm16958_vm5 = vmmov %vm16949_vm14 }
 0x5a0   : > { %v3881_v8 = vsel %vm15779_vm12, %v3833_v62, %v12449_v3  ;;  %v16959_v62 = vld [vmem:[#allocation175_spill] sm:$0xff] }
 0x5a1   : > { %v3988_v24 = vrot.slane %v3881_v8, 1  ;;  %v16960_v8 = vld [vmem:[#allocation204_spill] sm:$0xff] }
 0x5a2   : > { %3270 = vrot.lane.b32.xlu2 %v3177_v40, %s16864_s14  ;;  %v3233_v35 = vpop.permute.xlu0 %3232 }
 0x5a3   : > { %v3989_v38 = vsel %vm16943_vm7, %v3986_v55, %v3988_v24  ;;  %v12814_v55 = vld [vmem:[#allocation2 + $0x1a8] sm:$0xf]  ;;  %vm5156_vm7 = vcmask 39936   ;;  %v3697_v46 = vsel %vm15781_vm8, %v16959_v62, %v3233_v35 }
 0x5a4   : > { %3091 = vrot.lane.b32.xlu1 %v16944_v39, %s16846_s29  ;;  %4062 = vrot.lane.b32.xlu0 %v3989_v38, %s16859_s0  ;;  %v12777_v22 = vpop.permute.xlu2 %3093  ;;  %5594 = vst.msk [vmem:[#allocation3] sm:$0xff] %vm5156_vm7, %v16955_v14  ;;  %v16961_v24 = vld [vmem:[#allocation86_spill] sm:$0xff]  ;;  %v3162_v38 = vrot.slane %v7811_v48, 7 }
 0x5a5   : > { %v4053_v44 = vpop.permute.xlu1 %4052  ;;  %5595 = vst.msk [vmem:[#allocation3 + $0x8] sm:$0xff] %vm5156_vm7, %v16955_v14  ;;  %v3696_v63 = vsel %vm15781_vm8, %v16961_v24, %v3231_v41  ;;  %v16962_v39 = vld [vmem:[#allocation258_spill] sm:$0xff] }
 0x5a6   : > { %6788 = vmatmul.msk.f32.gmra.mxu2 %vm4172_vm3, %v4053_v44  ;;  %v4143_v3 = vsel %vm15780_vm4, %v11644_v0, %v4053_v44  ;;  %v12772_v0 = vld [vmem:[#allocation2 + $0x1c0] sm:$0xf]  ;;  %5596 = vst.msk [vmem:[#allocation3 + $0x10] sm:$0xff] %vm5156_vm7, %v16955_v14  ;;  %v3745_v51 = vsel %vm2554_vm9, %v3697_v46, %v16962_v39  ;;  %v16970_v62 = vld [vmem:[#allocation342_spill] sm:$0xff] }
 0x5a7   : > { %4387 = vmatmul.f32.gmra.mxu1 %v4143_v3  ;;  %v12775_v4 = vrot.slane %v12772_v0, 3  ;;  %5597 = vst.msk [vmem:[#allocation3 + $0x18] sm:$0xff] %vm5156_vm7, %v16955_v14  ;;  %v16963_v44 = vld [vmem:[#allocation105_spill] sm:$0xff]  ;;  %v16972_v48 = vld [vmem:[#allocation142_spill] sm:$0xff] }
 0x5a8   : > { %5598 = vst.msk [vmem:[#allocation3 + $0x20] sm:$0xff] %vm5156_vm7, %v16955_v14  ;;  %v16964_v3 = vld [vmem:[#allocation249_spill] sm:$0xff] }
 0x5a9   : > { %5599 = vst.msk [vmem:[#allocation3 + $0x28] sm:$0xff] %vm5156_vm7, %v16955_v14 }
 0x5aa   : > { %4068 = vrot.lane.b32.xlu2 %v3997_v7, %s16859_s0  ;;  %5600 = vst.msk [vmem:[#allocation3 + $0x30] sm:$0xff] %vm5156_vm7, %v16955_v14  ;;  %v3744_v7 = vsel %vm2554_vm9, %v3696_v63, %v16964_v3  ;;  %v7812_v63 = vld [vmem:[#allocation2 + $0xe8] sm:$0xf] }
 0x5ab   : > { %5601 = vst.msk [vmem:[#allocation3 + $0x38] sm:$0xff] %vm5156_vm7, %v16955_v14  ;;  %v3612_v39 = vsel %vm331_vm0, %v7812_v63, %v16972_v48 }
 0x5ac   : > { %3262 = vrot.lane.b32.xlu1 %v3175_v57, %s16864_s14  ;;  %3497 = vrot.lane.b32.xlu0 %v16747_v9, %s16778_s21  ;;  %v12787_v9 = vsel %vm16949_vm14, %v3061_v37, %v12775_v4  ;;  %v3793_v57 = vsel %vm2587_vm11, %v3745_v51, %v16965_v6  ;;  %vm16975_vm14 = vcmask 343040  }
 0x5b2   : > { %3505 = vrot.lane.b32.xlu2 %v11877_v1, %s16778_s21  ;;  %v12791_v1 = vpop.permute.xlu2 %3353 }
 0x5b4   : > { %3424 = vrot.lane.b32.xlu1 %v16948_v16, %s16782_s27  ;;  %3568 = vrot.lane.b32.xlu0 %v16886_v34, %s16788_s23  ;;  %v12800_v34 = vld [vmem:[#allocation2 + $0x1d0] sm:$0xff]  ;;  %v3163_v16 = vsel %vm16947_vm2, %v3161_v15, %v3162_v38 }
 0x5b5   : > { %v3394_v37 = vrot.slane %v12800_v34, 1  ;;  %v3465_v45 = vrot.slane %v12800_v34, 2  ;;  %v3536_v32 = vrot.slane %v12800_v34, 3  ;;  %v3180_v47 = vrot.slane %v12800_v34, 7 }
 0x5b7   : > { %v3397_v12 = vsel %vm16952_vm15, %v3394_v37, %v15777_v25  ;;  %v3466_v42 = vsel %vm16954_vm13, %v3464_v27, %v3465_v45  ;;  %v3537_v61 = vsel %vm16958_vm5, %v3535_v53, %v3536_v32  ;;  %v16967_v27 = vld [vmem:[#allocation317_spill] sm:$0xff]  ;;  %vm16977_vm13 = vmmov %vm16947_vm2 }
 0x5b8   : > { %v16968_v53 = vld [vmem:[#allocation313_spill] sm:$0xff]  ;;  %vm16978_vm5 = vmmov %vm16952_vm15 }
 0x5ba   : > { %3105 = vrot.lane.b32.xlu2 %v12787_v9, %s16846_s29  ;;  %v12823_v50 = vpop.permute.xlu2 %3426 }
 0x5bc   : > { %3234 = vrot.lane.b32.xlu1 %v16950_v36, %s16864_s14  ;;  %3095 = vrot.lane.b32.xlu0 %v16951_v56, %s16846_s29  ;;  %v16966_v36 = vld [vmem:[#allocation289_spill] sm:$0xff] }
 0x5c2   : > { %3365 = vrot.lane.b32.xlu2 %v12798_v60, %s16785_s26  ;;  %v12836_v43 = vpop.permute.xlu2 %3495 }
 0x5c4   : > { %3343 = vrot.lane.b32.xlu1 %v12810_v20, %s16785_s26  ;;  %3357 = vrot.lane.b32.xlu0 %v12814_v55, %s16785_s26 }
 0x5ca   : > { %3438 = vrot.lane.b32.xlu2 %v3397_v12, %s16782_s27  ;;  %v12866_v21 = vpop.permute.xlu2 %3566  ;;  %v3792_v12 = vsel %vm2587_vm11, %v3744_v7, %v16966_v36  ;;  %v16974_v7 = vld [vmem:[#allocation119_spill] sm:$0xff] }
 0x5cc   : > { %3414 = vrot.lane.b32.xlu1 %v16953_v29, %s16782_s27  ;;  %3236 = vrot.lane.b32.xlu0 %v3161_v15, %s16864_s14  ;;  %v3841_v29 = vsel %vm2620_vm10, %v3793_v57, %v16967_v27  ;;  %v3840_v15 = vsel %vm2620_vm10, %v3792_v12, %v16968_v53 }
 0x5cd   : > { %v12906_v46 = vsel %vm15779_vm12, %v3841_v29, %v16970_v62  ;;  %v3178_v62 = vsel %vm16977_vm13, %v3176_v18, %v3177_v40  ;;  %vm16993_vm13 = vmmov %vm16978_vm5 }
 0x5ce   : > { %v4001_v51 = vrot.slane %v12906_v46, 1 }
 0x5d2   : > { %3507 = vrot.lane.b32.xlu2 %v3466_v42, %s16778_s21  ;;  %v12886_v41 = vpop.permute.xlu2 %3485 }
 0x5d4   : > { %3556 = vrot.lane.b32.xlu1 %v16956_v28, %s16788_s23  ;;  %3570 = vrot.lane.b32.xlu0 %v16957_v49, %s16788_s23 }
 0x5d8   : > { %v12891_v42 = vpop.f32.mrf.mxu1 }
 0x5da   : > { %3578 = vrot.lane.b32.xlu2 %v3537_v61, %s16788_s23  ;;  %v16969_v61 = vld [vmem:[#allocation141_spill] sm:$0xff]  ;;  %v12923_v27 = vpop.permute.xlu2 %3264 }
 0x5dc   : > { %3428 = vrot.lane.b32.xlu1 %v16960_v8, %s16782_s27  ;;  %3266 = vrot.lane.b32.xlu0 %v3176_v18, %s16864_s14  ;;  %v16971_v8 = vld [vmem:[#allocation333_spill] sm:$0xff]  ;;  %v16980_v18 = vld [vmem:[#allocation227_spill] sm:$0xff] }
 0x5dd   : > { %v3888_v24 = vsel %vm15779_vm12, %v3840_v15, %v16971_v8 }
 0x5de   : > { %v4000_v36 = vrot.slane %v3888_v24, 1 }
 0x5e0   : > { %v4002_v15 = vsel %vm16952_vm15, %v4000_v36, %v4001_v51  ;;  %vm16992_vm15 = vmmov %vm16947_vm2 }
 0x5e2   : > { %3489 = vrot.lane.b32.xlu2 %v16963_v44, %s16778_s21  ;;  %v16973_v44 = vld [vmem:[#allocation174_spill] sm:$0xff] }
 0x5e3   : > { %v3634_v3 = vsel %vm2455_vm6, %v3612_v39, %v16973_v44  ;;  %v16979_v44 = vld [vmem:[#allocation180_spill] sm:$0xff] }
 0x5e4   : > { %3238 = vrot.lane.b32.xlu1 %v3163_v16, %s16864_s14  ;;  %3361 = vrot.lane.b32.xlu0 %v12643_v11, %s16785_s26  ;;  %v3656_v6 = vsel %vm16975_vm14, %v3634_v3, %v16974_v7  ;;  %v12917_v57 = vpop.f32.mrf.mxu1  ;;  %v16976_v16 = vld [vmem:[#allocation152_spill] sm:$0xff]  ;;  %v16981_v3 = vld [vmem:[#allocation222_spill] sm:$0xff] }
 0x5e5   : > { %v3692_v12 = vsel %vm15781_vm8, %v3656_v6, %v12571_v10  ;;  %v12937_v10 = vld [vmem:[%s15239_s2] ss:$0 sm:$0xff] }
 0x5e6   : > { %v4055_v28 = vpop.permute.xlu1 %4054  ;;  %v3740_v29 = vsel %vm2554_vm9, %v3692_v12, %v12593_v30 }
 0x5e7   : > { %6789 = vmatmul.msk.f32.gmra.mxu2 %vm4172_vm3, %v4055_v28  ;;  %v4144_v35 = vsel %vm15780_vm4, %v16969_v61, %v4055_v28  ;;  %v4263_v61 = vpop.f32.mrf.mxu0 }
 0x5e8   : > { %4390 = vmatmul.f32.gmra.mxu1 %v4144_v35  ;;  %v4264_v24 = vadd.f32 %v12937_v10, %v4263_v61 }
 0x5ea   : > { %3276 = vrot.lane.b32.xlu2 %v3180_v47, %s16864_s14 }
 0x5ec   : > { %3097 = vrot.lane.b32.xlu1 %v16976_v16, %s16846_s29  ;;  %v12964_v16 = vpop.permute.xlu0 %3260 }
 0x5ee   : > { %v3411_v53 = vpop.permute.xlu1 %3410 }
 0x5ef   : > { %v3788_v28 = vsel %vm2587_vm11, %v3740_v29, %v3411_v53  ;;  %v12971_v29 = vld [vmem:[#allocation2 + $0x148] sm:$0xf] }
 0x5f0   : > { %v3836_v35 = vsel %vm2620_vm10, %v3788_v28, %v12610_v5 }
 0x5f1   : > { %v3884_v30 = vsel %vm15779_vm12, %v3836_v35, %v12625_v54  ;;  %v4065_v54 = vpop.permute.xlu2 %4064 }
 0x5f2   : > { %4072 = vrot.lane.b32.xlu2 %v4002_v15, %s16859_s0  ;;  %v3993_v8 = vrot.slane %v3884_v30, 1 }
 0x5f4   : > { %3268 = vrot.lane.b32.xlu1 %v3178_v62, %s16864_s14  ;;  %v4376_v63 = vpop.f32.mrf.mxu1  ;;  %v3994_v5 = vsel %vm16978_vm5, %v3991_v2, %v3993_v8  ;;  %v16982_v2 = vld [vmem:[#allocation198_spill] sm:$0xff]  ;;  %v12975_v53 = vpop.permute.xlu0 %3355  ;;  %v7814_v8 = vld [vmem:[#allocation2 + $0x150] sm:$0xff]  ;;  %vm16997_vm5 = vmmov %vm16975_vm14 }
 0x5f5   : > { %v12949_v48 = vadd.f32 %v4376_v63, %v4264_v24  ;;  %4066 = vrot.lane.b32.xlu0 %v3994_v5, %s16859_s0  ;;  %v3164_v24 = vrot.slane %v7814_v8, 7  ;;  %v16986_v63 = vld [vmem:[#allocation165_spill] sm:$0xff]  ;;  %v16990_v8 = vld [vmem:[#allocation212_spill] sm:$0xff] }
 0x5f6   : > { %v4057_v39 = vpop.permute.xlu1 %4056 }
 0x5f7   : > { %6790 = vmatmul.msk.f32.gmra.mxu2 %vm4172_vm3, %v4057_v39  ;;  %v4145_v40 = vsel %vm15780_vm4, %v16979_v44, %v4057_v39 }
 0x5f8   : > { %4393 = vmatmul.f32.gmra.mxu1 %v4145_v40  ;;  %v16987_v40 = vld [vmem:[#allocation235_spill] sm:$0xff] }
 0x5f9   : > { %v12962_v6 = vpop.permute.xlu2 %3499 }
 0x5fc   : > { %3430 = vrot.lane.b32.xlu1 %v16980_v18, %s16782_s27  ;;  %v4149_v18 = vsel %vm15780_vm4, %v16987_v40, %v4065_v54  ;;  %v16991_v40 = vld [vmem:[#allocation177_spill] sm:$0xff] }
 0x5fd   : > { %3503 = vrot.lane.b32.xlu0 %v16981_v3, %s16778_s21  ;;  %v3467_v3 = vrot.slane %v12802_v33, 2 }
 0x5fe   : > { %v4059_v13 = vpop.permute.xlu1 %4058 }
 0x5ff   : > { %6791 = vmatmul.msk.f32.gmra.mxu2 %vm4172_vm3, %v4059_v13  ;;  %v4146_v7 = vsel %vm15780_vm4, %v16982_v2, %v4059_v13  ;;  %v16988_v13 = vld [vmem:[#allocation114_spill] sm:$0xff]  ;;  %3511 = vrot.lane.b32.xlu2 %v3467_v3, %s16778_s21  ;;  %v13011_v2 = vld [vmem:[#allocation2 + $0x158] sm:$0xff] }
 0x600   : > { %4396 = vmatmul.f32.gmra.mxu1 %v4146_v7  ;;  %v15778_v7 = vrot.slane %v13011_v2, 7 }
 0x601   : > { %v12969_v12 = vpop.permute.xlu2 %3099 }
 0x604   : > { %3240 = vrot.lane.b32.xlu1 %v3162_v38, %s16864_s14  ;;  %v16983_v38 = vld [vmem:[#allocation128_spill] sm:$0xff] }
 0x605   : > { %3574 = vrot.lane.b32.xlu0 %v12787_v9, %s16788_s23  ;;  %v16984_v9 = vld [vmem:[#allocation41_spill] sm:$0xff] }
 0x606   : > { %v3413_v36 = vpop.permute.xlu1 %3412 }
 0x609   : > { %v12984_v61 = vpop.permute.xlu2 %3359 }
 0x60c   : > { %3345 = vrot.lane.b32.xlu1 %v12971_v29, %s16785_s26 }
 0x60d   : > { %3101 = vrot.lane.b32.xlu0 %v16957_v49, %s16846_s29  ;;  %v16985_v49 = vld [vmem:[#allocation108_spill] sm:$0xff] }
 0x60e   : > { %v4061_v15 = vpop.permute.xlu1 %4060 }
 0x60f   : > { %6792 = vmatmul.msk.f32.gmra.mxu2 %vm4172_vm3, %v4061_v15  ;;  %v4147_v28 = vsel %vm15780_vm4, %v16983_v38, %v4061_v15 }
 0x610   : > { %4399 = vmatmul.f32.gmra.mxu1 %v4147_v28  ;;  %v3166_v28 = vsel %vm16947_vm2, %v3164_v24, %v15778_v7  ;;  %vm16998_vm2 = vmmov %vm16993_vm13 }
 0x611   : > { %v13000_v44 = vpop.permute.xlu2 %3432 }
 0x614   : > { %3416 = vrot.lane.b32.xlu1 %v16984_v9, %s16782_s27  ;;  %v3179_v9 = vrot.slane %v12798_v60, 7 }
 0x615   : > { %3363 = vrot.lane.b32.xlu0 %v12772_v0, %s16785_s26 }
 0x616   : > { %v4063_v35 = vpop.permute.xlu0 %4062  ;;  %v12988_v30 = vpop.permute.xlu1 %3091 }
 0x617   : > { %6793 = vmatmul.msk.f32.gmra.mxu2 %vm4172_vm3, %v4063_v35  ;;  %v4148_v62 = vsel %vm15780_vm4, %v16985_v49, %v4063_v35  ;;  %v7816_v35 = vld [vmem:[#allocation2 + $0x100] sm:$0xf] }
 0x618   : > { %4402 = vmatmul.f32.gmra.mxu1 %v4148_v62  ;;  %v16989_v49 = vld [vmem:[#allocation209_spill] sm:$0xff] }
 0x619   : > { %v3613_v62 = vsel %vm331_vm0, %v7816_v35, %v16989_v49 }
 0x61c   : > { %3558 = vrot.lane.b32.xlu1 %v16986_v63, %s16788_s23  ;;  %v3635_v63 = vsel %vm2455_vm6, %v3613_v62, %v16990_v8 }
 0x61d   : > { %3242 = vrot.lane.b32.xlu0 %v3164_v24, %s16864_s14 }
 0x61e   : > { %v12996_v5 = vpop.permute.xlu0 %3497  ;;  %v12998_v39 = vpop.permute.xlu1 %3262 }
 0x61f   : > { %6794 = vmatmul.msk.f32.gmra.mxu2 %vm4172_vm3, %v4065_v54  ;;  %v13018_v54 = vpop.permute.xlu2 %3501 }
 0x620   : > { %4405 = vmatmul.f32.gmra.mxu1 %v4149_v18  ;;  %v3657_v18 = vsel %vm16975_vm14, %v3635_v63, %v16991_v40  ;;  %v7817_v63 = vld [vmem:[#allocation2 + $0x118] sm:$0xf]  ;;  %v16994_v40 = vld [vmem:[#allocation13_spill] sm:$0xff]  ;;  %vm16999_vm14 = vcmask 1045504  }
 0x624   : > { %3434 = vrot.lane.b32.xlu1 %v16988_v13, %s16782_s27  ;;  %v3695_v13 = vsel %vm15781_vm8, %v3657_v18, %v12699_v17  ;;  %v3614_v18 = vsel %vm331_vm0, %v7817_v63, %v16994_v40  ;;  %v17001_v40 = vld [vmem:[#allocation161_spill] sm:$0xff] }
 0x625   : > { %3576 = vrot.lane.b32.xlu0 %v12775_v4, %s16788_s23  ;;  %v3743_v24 = vsel %vm2554_vm9, %v3695_v13, %v12808_v23 }
 0x626   : > { %v13014_v15 = vpop.permute.xlu0 %3568  ;;  %v13016_v38 = vpop.permute.xlu1 %3424  ;;  %v3791_v35 = vsel %vm2587_vm11, %v3743_v24, %v3413_v36  ;;  %v3181_v36 = vsel %vm16992_vm15, %v3179_v9, %v3180_v47  ;;  %v16995_v24 = vld [vmem:[#allocation149_spill] sm:$0xff]  ;;  %vm17004_vm15 = vmmov %vm16997_vm5 }
 0x627   : > { %v3839_v49 = vsel %vm2620_vm10, %v3791_v35, %v12735_v58  ;;  %v13039_v62 = vpop.permute.xlu2 %3572  ;;  %v3636_v47 = vsel %vm2455_vm6, %v3614_v18, %v16995_v24  ;;  %v17002_v24 = vld [vmem:[#allocation179_spill] sm:$0xff] }
 0x628   : > { %v3887_v17 = vsel %vm15779_vm12, %v3839_v49, %v12834_v52  ;;  %v3393_v52 = vrot.slane %v12798_v60, 1 }
 0x629   : > { %v3998_v8 = vrot.slane %v3887_v17, 1  ;;  %v3468_v17 = vsel %vm16999_vm14, %v3465_v45, %v3467_v3  ;;  %v13085_v3 = vld [vmem:[#allocation2 + $0x190] sm:$0xf] }
 0x62a   : > { %v3395_v49 = vsel %vm16998_vm2, %v3393_v52, %v3394_v37  ;;  %v17000_v52 = vld [vmem:[#allocation106_spill] sm:$0xff]  ;;  %v3621_v18 = vsel %vm331_vm0, %v13085_v3, %v17001_v40 }
 0x62b   : > { %v3999_v58 = vsel %vm16993_vm13, %v3996_v26, %v3998_v8  ;;  %vm17005_vm13 = vmmov %vm16997_vm5 }
 0x62c   : > { %3244 = vrot.lane.b32.xlu1 %v3166_v28, %s16864_s14 }
 0x62d   : > { %3272 = vrot.lane.b32.xlu0 %v3179_v9, %s16864_s14  ;;  %v16996_v9 = vld [vmem:[#allocation207_spill] sm:$0xff] }
 0x62e   : > { %v3096_v25 = vpop.permute.xlu0 %3095  ;;  %v3235_v7 = vpop.permute.xlu1 %3234  ;;  %v3658_v35 = vsel %vm16997_vm5, %v3636_v47, %v16996_v9  ;;  %v17003_v47 = vld [vmem:[#allocation187_spill] sm:$0xff]  ;;  %vm17006_vm5 = vmmov %vm16998_vm2  ;;  %vm17007_vm2 = vcmask 1044480  }
 0x62f   : > { %v3698_v19 = vsel %vm15781_vm8, %v3658_v35, %v3235_v7  ;;  %vm17010_vm14 = vmmov %vm17006_vm5 }
 0x634   : > { %3103 = vrot.lane.b32.xlu1 %v12662_v59, %s16846_s29  ;;  %v13054_v59 = vpop.permute.xlu2 %3487 }
 0x635   : > { %3367 = vrot.lane.b32.xlu0 %v12800_v34, %s16785_s26 }
 0x636   : > { %v3344_v28 = vpop.permute.xlu1 %3343  ;;  %v3358_v23 = vpop.permute.xlu0 %3357 }
 0x637   : > { %v3746_v60 = vsel %vm2554_vm9, %v3698_v19, %v3344_v28  ;;  %v7818_v28 = vld [vmem:[#allocation2 + $0x188] sm:$0xff] }
 0x638   : > { %v3620_v45 = vsel %vm331_vm0, %v7818_v28, %v17000_v52 }
 0x639   : > { %v3642_v9 = vsel %vm2455_vm6, %v3620_v45, %v17003_v47 }
 0x63a   : > { %v3664_v19 = vsel %vm17004_vm15, %v3642_v9, %v12777_v22  ;;  %v17008_v22 = vrot.slane %v13011_v2, 7  ;;  %vm17012_vm15 = vcmask 1040384   ;;  %v7822_v9 = vld [vmem:[#allocation2 + $0x168] sm:$0xff] }
 0x63c   : > { %3274 = vrot.lane.b32.xlu1 %v3181_v36, %s16864_s14  ;;  %v13080_v63 = vpop.permute.xlu2 %3270 }
 0x63d   : > { %4070 = vrot.lane.b32.xlu0 %v3999_v58, %s16859_s0  ;;  %v3538_v58 = vrot.slane %v12802_v33, 3 }
 0x63e   : > { %v3415_v13 = vpop.permute.xlu1 %3414  ;;  %v13065_v26 = vpop.permute.xlu0 %3236 }
 0x63f   : > { %v3794_v8 = vsel %vm2587_vm11, %v3746_v60, %v3415_v13 }
 0x640   : > { %v3842_v7 = vsel %vm2620_vm10, %v3794_v8, %v12886_v41  ;;  %v3643_v41 = vsel %vm2455_vm6, %v3621_v18, %v17002_v24  ;;  %v3712_v8 = vsel %vm15781_vm8, %v3664_v19, %v12998_v39  ;;  %v17011_v18 = vld [vmem:[#allocation48_spill] sm:$0xff]  ;;  %v17013_v19 = vld [vmem:[#allocation159_spill] sm:$0xff] }
 0x641   : > { %v3760_v46 = vsel %vm2554_vm9, %v3712_v8, %v12975_v53 }
 0x642   : > { %v3808_v2 = vsel %vm2587_vm11, %v3760_v46, %v12823_v50 }
 0x643   : > { %v3856_v53 = vsel %vm2620_vm10, %v3808_v2, %v12996_v5 }
 0x644   : > { %3436 = vrot.lane.b32.xlu1 %v3395_v49, %s16782_s27  ;;  %v3665_v49 = vsel %vm17005_vm13, %v3643_v41, %v3096_v25 }
 0x645   : > { %3509 = vrot.lane.b32.xlu0 %v3468_v17, %s16778_s21  ;;  %v3539_v17 = vsel %vm17007_vm2, %v3536_v32, %v3538_v58  ;;  %v3713_v25 = vsel %vm15781_vm8, %v3665_v49, %v12923_v27  ;;  %v17009_v27 = vld [vmem:[#allocation52_spill] sm:$0xff]  ;;  %vm17031_vm2 = vmmov %vm17005_vm13 }
 0x646   : > { %v3557_v36 = vpop.permute.xlu1 %3556  ;;  %v3571_v35 = vpop.permute.xlu0 %3570  ;;  %v3761_v34 = vsel %vm2554_vm9, %v3713_v25, %v3358_v23  ;;  %v13129_v23 = vld [vmem:[#allocation2 + $0x160] sm:$0xf]  ;;  %v17014_v49 = vld [vmem:[#allocation148_spill] sm:$0xff] }
 0x647   : > { %v3890_v37 = vsel %vm15779_vm12, %v3842_v7, %v3557_v36  ;;  %v4069_v7 = vpop.permute.xlu2 %4068 }
 0x648   : > { %v4003_v13 = vrot.slane %v3890_v37, 1 }
 0x64a   : > { %v4004_v60 = vsel %vm17006_vm5, %v4001_v51, %v4003_v13  ;;  %vm17020_vm5 = vmmov %vm17012_vm15 }
 0x64b   : > { %4074 = vrot.lane.b32.xlu2 %v4004_v60, %s16859_s0 }
 0x64c   : > { %3246 = vrot.lane.b32.xlu1 %v17008_v22, %s16864_s14 }
 0x64d   : > { %3580 = vrot.lane.b32.xlu0 %v3539_v17, %s16788_s23  ;;  %v17015_v17 = vld [vmem:[#allocation217_spill] sm:$0xff] }
 0x64e   : > { %v3429_v32 = vpop.permute.xlu1 %3428  ;;  %v13125_v37 = vpop.permute.xlu0 %3266 }
 0x64f   : > { %v3809_v51 = vsel %vm2587_vm11, %v3761_v34, %v3429_v32  ;;  %v13143_v40 = vpop.permute.xlu2 %3505  ;;  %v17016_v34 = vld [vmem:[#allocation99_spill] sm:$0xff] }
 0x650   : > { %v3857_v39 = vsel %vm2620_vm10, %v3809_v51, %v12962_v6  ;;  %v13135_v6 = vsel %vm15779_vm12, %v3856_v53, %v13014_v15  ;;  %v13148_v15 = vld [vmem:[#allocation2 + $0x180] sm:$0xff] }
 0x651   : > { %v3905_v36 = vsel %vm15779_vm12, %v3857_v39, %v3571_v35  ;;  %v4026_v45 = vrot.slane %v13135_v6, 1  ;;  %v3170_v13 = vrot.slane %v13148_v15, 7  ;;  %v3167_v35 = vrot.slane %v7822_v9, 7  ;;  %v17022_v9 = vld [vmem:[#allocation276_spill] sm:$0xff] }
 0x652   : > { %v4028_v50 = vrot.slane %v3905_v36, 1  ;;  %v17017_v39 = vrot.slane %v12802_v33, 1 }
 0x653   : > { %3420 = vrot.lane.b32.xlu2 %v17009_v27, %s16782_s27 }
 0x654   : > { %3347 = vrot.lane.b32.xlu1 %v13129_v23, %s16785_s26  ;;  %v4029_v5 = vsel %vm17010_vm14, %v4026_v45, %v4028_v50 }
 0x655   : > { %3107 = vrot.lane.b32.xlu0 %v12775_v4, %s16846_s29  ;;  %v3171_v4 = vrot.slane %v7818_v28, 7  ;;  %v3619_v28 = vsel %vm331_vm0, %v13148_v15, %v17014_v49  ;;  %v13309_v15 = vpop.f32.mrf.mxu2  ;;  %s7910_s29 = smov 5  }
 0x656   : > { %v3239_v52 = vpop.permute.xlu1 %3238  ;;  %v13153_v24 = vpop.permute.xlu0 %3361  ;;  %v3641_v8 = vsel %vm2455_vm6, %v3619_v28, %v17015_v17  ;;  %v17025_v17 = vld [vmem:[#allocation292_spill] sm:$0xff] }
 0x657   : > { %v3172_v47 = vsel %vm17012_vm15, %v3170_v13, %v3171_v4  ;;  %v13164_v60 = vpop.permute.xlu2 %3105  ;;  %v3663_v25 = vsel %vm17005_vm13, %v3641_v8, %v12988_v30  ;;  %v7823_v30 = vld [vmem:[#allocation2 + $0x170] sm:$0xff]  ;;  %vm17033_vm15 = vmmov %vm17031_vm2 }
 0x658   : > { %v3711_v51 = vsel %vm15781_vm8, %v3663_v25, %v12964_v16  ;;  %v3168_v36 = vrot.slane %v7823_v30, 7  ;;  %v7824_v25 = vld [vmem:[#allocation2 + $0x198] sm:$0xff]  ;;  %v7825_v30 = vld [vmem:[#allocation2 + $0x1a0] sm:$0xff]  ;;  %vm17038_vm13 = vmmov %vm17010_vm14 }
 0x659   : > { %v3759_v2 = vsel %vm2554_vm9, %v3711_v51, %v12791_v1 }
 0x65a   : > { %v3807_v27 = vsel %vm2587_vm11, %v3759_v2, %v13016_v38  ;;  %v17021_v38 = vld [vmem:[#allocation104_spill] sm:$0xff] }
 0x65b   : > { %4094 = vrot.lane.b32.xlu2 %v4029_v5, %s16859_s0  ;;  %v17018_v5 = vld [vmem:[#allocation143_spill] sm:$0xff]  ;;  %v3855_v1 = vsel %vm2620_vm10, %v3807_v27, %v12836_v43 }
 0x65c   : > { %3418 = vrot.lane.b32.xlu1 %v17011_v18, %s16782_s27  ;;  %v4151_v18 = vsel %vm15780_vm4, %v17018_v5, %v4069_v7  ;;  %v17024_v43 = vld [vmem:[#allocation263_spill] sm:$0xff]  ;;  %v17030_v5 = vld [vmem:[#allocation316_spill] sm:$0xff] }
 0x65d   : > { %3369 = vrot.lane.b32.xlu0 %v12802_v33, %s16785_s26 }
 0x65e   : > { %v3098_v41 = vpop.permute.xlu1 %3097 }
 0x65f   : > { %v13187_v16 = vpop.permute.xlu2 %3365 }
 0x663   : > { %3256 = vrot.lane.b32.xlu2 %v3172_v47, %s16864_s14  ;;  %v3699_v47 = vsel %vm15781_vm8, %v17021_v38, %v13065_v26 }
 0x664   : > { %3560 = vrot.lane.b32.xlu1 %v17013_v19, %s16788_s23  ;;  %v3903_v19 = vsel %vm15779_vm12, %v3855_v1, %v12866_v21 }
 0x665   : > { %3248 = vrot.lane.b32.xlu0 %v3167_v35, %s16864_s14  ;;  %v4025_v28 = vrot.slane %v3903_v19, 1 }
 0x666   : > { %v3269_v22 = vpop.permute.xlu1 %3268 }
 0x667   : > { %v4067_v46 = vpop.permute.xlu0 %4066  ;;  %v13216_v51 = vpop.permute.xlu2 %3438 }
 0x668   : > { %6795 = vmatmul.msk.f32.gmra.mxu2 %vm4172_vm3, %v4067_v46  ;;  %v4150_v32 = vsel %vm15780_vm4, %v17016_v34, %v4067_v46  ;;  %v17026_v46 = vld [vmem:[#allocation91_spill] sm:$0xff] }
 0x669   : > { %4408 = vmatmul.f32.gmra.mxu1 %v4150_v32  ;;  %v3622_v21 = vsel %vm331_vm0, %v7824_v25, %v17026_v46  ;;  %v17027_v34 = vld [vmem:[#allocation231_spill] sm:$0xff] }
 0x66a   : > { %v3644_v32 = vsel %vm2455_vm6, %v3622_v21, %v17027_v34 }
 0x66b   : > { %3258 = vrot.lane.b32.xlu2 %v3171_v4, %s16864_s14  ;;  %v17019_v4 = vld [vmem:[#allocation124_spill] sm:$0xff]  ;;  %v3666_v1 = vsel %vm17031_vm2, %v3644_v32, %v3098_v41 }
 0x66c   : > { %3440 = vrot.lane.b32.xlu1 %v17017_v39, %s16782_s27  ;;  %v3700_v33 = vsel %vm15781_vm8, %v17019_v4, %v3239_v52  ;;  %v3747_v52 = vsel %vm2554_vm9, %v3699_v47, %v17024_v43  ;;  %v17028_v39 = vld [vmem:[#allocation288_spill] sm:$0xff]  ;;  %v17034_v47 = vld [vmem:[#allocation306_spill] sm:$0xff]  ;;  %v3714_v19 = vsel %vm15781_vm8, %v3666_v1, %v13125_v37  ;;  %v13242_v43 = vpop.f32.mrf.mxu0  ;;  %v17043_v1 = vld [vmem:[#allocation193_spill] sm:$0xff] }
 0x66d   : > { %3582 = vrot.lane.b32.xlu0 %v3538_v58, %s16788_s23  ;;  %v3169_v58 = vsel %vm17020_vm5, %v3167_v35, %v3168_v36  ;;  %v3795_v2 = vsel %vm2587_vm11, %v3747_v52, %v17028_v39  ;;  %v17032_v4 = vld [vmem:[#allocation168_spill] sm:$0xff]  ;;  %v3762_v37 = vsel %vm2554_vm9, %v3714_v19, %v12984_v61  ;;  %vm17042_vm5 = vmmov %vm17038_vm13 }
 0x66e   : > { %v3431_v53 = vpop.permute.xlu1 %3430  ;;  %v17037_v52 = vld [vmem:[#allocation36_spill] sm:$0xff] }
 0x66f   : > { %v3504_v50 = vpop.permute.xlu0 %3503  ;;  %v13251_v46 = vpop.permute.xlu2 %3507  ;;  %v13258_v39 = vld [vmem:[#allocation2 + $0x178] sm:$0xf] }
 0x670   : > { %6796 = vmatmul.msk.f32.gmra.mxu2 %vm4172_vm3, %v4069_v7  ;;  %v17023_v7 = vld [vmem:[#allocation252_spill] sm:$0xff] }
 0x671   : > { %4411 = vmatmul.f32.gmra.mxu1 %v4151_v18  ;;  %v3748_v49 = vsel %vm2554_vm9, %v3700_v33, %v17023_v7  ;;  %v17035_v7 = vld [vmem:[#allocation97_spill] sm:$0xff] }
 0x672   : > { %v3796_v26 = vsel %vm2587_vm11, %v3748_v49, %v17025_v17  ;;  %v17036_v49 = vld [vmem:[#allocation336_spill] sm:$0xff] }
 0x673   : > { %3493 = vrot.lane.b32.xlu2 %v17022_v9, %s16778_s21  ;;  %v3844_v18 = vsel %vm2620_vm10, %v3796_v26, %v17030_v5  ;;  %v3843_v9 = vsel %vm2620_vm10, %v3795_v2, %v17034_v47  ;;  %v3810_v26 = vsel %vm2587_vm11, %v3762_v37, %v3431_v53  ;;  %v17040_v5 = vld [vmem:[#allocation176_spill] sm:$0xff] }
 0x674   : > { %3250 = vrot.lane.b32.xlu1 %v3169_v58, %s16864_s14  ;;  %v4027_v58 = vsel %vm17010_vm14, %v4025_v28, %v4026_v45  ;;  %v3892_v6 = vsel %vm15779_vm12, %v3844_v18, %v17036_v49  ;;  %v3891_v28 = vsel %vm15779_vm12, %v3843_v9, %v17037_v52  ;;  %v3858_v34 = vsel %vm2620_vm10, %v3810_v26, %v13018_v54  ;;  %v17041_v18 = vld [vmem:[#allocation170_spill] sm:$0xff]  ;;  %v17044_v49 = vld [vmem:[#allocation16_spill] sm:$0xff]  ;;  %vm17047_vm14 = vmmov %vm17031_vm2 }
 0x675   : > { %3252 = vrot.lane.b32.xlu0 %v3168_v36, %s16864_s14  ;;  %v17029_v36 = vld [vmem:[#allocation163_spill] sm:$0xff]  ;;  %v4005_v25 = vrot.slane %v3891_v28, 1  ;;  %v17046_v37 = vld [vmem:[#allocation40_spill] sm:$0xff] }
 0x676   : > { %v3241_v35 = vpop.permute.xlu1 %3240  ;;  %v3623_v27 = vsel %vm331_vm0, %v7825_v30, %v17029_v36  ;;  %v17039_v36 = vld [vmem:[#allocation11_spill] sm:$0xff] }
 0x677   : > { %v3575_v8 = vpop.permute.xlu0 %3574  ;;  %v3645_v33 = vsel %vm2455_vm6, %v3623_v27, %v17032_v4  ;;  %v3615_v27 = vsel %vm331_vm0, %v12810_v20, %v17039_v36 }
 0x678   : > { %v3667_v38 = vsel %vm17033_vm15, %v3645_v33, %v12969_v12  ;;  %v13284_v33 = vpop.permute.xlu2 %3578  ;;  %vm17049_vm15 = vmmov %vm17042_vm5 }
 0x679   : > { %v3715_v41 = vsel %vm15781_vm8, %v3667_v38, %v3269_v22  ;;  %v4006_v22 = vrot.slane %v3892_v6, 1  ;;  %v3624_v6 = vsel %vm331_vm0, %v12814_v55, %v17044_v49 }
 0x67a   : > { %v3763_v17 = vsel %vm2554_vm9, %v3715_v41, %v13153_v24 }
 0x67b   : > { %v3811_v21 = vsel %vm2587_vm11, %v3763_v17, %v13000_v44  ;;  %v4007_v61 = vsel %vm17038_vm13, %v4005_v25, %v4006_v22  ;;  %v3906_v44 = vsel %vm15779_vm12, %v3858_v34, %v13039_v62  ;;  %v17045_v17 = vld [vmem:[#allocation100_spill] sm:$0xff]  ;;  %vm17059_vm13 = vmmov %vm17042_vm5 }
 0x67c   : > { %4092 = vrot.lane.b32.xlu1 %v4027_v58, %s16859_s0  ;;  %v3859_v32 = vsel %vm2620_vm10, %v3811_v21, %v3504_v50  ;;  %v13270_v50 = vpop.f32.mrf.mxu0  ;;  %v4030_v30 = vrot.slane %v3906_v44, 1 }
 0x67d   : > { %3491 = vrot.lane.b32.xlu0 %v17035_v7, %s16778_s21  ;;  %v13264_v24 = vsel %vm15779_vm12, %v3859_v32, %v3575_v8  ;;  %v3637_v8 = vsel %vm2455_vm6, %v3615_v27, %v17040_v5  ;;  %v13330_v5 = vpop.f32.mrf.mxu2  ;;  %s7919_s21 = smov 45  }
 0x67e   : > { %v3346_v45 = vpop.permute.xlu1 %3345  ;;  %v4031_v54 = vrot.slane %v13264_v24, 1  ;;  %v3659_v4 = vsel %vm17031_vm2, %v3637_v8, %v17043_v1  ;;  %v13374_v24 = vpop.f32.mrf.mxu1 }
 0x67f   : > { %v3102_v12 = vpop.permute.xlu0 %3101  ;;  %v3701_v58 = vsel %vm15781_vm8, %v3659_v4, %v3241_v35  ;;  %v17055_v4 = vld [vmem:[#allocation311_spill] sm:$0xff] }
 0x680   : > { %v4032_v62 = vsel %vm17042_vm5, %v4030_v30, %v4031_v54  ;;  %v3749_v38 = vsel %vm2554_vm9, %v3701_v58, %v3346_v45  ;;  %v13303_v45 = vpop.permute.xlu2 %3489  ;;  %v17051_v30 = vld [vmem:[#allocation51_spill] sm:$0xff] }
 0x684   : > { %3349 = vrot.lane.b32.xlu1 %v13258_v39, %s16785_s26  ;;  %v13290_v19 = vpop.f32.mrf.mxu0 }
 0x685   : > { %4076 = vrot.lane.b32.xlu0 %v4007_v61, %s16859_s0  ;;  %v17050_v61 = vld [vmem:[#allocation283_spill] sm:$0xff] }
 0x686   : > { %v3417_v53 = vpop.permute.xlu1 %3416 }
 0x687   : > { %v3364_v2 = vpop.permute.xlu0 %3363  ;;  %v3797_v9 = vsel %vm2587_vm11, %v3749_v38, %v3417_v53  ;;  %v17056_v38 = vld [vmem:[#allocation253_spill] sm:$0xff] }
 0x688   : > { %v3845_v41 = vsel %vm2620_vm10, %v3797_v9, %v13054_v59  ;;  %v3646_v59 = vsel %vm2455_vm6, %v3624_v6, %v17045_v17  ;;  %v13332_v8 = vpop.permute.xlu2 %3276 }
 0x68c   : > { %3562 = vrot.lane.b32.xlu1 %v17041_v18, %s16788_s23  ;;  %v13318_v34 = vpop.f32.mrf.mxu0 }
 0x68d   : > { %4096 = vrot.lane.b32.xlu0 %v4032_v62, %s16859_s0  ;;  %v17054_v62 = vld [vmem:[#allocation290_spill] sm:$0xff] }
 0x68e   : > { %v3559_v20 = vpop.permute.xlu1 %3558 }
 0x68f   : > { %v3243_v47 = vpop.permute.xlu0 %3242  ;;  %v3893_v7 = vsel %vm15779_vm12, %v3845_v41, %v3559_v20  ;;  %v17058_v41 = vld [vmem:[#allocation30_spill] sm:$0xff] }
 0x690   : > { %v4008_v52 = vrot.slane %v3893_v7, 1  ;;  %v3702_v26 = vsel %vm15781_vm8, %v17046_v37, %v3243_v47  ;;  %v17057_v47 = vld [vmem:[#allocation345_spill] sm:$0xff]  ;;  %v4073_v37 = vpop.permute.xlu2 %4072 }
 0x692   : > { %v4009_v21 = vsel %vm17049_vm15, %v4006_v22, %v4008_v52  ;;  %vm17068_vm15 = vmmov %vm17042_vm5 }
 0x694   : > { %3254 = vrot.lane.b32.xlu1 %v3170_v13, %s16864_s14  ;;  %v3668_v13 = vsel %vm17047_vm14, %v3646_v59, %v3102_v12  ;;  %v13352_v49 = vpop.f32.mrf.mxu0  ;;  %v13354_v59 = vpop.f32.mrf.mxu2  ;;  %vm17065_vm14 = vmmov %vm17031_vm2 }
 0x695   : > { %3351 = vrot.lane.b32.xlu0 %v13085_v3, %s16785_s26  ;;  %v17048_v3 = vld [vmem:[#allocation261_spill] sm:$0xff]  ;;  %v3716_v55 = vsel %vm15781_vm8, %v3668_v13, %v13080_v63  ;;  %v17052_v63 = vld [vmem:[#allocation266_spill] sm:$0xff] }
 0x696   : > { %v3435_v35 = vpop.permute.xlu1 %3434  ;;  %v3750_v25 = vsel %vm2554_vm9, %v3702_v26, %v17048_v3  ;;  %v3764_v32 = vsel %vm2554_vm9, %v3716_v55, %v3364_v2  ;;  %v17053_v2 = vld [vmem:[#allocation320_spill] sm:$0xff]  ;;  %v17060_v3 = vld [vmem:[#allocation173_spill] sm:$0xff]  ;;  %v17061_v55 = vld [vmem:[#allocation111_spill] sm:$0xff] }
 0x697   : > { %v3577_v28 = vpop.permute.xlu0 %3576  ;;  %v3798_v12 = vsel %vm2587_vm11, %v3750_v25, %v17050_v61  ;;  %v3812_v53 = vsel %vm2587_vm11, %v3764_v32, %v3435_v35  ;;  %v3625_v25 = vsel %vm331_vm0, %v12573_v31, %v17060_v3  ;;  %v17062_v61 = vld [vmem:[#allocation135_spill] sm:$0xff] }
 0x698   : > { %v3860_v18 = vsel %vm2620_vm10, %v3812_v53, %v13143_v40  ;;  %v3647_v32 = vsel %vm2455_vm6, %v3625_v25, %v17061_v55 }
 0x699   : > { %v3908_v20 = vsel %vm15779_vm12, %v3860_v18, %v3577_v28 }
 0x69a   : > { %v4033_v6 = vrot.slane %v3908_v20, 1  ;;  %v13396_v20 = vpop.f32.mrf.mxu1 }
 0x69c   : > { %4078 = vrot.lane.b32.xlu1 %v4009_v21, %s16859_s0  ;;  %v4034_v26 = vsel %vm17042_vm5, %v4031_v54, %v4033_v6  ;;  %v13372_v53 = vpop.f32.mrf.mxu0  ;;  %vm4707_vm5 = vcmask 35840  }
 0x69d   : > { %3564 = vrot.lane.b32.xlu0 %v16951_v56, %s16788_s23  ;;  %v3846_v56 = vsel %vm2620_vm10, %v3798_v12, %v17053_v2 }
 0x69e   : > { %v3245_v44 = vpop.permute.xlu1 %3244  ;;  %v3894_v9 = vsel %vm15779_vm12, %v3846_v56, %v17057_v47 }
 0x69f   : > { %v3703_v22 = vsel %vm15781_vm8, %v17051_v30, %v3245_v44  ;;  %v3273_v36 = vpop.permute.xlu0 %3272  ;;  %v4010_v17 = vrot.slane %v3894_v9, 1  ;;  %v13377_v44 = vpop.f32.mrf.mxu2 }
 0x6a0   : > { %v3751_v27 = vsel %vm2554_vm9, %v3703_v22, %v17052_v63  ;;  %v13379_v30 = vpop.permute.xlu2 %3511  ;;  %v17063_v22 = vld [vmem:[#allocation203_spill] sm:$0xff] }
 0x6a1   : > { %v3799_v1 = vsel %vm2587_vm11, %v3751_v27, %v17054_v62  ;;  %v3626_v63 = vsel %vm331_vm0, %v12643_v11, %v17063_v22  ;;  %v17064_v27 = vld [vmem:[#allocation190_spill] sm:$0xff] }
 0x6a2   : > { %v3847_v58 = vsel %vm2620_vm10, %v3799_v1, %v17055_v4  ;;  %v3648_v2 = vsel %vm2455_vm6, %v3626_v63, %v17064_v27 }
 0x6a3   : > { %v13349_v7 = vsel %vm15779_vm12, %v3847_v58, %v17058_v41  ;;  %v3670_v18 = vsel %vm17065_vm14, %v3648_v2, %v13164_v60  ;;  %vm17077_vm14 = vmmov %vm17068_vm15 }
 0x6a4   : > { %3422 = vrot.lane.b32.xlu1 %v17056_v38, %s16782_s27  ;;  %v4011_v40 = vrot.slane %v13349_v7, 1  ;;  %v13398_v38 = vpop.f32.mrf.mxu0  ;;  %v4267_v7 = vadd.f32 %v12937_v10, %v13242_v43  ;;  %s7920_s27 = smov 60  }
 0x6a6   : > { %v3104_v35 = vpop.permute.xlu1 %3103  ;;  %v4012_v28 = vsel %vm17059_vm13, %v4010_v17, %v4011_v40  ;;  %vm17073_vm13 = vmmov %vm17031_vm2 }
 0x6a7   : > { %v3368_v52 = vpop.permute.xlu0 %3367  ;;  %4080 = vrot.lane.b32.xlu2 %v4012_v28, %s16859_s0  ;;  %v3669_v54 = vsel %vm17031_vm2, %v3647_v32, %v3104_v35  ;;  %v13400_v47 = vpop.f32.mrf.mxu2 }
 0x6a8   : > { %v3717_v31 = vsel %vm15781_vm8, %v3669_v54, %v3273_v36  ;;  %v17066_v36 = vld [vmem:[#allocation120_spill] sm:$0xff]  ;;  %v4075_v9 = vpop.permute.xlu2 %4074 }
 0x6a9   : > { %v3765_v62 = vsel %vm2554_vm9, %v3717_v31, %v13187_v16  ;;  %v4153_v11 = vsel %vm15780_vm4, %v17066_v36, %v4073_v37  ;;  %v17070_v31 = vld [vmem:[#allocation151_spill] sm:$0xff] }
 0x6aa   : > { %v3616_v22 = vsel %vm331_vm0, %v12971_v29, %v17070_v31 }
 0x6ac   : > { %4098 = vrot.lane.b32.xlu1 %v4034_v26, %s16859_s0  ;;  %v13423_v3 = vpop.f32.mrf.mxu0 }
 0x6ae   : > { %v3275_v13 = vpop.permute.xlu1 %3274 }
 0x6af   : > { %v4071_v21 = vpop.permute.xlu0 %4070  ;;  %v3718_v4 = vsel %vm15781_vm8, %v3670_v18, %v3275_v13  ;;  %v13425_v25 = vpop.f32.mrf.mxu2 }
 0x6b0   : > { %6797 = vmatmul.msk.f32.gmra.mxu2 %vm4172_vm3, %v4071_v21  ;;  %v4152_v12 = vsel %vm15780_vm4, %v17062_v61, %v4071_v21  ;;  %v3766_v60 = vsel %vm2554_vm9, %v3718_v4, %v3368_v52  ;;  %v17067_v52 = vld [vmem:[#allocation118_spill] sm:$0xff] }
 0x6b1   : > { %4414 = vmatmul.f32.gmra.mxu1 %v4152_v12  ;;  %v3814_v35 = vsel %vm2587_vm11, %v3766_v60, %v13216_v51  ;;  %v4154_v26 = vsel %vm15780_vm4, %v17067_v52, %v4075_v9  ;;  %v17069_v61 = vld [vmem:[#allocation102_spill] sm:$0xff] }
 0x6b2   : > { %v4258_v12 = vadd.f32 %v12937_v10, %v17069_v61  ;;  %v17076_v61 = vld [vmem:[#allocation184_spill] sm:$0xff] }
 0x6b4   : > { %v4371_v63 = vadd.f32 %v12891_v42, %v4258_v12  ;;  %v13437_v2 = vpop.f32.mrf.mxu0 }
 0x6b6   : > { %v3437_v56 = vpop.permute.xlu1 %3436 }
 0x6b7   : > { %v3510_v1 = vpop.permute.xlu0 %3509  ;;  %v3813_v58 = vsel %vm2587_vm11, %v3765_v62, %v3437_v56  ;;  %v13431_v54 = vpop.f32.mrf.mxu2  ;;  %v17071_v56 = vld [vmem:[#allocation181_spill] sm:$0xff] }
 0x6b8   : > { %6798 = vmatmul.msk.f32.gmra.mxu2 %vm4172_vm3, %v4073_v37  ;;  %v3861_v16 = vsel %vm2620_vm10, %v3813_v58, %v13251_v46  ;;  %v3862_v17 = vsel %vm2620_vm10, %v3814_v35, %v3510_v1  ;;  %v3638_v18 = vsel %vm2455_vm6, %v3616_v22, %v17071_v56  ;;  %v17072_v1 = vld [vmem:[#allocation215_spill] sm:$0xff]  ;;  %v4484_v58 = vadd.f32 %v13309_v15, %v4371_v63 }
 0x6b9   : > { %4417 = vmatmul.f32.gmra.mxu1 %v4153_v11  ;;  %v3909_v41 = vsel %vm15779_vm12, %v3861_v16, %v13284_v33  ;;  %v13417_v33 = vpop.f32.mrf.mxu1  ;;  %v3660_v4 = vsel %vm17073_vm13, %v3638_v18, %v17072_v1  ;;  %v17078_v1 = vld [vmem:[#allocation44_spill] sm:$0xff]  ;;  %vm17096_vm13 = vmmov %vm17031_vm2 }
 0x6ba   : > { %v4035_v46 = vrot.slane %v3909_v41, 1  ;;  %v4579_v29 = vmax.f32 %v4484_v58, 0.0 }
 0x6bc   : > { %v4708_v31 = vsel %vm4707_vm5, %v4579_v29, -inf }
 0x6be   : > { %v3247_v6 = vpop.permute.xlu1 %3246 }
 0x6bf   : > { %v3581_v28 = vpop.permute.xlu0 %3580  ;;  %v3704_v36 = vsel %vm15781_vm8, %v3660_v4, %v3247_v6  ;;  %v13449_v16 = vpop.f32.mrf.mxu2 }
 0x6c0   : > { %v13411_v37 = vsel %vm15779_vm12, %v3862_v17, %v3581_v28  ;;  %6799 = vmatmul.msk.f32.gmra.mxu2 %vm4172_vm3, %v4075_v9  ;;  %v17074_v9 = vld [vmem:[#allocation17_spill] sm:$0xff]  ;;  %v17075_v28 = vld [vmem:[#allocation80_spill] sm:$0xff] }
 0x6c1   : > { %v4036_v13 = vrot.slane %v13411_v37, 1  ;;  %4420 = vmatmul.f32.gmra.mxu1 %v4154_v26  ;;  %v13427_v32 = vpop.f32.mrf.mxu1  ;;  %v4261_v41 = vadd.f32 %v12937_v10, %v17074_v9  ;;  %v3627_v52 = vsel %vm331_vm0, %v12772_v0, %v17075_v28  ;;  %v4643_v26 = vrot.slane %v4579_v29, 4  ;;  %v17079_v9 = vld [vmem:[#allocation256_spill] sm:$0xff] }
 0x6c2   : > { %v3649_v12 = vsel %vm2455_vm6, %v3627_v52, %v17076_v61  ;;  %v4380_v29 = vadd.f32 %v13374_v24, %v4267_v7  ;;  %v13523_v61 = vadd.f32 %v12937_v10, %v13437_v2  ;;  %v17084_v7 = vld [vmem:[#allocation214_spill] sm:$0xff] }
 0x6c3   : > { %v4037_v51 = vsel %vm17068_vm15, %v4035_v46, %v4036_v13  ;;  %v4374_v46 = vadd.f32 %v12917_v57, %v4261_v41  ;;  %v4715_v0 = vsel %vm4707_vm5, %v4643_v26, -inf  ;;  %v4709_v57 = vrot.slane %v4708_v31, 4  ;;  %vm17081_vm15 = vmmov %vm17077_vm14 }
 0x6c4   : > { %4100 = vrot.lane.b32.xlu0 %v4037_v51, %s16859_s0  ;;  %v4716_v58 = vrot.slane %v4715_v0, 4  ;;  %v4493_v24 = vadd.f32 %v13377_v44, %v4380_v29  ;;  %v13514_v44 = vadd.f32 %v12937_v10, %v13423_v3  ;;  %v17088_v29 = vld [vmem:[#allocation340_spill] sm:$0xff] }
 0x6c6   : > { %v3348_v21 = vpop.permute.xlu1 %3347  ;;  %v4717_v28 = vmax.f32 %v4715_v0, %v4716_v58  ;;  %v4582_v37 = vmax.f32 %v4493_v24, 0.0  ;;  %v17086_v58 = vld [vmem:[#allocation264_spill] sm:$0xff] }
 0x6c7   : > { %v3108_v55 = vpop.permute.xlu0 %3107  ;;  %v3752_v11 = vsel %vm2554_vm9, %v3704_v36, %v3348_v21  ;;  %v4293_v21 = vpop.f32.mrf.mxu0  ;;  %v4490_v36 = vadd.f32 %v13354_v59, %v12949_v48  ;;  %v4276_v48 = vadd.f32 %v12937_v10, %v13318_v34  ;;  %v4710_v59 = vmax.f32 %v4708_v31, %v4709_v57 }
 0x6c8   : > { %v3671_v22 = vsel %vm17031_vm2, %v3649_v12, %v3108_v55  ;;  %v13472_v56 = vpop.f32.mrf.mxu2  ;;  %v13506_v34 = vadd.f32 %v12937_v10, %v13372_v53  ;;  %v13526_v53 = vadd.f32 %v12937_v10, %v4293_v21  ;;  %v4718_v2 = vrot.slane %v4717_v28, 2 }
 0x6c9   : > { %v13446_v60 = vpop.f32.mrf.mxu1  ;;  %v3719_v18 = vsel %vm15781_vm8, %v3671_v22, %v13332_v8  ;;  %v4270_v8 = vadd.f32 %v12937_v10, %v13270_v50  ;;  %v4581_v52 = vmax.f32 %v4490_v36, 0.0  ;;  %v4711_v3 = vrot.slane %v4710_v59, 2  ;;  %v17082_v22 = vld [vmem:[#allocation318_spill] sm:$0xff] }
 0x6ca   : > { %v4719_v24 = vmax.f32 %v4717_v28, %v4718_v2 }
 0x6cb   : > { %v4645_v0 = vrot.slane %v4581_v52, 4 }
 0x6ce   : > { %v3419_v27 = vpop.permute.xlu1 %3418 }
 0x6cf   : > { %v3370_v62 = vpop.permute.xlu0 %3369  ;;  %v3800_v42 = vsel %vm2587_vm11, %v3752_v11, %v3419_v27 }
 0x6d0   : > { %v3848_v35 = vsel %vm2620_vm10, %v3800_v42, %v13303_v45  ;;  %v4487_v45 = vadd.f32 %v13330_v5, %v4374_v46  ;;  %v13510_v46 = vadd.f32 %v12937_v10, %v13398_v38  ;;  %v4383_v38 = vadd.f32 %v13396_v20, %v4270_v8  ;;  %v13536_v57 = vpop.f32.mrf.mxu2 }
 0x6d1   : > { %v13468_v27 = vpop.f32.mrf.mxu1 }
 0x6d2   : > { %v4580_v55 = vmax.f32 %v4487_v45, 0.0  ;;  %v4496_v21 = vadd.f32 %v13400_v47, %v4383_v38 }
 0x6d4   : > { %v4722_v50 = vsel %vm4707_vm5, %v4580_v55, -inf }
 0x6d5   : > { %v4723_v12 = vrot.slane %v4722_v50, 4 }
 0x6d6   : > { %v3561_v17 = vpop.permute.xlu1 %3560 }
 0x6d7   : > { %v3896_v15 = vsel %vm15779_vm12, %v3848_v35, %v3561_v17  ;;  %v3249_v6 = vpop.permute.xlu0 %3248  ;;  %v4644_v17 = vrot.slane %v4580_v55, 4  ;;  %v3617_v55 = vsel %vm331_vm0, %v13129_v23, %v17084_v7  ;;  %v4724_v36 = vmax.f32 %v4722_v50, %v4723_v12  ;;  %v17089_v23 = vld [vmem:[#allocation324_spill] sm:$0xff] }
 0x6d8   : > { %v4013_v51 = vrot.slane %v3896_v15, 1  ;;  %v3705_v5 = vsel %vm15781_vm8, %v17078_v1, %v3249_v6  ;;  %v13500_v6 = vadd.f32 %v12937_v10, %v13352_v49  ;;  %v13516_v49 = vpop.permute.xlu2 %3420  ;;  %v17091_v12 = vld [vmem:[#allocation12_spill] sm:$0xff] }
 0x6d9   : > { %v3753_v41 = vsel %vm2554_vm9, %v3705_v5, %v17079_v9  ;;  %v13529_v31 = vpop.f32.mrf.mxu1  ;;  %v4729_v45 = vsel %vm4707_vm5, %v4644_v17, -inf }
 0x6da   : > { %v4014_v63 = vsel %vm17077_vm14, %v4011_v40, %v4013_v51  ;;  %v3767_v40 = vsel %vm2554_vm9, %v3719_v18, %v3370_v62  ;;  %v4273_v62 = vadd.f32 %v12937_v10, %v13290_v19  ;;  %v17080_v19 = vld [vmem:[#allocation295_spill] sm:$0xff]  ;;  %v17083_v18 = vld [vmem:[#allocation206_spill] sm:$0xff] }
 0x6db   : > { %4082 = vrot.lane.b32.xlu1 %v4014_v63, %s16859_s0  ;;  %v3801_v26 = vsel %vm2587_vm11, %v3753_v41, %v17080_v19  ;;  %v4712_v41 = vmax.f32 %v4710_v59, %v4711_v3  ;;  %v4750_v19 = vsel %vm4707_vm5, %v4582_v37, -inf  ;;  %v4725_v3 = vrot.slane %v4724_v36, 2 }
 0x6de   : > { %v3441_v4 = vpop.permute.xlu1 %3440 }
 0x6df   : > { %v3815_v11 = vsel %vm2587_vm11, %v3767_v40, %v3441_v4  ;;  %v3583_v42 = vpop.permute.xlu0 %3582  ;;  %v17085_v40 = vld [vmem:[#allocation166_spill] sm:$0xff] }
 0x6e0   : > { %v3863_v43 = vsel %vm2620_vm10, %v3815_v11, %v13379_v30  ;;  %v4296_v30 = vpop.f32.mrf.mxu0  ;;  %v3618_v4 = vsel %vm331_vm0, %v13258_v39, %v17085_v40  ;;  %v4730_v11 = vrot.slane %v4729_v45, 4  ;;  %v4743_v39 = vsel %vm4707_vm5, %v4645_v0, -inf  ;;  %v13575_v0 = vpop.permute.xlu2 %4094  ;;  %vm17092_vm0 = vmmov %vm17077_vm14 }
 0x6e1   : > { %v3911_v35 = vsel %vm15779_vm12, %v3863_v43, %v3583_v42  ;;  %v13543_v5 = vadd.f32 %v12937_v10, %v4296_v30  ;;  %v17087_v42 = vld [vmem:[#allocation286_spill] sm:$0xff]  ;;  %v4736_v43 = vsel %vm4707_vm5, %v4581_v52, -inf  ;;  %v17090_v30 = vld [vmem:[#allocation32_spill] sm:$0xff]  ;;  %v3640_v38 = vsel %vm2455_vm6, %v3618_v4, %v17091_v12  ;;  %vm17112_vm14 = vmmov %vm17092_vm0 }
 0x6e2   : > { %v4038_v15 = vrot.slane %v3911_v35, 1  ;;  %v4646_v35 = vrot.slane %v4582_v37, 4  ;;  %v4731_v28 = vmax.f32 %v4729_v45, %v4730_v11  ;;  %v4389_v37 = vadd.f32 %v13427_v32, %v4276_v48  ;;  %v17094_v48 = vld [vmem:[#allocation185_spill] sm:$0xff] }
 0x6e3   : > { %v3639_v40 = vsel %vm2455_vm6, %v3617_v55, %v17094_v48  ;;  %v4713_v4 = vrot.slane %v4712_v41, 1  ;;  %v4726_v11 = vmax.f32 %v4724_v36, %v4725_v3  ;;  %vm17103_vm6 = vmmov %vm17092_vm0 }
 0x6e4   : > { %v4039_v51 = vsel %vm17081_vm15, %v4036_v13, %v4038_v15  ;;  %v3849_v13 = vsel %vm2620_vm10, %v3801_v26, %v17082_v22  ;;  %v4583_v15 = vmax.f32 %v4496_v21, 0.0  ;;  %v4386_v26 = vadd.f32 %v13417_v33, %v4273_v62 }
 0x6e5   : > { %4102 = vrot.lane.b32.xlu2 %v4039_v51, %s16859_s0  ;;  %v3897_v9 = vsel %vm15779_vm12, %v3849_v13, %v17088_v29  ;;  %v4737_v22 = vrot.slane %v4736_v43, 4  ;;  %v13570_v13 = vpop.f32.mrf.mxu1  ;;  %v4744_v21 = vrot.slane %v4743_v39, 4  ;;  %v4714_v12 = vmax.f32 %v4712_v41, %v4713_v4 }
 0x6e6   : > { %v3251_v63 = vpop.permute.xlu1 %3250  ;;  %v4015_v51 = vrot.slane %v3897_v9, 1  ;;  %v4499_v2 = vadd.f32 %v13425_v25, %v4386_v26  ;;  %v4647_v45 = vrot.slane %v4583_v15, 4  ;;  %v17093_v25 = vld [vmem:[#allocation162_spill] sm:$0xff]  ;;  %vm5285_vm15 = vcmask 1041409  }
 0x6e7   : > { %v3706_v20 = vsel %vm15781_vm8, %v17083_v18, %v3251_v63  ;;  %v13540_v1 = vpop.permute.xlu0 %3252  ;;  %v4757_v63 = vsel %vm4707_vm5, %v4646_v35, -inf  ;;  %v4751_v18 = vrot.slane %v4750_v19, 4  ;;  %v17095_v35 = vld [vmem:[#allocation191_spill] sm:$0xff]  ;;  %v4745_v26 = vmax.f32 %v4743_v39, %v4744_v21 }
 0x6e8   : > { %v3754_v47 = vsel %vm2554_vm9, %v3706_v20, %v17086_v58  ;;  %v4299_v52 = vpop.f32.mrf.mxu0  ;;  %v13582_v20 = vpop.f32.mrf.mxu2  ;;  %v4720_v58 = vrot.slane %v4719_v24, 1  ;;  %v4758_v29 = vrot.slane %v4757_v63, 4  ;;  %v4584_v55 = vmax.f32 %v4499_v2, 0.0 }
 0x6e9   : > { %v3802_v8 = vsel %vm2587_vm11, %v3754_v47, %v17087_v42  ;;  %v4502_v47 = vadd.f32 %v13431_v54, %v4389_v37  ;;  %v4732_v42 = vrot.slane %v4731_v28, 2  ;;  %v13594_v9 = vadd.f32 %v12937_v10, %v4299_v52 }
 0x6ea   : > { %v3850_v17 = vsel %vm2620_vm10, %v3802_v8, %v17089_v23  ;;  %v4738_v8 = vmax.f32 %v4736_v43, %v4737_v22  ;;  %v3661_v23 = vsel %vm17096_vm13, %v3639_v40, %v17095_v35  ;;  %v4764_v54 = vsel %vm4707_vm5, %v4583_v15, -inf }
 0x6eb   : > { %v13563_v50 = vsel %vm15779_vm12, %v3850_v17, %v17090_v30  ;;  %v17097_v17 = vld [vmem:[#allocation87_spill] sm:$0xff]  ;;  %v4771_v36 = vsel %vm4707_vm5, %v4647_v45, -inf  ;;  %v4721_v43 = vmax.f32 %v4719_v24, %v4720_v58  ;;  %v4585_v3 = vmax.f32 %v4502_v47, 0.0  ;;  %v3257_v45 = vpop.permute.xlu2 %3256 }
 0x6ec   : > { %v4016_v59 = vrot.slane %v13563_v50, 1  ;;  %v13600_v30 = vsel %vm17031_vm2, %v3640_v38, %v17097_v17  ;;  %v4392_v10 = vadd.f32 %v13446_v60, %v13500_v6  ;;  %v4727_v52 = vrot.slane %v4726_v11, 1 }
 0x6ed   : > { %v4733_v22 = vmax.f32 %v4731_v28, %v4732_v42  ;;  %v4739_v37 = vrot.slane %v4738_v8, 2  ;;  %v4772_v38 = vrot.slane %v4771_v36, 4  ;;  %v4778_v2 = vsel %vm4707_vm5, %v4584_v55, -inf }
 0x6ee   : > { %v13577_v33 = vpop.permute.xlu1 %4092  ;;  %v4017_v62 = vsel %vm17092_vm0, %v4015_v51, %v4016_v59  ;;  %v4752_v51 = vmax.f32 %v4750_v19, %v4751_v18  ;;  %v4505_v39 = vadd.f32 %v13449_v16, %v4392_v10  ;;  %v4746_v15 = vrot.slane %v4745_v26, 2  ;;  %v17098_v18 = vld [vmem:[#allocation158_spill] sm:$0xff]  ;;  %v17099_v16 = vld [vmem:[#allocation9_spill] sm:$0xff] }
 0x6ef   : > { %v13584_v7 = vpop.permute.xlu0 %3491  ;;  %4084 = vrot.lane.b32.xlu0 %v4017_v62, %s16859_s0  ;;  %v4163_v32 = vsel %vm15780_vm4, %v17093_v25, %v13577_v33  ;;  %v4759_v62 = vmax.f32 %v4757_v63, %v4758_v29  ;;  %v4765_v25 = vrot.slane %v4764_v54, 4  ;;  %v3707_v41 = vsel %vm15781_vm8, %v3661_v23, %v13540_v1  ;;  %v13614_v63 = vpop.f32.mrf.mxu1 }
 0x6f0   : > { %4447 = vmatmul.f32.vlgmr.msrb.gmra.mxu3 %v4163_v32  ;;  %v4753_v21 = vrot.slane %v4752_v51, 2  ;;  %v4164_v60 = vsel %vm15780_vm4, %v17098_v18, %v13575_v0  ;;  %v4648_v6 = vrot.slane %v4584_v55, 4  ;;  %v4792_v28 = vsel %vm4707_vm5, %v4585_v3, -inf  ;;  %v13623_v47 = vpop.f32.mrf.mxu2 }
 0x6f1   : > { %v13621_v1 = vsel %vm5156_vm7, %v4714_v12, -inf  ;;  %v4760_v40 = vrot.slane %v4759_v62, 2  ;;  %v4779_v4 = vrot.slane %v4778_v2, 4  ;;  %v4649_v58 = vrot.slane %v4585_v3, 4 }
 0x6f2   : > { %v13626_v42 = vsel %vm5156_vm7, %v4721_v43, -inf  ;;  %v4766_v29 = vmax.f32 %v4764_v54, %v4765_v25  ;;  %v4773_v35 = vmax.f32 %v4771_v36, %v4772_v38  ;;  %v4586_v23 = vmax.f32 %v4505_v39, 0.0  ;;  %v17100_v43 = vld [vmem:[#allocation56_spill] sm:$0xff] }
 0x6f3   : > { %v4728_v17 = vmax.f32 %v4726_v11, %v4727_v52  ;;  %v4734_v55 = vrot.slane %v4733_v22, 1  ;;  %v4793_v10 = vrot.slane %v4792_v28, 4  ;;  %v4740_v12 = vmax.f32 %v4738_v8, %v4739_v37 }
 0x6f4   : > { %v4785_v3 = vsel %vm4707_vm5, %v4648_v6, -inf  ;;  %v4761_v18 = vmax.f32 %v4759_v62, %v4760_v40  ;;  %v3709_v54 = vsel %vm15781_vm8, %v17100_v43, %v3257_v45  ;;  %v4767_v36 = vrot.slane %v4766_v29, 2 }
 0x6f5   : > { %v4774_v25 = vrot.slane %v4773_v35, 2  ;;  %v4806_v11 = vsel %vm4707_vm5, %v4586_v23, -inf  ;;  %v4786_v8 = vrot.slane %v4785_v3, 4  ;;  %v4735_v45 = vmax.f32 %v4733_v22, %v4734_v55  ;;  %v17104_v55 = vld [vmem:[#allocation297_spill] sm:$0xff] }
 0x6f6   : > { %v3350_v19 = vpop.permute.xlu1 %3349  ;;  %v4768_v40 = vmax.f32 %v4766_v29, %v4767_v36  ;;  %v13659_v29 = vsel %vm5156_vm7, %v4728_v17, -inf  ;;  %v4762_v36 = vrot.slane %v4761_v18, 1 }
 0x6f7   : > { %v4077_v24 = vpop.permute.xlu0 %4076  ;;  %v3755_v32 = vsel %vm2554_vm9, %v3707_v41, %v3350_v19  ;;  %v4747_v41 = vmax.f32 %v4745_v26, %v4746_v15  ;;  %v4794_v26 = vmax.f32 %v4792_v28, %v4793_v10 }
 0x6f8   : > { %4450 = vmatmul.f32.gmra.mxu3 %v4164_v60  ;;  %6800 = vmatmul.msk.f32.gmra.mxu2 %vm4172_vm3, %v4077_v24  ;;  %v4155_v48 = vsel %vm15780_vm4, %v17099_v16, %v4077_v24  ;;  %v3803_v19 = vsel %vm2587_vm11, %v3755_v32, %v13516_v49  ;;  %v4754_v24 = vmax.f32 %v4752_v51, %v4753_v21  ;;  %v4799_v16 = vsel %vm4707_vm5, %v4649_v58, -inf  ;;  %v17102_v21 = vld [vmem:[#allocation131_spill] sm:$0xff]  ;;  %v13645_v58 = vpop.f32.mrf.mxu1  ;;  %v13653_v22 = vpop.f32.mrf.mxu2 }
 0x6f9   : > { %4423 = vmatmul.f32.gmra.mxu1 %v4155_v48  ;;  %v4780_v60 = vmax.f32 %v4778_v2, %v4779_v4  ;;  %v3851_v52 = vsel %vm2620_vm10, %v3803_v19, %v13584_v7  ;;  %v4650_v51 = vrot.slane %v4586_v23, 4  ;;  %v4800_v38 = vrot.slane %v4799_v16, 4  ;;  %v17101_v2 = vld [vmem:[#allocation259_spill] sm:$0xff]  ;;  %v13647_v23 = vpop.permute.xlu2 %3258 }
 0x6fa   : > { %v3757_v39 = vsel %vm2554_vm9, %v3709_v54, %v17101_v2  ;;  %v4741_v32 = vrot.slane %v4740_v12, 1  ;;  %v4807_v48 = vrot.slane %v4806_v11, 4  ;;  %v4748_v28 = vrot.slane %v4747_v41, 1  ;;  %v17105_v2 = vld [vmem:[#allocation321_spill] sm:$0xff] }
 0x6fb   : > { %v4781_v7 = vrot.slane %v4780_v60, 2  ;;  %v4775_v4 = vmax.f32 %v4773_v35, %v4774_v25  ;;  %v4787_v19 = vmax.f32 %v4785_v3, %v4786_v8  ;;  %v4795_v43 = vrot.slane %v4794_v26, 2 }
 0x6fc   : > { %v4813_v54 = vsel %vm4707_vm5, %v4650_v51, -inf  ;;  %v4755_v35 = vrot.slane %v4754_v24, 1  ;;  %v4801_v25 = vmax.f32 %v4799_v16, %v4800_v38  ;;  %v4742_v50 = vmax.f32 %v4740_v12, %v4741_v32  ;;  %v17108_v32 = vld [vmem:[#allocation293_spill] sm:$0xff] }
 0x6fd   : > { %v13662_v3 = vsel %vm5156_vm7, %v4735_v45, -inf  ;;  %v4749_v8 = vmax.f32 %v4747_v41, %v4748_v28  ;;  %v4769_v51 = vrot.slane %v4768_v40, 1  ;;  %v4796_v17 = vmax.f32 %v4794_v26, %v4795_v43 }
 0x6fe   : > { %v3563_v49 = vpop.permute.xlu1 %3562  ;;  %v4756_v16 = vmax.f32 %v4754_v24, %v4755_v35  ;;  %v4763_v12 = vmax.f32 %v4761_v18, %v4762_v36  ;;  %v4395_v43 = vadd.f32 %v13468_v27, %v13506_v34  ;;  %v17110_v35 = vld [vmem:[#allocation314_spill] sm:$0xff]  ;;  %v5158_v34 = vsel %vm5156_vm7, %v4742_v50, -inf }
 0x6ff   : > { %v3899_v37 = vsel %vm15779_vm12, %v3851_v52, %v3563_v49  ;;  %v13638_v62 = vpop.permute.xlu0 %4096  ;;  %v3805_v52 = vsel %vm2587_vm11, %v3757_v39, %v17104_v55  ;;  %v4782_v49 = vmax.f32 %v4780_v60, %v4781_v7  ;;  %v4802_v60 = vrot.slane %v4801_v25, 2 }
 0x700   : > { %v4018_v15 = vrot.slane %v3899_v37, 1  ;;  %v4165_v6 = vsel %vm15780_vm4, %v17102_v21, %v13638_v62  ;;  %v4814_v37 = vrot.slane %v4813_v54, 4  ;;  %v3853_v39 = vsel %vm2620_vm10, %v3805_v52, %v17105_v2  ;;  %v13678_v24 = vpop.f32.mrf.mxu1 }
 0x701   : > { %4453 = vmatmul.f32.gmra.mxu3 %v4165_v6  ;;  %v4776_v21 = vrot.slane %v4775_v4, 1  ;;  %v4788_v6 = vrot.slane %v4787_v19, 2  ;;  %v4783_v45 = vrot.slane %v4782_v49, 1  ;;  %v4770_v52 = vmax.f32 %v4768_v40, %v4769_v51  ;;  %v13680_v18 = vpop.permute.xlu2 %3493 }
 0x702   : > { %v4019_v10 = vsel %vm17103_vm6, %v4016_v59, %v4018_v15  ;;  %v4808_v59 = vmax.f32 %v4806_v11, %v4807_v48  ;;  %v17107_v11 = vld [vmem:[#allocation269_spill] sm:$0xff]  ;;  %v17109_v48 = vld [vmem:[#allocation343_spill] sm:$0xff]  ;;  %v4815_v26 = vmax.f32 %v4813_v54, %v4814_v37  ;;  %v4803_v40 = vmax.f32 %v4801_v25, %v4802_v60 }
 0x703   : > { %4086 = vrot.lane.b32.xlu1 %v4019_v10, %s16859_s0  ;;  %v17106_v10 = vld [vmem:[#allocation23_spill] sm:$0xff]  ;;  %v13674_v28 = vsel %vm15779_vm12, %v3853_v39, %v17109_v48  ;;  %v4777_v2 = vmax.f32 %v4775_v4, %v4776_v21  ;;  %v4508_v54 = vadd.f32 %v13472_v56, %v4395_v43  ;;  %v5165_v37 = vsel %vm5156_vm7, %v4749_v8, -inf }
 0x704   : > { %v4809_v41 = vrot.slane %v4808_v59, 2  ;;  %v4021_v27 = vrot.slane %v13674_v28, 1  ;;  %v5172_v4 = vsel %vm5156_vm7, %v4756_v16, -inf  ;;  %v4816_v21 = vrot.slane %v4815_v26, 2 }
 0x705   : > { %v5160_v25 = vsel %vm5156_vm7, %v4770_v52, -inf  ;;  %v5167_v50 = vsel %vm5156_vm7, %v4777_v2, -inf  ;;  %v4804_v16 = vrot.slane %v4803_v40, 1  ;;  %v5166_v48 = vmax.f32 %v13626_v42, %v5165_v37 }
 0x706   : > { %v3255_v15 = vpop.permute.xlu1 %3254 }
 0x707   : > { %v3708_v55 = vsel %vm15781_vm8, %v17106_v10, %v3255_v15  ;;  %v4789_v15 = vmax.f32 %v4787_v19, %v4788_v6  ;;  %v4797_v10 = vrot.slane %v4796_v17, 1  ;;  %v13694_v19 = vsel %vm5156_vm7, %v4763_v12, -inf  ;;  %v3352_v6 = vpop.permute.xlu0 %3351 }
 0x708   : > { %v3756_v38 = vsel %vm2554_vm9, %v3708_v55, %v17107_v11  ;;  %v13684_v55 = vpop.f32.mrf.mxu2  ;;  %v17111_v11 = vld [vmem:[#allocation25_spill] sm:$0xff]  ;;  %v4587_v12 = vmax.f32 %v4508_v54, 0.0  ;;  %v4805_v42 = vmax.f32 %v4803_v40, %v4804_v16 }
 0x709   : > { %v3804_v7 = vsel %vm2587_vm11, %v3756_v38, %v17108_v32  ;;  %v4784_v38 = vmax.f32 %v4782_v49, %v4783_v45  ;;  %v4810_v32 = vmax.f32 %v4808_v59, %v4809_v41  ;;  %v4790_v60 = vrot.slane %v4789_v15, 1  ;;  %v17113_v49 = vld [vmem:[#allocation147_spill] sm:$0xff] }
 0x70a   : > { %v3852_v36 = vsel %vm2620_vm10, %v3804_v7, %v17110_v35  ;;  %v4798_v8 = vmax.f32 %v4796_v17, %v4797_v10  ;;  %v4401_v45 = vadd.f32 %v13570_v13, %v13514_v44  ;;  %v5159_v41 = vmax.f32 %v13621_v1, %v5158_v34 }
 0x70b   : > { %v3900_v39 = vsel %vm15779_vm12, %v3852_v36, %v17111_v11  ;;  %v5174_v52 = vsel %vm5156_vm7, %v4784_v38, -inf  ;;  %v4811_v43 = vrot.slane %v4810_v32, 1  ;;  %v5173_v35 = vmax.f32 %v13659_v29, %v5172_v4  ;;  %v4081_v29 = vpop.permute.xlu2 %4080 }
 0x70c   : > { %v4020_v51 = vrot.slane %v3900_v39, 1  ;;  %v4817_v36 = vmax.f32 %v4815_v26, %v4816_v21  ;;  %v13712_v2 = vadd.f32 %v13582_v20, %v4401_v45  ;;  %v5180_v17 = vmax.f32 %v13662_v3, %v13694_v19 }
 0x70d   : > { %v5161_v10 = vmax.f32 %v5159_v41, %v5160_v25  ;;  %v5168_v11 = vmax.f32 %v5166_v48, %v5167_v50  ;;  %v4791_v44 = vmax.f32 %v4789_v15, %v4790_v60  ;;  %v4398_v13 = vadd.f32 %v13529_v31, %v13510_v46 }
 0x70e   : > { %v4079_v7 = vpop.permute.xlu1 %4078  ;;  %v4022_v56 = vsel %vm17112_vm14, %v4020_v51, %v4021_v27  ;;  %v5175_v1 = vmax.f32 %v5173_v35, %v5174_v52  ;;  %v5162_v39 = vsel %vm5156_vm7, %v4798_v8, -inf  ;;  %v4651_v54 = vrot.slane %v4587_v12, 4  ;;  %v4412_v51 = vpop.f32.mrf.mxu1 }
 0x70f   : > { %4088 = vrot.lane.b32.xlu2 %v4022_v56, %s16859_s0  ;;  %6801 = vmatmul.msk.f32.gmra.mxu2 %vm4172_vm3, %v4079_v7  ;;  %v4156_v59 = vsel %vm15780_vm4, %v17113_v49, %v4079_v7  ;;  %v4812_v26 = vmax.f32 %v4810_v32, %v4811_v43  ;;  %v4511_v20 = vadd.f32 %v13536_v57, %v4398_v13  ;;  %v4818_v38 = vrot.slane %v4817_v36, 1  ;;  %v3565_v32 = vpop.permute.xlu0 %3564 }
 0x710   : > { %4426 = vmatmul.f32.gmra.mxu1 %v4156_v59  ;;  %v4407_v34 = vadd.f32 %v13645_v58, %v13526_v53  ;;  %v3710_v15 = vsel %vm15781_vm8, %v13600_v30, %v13647_v23  ;;  %v4525_v37 = vpop.f32.mrf.mxu2  ;;  %v4589_v46 = vmax.f32 %v13712_v2, 0.0  ;;  %v4404_v31 = vadd.f32 %v13614_v63, %v13523_v61  ;;  %v17114_v30 = vld [vmem:[#allocation145_spill] sm:$0xff] }
 0x711   : > { %v3758_v40 = vsel %vm2554_vm9, %v3710_v15, %v3352_v6  ;;  %v4413_v53 = vadd.f32 %v4412_v51, %v13594_v9  ;;  %v4157_v23 = vsel %vm15780_vm4, %v17114_v30, %v4081_v29  ;;  %v5169_v21 = vsel %vm5156_vm7, %v4805_v42, -inf }
 0x712   : > { %v4520_v57 = vadd.f32 %v13653_v22, %v4407_v34  ;;  %v4820_v61 = vsel %vm4707_vm5, %v4587_v12, -inf  ;;  %v4827_v63 = vsel %vm4707_vm5, %v4651_v54, -inf  ;;  %v4588_v22 = vmax.f32 %v4511_v20, 0.0 }
 0x713   : > { %v4517_v9 = vadd.f32 %v13623_v47, %v4404_v31  ;;  %v4526_v7 = vadd.f32 %v4525_v37, %v4413_v53  ;;  %v4819_v25 = vmax.f32 %v4817_v36, %v4818_v38  ;;  %v4653_v50 = vrot.slane %v4589_v46, 4 }
 0x714   : > { %v4410_v60 = vadd.f32 %v13678_v24, %v13543_v5  ;;  %v5176_v59 = vsel %vm5156_vm7, %v4812_v26, -inf  ;;  %v4821_v8 = vrot.slane %v4820_v61, 4  ;;  %v4828_v16 = vrot.slane %v4827_v63, 4 }
 0x715   : > { %v4591_v12 = vmax.f32 %v4520_v57, 0.0  ;;  %v13745_v45 = vmax.f32 %v5161_v10, %v5162_v39  ;;  %v5181_v41 = vsel %vm5156_vm7, %v4791_v44, -inf  ;;  %v4834_v48 = vsel %vm4707_vm5, %v4588_v22, -inf  ;;  %v17116_v10 = vld [vmem:[#allocation153_spill] sm:$0xff] }
 0x716   : > { %v3423_v4 = vpop.permute.xlu1 %3422  ;;  %v4590_v52 = vmax.f32 %v4517_v9, 0.0  ;;  %v4593_v5 = vmax.f32 %v4526_v7, 0.0  ;;  %v13754_v24 = vmax.f32 %v5168_v11, %v5169_v21  ;;  %v4855_v43 = vsel %vm4707_vm5, %v4653_v50, -inf }
 0x717   : > { %v3806_v58 = vsel %vm2587_vm11, %v3758_v40, %v3423_v4  ;;  %6802 = vmatmul.msk.f32.gmra.mxu2 %vm4172_vm3, %v4081_v29  ;;  %v13759_v36 = vmax.f32 %v5175_v1, %v5176_v59  ;;  %v5183_v28 = vsel %vm5156_vm7, %v4819_v25, -inf  ;;  %vm5287_vm11 = vcmask 1042434  }
 0x718   : > { %v3854_v6 = vsel %vm2620_vm10, %v3806_v58, %v13680_v18  ;;  %4429 = vmatmul.f32.gmra.mxu1 %v4157_v23  ;;  %v4523_v18 = vadd.f32 %v13684_v55, %v4410_v60  ;;  %vm17115_vm10 = vmmov %vm17092_vm0  ;;  %v4822_v55 = vmax.f32 %v4820_v61, %v4821_v8  ;;  %v4655_v2 = vrot.slane %v4591_v12, 4 }
 0x719   : > { %v3902_v56 = vsel %vm15779_vm12, %v3854_v6, %v3565_v32  ;;  %v4652_v13 = vrot.slane %v4588_v22, 4  ;;  %v4835_v42 = vrot.slane %v4834_v48, 4  ;;  %v5182_v39 = vmax.f32 %v5180_v17, %v5181_v41 }
 0x71a   : > { %v4023_v49 = vrot.slane %v3902_v56, 1  ;;  %v4592_v11 = vmax.f32 %v4523_v18, 0.0  ;;  %v4856_v1 = vrot.slane %v4855_v43, 4  ;;  %v4654_v54 = vrot.slane %v4590_v52, 4 }
 0x71b   : > { %v4657_v51 = vrot.slane %v4593_v5, 4  ;;  %v5286_v29 = vsel %vm5285_vm15, %v13754_v24, %v13745_v45  ;;  %v4848_v26 = vsel %vm4707_vm5, %v4589_v46, -inf  ;;  %v13772_v20 = vmax.f32 %v5182_v39, %v5183_v28  ;;  %v4302_v28 = vpop.f32.mrf.mxu0 }
 0x71c   : > { %v4024_v47 = vsel %vm17115_vm10, %v4021_v27, %v4023_v49  ;;  %v4829_v27 = vmax.f32 %v4827_v63, %v4828_v16  ;;  %v5288_v34 = vsel %vm5287_vm11, %v13759_v36, %v5286_v29  ;;  %vm5289_vm0 = vcmask 1043459   ;;  %v13791_v29 = vld [vmem:[%s15239_s2] ss:$0 sm:$0xff] }
 0x71d   : > { %4090 = vrot.lane.b32.xlu0 %v4024_v47, %s16859_s0  ;;  %v4823_v15 = vrot.slane %v4822_v55, 2  ;;  %v4862_v3 = vsel %vm4707_vm5, %v4590_v52, -inf  ;;  %v4883_v19 = vsel %vm4707_vm5, %v4655_v2, -inf  ;;  %v4836_v17 = vmax.f32 %v4834_v48, %v4835_v42 }
 0x71e   : > { %v13757_v35 = vpop.permute.xlu1 %4098  ;;  %v4830_v37 = vrot.slane %v4829_v27, 2  ;;  %v4841_v38 = vsel %vm4707_vm5, %v4652_v13, -inf  ;;  %v4876_v31 = vsel %vm4707_vm5, %v4591_v12, -inf  ;;  %v4656_v40 = vrot.slane %v4592_v11, 4 }
 0x71f   : > { %v4166_v44 = vsel %vm15780_vm4, %v17116_v10, %v13757_v35  ;;  %v4849_v4 = vrot.slane %v4848_v26, 4  ;;  %v4857_v46 = vmax.f32 %v4855_v43, %v4856_v1  ;;  %v4869_v32 = vsel %vm4707_vm5, %v4654_v54, -inf }
 0x720   : > { %4456 = vmatmul.f32.gmra.mxu3 %v4166_v44  ;;  %v4911_v57 = vsel %vm4707_vm5, %v4657_v51, -inf  ;;  %v4863_v53 = vrot.slane %v4862_v3, 4  ;;  %v4884_v58 = vrot.slane %v4883_v19, 4  ;;  %v4890_v30 = vsel %vm4707_vm5, %v4592_v11, -inf }
 0x721   : > { %v5290_v23 = vsel %vm5289_vm0, %v13772_v20, %v5288_v34  ;;  %v4824_v21 = vmax.f32 %v4822_v55, %v4823_v15  ;;  %v4842_v61 = vrot.slane %v4841_v38, 4  ;;  %v4877_v63 = vrot.slane %v4876_v31, 4 }
 0x722   : > { %v4904_v6 = vsel %vm4707_vm5, %v4593_v5, -inf  ;;  %v4831_v22 = vmax.f32 %v4829_v27, %v4830_v37  ;;  %v4870_v9 = vrot.slane %v4869_v32, 4  ;;  %v4897_v7 = vsel %vm4707_vm5, %v4656_v40, -inf }
 0x723   : > { %v4912_v56 = vrot.slane %v4911_v57, 4  ;;  %v4837_v25 = vrot.slane %v4836_v17, 2  ;;  %v4850_v50 = vmax.f32 %v4848_v26, %v4849_v4  ;;  %v4858_v60 = vrot.slane %v4857_v46, 2 }
 0x724   : > { %v4891_v49 = vrot.slane %v4890_v30, 4  ;;  %v4864_v59 = vmax.f32 %v4862_v3, %v4863_v53  ;;  %v4885_v8 = vmax.f32 %v4883_v19, %v4884_v58  ;;  %v4905_v16 = vrot.slane %v4904_v6, 4 }
 0x725   : > { %v4825_v12 = vrot.slane %v4824_v21, 1  ;;  %v4843_v18 = vmax.f32 %v4841_v38, %v4842_v61  ;;  %v4878_v47 = vmax.f32 %v4876_v31, %v4877_v63  ;;  %v4898_v41 = vrot.slane %v4897_v7, 4 }
 0x726   : > { %v4832_v48 = vrot.slane %v4831_v22, 1  ;;  %v4871_v52 = vmax.f32 %v4869_v32, %v4870_v9  ;;  %v4913_v43 = vmax.f32 %v4911_v57, %v4912_v56  ;;  %v5304_v5 = vsel %vm4707_vm5, %v5290_v23, 0.0 }
 0x727   : > { %v4838_v55 = vmax.f32 %v4836_v17, %v4837_v25  ;;  %v4851_v27 = vrot.slane %v4850_v50, 2  ;;  %v4859_v2 = vmax.f32 %v4857_v46, %v4858_v60  ;;  %v4892_v10 = vmax.f32 %v4890_v30, %v4891_v49 }
 0x728   : > { %v4865_v44 = vrot.slane %v4864_v59, 2  ;;  %v4886_v13 = vrot.slane %v4885_v8, 2  ;;  %v4906_v42 = vmax.f32 %v4904_v6, %v4905_v16  ;;  %v4826_v11 = vmax.f32 %v4824_v21, %v4825_v12  ;;  %v17117_v12 = vld [vmem:[#allocation337_spill] sm:$0xff] }
 0x729   : > { %v4844_v39 = vrot.slane %v4843_v18, 2  ;;  %v4879_v1 = vrot.slane %v4878_v47, 2  ;;  %v4899_v54 = vmax.f32 %v4897_v7, %v4898_v41  ;;  %v4303_v26 = vadd.f32 %v13791_v29, %v4302_v28 }
 0x72a   : > { %v4833_v34 = vmax.f32 %v4831_v22, %v4832_v48  ;;  %v4872_v15 = vrot.slane %v4871_v52, 2  ;;  %v4914_v37 = vrot.slane %v4913_v43, 2  ;;  %v4839_v3 = vrot.slane %v4838_v55, 1 }
 0x72b   : > { %v4852_v19 = vmax.f32 %v4850_v50, %v4851_v27  ;;  %v4860_v17 = vrot.slane %v4859_v2, 1  ;;  %v4893_v38 = vrot.slane %v4892_v10, 2  ;;  %v4866_v31 = vmax.f32 %v4864_v59, %v4865_v44 }
 0x72c   : > { %v4887_v40 = vmax.f32 %v4885_v8, %v4886_v13  ;;  %v4907_v4 = vrot.slane %v4906_v42, 2  ;;  %v13795_v32 = vsel %vm5156_vm7, %v4826_v11, -inf  ;;  %v4845_v57 = vmax.f32 %v4843_v18, %v4844_v39 }
 0x72d   : > { %5305 = vadd.xlane.f32.xlu1 %v5304_v5  ;;  %v4880_v53 = vmax.f32 %v4878_v47, %v4879_v1  ;;  %v4900_v58 = vrot.slane %v4899_v54, 2  ;;  %v5192_v23 = vsel %vm5156_vm7, %v4833_v34, -inf  ;;  %v4873_v21 = vmax.f32 %v4871_v52, %v4872_v15 }
 0x72e   : > { %v4415_v51 = vpop.f32.mrf.mxu1  ;;  %v4915_v61 = vmax.f32 %v4913_v43, %v4914_v37  ;;  %v4840_v6 = vmax.f32 %v4838_v55, %v4839_v3  ;;  %v4853_v22 = vrot.slane %v4852_v19, 1  ;;  %v4861_v9 = vmax.f32 %v4859_v2, %v4860_v17  ;;  %v13804_v43 = vpop.f32.mrf.mxu3 }
 0x72f   : > { %v4416_v46 = vadd.f32 %v4415_v51, %v4303_v26  ;;  %v4894_v7 = vmax.f32 %v4892_v10, %v4893_v38  ;;  %v4867_v56 = vrot.slane %v4866_v31, 1  ;;  %v4888_v25 = vrot.slane %v4887_v40, 1 }
 0x730   : > { %v4908_v50 = vmax.f32 %v4906_v42, %v4907_v4  ;;  %v4846_v59 = vrot.slane %v4845_v57, 1  ;;  %v4881_v8 = vrot.slane %v4880_v53, 1  ;;  %v4901_v16 = vmax.f32 %v4899_v54, %v4900_v58 }
 0x731   : > { %v4874_v47 = vrot.slane %v4873_v21, 1  ;;  %v4916_v41 = vrot.slane %v4915_v61, 1  ;;  %v4854_v5 = vmax.f32 %v4852_v19, %v4853_v22  ;;  %v5193_v28 = vsel %vm5156_vm7, %v4861_v9, -inf }
 0x732   : > { %v4895_v55 = vrot.slane %v4894_v7, 1  ;;  %v4868_v2 = vmax.f32 %v4866_v31, %v4867_v56  ;;  %v4889_v10 = vmax.f32 %v4887_v40, %v4888_v25  ;;  %v4909_v44 = vrot.slane %v4908_v50, 1 }
 0x733   : > { %v4528_v30 = vpop.f32.mrf.mxu2  ;;  %v4882_v42 = vmax.f32 %v4880_v53, %v4881_v8  ;;  %v4902_v11 = vrot.slane %v4901_v16, 1  ;;  %v4847_v54 = vmax.f32 %v4845_v57, %v4846_v59  ;;  %v5199_v51 = vsel %vm5156_vm7, %v4840_v6, -inf }
 0x734   : > { %v4529_v63 = vadd.f32 %v4528_v30, %v4416_v46  ;;  %v4875_v26 = vmax.f32 %v4873_v21, %v4874_v47  ;;  %v4917_v34 = vmax.f32 %v4915_v61, %v4916_v41  ;;  %v5186_v15 = vsel %vm5156_vm7, %v4854_v5, -inf }
 0x735   : > { %v4896_v37 = vmax.f32 %v4894_v7, %v4895_v55  ;;  %v5194_v17 = vmax.f32 %v5192_v23, %v5193_v28  ;;  %v5200_v38 = vsel %vm5156_vm7, %v4868_v2, -inf  ;;  %v5195_v31 = vsel %vm5156_vm7, %v4889_v10, -inf }
 0x736   : > { %v4594_v60 = vmax.f32 %v4529_v63, 0.0  ;;  %v13798_v49 = vpop.permute.xlu0 %4100  ;;  %v4910_v40 = vmax.f32 %v4908_v50, %v4909_v44  ;;  %v5188_v4 = vsel %vm5156_vm7, %v4882_v42, -inf  ;;  %v4903_v46 = vmax.f32 %v4901_v16, %v4902_v11  ;;  %v17118_v63 = vld [vmem:[#allocation167_spill] sm:$0xff] }
 0x737   : > { %v4167_v18 = vsel %vm15780_vm4, %v17117_v12, %v13798_v49  ;;  %v5187_v30 = vmax.f32 %v13795_v32, %v5186_v15  ;;  %v5207_v21 = vsel %vm5156_vm7, %v4875_v26, -inf  ;;  %v5197_v61 = vsel %vm5156_vm7, %v4917_v34, -inf  ;;  %v4338_v32 = vpop.f32.mrf.mxu3  ;;  %v17120_v26 = vld [vmem:[#allocation154_spill] sm:$0xff] }
 0x738   : > { %v4658_v48 = vrot.slane %v4594_v60, 4  ;;  %v4918_v52 = vsel %vm4707_vm5, %v4594_v60, -inf  ;;  %4459 = vmatmul.f32.gmra.mxu3 %v4167_v18  ;;  %v5196_v6 = vmax.f32 %v5194_v17, %v5195_v31  ;;  %v5202_v22 = vsel %vm5156_vm7, %v4896_v37, -inf }
 0x739   : > { %v4919_v27 = vrot.slane %v4918_v52, 4  ;;  %v5206_v56 = vsel %vm5156_vm7, %v4847_v54, -inf  ;;  %v5201_v25 = vmax.f32 %v5199_v51, %v5200_v38  ;;  %v5189_v50 = vmax.f32 %v5187_v30, %v5188_v4  ;;  %v17122_v4 = vld [vmem:[#allocation133_spill] sm:$0xff] }
 0x73a   : > { %v4925_v13 = vsel %vm4707_vm5, %v4658_v48, -inf  ;;  %v5190_v60 = vsel %vm5156_vm7, %v4910_v40, -inf  ;;  %v13821_v16 = vmax.f32 %v5196_v6, %v5197_v61  ;;  %v5209_v12 = vsel %vm5156_vm7, %v4903_v46, -inf }
 0x73b   : > { %v4920_v39 = vmax.f32 %v4918_v52, %v4919_v27  ;;  %v4926_v1 = vrot.slane %v4925_v13, 4  ;;  %v5203_v18 = vmax.f32 %v5201_v25, %v5202_v22  ;;  %v5208_v47 = vmax.f32 %v5206_v56, %v5207_v21  ;;  %v4418_v21 = vpop.f32.mrf.mxu1 }
 0x73c   : > { %v13824_v41 = vmax.f32 %v5189_v50, %v5190_v60  ;;  %v4336_v15 = vadd.f32 %v13791_v29, %v13804_v43  ;;  %v4339_v17 = vadd.f32 %v13791_v29, %v4338_v32  ;;  %vm5945_vm12 = vcmask 531456  }
 0x73d   : > { %v4921_v3 = vrot.slane %v4920_v39, 2  ;;  %v4927_v19 = vmax.f32 %v4925_v13, %v4926_v1  ;;  %v5210_v28 = vmax.f32 %v5208_v47, %v5209_v12  ;;  %vm6094_vm8 = vcmask 654336  }
 0x73e   : > { %v5291_v27 = vsel %vm5285_vm15, %v13821_v16, %v13824_v41 }
 0x73f   : > { %v4922_v53 = vmax.f32 %v4920_v39, %v4921_v3  ;;  %v4928_v57 = vrot.slane %v4927_v19, 2  ;;  %v4103_v58 = vpop.permute.xlu2 %4102  ;;  %v13842_v42 = vpop.f32.mrf.mxu3  ;;  %v17119_v39 = vld [vmem:[#allocation195_spill] sm:$0xff] }
 0x740   : > { %v4168_v23 = vsel %vm15780_vm4, %v17118_v63, %v4103_v58  ;;  %v4531_v63 = vpop.f32.mrf.mxu2 }
 0x741   : > { %v4923_v9 = vrot.slane %v4922_v53, 1  ;;  %v4929_v7 = vmax.f32 %v4927_v19, %v4928_v57  ;;  %4462 = vmatmul.f32.gmra.mxu3 %v4168_v23 }
 0x743   : > { %v4924_v59 = vmax.f32 %v4922_v53, %v4923_v9  ;;  %v4930_v8 = vrot.slane %v4929_v7, 1  ;;  %v17123_v53 = vld [vmem:[#allocation73_spill] sm:$0xff]  ;;  %v4421_v23 = vpop.f32.mrf.mxu1 }
 0x745   : > { %v4931_v48 = vmax.f32 %v4929_v7, %v4930_v8  ;;  %v5204_v52 = vsel %vm5156_vm7, %v4924_v59, -inf }
 0x746   : > { %v13827_v5 = vmax.f32 %v5203_v18, %v5204_v52 }
 0x747   : > { %v5211_v55 = vsel %vm5156_vm7, %v4931_v48, -inf  ;;  %v13849_v54 = vpop.f32.mrf.mxu3 }
 0x748   : > { %v13833_v2 = vmax.f32 %v5210_v28, %v5211_v55  ;;  %v5292_v10 = vsel %vm5287_vm11, %v13827_v5, %v5291_v27  ;;  %v4534_v22 = vpop.f32.mrf.mxu2 }
 0x749   : > { %6809 = vmatmul.msk.f32.vlgmr.msra.gmra.mxu3 %vm4172_vm3, %v13575_v0 }
 0x74a   : > { %v5293_v44 = vsel %vm5289_vm0, %v13833_v2, %v5292_v10 }
 0x74b   : > { %v5307_v13 = vsel %vm4707_vm5, %v5293_v44, 0.0 }
 0x74c   : > { %5308 = vadd.xlane.f32.xlu2 %v5307_v13 }
 0x74d   : > { %v4083_v11 = vpop.permute.xlu1 %4082 }
 0x74e   : > { %6803 = vmatmul.msk.f32.gmra.mxu2 %vm4172_vm3, %v4083_v11  ;;  %v4158_v1 = vsel %vm15780_vm4, %v17119_v39, %v4083_v11 }
 0x74f   : > { %4432 = vmatmul.f32.gmra.mxu1 %v4158_v1  ;;  %v13853_v0 = vpop.f32.mrf.mxu3 }
 0x751   : > { %6810 = vmatmul.msk.f32.gmra.mxu3 %vm4172_vm3, %v13638_v62 }
 0x757   : > { %v13861_v62 = vpop.f32.mrf.mxu3 }
 0x759   : > { %6811 = vmatmul.msk.f32.gmra.mxu3 %vm4172_vm3, %v13757_v35 }
 0x761   : > { %v4085_v51 = vpop.permute.xlu0 %4084  ;;  %6812 = vmatmul.msk.f32.gmra.mxu3 %vm4172_vm3, %v13798_v49  ;;  %v17121_v49 = vld [vmem:[#allocation228_spill] sm:$0xff] }
 0x762   : > { %6804 = vmatmul.msk.f32.gmra.mxu2 %vm4172_vm3, %v4085_v51  ;;  %v4159_v34 = vsel %vm15780_vm4, %v17120_v26, %v4085_v51 }
 0x763   : > { %4435 = vmatmul.f32.gmra.mxu1 %v4159_v34 }
 0x769   : > { %6813 = vmatmul.msk.f32.gmra.mxu3 %vm4172_vm3, %v4103_v58  ;;  %v4089_v38 = vpop.permute.xlu2 %4088  ;;  %v4305_v58 = vpop.f32.mrf.mxu0 }
 0x76a   : > { %v4161_v43 = vsel %vm15780_vm4, %v17122_v4, %v4089_v38  ;;  %v4306_v32 = vadd.f32 %v13791_v29, %v4305_v58 }
 0x76c   : > { %v4419_v59 = vadd.f32 %v4418_v21, %v4306_v32 }
 0x76e   : > { %v4532_v12 = vadd.f32 %v4531_v63, %v4419_v59 }
 0x770   : > { %v4595_v27 = vmax.f32 %v4532_v12, 0.0 }
 0x771   : > { %v4308_v30 = vpop.f32.mrf.mxu0 }
 0x772   : > { %v4932_v1 = vsel %vm4707_vm5, %v4595_v27, -inf  ;;  %v4659_v26 = vrot.slane %v4595_v27, 4 }
 0x773   : > { %v4448_v35 = vpop.f32.mrf.mxu3 }
 0x774   : > { %v13865_v37 = vadd.f32 %v4448_v35, %v4336_v15  ;;  %v4939_v4 = vsel %vm4707_vm5, %v4659_v26, -inf }
 0x775   : > { %v4087_v3 = vpop.permute.xlu1 %4086  ;;  %v4940_v21 = vrot.slane %v4939_v4, 4 }
 0x776   : > { %6805 = vmatmul.msk.f32.gmra.mxu2 %vm4172_vm3, %v4087_v3  ;;  %v4160_v19 = vsel %vm15780_vm4, %v17121_v49, %v4087_v3  ;;  %v4424_v7 = vpop.f32.mrf.mxu1  ;;  %v4933_v49 = vrot.slane %v4932_v1, 4 }
 0x777   : > { %4438 = vmatmul.f32.gmra.mxu1 %v4160_v19 }
 0x778   : > { %v4934_v58 = vmax.f32 %v4932_v1, %v4933_v49  ;;  %v13912_v49 = vadd.f32 %v13791_v29, %v13849_v54 }
 0x779   : > { %v4311_v61 = vpop.f32.mrf.mxu0 }
 0x77a   : > { %v4312_v18 = vadd.f32 %v13791_v29, %v4311_v61  ;;  %v4935_v32 = vrot.slane %v4934_v58, 2 }
 0x77b   : > { %v4451_v31 = vpop.f32.mrf.mxu3  ;;  %v4537_v56 = vpop.f32.mrf.mxu2 }
 0x77c   : > { %v13871_v40 = vadd.f32 %v4451_v31, %v4339_v17  ;;  %v4425_v55 = vadd.f32 %v4424_v7, %v4312_v18 }
 0x77e   : > { %6806 = vmatmul.msk.f32.gmra.mxu2 %vm4172_vm3, %v4089_v38  ;;  %v4538_v10 = vadd.f32 %v4537_v56, %v4425_v55 }
 0x77f   : > { %4441 = vmatmul.f32.gmra.mxu1 %v4161_v43 }
 0x780   : > { %v4597_v34 = vmax.f32 %v4538_v10, 0.0 }
 0x781   : > { %v4314_v6 = vpop.f32.mrf.mxu0 }
 0x782   : > { %v4315_v13 = vadd.f32 %v13791_v29, %v4314_v6  ;;  %v4661_v43 = vrot.slane %v4597_v34, 4  ;;  %v4960_v61 = vsel %vm4707_vm5, %v4597_v34, -inf }
 0x783   : > { %v4961_v59 = vrot.slane %v4960_v61, 4 }
 0x784   : > { %v13881_v9 = vpop.f32.mrf.mxu3  ;;  %v4967_v6 = vsel %vm4707_vm5, %v4661_v43, -inf }
 0x785   : > { %v4962_v26 = vmax.f32 %v4960_v61, %v4961_v59  ;;  %v13920_v61 = vadd.f32 %v13791_v29, %v13861_v62 }
 0x789   : > { %v4317_v25 = vpop.f32.mrf.mxu0 }
 0x78a   : > { %v4318_v39 = vadd.f32 %v13791_v29, %v4317_v25 }
 0x78d   : > { %v4427_v60 = vpop.f32.mrf.mxu1 }
 0x78e   : > { %v4428_v51 = vadd.f32 %v4427_v60, %v4315_v13 }
 0x78f   : > { %v4091_v46 = vpop.permute.xlu0 %4090 }
 0x790   : > { %6807 = vmatmul.msk.f32.gmra.mxu2 %vm4172_vm3, %v4091_v46  ;;  %v4162_v57 = vsel %vm15780_vm4, %v17123_v53, %v4091_v46  ;;  %vm5954_vm4 = vcmask 613376  }
 0x791   : > { %4444 = vmatmul.f32.gmra.mxu1 %v4162_v57  ;;  %v4320_v52 = vpop.f32.mrf.mxu0 }
 0x792   : > { %v4540_v8 = vpop.f32.mrf.mxu2  ;;  %v4321_v7 = vadd.f32 %v13791_v29, %v4320_v52 }
 0x793   : > { %v4541_v35 = vadd.f32 %v4540_v8, %v4428_v51  ;;  %v4968_v8 = vrot.slane %v4967_v6, 4  ;;  %v4936_v51 = vmax.f32 %v4934_v58, %v4935_v32 }
 0x795   : > { %v4430_v44 = vpop.f32.mrf.mxu1  ;;  %v4598_v57 = vmax.f32 %v4541_v35, 0.0  ;;  %v4937_v58 = vrot.slane %v4936_v51, 1 }
 0x796   : > { %v4431_v3 = vadd.f32 %v4430_v44, %v4318_v39  ;;  %v13907_v39 = vadd.f32 %v13791_v29, %v13842_v42 }
 0x797   : > { %v4662_v25 = vrot.slane %v4598_v57, 4  ;;  %v4974_v60 = vsel %vm4707_vm5, %v4598_v57, -inf  ;;  %v13916_v57 = vadd.f32 %v13791_v29, %v13853_v0  ;;  %v4938_v59 = vmax.f32 %v4936_v51, %v4937_v58 }
 0x798   : > { %6808 = vmatmul.msk.f32.gmra.mxu2 %vm4172_vm3, %v13577_v33  ;;  %v4309_v33 = vadd.f32 %v13791_v29, %v4308_v30  ;;  %v4975_v55 = vrot.slane %v4974_v60, 4  ;;  %vm17124_vm3 = vcmask 1043456  }
 0x799   : > { %v4323_v31 = vpop.f32.mrf.mxu0  ;;  %v4981_v44 = vsel %vm4707_vm5, %v4662_v25, -inf  ;;  %vm17125_vm13 = vmmov %vm17124_vm3 }
 0x79a   : > { %v4422_v47 = vadd.f32 %v4421_v23, %v4309_v33  ;;  %v4543_v15 = vpop.f32.mrf.mxu2  ;;  %v4941_v33 = vmax.f32 %v4939_v4, %v4940_v21  ;;  %vm17126_vm2 = vmmov %vm17124_vm3 }
 0x79b   : > { %v4544_v17 = vadd.f32 %v4543_v15, %v4431_v3  ;;  %v4969_v15 = vmax.f32 %v4967_v6, %v4968_v8  ;;  %vm17127_vm6 = vmmov %vm17126_vm2 }
 0x79c   : > { %v4535_v28 = vadd.f32 %v4534_v22, %v4422_v47  ;;  %v4324_v47 = vadd.f32 %v13791_v29, %v4323_v31  ;;  %v4942_v34 = vrot.slane %v4941_v33, 2  ;;  %vm17128_vm10 = vmmov %vm17126_vm2 }
 0x79d   : > { %v4599_v63 = vmax.f32 %v4544_v17, 0.0  ;;  %v4982_v17 = vrot.slane %v4981_v44, 4 }
 0x79e   : > { %v4596_v11 = vmax.f32 %v4535_v28, 0.0  ;;  %v4943_v54 = vmax.f32 %v4941_v33, %v4942_v34 }
 0x79f   : > { %v4663_v12 = vrot.slane %v4599_v63, 4  ;;  %v4988_v52 = vsel %vm4707_vm5, %v4599_v63, -inf  ;;  %v4970_v63 = vrot.slane %v4969_v15, 2 }
 0x7a0   : > { %v4660_v19 = vrot.slane %v4596_v11, 4  ;;  %v4946_v53 = vsel %vm4707_vm5, %v4596_v11, -inf  ;;  %v4989_v31 = vrot.slane %v4988_v52, 4  ;;  %v4944_v62 = vrot.slane %v4943_v54, 1 }
 0x7a1   : > { %v4947_v23 = vrot.slane %v4946_v53, 4  ;;  %v4326_v1 = vpop.f32.mrf.mxu0  ;;  %v4995_v35 = vsel %vm4707_vm5, %v4663_v12, -inf }
 0x7a2   : > { %v4953_v30 = vsel %vm4707_vm5, %v4660_v19, -inf  ;;  %v4976_v19 = vmax.f32 %v4974_v60, %v4975_v55  ;;  %v4996_v21 = vrot.slane %v4995_v35, 4  ;;  %v13923_v6 = vadd.f32 %v13791_v29, %v4326_v1 }
 0x7a3   : > { %v13883_v50 = vpop.f32.mrf.mxu3  ;;  %v4954_v56 = vrot.slane %v4953_v30, 4  ;;  %v4948_v28 = vmax.f32 %v4946_v53, %v4947_v23 }
 0x7a4   : > { %v4997_v12 = vmax.f32 %v4995_v35, %v4996_v21 }
 0x7a5   : > { %v4955_v10 = vmax.f32 %v4953_v30, %v4954_v56  ;;  %v4949_v43 = vrot.slane %v4948_v28, 2  ;;  %v4963_v30 = vrot.slane %v4962_v26, 2  ;;  %v4990_v56 = vmax.f32 %v4988_v52, %v4989_v31 }
 0x7a7   : > { %v4950_v25 = vmax.f32 %v4948_v28, %v4949_v43  ;;  %v4964_v8 = vmax.f32 %v4962_v26, %v4963_v30  ;;  %v4991_v28 = vrot.slane %v4990_v56, 2 }
 0x7a9   : > { %v4951_v1 = vrot.slane %v4950_v25, 1 }
 0x7ab   : > { %v4952_v58 = vmax.f32 %v4950_v25, %v4951_v1 }
 0x7bb   : > { %v13888_v48 = vpop.f32.mrf.mxu3 }
 0x7c4   : > { %v13893_v38 = vpop.f32.mrf.mxu3 }
 0x7cc   : > { %v4433_v46 = vpop.f32.mrf.mxu1  ;;  %v4564_v13 = vpop.f32.mrf.mxu3 }
 0x7cd   : > { %v4434_v18 = vadd.f32 %v4433_v46, %v4321_v7  ;;  %v4956_v46 = vrot.slane %v4955_v10, 2  ;;  %v4983_v7 = vmax.f32 %v4981_v44, %v4982_v17  ;;  %v4945_v17 = vmax.f32 %v4943_v54, %v4944_v62 }
 0x7cf   : > { %v4957_v60 = vmax.f32 %v4955_v10, %v4956_v46  ;;  %v4984_v52 = vrot.slane %v4983_v7, 2  ;;  %v4992_v46 = vmax.f32 %v4990_v56, %v4991_v28 }
 0x7d1   : > { %v4546_v22 = vpop.f32.mrf.mxu2  ;;  %v4958_v51 = vrot.slane %v4957_v60, 1  ;;  %v4985_v43 = vmax.f32 %v4983_v7, %v4984_v52  ;;  %v4993_v56 = vrot.slane %v4992_v46, 1 }
 0x7d2   : > { %v4547_v11 = vadd.f32 %v4546_v22, %v4434_v18  ;;  %v4977_v22 = vrot.slane %v4976_v19, 2  ;;  %v4565_v18 = vadd.f32 %v4564_v13, %v13871_v40  ;;  %v4965_v40 = vrot.slane %v4964_v8, 1 }
 0x7d3   : > { %v4998_v13 = vrot.slane %v4997_v12, 2  ;;  %v4959_v30 = vmax.f32 %v4957_v60, %v4958_v51  ;;  %v4986_v7 = vrot.slane %v4985_v43, 1 }
 0x7d4   : > { %v4600_v42 = vmax.f32 %v4547_v11, 0.0  ;;  %v13927_v55 = vpop.f32.mrf.mxu3  ;;  %v4329_v11 = vpop.f32.mrf.mxu0  ;;  %v4978_v44 = vmax.f32 %v4976_v19, %v4977_v22 }
 0x7d5   : > { %v13944_v25 = vsel %vm5156_vm7, %v4959_v30, -inf }
 0x7d6   : > { %v4664_v0 = vrot.slane %v4600_v42, 4  ;;  %v5002_v33 = vsel %vm4707_vm5, %v4600_v42, -inf  ;;  %v4979_v19 = vrot.slane %v4978_v44, 1 }
 0x7d7   : > { %v5003_v35 = vrot.slane %v5002_v33, 4 }
 0x7d8   : > { %v5009_v26 = vsel %vm4707_vm5, %v4664_v0, -inf }
 0x7d9   : > { %v5010_v42 = vrot.slane %v5009_v26, 4  ;;  %v5004_v0 = vmax.f32 %v5002_v33, %v5003_v35 }
 0x7db   : > { %v5011_v52 = vmax.f32 %v5009_v26, %v5010_v42 }
 0x7e0   : > { %v4436_v27 = vpop.f32.mrf.mxu1 }
 0x7e1   : > { %v4437_v3 = vadd.f32 %v4436_v27, %v4324_v47  ;;  %v4971_v47 = vmax.f32 %v4969_v15, %v4970_v63  ;;  %v4606_v15 = vmax.f32 %v4565_v18, 0.0  ;;  %v4966_v63 = vmax.f32 %v4964_v8, %v4965_v40  ;;  %v4570_v8 = vpop.f32.mrf.mxu3 }
 0x7e3   : > { %v4972_v31 = vrot.slane %v4971_v47, 1  ;;  %v5086_v22 = vsel %vm4707_vm5, %v4606_v15, -inf  ;;  %v4670_v18 = vrot.slane %v4606_v15, 4  ;;  %v5214_v33 = vsel %vm5156_vm7, %v4966_v63, -inf }
 0x7e4   : > { %v5087_v60 = vrot.slane %v5086_v22, 4  ;;  %v5012_v15 = vrot.slane %v5011_v52, 2 }
 0x7e5   : > { %v4549_v4 = vpop.f32.mrf.mxu2  ;;  %v4973_v54 = vmax.f32 %v4971_v47, %v4972_v31  ;;  %v4455_v47 = vadd.f32 %v13881_v9, %v13907_v39  ;;  %v5093_v1 = vsel %vm4707_vm5, %v4670_v18, -inf }
 0x7e6   : > { %v4550_v53 = vadd.f32 %v4549_v4, %v4437_v3  ;;  %v13933_v3 = vadd.f32 %v13791_v29, %v4329_v11  ;;  %v4980_v11 = vmax.f32 %v4978_v44, %v4979_v19  ;;  %v5005_v44 = vrot.slane %v5004_v0, 2 }
 0x7e7   : > { %v5088_v31 = vmax.f32 %v5086_v22, %v5087_v60  ;;  %v5094_v42 = vrot.slane %v5093_v1, 4 }
 0x7e8   : > { %v4601_v23 = vmax.f32 %v4550_v53, 0.0  ;;  %v13936_v53 = vsel %vm5156_vm7, %v4938_v59, -inf  ;;  %v13941_v59 = vsel %vm5156_vm7, %v4952_v58, -inf  ;;  %v13953_v40 = vsel %vm5156_vm7, %v4980_v11, -inf }
 0x7e9   : > { %v5006_v58 = vmax.f32 %v5004_v0, %v5005_v44  ;;  %v5229_v30 = vmax.f32 %v13941_v59, %v13953_v40  ;;  %v5089_v22 = vrot.slane %v5088_v31, 2  ;;  %v5095_v11 = vmax.f32 %v5093_v1, %v5094_v42 }
 0x7ea   : > { %v4665_v32 = vrot.slane %v4601_v23, 4  ;;  %v5016_v10 = vsel %vm4707_vm5, %v4601_v23, -inf  ;;  %v4999_v23 = vmax.f32 %v4997_v12, %v4998_v13  ;;  %v4994_v13 = vmax.f32 %v4992_v46, %v4993_v56 }
 0x7eb   : > { %v5017_v4 = vrot.slane %v5016_v10, 4  ;;  %v4461_v1 = vadd.f32 %v13888_v48, %v13916_v57 }
 0x7ec   : > { %v5023_v27 = vsel %vm4707_vm5, %v4665_v32, -inf  ;;  %v5220_v32 = vsel %vm5156_vm7, %v4945_v17, -inf  ;;  %v5215_v17 = vmax.f32 %v13936_v53, %v5214_v33  ;;  %v4458_v53 = vadd.f32 %v13883_v50, %v13912_v49 }
 0x7ed   : > { %v5024_v34 = vrot.slane %v5023_v27, 4  ;;  %v5018_v62 = vmax.f32 %v5016_v10, %v5017_v4  ;;  %v5221_v10 = vsel %vm5156_vm7, %v4973_v54, -inf  ;;  %v5216_v54 = vsel %vm5156_vm7, %v4994_v13, -inf }
 0x7ee   : > { %v5222_v4 = vmax.f32 %v5220_v32, %v5221_v10  ;;  %v4571_v56 = vadd.f32 %v4570_v8, %v4458_v53 }
 0x7ef   : > { %v5025_v21 = vmax.f32 %v5023_v27, %v5024_v34  ;;  %v5000_v27 = vrot.slane %v4999_v23, 1  ;;  %v5019_v51 = vrot.slane %v5018_v62, 2  ;;  %v4987_v34 = vmax.f32 %v4985_v43, %v4986_v7 }
 0x7f0   : > { %v4608_v13 = vmax.f32 %v4571_v56, 0.0 }
 0x7f1   : > { %v5026_v12 = vrot.slane %v5025_v21, 2  ;;  %v5001_v19 = vmax.f32 %v4999_v23, %v5000_v27  ;;  %v5020_v43 = vmax.f32 %v5018_v62, %v5019_v51  ;;  %v13960_v46 = vsel %vm5156_vm7, %v4987_v34, -inf }
 0x7f2   : > { %v5236_v49 = vmax.f32 %v13944_v25, %v13960_v46  ;;  %v13970_v27 = vmax.f32 %v5088_v31, %v5089_v22  ;;  %v5096_v34 = vrot.slane %v5095_v11, 2  ;;  %v4464_v31 = vadd.f32 %v13893_v38, %v13920_v61 }
 0x7f3   : > { %v5027_v9 = vmax.f32 %v5025_v21, %v5026_v12  ;;  %v5013_v21 = vmax.f32 %v5011_v52, %v5012_v15  ;;  %v5223_v18 = vsel %vm5156_vm7, %v5001_v19, -inf  ;;  %v5021_v59 = vrot.slane %v5020_v43, 1 }
 0x7f4   : > { %v4439_v28 = vpop.f32.mrf.mxu1  ;;  %v5217_v52 = vmax.f32 %v5215_v17, %v5216_v54  ;;  %v4672_v46 = vrot.slane %v4608_v13, 4 }
 0x7f5   : > { %v4440_v26 = vadd.f32 %v4439_v28, %v13923_v6  ;;  %v4568_v6 = vadd.f32 %v13927_v55, %v4455_v47  ;;  %v5028_v23 = vrot.slane %v5027_v9, 1  ;;  %v5007_v55 = vrot.slane %v5006_v58, 1  ;;  %v4573_v28 = vpop.f32.mrf.mxu3 }
 0x7f6   : > { %v5014_v12 = vrot.slane %v5013_v21, 1  ;;  %v5224_v47 = vmax.f32 %v5222_v4, %v5223_v18  ;;  %v5022_v15 = vmax.f32 %v5020_v43, %v5021_v59  ;;  %v5097_v43 = vmax.f32 %v5095_v11, %v5096_v34 }
 0x7f7   : > { %v4607_v7 = vmax.f32 %v4568_v6, 0.0  ;;  %v5029_v44 = vmax.f32 %v5027_v9, %v5028_v23  ;;  %v5008_v8 = vmax.f32 %v5006_v58, %v5007_v55  ;;  %v5091_v9 = vrot.slane %v13970_v27, 1 }
 0x7f8   : > { %v5114_v23 = vsel %vm4707_vm5, %v4608_v13, -inf  ;;  %v5121_v56 = vsel %vm4707_vm5, %v4672_v46, -inf }
 0x7f9   : > { %v4552_v35 = vpop.f32.mrf.mxu2  ;;  %v4671_v40 = vrot.slane %v4607_v7, 4  ;;  %v5100_v48 = vsel %vm4707_vm5, %v4607_v7, -inf  ;;  %v5225_v57 = vsel %vm5156_vm7, %v5029_v44, -inf  ;;  %v5230_v4 = vsel %vm5156_vm7, %v5008_v8, -inf }
 0x7fa   : > { %v4553_v39 = vadd.f32 %v4552_v35, %v4440_v26  ;;  %v13983_v38 = vmax.f32 %v5224_v47, %v5225_v57  ;;  %v5101_v22 = vrot.slane %v5100_v48, 4 }
 0x7fc   : > { %v4602_v63 = vmax.f32 %v4553_v39, 0.0  ;;  %v4442_v10 = vpop.f32.mrf.mxu1  ;;  %v5015_v39 = vmax.f32 %v5013_v21, %v5014_v12  ;;  %v5231_v21 = vmax.f32 %v5229_v30, %v5230_v4  ;;  %v4332_v12 = vpop.f32.mrf.mxu0  ;;  %v5102_v47 = vmax.f32 %v5100_v48, %v5101_v22 }
 0x7fd   : > { %v4443_v17 = vadd.f32 %v4442_v10, %v13933_v3  ;;  %v5218_v3 = vsel %vm5156_vm7, %v5022_v15, -inf }
 0x7fe   : > { %v4666_v32 = vrot.slane %v4602_v63, 4  ;;  %v5030_v0 = vsel %vm4707_vm5, %v4602_v63, -inf  ;;  %v5107_v63 = vsel %vm4707_vm5, %v4671_v40, -inf  ;;  %v5237_v61 = vsel %vm5156_vm7, %v5015_v39, -inf }
 0x7ff   : > { %v5031_v62 = vrot.slane %v5030_v0, 4  ;;  %v13987_v18 = vmax.f32 %v5217_v52, %v5218_v3  ;;  %v5108_v7 = vrot.slane %v5107_v63, 4  ;;  %v5098_v52 = vrot.slane %v5097_v43, 1 }
 0x800   : > { %v5037_v60 = vsel %vm4707_vm5, %v4666_v32, -inf  ;;  %v4574_v32 = vadd.f32 %v4573_v28, %v4461_v1  ;;  %v5122_v1 = vrot.slane %v5121_v56, 4 }
 0x801   : > { %v5032_v33 = vmax.f32 %v5030_v0, %v5031_v62  ;;  %v5038_v50 = vrot.slane %v5037_v60, 4  ;;  %v4555_v35 = vpop.f32.mrf.mxu2  ;;  %v4576_v0 = vpop.f32.mrf.mxu3  ;;  %v5294_v28 = vsel %vm5285_vm15, %v13983_v38, %v13987_v18  ;;  %v5109_v34 = vmax.f32 %v5107_v63, %v5108_v7 }
 0x802   : > { %v4556_v6 = vadd.f32 %v4555_v35, %v4443_v17  ;;  %v4577_v30 = vadd.f32 %v4576_v0, %v4464_v31  ;;  %v4609_v8 = vmax.f32 %v4574_v32, 0.0  ;;  %v5103_v17 = vrot.slane %v5102_v47, 2 }
 0x803   : > { %v5033_v51 = vrot.slane %v5032_v33, 2  ;;  %v5039_v26 = vmax.f32 %v5037_v60, %v5038_v50  ;;  %v5238_v60 = vmax.f32 %v5236_v49, %v5237_v61  ;;  %v5123_v48 = vmax.f32 %v5121_v56, %v5122_v1 }
 0x804   : > { %v4603_v62 = vmax.f32 %v4556_v6, 0.0  ;;  %v4610_v15 = vmax.f32 %v4577_v30, 0.0  ;;  %v4673_v57 = vrot.slane %v4609_v8, 4  ;;  %v5110_v63 = vrot.slane %v5109_v34, 2 }
 0x805   : > { %v5034_v19 = vmax.f32 %v5032_v33, %v5033_v51  ;;  %v5040_v25 = vrot.slane %v5039_v26, 2  ;;  %v5115_v33 = vrot.slane %v5114_v23, 4  ;;  %v14015_v61 = vmax.f32 %v5102_v47, %v5103_v17 }
 0x806   : > { %v4667_v51 = vrot.slane %v4603_v62, 4  ;;  %v5044_v35 = vsel %vm4707_vm5, %v4603_v62, -inf  ;;  %v4674_v3 = vrot.slane %v4610_v15, 4  ;;  %v5135_v22 = vsel %vm4707_vm5, %v4673_v57, -inf }
 0x807   : > { %v5035_v42 = vrot.slane %v5034_v19, 1  ;;  %v5041_v58 = vmax.f32 %v5039_v26, %v5040_v25  ;;  %v4333_v26 = vadd.f32 %v13791_v29, %v4332_v12  ;;  %v5116_v13 = vmax.f32 %v5114_v23, %v5115_v33 }
 0x808   : > { %v5099_v25 = vmax.f32 %v5097_v43, %v5098_v52  ;;  %v5128_v29 = vsel %vm4707_vm5, %v4609_v8, -inf  ;;  %v5051_v4 = vsel %vm4707_vm5, %v4667_v51, -inf  ;;  %v5142_v23 = vsel %vm4707_vm5, %v4610_v15, -inf }
 0x809   : > { %v5036_v54 = vmax.f32 %v5034_v19, %v5035_v42  ;;  %v5042_v53 = vrot.slane %v5041_v58, 1  ;;  %v5092_v19 = vmax.f32 %v13970_v27, %v5091_v9  ;;  %v5117_v46 = vrot.slane %v5116_v13, 2 }
 0x80a   : > { %v5129_v27 = vrot.slane %v5128_v29, 4  ;;  %v5052_v9 = vrot.slane %v5051_v4, 4  ;;  %v5149_v7 = vsel %vm4707_vm5, %v4674_v3, -inf  ;;  %v5136_v12 = vrot.slane %v5135_v22, 4 }
 0x80b   : > { %v5043_v11 = vmax.f32 %v5041_v58, %v5042_v53  ;;  %v5232_v55 = vsel %vm5156_vm7, %v5036_v54, -inf  ;;  %v5045_v58 = vrot.slane %v5044_v35, 4  ;;  %v14010_v54 = vsel %vm5156_vm7, %v5092_v19, -inf }
 0x80c   : > { %v13991_v59 = vmax.f32 %v5231_v21, %v5232_v55  ;;  %v14013_v53 = vsel %vm5156_vm7, %v5099_v25, -inf  ;;  %v5124_v21 = vrot.slane %v5123_v48, 2  ;;  %v14020_v55 = vmax.f32 %v5109_v34, %v5110_v63 }
 0x80d   : > { %v5239_v50 = vsel %vm5156_vm7, %v5043_v11, -inf  ;;  %v5046_v32 = vmax.f32 %v5044_v35, %v5045_v58  ;;  %v5118_v62 = vmax.f32 %v5116_v13, %v5117_v46  ;;  %v5053_v33 = vmax.f32 %v5051_v4, %v5052_v9 }
 0x80e   : > { %v13997_v44 = vmax.f32 %v5238_v60, %v5239_v50  ;;  %v5295_v10 = vsel %vm5287_vm11, %v13991_v59, %v5294_v28  ;;  %v4445_v49 = vpop.f32.mrf.mxu1  ;;  %v5130_v60 = vmax.f32 %v5128_v29, %v5129_v27  ;;  %v5125_v50 = vmax.f32 %v5123_v48, %v5124_v21 }
 0x80f   : > { %v4446_v31 = vadd.f32 %v4445_v49, %v4333_v26  ;;  %v5143_v28 = vrot.slane %v5142_v23, 4  ;;  %v5105_v1 = vrot.slane %v14015_v61, 1  ;;  %v5150_v8 = vrot.slane %v5149_v7, 4 }
 0x810   : > { %v5296_v40 = vsel %vm5289_vm0, %v13997_v44, %v5295_v10  ;;  %v5047_v51 = vrot.slane %v5046_v32, 2  ;;  %v5112_v26 = vrot.slane %v14020_v55, 1  ;;  %v5119_v34 = vrot.slane %v5118_v62, 1 }
 0x811   : > { %v5310_v39 = vsel %vm4707_vm5, %v5296_v40, 0.0  ;;  %v5131_v15 = vrot.slane %v5130_v60, 2  ;;  %v5137_v35 = vmax.f32 %v5135_v22, %v5136_v12  ;;  %v5126_v25 = vrot.slane %v5125_v50, 1 }
 0x812   : > { %5311 = vadd.xlane.f32.xlu0 %v5310_v39  ;;  %v5054_v39 = vrot.slane %v5053_v33, 2  ;;  %v5144_v17 = vmax.f32 %v5142_v23, %v5143_v28  ;;  %v5151_v57 = vmax.f32 %v5149_v7, %v5150_v8  ;;  %v5048_v29 = vmax.f32 %v5046_v32, %v5047_v51 }
 0x813   : > { %v4558_v42 = vpop.f32.mrf.mxu2  ;;  %v5120_v58 = vmax.f32 %v5118_v62, %v5119_v34  ;;  %v5132_v46 = vmax.f32 %v5130_v60, %v5131_v15  ;;  %v5138_v3 = vrot.slane %v5137_v35, 2 }
 0x814   : > { %v4559_v6 = vadd.f32 %v4558_v42, %v4446_v31  ;;  %v5055_v27 = vmax.f32 %v5053_v33, %v5054_v39  ;;  %v5152_v7 = vrot.slane %v5151_v57, 2  ;;  %v5049_v32 = vrot.slane %v5048_v29, 1 }
 0x815   : > { %v5258_v28 = vsel %vm5156_vm7, %v5120_v58, -inf  ;;  %v5133_v60 = vrot.slane %v5132_v46, 1 }
 0x816   : > { %v4604_v43 = vmax.f32 %v4559_v6, 0.0  ;;  %v5050_v15 = vmax.f32 %v5048_v29, %v5049_v32 }
 0x817   : > { %v5134_v58 = vmax.f32 %v5132_v46, %v5133_v60  ;;  %v5309_v60 = vpop.xlane.xlu2 %5308 }
 0x818   : > { %v4668_v0 = vrot.slane %v4604_v43, 4  ;;  %v5058_v11 = vsel %vm4707_vm5, %v4604_v43, -inf }
 0x819   : > { %v5059_v56 = vrot.slane %v5058_v11, 4 }
 0x81a   : > { %v5065_v30 = vsel %vm4707_vm5, %v4668_v0, -inf  ;;  %v5127_v0 = vmax.f32 %v5125_v50, %v5126_v25  ;;  %v5106_v25 = vmax.f32 %v14015_v61, %v5105_v1 }
 0x81b   : > { %v5060_v52 = vmax.f32 %v5058_v11, %v5059_v56  ;;  %v5066_v47 = vrot.slane %v5065_v30, 4  ;;  %v4561_v10 = vpop.f32.mrf.mxu2  ;;  %v5145_v11 = vrot.slane %v5144_v17, 2 }
 0x81c   : > { %v4562_v49 = vadd.f32 %v4561_v10, %v13865_v37 }
 0x81d   : > { %v5061_v40 = vrot.slane %v5060_v52, 2  ;;  %v5067_v13 = vmax.f32 %v5065_v30, %v5066_v47  ;;  %v5056_v47 = vrot.slane %v5055_v27, 1  ;;  %v5146_v50 = vmax.f32 %v5144_v17, %v5145_v11 }
 0x81e   : > { %v4605_v19 = vmax.f32 %v4562_v49, 0.0 }
 0x81f   : > { %v5062_v31 = vmax.f32 %v5060_v52, %v5061_v40  ;;  %v5068_v48 = vrot.slane %v5067_v13, 2  ;;  %v5139_v52 = vmax.f32 %v5137_v35, %v5138_v3  ;;  %v5265_v40 = vsel %vm5156_vm7, %v5127_v0, -inf }
 0x820   : > { %v4669_v4 = vrot.slane %v4605_v19, 4  ;;  %v5072_v42 = vsel %vm4707_vm5, %v4605_v19, -inf  ;;  %v5147_v17 = vrot.slane %v5146_v50, 1 }
 0x821   : > { %v5063_v37 = vrot.slane %v5062_v31, 1  ;;  %v5069_v6 = vmax.f32 %v5067_v13, %v5068_v48  ;;  %v5073_v63 = vrot.slane %v5072_v42, 4  ;;  %v5153_v13 = vmax.f32 %v5151_v57, %v5152_v7 }
 0x822   : > { %v5079_v9 = vsel %vm4707_vm5, %v4669_v4, -inf }
 0x823   : > { %v5064_v43 = vmax.f32 %v5062_v31, %v5063_v37  ;;  %v5070_v21 = vrot.slane %v5069_v6, 1  ;;  %v5074_v22 = vmax.f32 %v5072_v42, %v5073_v63  ;;  %v5080_v23 = vrot.slane %v5079_v9, 4 }
 0x824   : > { %v5140_v31 = vrot.slane %v5139_v52, 1  ;;  %v5113_v42 = vmax.f32 %v14020_v55, %v5112_v26  ;;  %v5154_v37 = vrot.slane %v5153_v13, 1  ;;  %v5244_v63 = vsel %vm5156_vm7, %v5106_v25, -inf }
 0x825   : > { %v5071_v56 = vmax.f32 %v5069_v6, %v5070_v21  ;;  %v5255_v12 = vsel %vm5156_vm7, %v5064_v43, -inf  ;;  %v5075_v62 = vrot.slane %v5074_v22, 2  ;;  %v5081_v30 = vmax.f32 %v5079_v9, %v5080_v23 }
 0x826   : > { %v5257_v33 = vmax.f32 %v5255_v12, %v14010_v54  ;;  %v5057_v54 = vmax.f32 %v5055_v27, %v5056_v47  ;;  %v5141_v3 = vmax.f32 %v5139_v52, %v5140_v31  ;;  %v5148_v27 = vmax.f32 %v5146_v50, %v5147_v17  ;;  %v5306_v52 = vpop.xlane.xlu1 %5305 }
 0x827   : > { %v5262_v10 = vsel %vm5156_vm7, %v5071_v56, -inf  ;;  %v5076_v8 = vmax.f32 %v5074_v22, %v5075_v62  ;;  %v5082_v51 = vrot.slane %v5081_v30, 2  ;;  %v5251_v55 = vsel %vm5156_vm7, %v5113_v42, -inf }
 0x828   : > { %v5259_v49 = vmax.f32 %v5257_v33, %v5258_v28  ;;  %v5264_v34 = vmax.f32 %v5262_v10, %v14013_v53  ;;  %v5241_v53 = vsel %vm5156_vm7, %v5050_v15, -inf  ;;  %v5248_v61 = vsel %vm5156_vm7, %v5057_v54, -inf }
 0x829   : > { %v5077_v39 = vrot.slane %v5076_v8, 1  ;;  %v5083_v19 = vmax.f32 %v5081_v30, %v5082_v51  ;;  %v5246_v26 = vsel %vm5156_vm7, %v5134_v58, -inf  ;;  %v5155_v46 = vmax.f32 %v5153_v13, %v5154_v37 }
 0x82a   : > { %v5266_v35 = vmax.f32 %v5264_v34, %v5265_v40  ;;  %v5253_v23 = vsel %vm5156_vm7, %v5141_v3, -inf  ;;  %v5260_v0 = vsel %vm5156_vm7, %v5148_v27, -inf  ;;  %v5323_v47 = vsel %vm17124_vm3, %v5309_v60, 0.0  ;;  %vm17129_vm3 = vmmov %vm17126_vm2 }
 0x82b   : > { %v5078_v48 = vmax.f32 %v5076_v8, %v5077_v39  ;;  %v5084_v4 = vrot.slane %v5083_v19, 1  ;;  %v14050_v7 = vmax.f32 %v5259_v49, %v5260_v0  ;;  %v5267_v32 = vsel %vm5156_vm7, %v5155_v46, -inf }
 0x82c   : > { %v14053_v56 = vmax.f32 %v5266_v35, %v5267_v32  ;;  %v5316_v10 = vsel %vm17125_vm13, %v5306_v52, 0.0  ;;  %v5324_v51 = vrot.slane %v5323_v47, 4  ;;  %v7909_v34 = vmov 80.0   ;;  %vm17130_vm13 = vmmov %vm17126_vm2 }
 0x82d   : > { %v5085_v6 = vmax.f32 %v5083_v19, %v5084_v4  ;;  %v5242_v57 = vsel %vm5156_vm7, %v5078_v48, -inf  ;;  %v5317_v50 = vrot.slane %v5316_v10, 4  ;;  %7704 = vrcp.f32 %v7909_v34 }
 0x82e   : > { %v5243_v29 = vmax.f32 %v5241_v53, %v5242_v57  ;;  %v5325_v40 = vadd.f32 %v5324_v51, %v5323_v47 }
 0x82f   : > { %v5249_v1 = vsel %vm5156_vm7, %v5085_v6, -inf  ;;  %v5318_v13 = vadd.f32 %v5317_v50, %v5316_v10 }
 0x830   : > { %v5245_v9 = vmax.f32 %v5243_v29, %v5244_v63  ;;  %v5250_v43 = vmax.f32 %v5248_v61, %v5249_v1  ;;  %v5326_v19 = vrot.slane %v5325_v40, 2 }
 0x831   : > { %v5319_v25 = vrot.slane %v5318_v13, 2 }
 0x832   : > { %v14044_v21 = vmax.f32 %v5245_v9, %v5246_v26  ;;  %v5252_v22 = vmax.f32 %v5250_v43, %v5251_v55  ;;  %v5327_v54 = vadd.f32 %v5326_v19, %v5325_v40 }
 0x833   : > { %v7705_v39 = vpop.eup %7704  ;;  %v5320_v48 = vadd.f32 %v5319_v25, %v5318_v13 }
 0x834   : > { %v14048_v11 = vmax.f32 %v5252_v22, %v5253_v23  ;;  %v5348_v31 = vmul.f32 80.0, %v7705_v39  ;;  %v5328_v37 = vrot.slane %v5327_v54, 1  ;;  %vm5352_vm14 = vweird.f32 %v7705_v39 }
 0x835   : > { %v5321_v6 = vrot.slane %v5320_v48, 1 }
 0x836   : > { %v5297_v12 = vsel %vm5285_vm15, %v14048_v11, %v14044_v21  ;;  %v5349_v58 = vsub.f32 1.0, %v5348_v31  ;;  %v5329_v3 = vadd.f32 %v5328_v37, %v5327_v54 }
 0x837   : > { %v5298_v62 = vsel %vm5287_vm11, %v14050_v7, %v5297_v12  ;;  %v5322_v1 = vadd.f32 %v5321_v6, %v5320_v48 }
 0x838   : > { %v5299_v30 = vsel %vm5289_vm0, %v14053_v56, %v5298_v62  ;;  %v5350_v63 = vmul.f32 %v7705_v39, %v5349_v58 }
 0x839   : > { %v5313_v28 = vsel %vm4707_vm5, %v5299_v30, 0.0  ;;  %v5344_v55 = vadd.f32 %v5329_v3, %v5322_v1 }
 0x83a   : > { %5314 = vadd.xlane.f32.xlu2 %v5313_v28  ;;  %v5351_v43 = vadd.f32 %v7705_v39, %v5350_v63 }
 0x83c   : > { %v14067_v23 = vsel %vm5352_vm14, %v7705_v39, %v5351_v43 }
 0x885   : > { %v5312_v33 = vpop.xlane.xlu0 %5311 }
 0x886   : > { %v5330_v8 = vsel %vm17126_vm2, %v5312_v33, 0.0 }
 0x887   : > { %v5331_v49 = vrot.slane %v5330_v8, 4 }
 0x889   : > { %v5332_v15 = vadd.f32 %v5331_v49, %v5330_v8 }
 0x88b   : > { %v5333_v35 = vrot.slane %v5332_v15, 2 }
 0x88d   : > { %v5334_v4 = vadd.f32 %v5333_v35, %v5332_v15 }
 0x88f   : > { %v5335_v57 = vrot.slane %v5334_v4, 1 }
 0x891   : > { %v5336_v27 = vadd.f32 %v5335_v57, %v5334_v4 }
 0x893   : > { %v5345_v46 = vadd.f32 %v5344_v55, %v5336_v27 }
 0x8ad   : > { %v5315_v42 = vpop.xlane.xlu2 %5314 }
 0x8ae   : > { %v5337_v17 = vsel %vm17127_vm6, %v5315_v42, 0.0 }
 0x8af   : > { %v5338_v53 = vrot.slane %v5337_v17, 4 }
 0x8b1   : > { %v5339_v29 = vadd.f32 %v5338_v53, %v5337_v17 }
 0x8b3   : > { %v5340_v61 = vrot.slane %v5339_v29, 2 }
 0x8b5   : > { %v5341_v9 = vadd.f32 %v5340_v61, %v5339_v29 }
 0x8b7   : > { %v5342_v26 = vrot.slane %v5341_v9, 1 }
 0x8b9   : > { %v5343_v22 = vadd.f32 %v5342_v26, %v5341_v9 }
 0x8bb   : > { %v5346_v0 = vadd.f32 %v5345_v46, %v5343_v22 }
 0x8bd   : > { %v5354_v32 = vmul.f32 %v14067_v23, %v5346_v0 }
 0x8bf   : > { %v14071_v12 = vsub.f32 %v13987_v18, %v5354_v32  ;;  %v14074_v62 = vsub.f32 %v13983_v38, %v5354_v32  ;;  %v14077_v30 = vsub.f32 %v13991_v59, %v5354_v32  ;;  %v14080_v28 = vsub.f32 %v13997_v44, %v5354_v32 }
 0x8c0   : > { %v14083_v60 = vsub.f32 %v13824_v41, %v5354_v32  ;;  %v14086_v52 = vsub.f32 %v13821_v16, %v5354_v32  ;;  %v14089_v33 = vsub.f32 %v13827_v5, %v5354_v32  ;;  %v14092_v18 = vsub.f32 %v13833_v2, %v5354_v32 }
 0x8c1   : > { %v5379_v38 = vmul.f32 %v14071_v12, %v14071_v12  ;;  %v5380_v59 = vmul.f32 %v14074_v62, %v14074_v62  ;;  %v5381_v44 = vmul.f32 %v14077_v30, %v14077_v30  ;;  %v5382_v41 = vmul.f32 %v14080_v28, %v14080_v28 }
 0x8c2   : > { %v5375_v16 = vmul.f32 %v14083_v60, %v14083_v60  ;;  %v5376_v5 = vmul.f32 %v14086_v52, %v14086_v52  ;;  %v5377_v2 = vmul.f32 %v14089_v33, %v14089_v33  ;;  %v5378_v47 = vmul.f32 %v14092_v18, %v14092_v18 }
 0x8c3   : > { %v5409_v10 = vsel %vm5285_vm15, %v5380_v59, %v5379_v38  ;;  %v14112_v8 = vsub.f32 %v13745_v45, %v5354_v32  ;;  %v14115_v51 = vsub.f32 %v13754_v24, %v5354_v32  ;;  %v14118_v50 = vsub.f32 %v13759_v36, %v5354_v32 }
 0x8c4   : > { %v5410_v49 = vsel %vm5287_vm11, %v5381_v44, %v5409_v10  ;;  %v5406_v34 = vsel %vm5285_vm15, %v5376_v5, %v5375_v16  ;;  %v14123_v40 = vsub.f32 %v13772_v20, %v5354_v32  ;;  %v14126_v13 = vsub.f32 %v14044_v21, %v5354_v32 }
 0x8c5   : > { %v5411_v15 = vsel %vm5289_vm0, %v5382_v41, %v5410_v49  ;;  %v5407_v45 = vsel %vm5287_vm11, %v5377_v2, %v5406_v34  ;;  %v5371_v24 = vmul.f32 %v14112_v8, %v14112_v8  ;;  %v5372_v36 = vmul.f32 %v14115_v51, %v14115_v51 }
 0x8c6   : > { %v5425_v39 = vsel %vm4707_vm5, %v5411_v15, 0.0  ;;  %v5408_v19 = vsel %vm5289_vm0, %v5378_v47, %v5407_v45  ;;  %v5373_v20 = vmul.f32 %v14118_v50, %v14118_v50  ;;  %v5374_v21 = vmul.f32 %v14123_v40, %v14123_v40  ;;  %v14170_v45 = vld [vmem:[#allocation3] sm:$0xff] }
 0x8c7   : > { %5426 = vadd.xlane.f32.xlu0 %v5425_v39  ;;  %v5422_v25 = vsel %vm4707_vm5, %v5408_v19, 0.0  ;;  %v5403_v35 = vsel %vm5285_vm15, %v5372_v36, %v5371_v24  ;;  %v14143_v31 = vsub.f32 %v14048_v11, %v5354_v32  ;;  %v14146_v54 = vsub.f32 %v14050_v7, %v5354_v32  ;;  %v14172_v24 = vld [vmem:[#allocation3 + $0x8] sm:$0xff] }
 0x8c8   : > { %5423 = vadd.xlane.f32.xlu2 %v5422_v25  ;;  %v5404_v48 = vsel %vm5287_vm11, %v5373_v20, %v5403_v35  ;;  %v5383_v4 = vmul.f32 %v14126_v13, %v14126_v13  ;;  %v14153_v58 = vsub.f32 %v14053_v56, %v5354_v32  ;;  %v5680_v19 = vrot.slane %v14170_v45, 1 }
 0x8c9   : > { %v5405_v42 = vsel %vm5289_vm0, %v5374_v21, %v5404_v48  ;;  %v5384_v17 = vmul.f32 %v14143_v31, %v14143_v31  ;;  %v5385_v11 = vmul.f32 %v14146_v54, %v14146_v54  ;;  %v5681_v20 = vrot.slane %v14172_v24, 1 }
 0x8ca   : > { %v5419_v7 = vsel %vm4707_vm5, %v5405_v42, 0.0  ;;  %v5386_v6 = vmul.f32 %v14153_v58, %v14153_v58 }
 0x8cb   : > { %5420 = vadd.xlane.f32.xlu1 %v5419_v7  ;;  %v5412_v37 = vsel %vm5285_vm15, %v5384_v17, %v5383_v4  ;;  %v5696_v17 = vrot.slane %v14170_v45, 2 }
 0x8cc   : > { %v5413_v53 = vsel %vm5287_vm11, %v5385_v11, %v5412_v37 }
 0x8cd   : > { %v5414_v57 = vsel %vm5289_vm0, %v5386_v6, %v5413_v53 }
 0x8ce   : > { %v5428_v56 = vsel %vm4707_vm5, %v5414_v57, 0.0  ;;  %v5491_v57 = vld [vmem:[%s15240_s3 + $0x4] sm:$0xf] }
 0x8d3   : > { %5429 = vadd.xlane.f32.xlu1 %v5428_v56 }
 0x8db   : > { %5686 = vrot.lane.b32.xlu0 %v5681_v20, %s7910_s29 }
 0x8e0   : > { %5684 = vrot.lane.b32.xlu2 %v5680_v19, %s7910_s29 }
 0x8e8   : > { %5700 = vrot.lane.b32.xlu2 %v5696_v17, %s7911_s16 }
 0x93a   : > { %v5427_v29 = vpop.xlane.xlu0 %5426 }
 0x93b   : > { %v5445_v63 = vsel %vm17128_vm10, %v5427_v29, 0.0  ;;  %v5424_v3 = vpop.xlane.xlu2 %5423  ;;  %v5543_v29 = vld [vmem:[%s15241_s4 + $0x4] sm:$0xf] }
 0x93c   : > { %v5446_v61 = vrot.slane %v5445_v63, 4  ;;  %v5438_v1 = vsel %vm17129_vm3, %v5424_v3, 0.0  ;;  %v5501_v3 = vrot.slane %v5491_v57, 1  ;;  %vm5906_vm3 = vcmask 203776  }
 0x93d   : > { %v5439_v27 = vrot.slane %v5438_v1, 4 }
 0x93e   : > { %v5421_v9 = vpop.xlane.xlu1 %5420  ;;  %v5447_v26 = vadd.f32 %v5446_v61, %v5445_v63  ;;  %v5542_v61 = vld [vmem:[%s15241_s4] sm:$0xf] }
 0x93f   : > { %v5440_v43 = vadd.f32 %v5439_v27, %v5438_v1  ;;  %v5431_v55 = vsel %vm17130_vm13, %v5421_v9, 0.0  ;;  %v5502_v1 = vrot.slane %v5491_v57, 2  ;;  %v5503_v27 = vrot.slane %v5491_v57, 3 }
 0x940   : > { %v5432_v46 = vrot.slane %v5431_v55, 4  ;;  %v5448_v38 = vrot.slane %v5447_v26, 2  ;;  %v5553_v9 = vrot.slane %v5543_v29, 1  ;;  %vm5916_vm13 = vcmask 285696  }
 0x941   : > { %v5441_v22 = vrot.slane %v5440_v43, 2 }
 0x942   : > { %v5433_v0 = vadd.f32 %v5432_v46, %v5431_v55  ;;  %v5449_v2 = vadd.f32 %v5448_v38, %v5447_v26  ;;  %v14198_v55 = vld [vmem:[%s15240_s3 + $0x8] sm:$0xf]  ;;  %v5555_v46 = vrot.slane %v5543_v29, 3 }
 0x943   : > { %v5442_v32 = vadd.f32 %v5441_v22, %v5440_v43  ;;  %v5554_v43 = vrot.slane %v5543_v29, 2 }
 0x944   : > { %v5434_v59 = vrot.slane %v5433_v0, 2  ;;  %v5450_v36 = vrot.slane %v5449_v2, 1 }
 0x945   : > { %v5443_v44 = vrot.slane %v5442_v32, 1 }
 0x946   : > { %v5435_v41 = vadd.f32 %v5434_v59, %v5433_v0  ;;  %v5430_v16 = vpop.xlane.xlu1 %5429  ;;  %v5451_v35 = vadd.f32 %v5450_v36, %v5449_v2  ;;  %v14203_v0 = vld [vmem:[%s15241_s4 + $0x8] sm:$0xf]  ;;  %v5550_v59 = vrot.slane %v5542_v61, 1  ;;  %v5504_v2 = vrot.slane %v14198_v55, 1 }
 0x947   : > { %v5452_v5 = vsel %vm17126_vm2, %v5430_v16, 0.0  ;;  %v5444_v49 = vadd.f32 %v5443_v44, %v5442_v32  ;;  %v5551_v44 = vrot.slane %v5542_v61, 2  ;;  %v5558_v36 = vrot.slane %v14203_v0, 3 }
 0x948   : > { %v5436_v47 = vrot.slane %v5435_v41, 1  ;;  %v5453_v10 = vrot.slane %v5452_v5, 4  ;;  %vm17132_vm2 = vcmask 1044480  }
 0x94a   : > { %v5437_v34 = vadd.f32 %v5436_v47, %v5435_v41  ;;  %v5454_v15 = vadd.f32 %v5453_v10, %v5452_v5  ;;  %v14208_v41 = vld [vmem:[%s15240_s3 + $0xc] sm:$0xf]  ;;  %v5552_v5 = vrot.slane %v5542_v61, 3  ;;  %v5505_v47 = vrot.slane %v14198_v55, 2 }
 0x94b   : > { %v5506_v10 = vrot.slane %v14198_v55, 3  ;;  %v5508_v19 = vrot.slane %v14208_v41, 2 }
 0x94c   : > { %v5455_v39 = vrot.slane %v5454_v15, 2  ;;  %v5459_v21 = vadd.f32 %v5444_v49, %v5437_v34  ;;  %v5556_v49 = vrot.slane %v14203_v0, 1  ;;  %v5557_v34 = vrot.slane %v14203_v0, 2 }
 0x94e   : > { %v5456_v25 = vadd.f32 %v5455_v39, %v5454_v15  ;;  %v5460_v4 = vadd.f32 %v5459_v21, %v5451_v35  ;;  %v5507_v39 = vrot.slane %v14208_v41, 1 }
 0x950   : > { %v5457_v48 = vrot.slane %v5456_v25, 1 }
 0x952   : > { %v5458_v42 = vadd.f32 %v5457_v48, %v5456_v25 }
 0x954   : > { %v5461_v11 = vadd.f32 %v5460_v4, %v5458_v42 }
 0x956   : > { %v5462_v7 = vmul.f32 %v5461_v11, %v14067_v23  ;;  %v5490_v23 = vld [vmem:[%s15240_s3] sm:$0xf] }
 0x957   : > { %v5498_v22 = vrot.slane %v5490_v23, 1  ;;  %v5499_v32 = vrot.slane %v5490_v23, 2  ;;  %v5500_v38 = vrot.slane %v5490_v23, 3 }
 0x958   : > { %v5463_v37 = vadd.f32 1e-05, %v5462_v7 }
 0x95a   : > { %7706 = vrsqrt.f32 %v5463_v37  ;;  %vm5470_vm14 = vweird.f32 %v5463_v37 }
 0x960   : > { %v7707_v53 = vpop.eup %7706 }
 0x961   : > { %v5465_v6 = vmul.f32 %v7707_v53, %v5463_v37  ;;  %vm5471_vm6 = vweird.f32 %v7707_v53 }
 0x962   : > { %vm5472_vm10 = vmor %vm5470_vm14, %vm5471_vm6  ;;  %vm5925_vm6 = vcmask 367616   ;;  %vm15782_vm14 = vcmask 408576  }
 0x963   : > { %v5466_v56 = vmul.f32 %v7707_v53, %v5465_v6 }
 0x965   : > { %v5467_v63 = vmul.f32 0.5, %v5466_v56 }
 0x967   : > { %v5468_v26 = vsub.f32 1.5, %v5467_v63 }
 0x969   : > { %v5469_v16 = vmul.f32 %v7707_v53, %v5468_v26 }
 0x96b   : > { %v5473_v15 = vsel %vm5472_vm10, %v7707_v53, %v5469_v16  ;;  %vm5935_vm10 = vcmask 449536  }
 0x96c   : > { %v5478_v21 = vmul.f32 %v5473_v15, %v14083_v60  ;;  %v5479_v25 = vmul.f32 %v5473_v15, %v14086_v52  ;;  %v5480_v35 = vmul.f32 %v5473_v15, %v14089_v33  ;;  %v5481_v48 = vmul.f32 %v5473_v15, %v14092_v18  ;;  %v14229_v60 = vld [vmem:[%s15241_s4 + $0xc] sm:$0xf] }
 0x96d   : > { %v5474_v4 = vmul.f32 %v5473_v15, %v14112_v8  ;;  %v5475_v42 = vmul.f32 %v5473_v15, %v14115_v51  ;;  %v5476_v17 = vmul.f32 %v5473_v15, %v14118_v50  ;;  %v5477_v11 = vmul.f32 %v5473_v15, %v14123_v40 }
 0x96e   : > { %v5530_v7 = vmul.f32 %v5491_v57, %v5478_v21  ;;  %v5531_v37 = vmul.f32 %v5501_v3, %v5479_v25  ;;  %v5532_v53 = vmul.f32 %v5502_v1, %v5480_v35  ;;  %v5533_v6 = vmul.f32 %v5503_v27, %v5481_v48 }
 0x96f   : > { %v5526_v52 = vmul.f32 %v5490_v23, %v5474_v4  ;;  %v5527_v33 = vmul.f32 %v5498_v22, %v5475_v42  ;;  %v5528_v18 = vmul.f32 %v5499_v32, %v5476_v17  ;;  %v5529_v56 = vmul.f32 %v5500_v38, %v5477_v11 }
 0x970   : > { %v5583_v8 = vadd.f32 %v5553_v9, %v5531_v37  ;;  %v5584_v63 = vadd.f32 %v5554_v43, %v5532_v53  ;;  %v5585_v51 = vadd.f32 %v5555_v46, %v5533_v6  ;;  %v5509_v50 = vrot.slane %v14208_v41, 3 }
 0x971   : > { %v5579_v26 = vadd.f32 %v5550_v59, %v5527_v33  ;;  %v5580_v40 = vadd.f32 %v5551_v44, %v5528_v18  ;;  %v5581_v57 = vadd.f32 %v5552_v5, %v5529_v56  ;;  %v5559_v3 = vrot.slane %v14229_v60, 1 }
 0x972   : > { %v5582_v1 = vadd.f32 %v5543_v29, %v5530_v7  ;;  %v5624_v27 = vrot.slane %v5583_v8, 7  ;;  %v5626_v16 = vrot.slane %v5584_v63, 6  ;;  %v5578_v21 = vadd.f32 %v5542_v61, %v5526_v52 }
 0x973   : > { %v5628_v25 = vrot.slane %v5585_v51, 5  ;;  %v5618_v35 = vrot.slane %v5579_v26, 7  ;;  %v5620_v23 = vrot.slane %v5580_v40, 6  ;;  %v5622_v22 = vrot.slane %v5581_v57, 5 }
 0x974   : > { %v5625_v32 = vsel %vm5285_vm15, %v5624_v27, %v5582_v1  ;;  %v5482_v9 = vmul.f32 %v5473_v15, %v14071_v12  ;;  %v5483_v43 = vmul.f32 %v5473_v15, %v14074_v62  ;;  %v5484_v46 = vmul.f32 %v5473_v15, %v14077_v30 }
 0x975   : > { %v5627_v38 = vsel %vm5287_vm11, %v5626_v16, %v5625_v32  ;;  %v5619_v59 = vsel %vm5285_vm15, %v5618_v35, %v5578_v21  ;;  %v5485_v29 = vmul.f32 %v5473_v15, %v14080_v28  ;;  %v5486_v61 = vmul.f32 %v5473_v15, %v14126_v13 }
 0x976   : > { %v5629_v44 = vsel %vm5289_vm0, %v5628_v25, %v5627_v38  ;;  %v5621_v5 = vsel %vm5287_vm11, %v5620_v23, %v5619_v59  ;;  %v5534_v48 = vmul.f32 %v14198_v55, %v5482_v9  ;;  %v5535_v4 = vmul.f32 %v5504_v2, %v5483_v43 }
 0x977   : > { %5648 = vst.msk [vmem:[#allocation3 + $0x1a] sm:$0xf] %vm4707_vm5, %v5629_v44  ;;  %v5623_v12 = vsel %vm5289_vm0, %v5622_v22, %v5621_v5  ;;  %v5536_v62 = vmul.f32 %v5505_v47, %v5484_v46  ;;  %v5537_v30 = vmul.f32 %v5506_v10, %v5485_v29  ;;  %v5487_v42 = vmul.f32 %v5473_v15, %v14143_v31 }
 0x978   : > { %5647 = vst.msk [vmem:[#allocation3 + $0x12] sm:$0xf] %vm4707_vm5, %v5623_v12  ;;  %v5587_v28 = vadd.f32 %v5556_v49, %v5535_v4  ;;  %v5488_v13 = vmul.f32 %v5473_v15, %v14146_v54  ;;  %v5489_v17 = vmul.f32 %v5473_v15, %v14153_v58  ;;  %v5560_v11 = vrot.slane %v14229_v60, 2  ;;  %v14375_v4 = vpop.permute.xlu2 %5684  ;;  %v5658_v12 = vld [vmem:[#allocation3 + $0x38] sm:$0xff] }
 0x979   : > { %v5586_v55 = vadd.f32 %v14203_v0, %v5534_v48  ;;  %v5588_v2 = vadd.f32 %v5557_v34, %v5536_v62  ;;  %v5589_v7 = vadd.f32 %v5558_v36, %v5537_v30  ;;  %v5561_v37 = vrot.slane %v14229_v60, 3 }
 0x97a   : > { %v5630_v53 = vrot.slane %v5587_v28, 7  ;;  %v5539_v47 = vmul.f32 %v5507_v39, %v5487_v42  ;;  %v5540_v10 = vmul.f32 %v5508_v19, %v5488_v13  ;;  %v5541_v6 = vmul.f32 %v5509_v50, %v5489_v17 }
 0x97b   : > { %v5632_v31 = vrot.slane %v5588_v2, 6  ;;  %v5538_v52 = vmul.f32 %v14208_v41, %v5486_v61  ;;  %v5634_v54 = vrot.slane %v5589_v7, 5  ;;  %v5729_v1 = vrot.slane %v14172_v24, 4  ;;  %v14361_v61 = vld [vmem:[#allocation3 + $0x30] sm:$0xff]  ;;  %v14406_v7 = vpop.permute.xlu0 %5686 }
 0x97c   : > { %v5631_v49 = vsel %vm5285_vm15, %v5630_v53, %v5586_v55  ;;  %v5591_v33 = vadd.f32 %v5559_v3, %v5539_v47  ;;  %v5592_v58 = vadd.f32 %v5560_v11, %v5540_v10  ;;  %v5593_v18 = vadd.f32 %v5561_v37, %v5541_v6 }
 0x97d   : > { %v5633_v15 = vsel %vm5287_vm11, %v5632_v31, %v5631_v49  ;;  %v5590_v8 = vadd.f32 %v14229_v60, %v5538_v52  ;;  %v5697_v60 = vrot.slane %v14172_v24, 2  ;;  %v5713_v27 = vrot.slane %v14172_v24, 3 }
 0x97e   : > { %v14256_v0 = vld [vmem:[#allocation3 + $0x18] sm:$0xff]  ;;  %v5635_v34 = vsel %vm5289_vm0, %v5634_v54, %v5633_v15  ;;  %v5636_v36 = vrot.slane %v5591_v33, 7  ;;  %v5638_v56 = vrot.slane %v5592_v58, 6  ;;  %v5640_v50 = vrot.slane %v5593_v18, 5 }
 0x97f   : > { %v14260_v39 = vrot.slane %v14256_v0, 2  ;;  %v14263_v19 = vrot.slane %v14256_v0, 1  ;;  %v14265_v41 = vld [vmem:[#allocation3 + $0x10] sm:$0xff]  ;;  %5649 = vst.msk [vmem:[#allocation3 + $0x22] sm:$0xf] %vm4707_vm5, %v5635_v34  ;;  %v5712_v16 = vrot.slane %v14170_v45, 3 }
 0x980   : > { %v14270_v63 = vrot.slane %v14265_v41, 1  ;;  %v5637_v51 = vsel %vm5285_vm15, %v5636_v36, %v5590_v8  ;;  %v14284_v57 = vrot.slane %v14265_v41, 3  ;;  %v14287_v3 = vrot.slane %v14265_v41, 2  ;;  %v14386_v42 = vpop.permute.xlu2 %5700 }
 0x981   : > { %5706 = vrot.lane.b32.xlu2 %v14260_v39, %s7911_s16  ;;  %5690 = vrot.lane.b32.xlu0 %v14263_v19, %s7910_s29  ;;  %v5639_v26 = vsel %vm5287_vm11, %v5638_v56, %v5637_v51  ;;  %v5728_v21 = vrot.slane %v14170_v45, 4  ;;  %v14308_v25 = vrot.slane %v14256_v0, 3  ;;  %v14321_v22 = vrot.slane %v14256_v0, 4 }
 0x982   : > { %5688 = vrot.lane.b32.xlu1 %v14270_v63, %s7910_s29  ;;  %v5641_v40 = vsel %vm5289_vm0, %v5640_v50, %v5639_v26  ;;  %v14324_v32 = vrot.slane %v14265_v41, 4  ;;  %v5959_v44 = vrot.slane %v14361_v61, 1  ;;  %v5993_v62 = vrot.slane %v5658_v12, 7 }
 0x983   : > { %5650 = vst.msk [vmem:[#allocation3 + $0x2a] sm:$0xf] %vm4707_vm5, %v5641_v40  ;;  %v5969_v30 = vrot.slane %v14361_v61, 2  ;;  %v5992_v28 = vrot.slane %v14361_v61, 7  ;;  %v5979_v13 = vrot.slane %v14361_v61, 3  ;;  %v6025_v11 = vrot.slane %v5658_v12, 2 }
 0x984   : > { %v6015_v2 = vrot.slane %v5658_v12, 1  ;;  %v6035_v53 = vrot.slane %v5658_v12, 3  ;;  %vm5891_vm5 = vcmask 80896   ;;  %vm5896_vm15 = vcmask 121856  }
 0x985   : > { %vm5901_vm11 = vcmask 162816   ;;  %vm5911_vm0 = vcmask 244736  }
 0x986   : > { %v14315_v35 = vld [vmem:[#allocation3 + $0x20] sm:$0xff] }
 0x987   : > { %v14318_v23 = vrot.slane %v14315_v35, 3  ;;  %v14333_v9 = vrot.slane %v14315_v35, 2  ;;  %v14336_v43 = vrot.slane %v14315_v35, 1  ;;  %v5990_v29 = vrot.slane %v14315_v35, 7 }
 0x989   : > { %5720 = vrot.lane.b32.xlu2 %v14284_v57, %s7912_s28  ;;  %5704 = vrot.lane.b32.xlu0 %v14287_v3, %s7911_s16 }
 0x98a   : > { %5702 = vrot.lane.b32.xlu1 %v5697_v60, %s7911_s16  ;;  %v14344_v46 = vld [vmem:[#allocation3 + $0x28] sm:$0xff] }
 0x98b   : > { %v14347_v38 = vrot.slane %v14344_v46, 1  ;;  %v5991_v59 = vrot.slane %v14344_v46, 7  ;;  %v14365_v5 = vrot.slane %v14344_v46, 2  ;;  %v14373_v48 = vrot.slane %v14344_v46, 3 }
 0x991   : > { %5734 = vrot.lane.b32.xlu2 %v5729_v1, %s7913_s25  ;;  %5718 = vrot.lane.b32.xlu0 %v5713_v27, %s7912_s28 }
 0x992   : > { %5716 = vrot.lane.b32.xlu1 %v5712_v16, %s7912_s28 }
 0x999   : > { %5745 = vrot.lane.b32.xlu2 %v14172_v24, %s7914_s18  ;;  %5732 = vrot.lane.b32.xlu0 %v5728_v21, %s7913_s25 }
 0x99a   : > { %5722 = vrot.lane.b32.xlu1 %v14308_v25, %s7912_s28 }
 0x9a1   : > { %5980 = vrot.lane.b32.xlu2 %v14318_v23, %s7912_s28  ;;  %5738 = vrot.lane.b32.xlu0 %v14321_v22, %s7913_s25 }
 0x9a2   : > { %5736 = vrot.lane.b32.xlu1 %v14324_v32, %s7913_s25 }
 0x9a9   : > { %5751 = vrot.lane.b32.xlu2 %v14315_v35, %s7914_s18  ;;  %5970 = vrot.lane.b32.xlu0 %v14333_v9, %s7911_s16 }
 0x9aa   : > { %5960 = vrot.lane.b32.xlu1 %v14336_v43, %s7910_s29 }
 0x9b1   : > { %6016 = vrot.lane.b32.xlu2 %v14347_v38, %s7915_s17  ;;  %5996 = vrot.lane.b32.xlu0 %v5991_v59, %s7913_s25 }
 0x9b2   : > { %5994 = vrot.lane.b32.xlu1 %v5990_v29, %s7913_s25 }
 0x9b9   : > { %5790 = vrot.lane.b32.xlu2 %v14318_v23, %s17131_s24  ;;  %5764 = vrot.lane.b32.xlu0 %v14336_v43, %s7915_s17 }
 0x9ba   : > { %6006 = vrot.lane.b32.xlu1 %v14344_v46, %s7914_s18 }
 0x9c1   : > { %5964 = vrot.lane.b32.xlu2 %v5959_v44, %s7910_s29  ;;  %6026 = vrot.lane.b32.xlu0 %v14365_v5, %s7916_s22 }
 0x9c2   : > { %5777 = vrot.lane.b32.xlu1 %v14333_v9, %s7916_s22 }
 0x9c9   : > { %5982 = vrot.lane.b32.xlu2 %v14373_v48, %s7912_s28  ;;  %5962 = vrot.lane.b32.xlu0 %v14347_v38, %s7910_s29  ;;  %s7917_s29 = smov 50  }
 0x9ca   : > { %6036 = vrot.lane.b32.xlu1 %v14373_v48, %s17131_s24 }
 0x9d1   : > { %6000 = vrot.lane.b32.xlu2 %v5993_v62, %s7913_s25  ;;  %5974 = vrot.lane.b32.xlu0 %v5969_v30, %s7911_s16 }
 0x9d2   : > { %5972 = vrot.lane.b32.xlu1 %v14365_v5, %s7911_s16  ;;  %s7918_s16 = smov 55  }
 0x9d9   : > { %6018 = vrot.lane.b32.xlu2 %v5959_v44, %s7915_s17  ;;  %5998 = vrot.lane.b32.xlu0 %v5992_v28, %s7913_s25  ;;  %s7922_s25 = smov 75  }
 0x9da   : > { %5984 = vrot.lane.b32.xlu1 %v5979_v13, %s7912_s28  ;;  %s7921_s28 = smov 65  }
 0x9db   : > { %v14395_v17 = vpop.permute.xlu2 %5706 }
 0x9e1   : > { %6030 = vrot.lane.b32.xlu2 %v6025_v11, %s7916_s22  ;;  %6010 = vrot.lane.b32.xlu0 %v5658_v12, %s7914_s18 }
 0x9e2   : > { %6008 = vrot.lane.b32.xlu1 %v14361_v61, %s7914_s18 }
 0x9e3   : > { %v14401_v55 = vpop.permute.xlu2 %5720 }
 0x9e9   : > { %5747 = vrot.lane.b32.xlu2 %v14265_v41, %s7914_s18  ;;  %6028 = vrot.lane.b32.xlu0 %v5969_v30, %s7916_s22 }
 0x9ea   : > { %6020 = vrot.lane.b32.xlu1 %v6015_v2, %s7915_s17 }
 0x9eb   : > { %v14409_v37 = vpop.permute.xlu2 %5734 }
 0x9f1   : > { %5771 = vrot.lane.b32.xlu2 %v5697_v60, %s7916_s22  ;;  %6040 = vrot.lane.b32.xlu0 %v6035_v53, %s17131_s24 }
 0x9f2   : > { %6038 = vrot.lane.b32.xlu1 %v5979_v13, %s17131_s24 }
 0x9f3   : > { %v5691_v47 = vpop.permute.xlu0 %5690  ;;  %v14416_v10 = vpop.permute.xlu2 %5745 }
 0x9f4   : > { %v14418_v6 = vpop.permute.xlu1 %5688 }
 0x9f9   : > { %5786 = vrot.lane.b32.xlu2 %v14284_v57, %s17131_s24  ;;  %5760 = vrot.lane.b32.xlu0 %v14270_v63, %s7915_s17 }
 0x9fa   : > { %5758 = vrot.lane.b32.xlu1 %v5681_v20, %s7915_s17 }
 0x9fb   : > { %v14427_v31 = vpop.permute.xlu2 %5980  ;;  %v14429_v52 = vpop.permute.xlu0 %5704 }
 0x9fc   : > { %v14431_v49 = vpop.permute.xlu1 %5702 }
 0xa01   : > { %5810 = vrot.lane.b32.xlu2 %v14265_v41, %s7917_s29  ;;  %5784 = vrot.lane.b32.xlu0 %v5713_v27, %s17131_s24 }
 0xa02   : > { %5773 = vrot.lane.b32.xlu1 %v14287_v3, %s7916_s22 }
 0xa03   : > { %v5752_v54 = vpop.permute.xlu2 %5751  ;;  %v14440_v33 = vpop.permute.xlu0 %5718 }
 0xa04   : > { %v14442_v20 = vpop.permute.xlu1 %5716 }
 0xa09   : > { %5825 = vrot.lane.b32.xlu2 %v14263_v19, %s7918_s16  ;;  %5799 = vrot.lane.b32.xlu0 %v14324_v32, %s7919_s21 }
 0xa0a   : > { %5797 = vrot.lane.b32.xlu1 %v5729_v1, %s7919_s21 }
 0xa0b   : > { %v14451_v58 = vpop.permute.xlu2 %6016  ;;  %v14453_v15 = vpop.permute.xlu0 %5732 }
 0xa0c   : > { %v5723_v18 = vpop.permute.xlu1 %5722 }
 0xa11   : > { %5749 = vrot.lane.b32.xlu2 %v14256_v0, %s7914_s18  ;;  %5823 = vrot.lane.b32.xlu0 %v14270_v63, %s7918_s16  ;;  %s7923_s18 = smov 80  }
 0xa12   : > { %5812 = vrot.lane.b32.xlu1 %v14256_v0, %s7917_s29 }
 0xa13   : > { %v5791_v34 = vpop.permute.xlu2 %5790  ;;  %v5739_v36 = vpop.permute.xlu0 %5738 }
 0xa14   : > { %v14461_v56 = vpop.permute.xlu1 %5736 }
 0xa19   : > { %5762 = vrot.lane.b32.xlu2 %v14263_v19, %s7915_s17  ;;  %5838 = vrot.lane.b32.xlu0 %v14260_v39, %s7920_s27  ;;  %s7927_s17 = smov 32  }
 0xa1a   : > { %5836 = vrot.lane.b32.xlu1 %v14287_v3, %s7920_s27 }
 0xa1b   : > { %v14469_v8 = vpop.permute.xlu2 %5964  ;;  %v5971_v63 = vpop.permute.xlu0 %5970 }
 0xa1c   : > { %v5961_v51 = vpop.permute.xlu1 %5960 }
 0xa1d   : > { %v6045_v16 = vsel %vm5156_vm7, %v14315_v35, %v5961_v51 }
 0xa21   : > { %5775 = vrot.lane.b32.xlu2 %v14260_v39, %s7916_s22  ;;  %5851 = vrot.lane.b32.xlu0 %v14308_v25, %s7921_s28  ;;  %v5890_v39 = vsel %vm5156_vm7, %v14256_v0, %v5691_v47  ;;  %s7928_s22 = smov 48  }
 0xa22   : > { %5849 = vrot.lane.b32.xlu1 %v14284_v57, %s7921_s28  ;;  %v5895_v3 = vsel %vm5891_vm5, %v5890_v39, %v14395_v17 }
 0xa23   : > { %v14477_v19 = vpop.permute.xlu2 %5982  ;;  %v5997_v50 = vpop.permute.xlu0 %5996  ;;  %v5900_v1 = vsel %vm5896_vm15, %v5895_v3, %v5723_v18 }
 0xa24   : > { %v5995_v26 = vpop.permute.xlu1 %5994  ;;  %v5905_v27 = vsel %vm5901_vm11, %v5900_v1, %v5739_v36 }
 0xa25   : > { %v6054_v21 = vsel %vm5901_vm11, %v5900_v1, %v5995_v26 }
 0xa26   : > { %v6058_v59 = vsel %vm5906_vm3, %v6054_v21, %v5752_v54  ;;  %v5861_v21 = vrot.slane %v14344_v46, 4 }
 0xa29   : > { %5788 = vrot.lane.b32.xlu2 %v14308_v25, %s17131_s24  ;;  %5864 = vrot.lane.b32.xlu0 %v14321_v22, %s16785_s26  ;;  %v5910_v25 = vsel %vm5906_vm3, %v5905_v27, %v5752_v54 }
 0xa2a   : > { %5862 = vrot.lane.b32.xlu1 %v14324_v32, %s16785_s26  ;;  %v6048_v32 = vsel %vm5891_vm5, %v6045_v16, %v5971_v63  ;;  %v5796_v63 = vrot.slane %v14315_v35, 4 }
 0xa2b   : > { %v5765_v40 = vpop.permute.xlu0 %5764  ;;  %v14487_v57 = vpop.permute.xlu2 %6000 }
 0xa2c   : > { %v6007_v60 = vpop.permute.xlu1 %6006  ;;  %v5915_v44 = vsel %vm5911_vm0, %v5910_v25, %v5765_v40 }
 0xa31   : > { %5801 = vrot.lane.b32.xlu2 %v14321_v22, %s7919_s21  ;;  %5877 = vrot.lane.b32.xlu0 %v14315_v35, %s7922_s25  ;;  %v6062_v22 = vsel %vm5911_vm0, %v6058_v59, %v5765_v40 }
 0xa32   : > { %5875 = vrot.lane.b32.xlu1 %v14256_v0, %s7922_s25  ;;  %v6051_v0 = vsel %vm5896_vm15, %v6048_v32, %v14427_v31 }
 0xa33   : > { %v6027_v29 = vpop.permute.xlu0 %6026  ;;  %v6055_v17 = vsel %vm5901_vm11, %v6051_v0, %v5997_v50  ;;  %v6019_v11 = vpop.permute.xlu2 %6018 }
 0xa34   : > { %v5778_v12 = vpop.permute.xlu1 %5777  ;;  %v6059_v53 = vsel %vm5906_vm3, %v6055_v17, %v6007_v60 }
 0xa35   : > { %v5920_v62 = vsel %vm5916_vm13, %v5915_v44, %v5778_v12  ;;  %v6066_v30 = vsel %vm5916_vm13, %v6062_v22, %v5778_v12  ;;  %v6063_v47 = vsel %vm5911_vm0, %v6059_v53, %v14451_v58 }
 0xa36   : > { %v6070_v28 = vsel %vm2785_vm1, %v6066_v30, %v5791_v34  ;;  %v14513_v13 = vsel %vm2785_vm1, %v5920_v62, %v5791_v34  ;;  %v6067_v54 = vsel %vm5916_vm13, %v6063_v47, %v6027_v29 }
 0xa37   : > { %v6078_v2 = vrot.slane %v6070_v28, 1 }
 0xa39   : > { %5816 = vrot.lane.b32.xlu2 %v14344_v46, %s7917_s29 }
 0xa3a   : > { %6082 = vrot.lane.b32.xlu1 %v6078_v2, %s7923_s18 }
 0xa3b   : > { %v5963_v31 = vpop.permute.xlu0 %5962  ;;  %v6031_v51 = vpop.permute.xlu2 %6030 }
 0xa3c   : > { %v6037_v18 = vpop.permute.xlu1 %6036 }
 0xa3d   : > { %v6071_v34 = vsel %vm2785_vm1, %v6067_v54, %v6037_v18  ;;  %v5672_v54 = vld [vmem:[%s15242_s5 + $0x68] sm:$0xff]  ;;  %v5671_v18 = vld [vmem:[%s15242_s5 + $0x60] sm:$0xff] }
 0xa3e   : > { %v6079_v36 = vrot.slane %v6071_v34, 1 }
 0xa40   : > { %6084 = vrot.lane.b32.xlu0 %v6079_v36, %s7923_s18 }
 0xa41   : > { %5840 = vrot.lane.b32.xlu2 %v14333_v9, %s7920_s27 }
 0xa42   : > { %5803 = vrot.lane.b32.xlu1 %v5796_v63, %s7919_s21  ;;  %s7924_s21 = smov 8  }
 0xa43   : > { %v5975_v50 = vpop.permute.xlu0 %5974  ;;  %v14535_v58 = vpop.permute.xlu2 %5747 }
 0xa44   : > { %v5973_v26 = vpop.permute.xlu1 %5972 }
 0xa48   : > { %5814 = vrot.lane.b32.xlu0 %v14315_v35, %s7917_s29  ;;  %s7929_s29 = smov 64  }
 0xa49   : > { %5855 = vrot.lane.b32.xlu2 %v14373_v48, %s7921_s28  ;;  %v6047_v48 = vsel %vm5156_vm7, %v14361_v61, %v14469_v8 }
 0xa4a   : > { %5827 = vrot.lane.b32.xlu1 %v14336_v43, %s7918_s16  ;;  %v6050_v60 = vsel %vm5891_vm5, %v6047_v48, %v5975_v50  ;;  %v5669_v50 = vld [vmem:[%s15242_s5 + $0x50] sm:$0xff] }
 0xa4b   : > { %v5999_v39 = vpop.permute.xlu0 %5998  ;;  %v14546_v43 = vpop.permute.xlu2 %5771 }
 0xa4c   : > { %v5985_v40 = vpop.permute.xlu1 %5984 }
 0xa4d   : > { %v6053_v3 = vsel %vm5896_vm15, %v6050_v60, %v5985_v40  ;;  %v5665_v60 = vld [vmem:[%s15242_s5 + $0x30] sm:$0xff] }
 0xa4e   : > { %v6057_v16 = vsel %vm5901_vm11, %v6053_v3, %v14487_v57  ;;  %v5664_v3 = vld [vmem:[%s15242_s5 + $0x28] sm:$0xff] }
 0xa50   : > { %5829 = vrot.lane.b32.xlu0 %v14347_v38, %s7918_s16  ;;  %v6046_v38 = vsel %vm5156_vm7, %v14344_v46, %v5963_v31  ;;  %v5673_v31 = vld [vmem:[%s15242_s5 + $0x70] sm:$0xff]  ;;  %s7930_s16 = smov 72  }
 0xa51   : > { %5879 = vrot.lane.b32.xlu2 %v14344_v46, %s7922_s25 }
 0xa52   : > { %5842 = vrot.lane.b32.xlu1 %v14365_v5, %s7920_s27  ;;  %v6049_v5 = vsel %vm5891_vm5, %v6046_v38, %v5973_v26  ;;  %v5668_v26 = vld [vmem:[%s15242_s5 + $0x48] sm:$0xff]  ;;  %s7925_s27 = smov 16  }
 0xa53   : > { %v6011_v35 = vpop.permute.xlu0 %6010  ;;  %v6052_v8 = vsel %vm5896_vm15, %v6049_v5, %v14477_v19  ;;  %v14562_v25 = vpop.permute.xlu2 %5786 }
 0xa54   : > { %v6009_v9 = vpop.permute.xlu1 %6008  ;;  %v6061_v32 = vsel %vm5906_vm3, %v6057_v16, %v6011_v35  ;;  %v5667_v35 = vld [vmem:[%s15242_s5 + $0x40] sm:$0xff] }
 0xa58   : > { %5853 = vrot.lane.b32.xlu0 %v14318_v23, %s7921_s28  ;;  %v6056_v23 = vsel %vm5901_vm11, %v6052_v8, %v5999_v39  ;;  %s7931_s28 = smov 88  }
 0xa59   : > { %v6060_v59 = vsel %vm5906_vm3, %v6056_v23, %v6009_v9  ;;  %v5666_v9 = vld [vmem:[%s15242_s5 + $0x38] sm:$0xff]  ;;  %v5660_v23 = vld [vmem:[%s15242_s5 + $0x8] sm:$0xff] }
 0xa5a   : > { %5866 = vrot.lane.b32.xlu1 %v5796_v63, %s16785_s26  ;;  %v6064_v19 = vsel %vm5911_vm0, %v6060_v59, %v6019_v11  ;;  %v5674_v11 = vld [vmem:[%s15242_s5 + $0x78] sm:$0x1f] }
 0xa5b   : > { %v6029_v1 = vpop.permute.xlu0 %6028  ;;  %v14577_v28 = vpop.permute.xlu2 %5810  ;;  %6814 = vmatpush.msk.msrb.mxu3 %vm17132_vm2, %v5674_v11  ;;  %vm5940_vm2 = vcmask 490496  }
 0xa5c   : > { %v6021_v27 = vpop.permute.xlu1 %6020  ;;  %v6068_v44 = vsel %vm5916_vm13, %v6064_v19, %v6029_v1  ;;  %v5663_v1 = vld [vmem:[%s15242_s5 + $0x20] sm:$0xff] }
 0xa5d   : > { %v6065_v29 = vsel %vm5911_vm0, %v6061_v32, %v6021_v27  ;;  %6124 = vmatpush.msrb.mxu3 %v5673_v31  ;;  %v5662_v27 = vld [vmem:[%s15242_s5 + $0x18] sm:$0xff]  ;;  %v5887_v32 = vsel %vm5156_vm7, %v14170_v45, %v14375_v4  ;;  %v5888_v4 = vsel %vm5156_vm7, %v14172_v24, %v14406_v7 }
 0xa5e   : > { %v6069_v46 = vsel %vm5916_vm13, %v6065_v29, %v6031_v51  ;;  %v5670_v51 = vld [vmem:[%s15242_s5 + $0x58] sm:$0xff]  ;;  %v5659_v29 = vld [vmem:[%s15242_s5] sm:$0xff]  ;;  %v5892_v19 = vsel %vm5891_vm5, %v5887_v32, %v14386_v42  ;;  %v5893_v42 = vsel %vm5891_vm5, %v5888_v4, %v14431_v49 }
 0xa5f   : > { %6125 = vmatpush.msrb.mxu3 %v5672_v54 }
 0xa60   : > { %5868 = vrot.lane.b32.xlu0 %v5861_v21, %s16785_s26  ;;  %v5661_v21 = vld [vmem:[%s15242_s5 + $0x10] sm:$0xff]  ;;  %s7926_s26 = smov 24  }
 0xa61   : > { %6126 = vmatpush.msrb.mxu3 %v5671_v18 }
 0xa62   : > { %5881 = vrot.lane.b32.xlu1 %v14361_v61, %s7922_s25  ;;  %s15783_s25 = smov 104  }
 0xa63   : > { %v6041_v57 = vpop.permute.xlu0 %6040  ;;  %v14585_v2 = vpop.permute.xlu2 %5825  ;;  %6127 = vmatpush.msrb.mxu3 %v5670_v51 }
 0xa64   : > { %v6073_v22 = vsel %vm2785_vm1, %v6069_v46, %v6041_v57  ;;  %v6039_v12 = vpop.permute.xlu1 %6038  ;;  %v5897_v57 = vsel %vm5896_vm15, %v5892_v19, %v14442_v20  ;;  %v5898_v20 = vsel %vm5896_vm15, %v5893_v42, %v14440_v33 }
 0xa65   : > { %v6081_v62 = vrot.slane %v6073_v22, 1  ;;  %v6072_v30 = vsel %vm2785_vm1, %v6068_v44, %v6039_v12  ;;  %6128 = vmatpush.msrb.mxu3 %v5669_v50  ;;  %v5902_v46 = vsel %vm5901_vm11, %v5897_v57, %v14453_v15 }
 0xa66   : > { %v6080_v0 = vrot.slane %v6072_v30, 1  ;;  %v5907_v22 = vsel %vm5906_vm3, %v5902_v46, %v14416_v10  ;;  %v5903_v30 = vsel %vm5901_vm11, %v5898_v20, %v14409_v37 }
 0xa67   : > { %6088 = vrot.lane.b32.xlu2 %v6081_v62, %s7923_s18  ;;  %6129 = vmatpush.msrb.mxu3 %v5668_v26  ;;  %v5908_v7 = vsel %vm5906_vm3, %v5903_v30, %v14535_v58 }
 0xa68   : > { %6086 = vrot.lane.b32.xlu0 %v6080_v0, %s7923_s18 }
 0xa69   : > { %6130 = vmatpush.msrb.mxu3 %v5667_v35 }
 0xa6b   : > { %v14579_v61 = vpop.permute.xlu0 %5760  ;;  %v14600_v63 = vpop.permute.xlu2 %5749  ;;  %6131 = vmatpush.msrb.mxu3 %v5666_v9 }
 0xa6c   : > { %v5759_v17 = vpop.permute.xlu1 %5758  ;;  %v5913_v33 = vsel %vm5911_vm0, %v5908_v7, %v14579_v61 }
 0xa6d   : > { %6132 = vmatpush.msrb.mxu3 %v5665_v60  ;;  %v5912_v12 = vsel %vm5911_vm0, %v5907_v22, %v5759_v17 }
 0xa6e   : > { %v5917_v15 = vsel %vm5916_vm13, %v5912_v12, %v14546_v43 }
 0xa6f   : > { %6133 = vmatpush.msrb.mxu3 %v5664_v3 }
 0xa71   : > { %6134 = vmatpush.msrb.mxu3 %v5663_v1 }
 0xa73   : > { %v5785_v53 = vpop.permute.xlu0 %5784  ;;  %v14617_v48 = vpop.permute.xlu2 %5762  ;;  %6135 = vmatpush.msrb.mxu3 %v5662_v27 }
 0xa74   : > { %v14587_v47 = vpop.permute.xlu1 %5773  ;;  %v5921_v24 = vsel %vm2785_vm1, %v5917_v15, %v5785_v53 }
 0xa75   : > { %6136 = vmatpush.msrb.mxu3 %v5661_v21  ;;  %v5918_v43 = vsel %vm5916_vm13, %v5913_v33, %v14587_v47 }
 0xa76   : > { %v5922_v58 = vsel %vm2785_vm1, %v5918_v43, %v14562_v25 }
 0xa77   : > { %6137 = vmatpush.msrb.mxu3 %v5660_v23 }
 0xa79   : > { %6138 = vmatpush.msrb.mxu3 %v5659_v29 }
 0xa7b   : > { %v14598_v34 = vpop.permute.xlu0 %5799  ;;  %v14631_v8 = vpop.permute.xlu2 %5775 }
 0xa7c   : > { %v5798_v36 = vpop.permute.xlu1 %5797  ;;  %v5927_v61 = vsel %vm5925_vm6, %v5922_v58, %v14598_v34 }
 0xa7d   : > { %v5926_v10 = vsel %vm5925_vm6, %v5921_v24, %v5798_v36 }
 0xa7e   : > { %v5931_v37 = vsel %vm15782_vm14, %v5926_v10, %v14577_v28 }
 0xa83   : > { %v5824_v39 = vpop.permute.xlu0 %5823  ;;  %v14651_v44 = vpop.permute.xlu2 %5788 }
 0xa84   : > { %v5813_v40 = vpop.permute.xlu1 %5812  ;;  %v5936_v17 = vsel %vm5935_vm10, %v5931_v37, %v5824_v39 }
 0xa85   : > { %v5932_v47 = vsel %vm15782_vm14, %v5927_v61, %v5813_v40  ;;  %vm6115_vm14 = vcmask 1022976  }
 0xa86   : > { %v5937_v25 = vsel %vm5935_vm10, %v5932_v47, %v14585_v2 }
 0xa8b   : > { %v5839_v38 = vpop.permute.xlu0 %5838  ;;  %v5802_v0 = vpop.permute.xlu2 %5801 }
 0xa8c   : > { %v5837_v5 = vpop.permute.xlu1 %5836  ;;  %v5942_v51 = vsel %vm5940_vm2, %v5937_v25, %v5839_v38  ;;  %v5889_v38 = vsel %vm5156_vm7, %v14265_v41, %v14418_v6  ;;  %vm17133_vm7 = vcmask 408576  }
 0xa8d   : > { %v5941_v11 = vsel %vm5940_vm2, %v5936_v17, %v5837_v5  ;;  %v5894_v27 = vsel %vm5891_vm5, %v5889_v38, %v14429_v52  ;;  %vm17134_vm5 = vmmov %vm17133_vm7 }
 0xa8e   : > { %v5899_v23 = vsel %vm5896_vm15, %v5894_v27, %v14401_v55  ;;  %vm6148_vm15 = vcmask 64512  }
 0xa8f   : > { %v5904_v32 = vsel %vm5901_vm11, %v5899_v23, %v14461_v56  ;;  %6151 = vst.msk [vmem:[#allocation4 + $0x10] sm:$0xff] %vm6148_vm15, %v16955_v14  ;;  %vm6428_vm11 = vcmask 261120  }
 0xa90   : > { %6152 = vst.msk [vmem:[#allocation4 + $0x18] sm:$0xff] %vm6148_vm15, %v16955_v14 }
 0xa91   : > { %6149 = vst.msk [vmem:[#allocation4] sm:$0xff] %vm6148_vm15, %v16955_v14 }
 0xa92   : > { %6150 = vst.msk [vmem:[#allocation4 + $0x8] sm:$0xff] %vm6148_vm15, %v16955_v14 }
 0xa93   : > { %v5852_v59 = vpop.permute.xlu0 %5851  ;;  %v5817_v34 = vpop.permute.xlu2 %5816  ;;  %6153 = vst.msk [vmem:[#allocation4 + $0x20] sm:$0xff] %vm6148_vm15, %v16955_v14 }
 0xa94   : > { %v5850_v16 = vpop.permute.xlu1 %5849  ;;  %v5947_v50 = vsel %vm5945_vm12, %v5942_v51, %v5852_v59  ;;  %v5909_v59 = vsel %vm5906_vm3, %v5904_v32, %v14600_v63  ;;  %6154 = vst.msk [vmem:[#allocation4 + $0x28] sm:$0xff] %vm6148_vm15, %v16955_v14  ;;  %vm6446_vm3 = vcmask 523264  }
 0xa95   : > { %v5946_v53 = vsel %vm5945_vm12, %v5941_v11, %v5850_v16  ;;  %v5914_v41 = vsel %vm5911_vm0, %v5909_v59, %v14617_v48  ;;  %6155 = vst.msk [vmem:[#allocation4 + $0x30] sm:$0xff] %vm6148_vm15, %v16955_v14  ;;  %vm6437_vm0 = vcmask 392192  }
 0xa96   : > { %v5919_v6 = vsel %vm5916_vm13, %v5914_v41, %v14631_v8  ;;  %6156 = vst.msk [vmem:[#allocation4 + $0x38] sm:$0xff] %vm6148_vm15, %v16955_v14  ;;  %v7702_v14 = vld [vmem:[%s15243_s6] ss:$0 sm:$0xff]  ;;  %vm17135_vm13 = vcmask 457728  }
 0xa97   : > { %v5923_v19 = vsel %vm2785_vm1, %v5919_v6, %v14651_v44 }
 0xa98   : > { %v5928_v56 = vsel %vm5925_vm6, %v5923_v19, %v5802_v0  ;;  %v14747_v33 = vld [vmem:[#allocation4] sm:$0xff] }
 0xa99   : > { %v14749_v0 = vld [vmem:[#allocation4 + $0x8] sm:$0xff]  ;;  %v6207_v43 = vrot.slane %v14747_v33, 1  ;;  %v6223_v17 = vrot.slane %v14747_v33, 2 }
 0xa9a   : > { %v6208_v37 = vrot.slane %v14749_v0, 1 }
 0xa9b   : > { %v5865_v62 = vpop.permute.xlu0 %5864  ;;  %v5841_v60 = vpop.permute.xlu2 %5840  ;;  %6211 = vrot.lane.b32.xlu1 %v6207_v43, %s7924_s21 }
 0xa9c   : > { %v5863_v45 = vpop.permute.xlu1 %5862  ;;  %v5951_v26 = vsel %vm2554_vm9, %v5947_v50, %v5865_v62  ;;  %6213 = vrot.lane.b32.xlu0 %v6208_v37, %s7924_s21  ;;  %v6240_v50 = vrot.slane %v14749_v0, 3 }
 0xa9d   : > { %v5950_v28 = vsel %vm2554_vm9, %v5946_v53, %v5863_v45 }
 0xaa3   : > { %v5878_v31 = vpop.permute.xlu0 %5877  ;;  %v5856_v16 = vpop.permute.xlu2 %5855 }
 0xaa4   : > { %v5876_v49 = vpop.permute.xlu1 %5875  ;;  %v5956_v39 = vsel %vm5954_vm4, %v5951_v26, %v5878_v31  ;;  %6227 = vrot.lane.b32.xlu0 %v6223_v17, %s7925_s27  ;;  %v6255_v26 = vrot.slane %v14747_v33, 4 }
 0xaa5   : > { %v5955_v54 = vsel %vm5954_vm4, %v5950_v28, %v5876_v49 }
 0xaab   : > { %v5880_v46 = vpop.permute.xlu2 %5879 }
 0xaac   : > { %v6083_v18 = vpop.permute.xlu1 %6082 }
 0xaad   : > { %v6095_v36 = vsel %vm6094_vm8, %v5955_v54, %v6083_v18 }
 0xaae   : > { %6106 = vst [vmem:[#allocation1] ss:$2 sm:$0xff] %v6095_v36  ;;  %v6224_v36 = vrot.slane %v14749_v0, 2 }
 0xab2   : > { %v6085_v40 = vpop.permute.xlu0 %6084 }
 0xab3   : > { %v6096_v35 = vsel %vm6094_vm8, %v5956_v39, %v6085_v40  ;;  %v6256_v39 = vrot.slane %v14749_v0, 4 }
 0xab4   : > { %6108 = vst [vmem:[#allocation1 + $0x1] ss:$2 sm:$0xff] %v6096_v35  ;;  %v5804_v9 = vpop.permute.xlu1 %5803 }
 0xab5   : > { %v5929_v29 = vsel %vm5925_vm6, %v14513_v13, %v5804_v9  ;;  %vm6451_vm6 = vcmask 588800  }
 0xab6   : > { %v5934_v55 = vsel %vm17133_vm7, %v5929_v29, %v5817_v34  ;;  %v6239_v34 = vrot.slane %v14747_v33, 3  ;;  %vm6469_vm7 = vcmask 850944  }
 0xaba   : > { %v5815_v5 = vpop.permute.xlu0 %5814 }
 0xabb   : > { %v6113_v3 = vld.sshfl [vmem:[#allocation1] sm:$0xff pattern:$0x75316420]  ;;  %v5933_v13 = vsel %vm17134_vm5, %v5928_v56, %v5815_v5 }
 0xabc   : > { %6815 = vmatmul.msk.f32.vlgmr.msrb.gmra.mxu3 %vm6115_vm14, %v6113_v3  ;;  %v5828_v2 = vpop.permute.xlu1 %5827 }
 0xabd   : > { %v5938_v48 = vsel %vm5935_vm10, %v5933_v13, %v5828_v2 }
 0xabe   : > { %v5943_v22 = vsel %vm5940_vm2, %v5938_v48, %v5841_v60 }
 0xac1   : > { %v6089_v20 = vpop.permute.xlu2 %6088 }
 0xac2   : > { %v5830_v1 = vpop.permute.xlu0 %5829 }
 0xac3   : > { %v5939_v57 = vsel %vm5935_vm10, %v5934_v55, %v5830_v1  ;;  %vm17138_vm10 = vmmov %vm17135_vm13 }
 0xac4   : > { %v5843_v21 = vpop.permute.xlu1 %5842  ;;  %vm17139_vm5 = vmmov %vm17138_vm10 }
 0xac5   : > { %v5944_v45 = vsel %vm5940_vm2, %v5939_v57, %v5843_v21  ;;  %vm6460_vm2 = vcmask 719872  }
 0xac6   : > { %v5949_v8 = vsel %vm5945_vm12, %v5944_v45, %v5856_v16 }
 0xaca   : > { %v5854_v52 = vpop.permute.xlu0 %5853 }
 0xacb   : > { %v5948_v42 = vsel %vm5945_vm12, %v5943_v22, %v5854_v52  ;;  %vm6423_vm12 = vcmask 195584  }
 0xacc   : > { %v5867_v63 = vpop.permute.xlu1 %5866 }
 0xacd   : > { %v5952_v30 = vsel %vm2554_vm9, %v5948_v42, %v5867_v63 }
 0xace   : > { %v5957_v7 = vsel %vm5954_vm4, %v5952_v30, %v5880_v46 }
 0xad2   : > { %v5869_v4 = vpop.permute.xlu0 %5868 }
 0xad3   : > { %v5953_v44 = vsel %vm2554_vm9, %v5949_v8, %v5869_v4  ;;  %vm6418_vm9 = vcmask 130048   ;;  %v14887_v8 = vld [vmem:[#allocation4 + $0x30] sm:$0xff] }
 0xad4   : > { %v5882_v12 = vpop.permute.xlu1 %5881 }
 0xad5   : > { %v5958_v62 = vsel %vm5954_vm4, %v5953_v44, %v5882_v12  ;;  %vm15785_vm4 = vcmask 60416  }
 0xad6   : > { %v6098_v15 = vsel %vm6094_vm8, %v5958_v62, %v6089_v20  ;;  %v6483_v20 = vrot.slane %v14887_v8, 1 }
 0xad7   : > { %6112 = vst [vmem:[#allocation1 + $0x11] ss:$2 sm:$0xff] %v6098_v15 }
 0xada   : > { %v6087_v24 = vpop.permute.xlu0 %6086 }
 0xadb   : > { %v6097_v10 = vsel %vm6094_vm8, %v5957_v7, %v6087_v24 }
 0xadc   : > { %6110 = vst [vmem:[#allocation1 + $0x10] ss:$2 sm:$0xff] %v6097_v10 }
 0xae3   : > { %v6114_v49 = vld.sshfl [vmem:[#allocation1 + $0x10] sm:$0xff pattern:$0x75316420] }
 0xae4   : > { %6816 = vmatmul.msk.f32.gmra.mxu3 %vm6115_vm14, %v6114_v49  ;;  %vm17136_vm14 = vmmov %vm17135_vm13 }
 0xb0d   : > { %v6212_v59 = vpop.permute.xlu1 %6211 }
 0xb0e   : > { %v6214_v32 = vpop.permute.xlu0 %6213  ;;  %v6414_v6 = vsel %vm6148_vm15, %v14747_v33, %v6212_v59 }
 0xb0f   : > { %v6415_v56 = vsel %vm6148_vm15, %v14749_v0, %v6214_v32 }
 0xb16   : > { %v6228_v52 = vpop.permute.xlu0 %6227 }
 0xb17   : > { %v6419_v19 = vsel %vm6418_vm9, %v6414_v6, %v6228_v52 }
 0xb3f   : > { %v6140_v58 = vpop.f32.mrf.mxu3 }
 0xb40   : > { %v6141_v11 = vadd.f32 %v7702_v14, %v6140_v58 }
 0xb42   : > { %v6146_v61 = vmax.f32 %v6141_v11, 0.0 }
 0xb44   : > { %v6159_v53 = vrot.slane %v6146_v61, 4  ;;  %6165 = vst.msk [vmem:[#allocation4 + $0x12] sm:$0xf] %vm15785_vm4, %v6146_v61 }
 0xb46   : > { %6166 = vst.msk [vmem:[#allocation4 + $0x1a] sm:$0xf] %vm15785_vm4, %v6159_v53 }
 0xb4b   : > { %v14762_v31 = vld [vmem:[#allocation4 + $0x10] sm:$0xff] }
 0xb4c   : > { %v6209_v47 = vrot.slane %v14762_v31, 1  ;;  %v14781_v25 = vrot.slane %v14762_v31, 3  ;;  %v6225_v51 = vrot.slane %v14762_v31, 2  ;;  %v6257_v21 = vrot.slane %v14762_v31, 4 }
 0xb4d   : > { %v14765_v28 = vld [vmem:[#allocation4 + $0x18] sm:$0xff] }
 0xb4e   : > { %6215 = vrot.lane.b32.xlu2 %v6209_v47, %s7924_s21  ;;  %v14769_v54 = vrot.slane %v14765_v28, 2  ;;  %v14772_v18 = vrot.slane %v14765_v28, 1  ;;  %v14819_v38 = vrot.slane %v14765_v28, 3  ;;  %v6258_v55 = vrot.slane %v14765_v28, 4 }
 0xb50   : > { %6233 = vrot.lane.b32.xlu0 %v14769_v54, %s7925_s27  ;;  %6217 = vrot.lane.b32.xlu1 %v14772_v18, %s7924_s21 }
 0xb56   : > { %6229 = vrot.lane.b32.xlu2 %v6224_v36, %s7925_s27 }
 0xb58   : > { %6247 = vrot.lane.b32.xlu0 %v14781_v25, %s7926_s26  ;;  %6231 = vrot.lane.b32.xlu1 %v6225_v51, %s7925_s27 }
 0xb5e   : > { %6243 = vrot.lane.b32.xlu2 %v6239_v34, %s7926_s26 }
 0xb60   : > { %6272 = vrot.lane.b32.xlu0 %v14749_v0, %s17131_s24  ;;  %6245 = vrot.lane.b32.xlu1 %v6240_v50, %s7926_s26 }
 0xb66   : > { %6259 = vrot.lane.b32.xlu2 %v6255_v26, %s7927_s17 }
 0xb67   : > { %v6143_v40 = vpop.f32.mrf.mxu3 }
 0xb68   : > { %v6144_v35 = vadd.f32 %v7702_v14, %v6143_v40  ;;  %6287 = vrot.lane.b32.xlu0 %v6209_v47, %s7928_s22  ;;  %6261 = vrot.lane.b32.xlu1 %v6256_v39, %s7927_s17  ;;  %v6503_v40 = vrot.slane %v14887_v8, 3 }
 0xb6a   : > { %v6147_v9 = vmax.f32 %v6144_v35, 0.0 }
 0xb6c   : > { %v6160_v60 = vrot.slane %v6147_v9, 4  ;;  %6167 = vst.msk [vmem:[#allocation4 + $0x22] sm:$0xf] %vm15785_vm4, %v6147_v9 }
 0xb6e   : > { %6168 = vst.msk [vmem:[#allocation4 + $0x2a] sm:$0xf] %vm15785_vm4, %v6160_v60  ;;  %6274 = vrot.lane.b32.xlu2 %v14762_v31, %s17131_s24  ;;  %vm17145_vm4 = vcmask 916480  }
 0xb70   : > { %6300 = vrot.lane.b32.xlu0 %v6225_v51, %s16864_s14  ;;  %6285 = vrot.lane.b32.xlu1 %v6208_v37, %s7928_s22 }
 0xb73   : > { %v14804_v5 = vld [vmem:[#allocation4 + $0x20] sm:$0xff] }
 0xb74   : > { %v14807_v3 = vrot.slane %v14804_v5, 1  ;;  %v14814_v2 = vrot.slane %v14804_v5, 2  ;;  %v14829_v27 = vrot.slane %v14804_v5, 3  ;;  %v6514_v23 = vrot.slane %v14804_v5, 7 }
 0xb75   : > { %v14824_v1 = vld [vmem:[#allocation4 + $0x28] sm:$0xff] }
 0xb76   : > { %6484 = vrot.lane.b32.xlu2 %v14807_v3, %s7924_s21  ;;  %v6515_v16 = vrot.slane %v14824_v1, 7  ;;  %v14854_v29 = vrot.slane %v14824_v1, 1  ;;  %v14874_v46 = vrot.slane %v14824_v1, 2  ;;  %v14892_v12 = vrot.slane %v14824_v1, 3 }
 0xb78   : > { %6311 = vrot.lane.b32.xlu0 %v6240_v50, %s7929_s29  ;;  %6298 = vrot.lane.b32.xlu1 %v6224_v36, %s16864_s14 }
 0xb7e   : > { %6494 = vrot.lane.b32.xlu2 %v14814_v2, %s7925_s27 }
 0xb80   : > { %6324 = vrot.lane.b32.xlu0 %v6256_v39, %s7930_s16  ;;  %6249 = vrot.lane.b32.xlu1 %v14819_v38, %s7926_s26 }
 0xb86   : > { %6313 = vrot.lane.b32.xlu2 %v14781_v25, %s7929_s29 }
 0xb88   : > { %6504 = vrot.lane.b32.xlu1 %v14829_v27, %s7926_s26  ;;  %6520 = vrot.lane.b32.xlu0 %v6515_v16, %s7927_s17 }
 0xb8e   : > { %6326 = vrot.lane.b32.xlu2 %v6257_v21, %s7930_s16 }
 0xb90   : > { %6518 = vrot.lane.b32.xlu1 %v6514_v23, %s7927_s17  ;;  %6339 = vrot.lane.b32.xlu0 %v14765_v28, %s7923_s18  ;;  %v6516_v23 = vrot.slane %v14887_v8, 7 }
 0xb96   : > { %6278 = vrot.lane.b32.xlu2 %v14804_v5, %s17131_s24 }
 0xb98   : > { %6337 = vrot.lane.b32.xlu1 %v14762_v31, %s7923_s18  ;;  %6350 = vrot.lane.b32.xlu0 %v6209_v47, %s7931_s28 }
 0xb9e   : > { %6530 = vrot.lane.b32.xlu2 %v14824_v1, %s17131_s24 }
 0xba0   : > { %6291 = vrot.lane.b32.xlu1 %v14807_v3, %s7928_s22  ;;  %6263 = vrot.lane.b32.xlu0 %v6257_v21, %s7927_s17 }
 0xba6   : > { %6352 = vrot.lane.b32.xlu2 %v14772_v18, %s7931_s28 }
 0xba8   : > { %v6216_v41 = vpop.permute.xlu2 %6215  ;;  %6363 = vrot.lane.b32.xlu0 %v6225_v51, %s16859_s0  ;;  %6540 = vrot.lane.b32.xlu1 %v14854_v29, %s7928_s22 }
 0xba9   : > { %v6416_v30 = vsel %vm6148_vm15, %v14762_v31, %v6216_v41 }
 0xbae   : > { %6265 = vrot.lane.b32.xlu2 %v6258_v55, %s7927_s17 }
 0xbb0   : > { %v6230_v57 = vpop.permute.xlu2 %6229  ;;  %6276 = vrot.lane.b32.xlu0 %v14765_v28, %s17131_s24  ;;  %6304 = vrot.lane.b32.xlu1 %v14814_v2, %s16864_s14 }
 0xbb1   : > { %v6420_v63 = vsel %vm6418_vm9, %v6415_v56, %v6230_v57 }
 0xbb6   : > { %6365 = vrot.lane.b32.xlu2 %v14769_v54, %s16859_s0 }
 0xbb8   : > { %v6244_v13 = vpop.permute.xlu2 %6243  ;;  %6378 = vrot.lane.b32.xlu0 %v14819_v38, %s15783_s25  ;;  %6550 = vrot.lane.b32.xlu1 %v14874_v46, %s16864_s14 }
 0xbb9   : > { %v6424_v45 = vsel %vm6423_vm12, %v6419_v19, %v6244_v13 }
 0xbbe   : > { %6317 = vrot.lane.b32.xlu2 %v14829_v27, %s7929_s29 }
 0xbc0   : > { %v6260_v48 = vpop.permute.xlu2 %6259  ;;  %6389 = vrot.lane.b32.xlu0 %v6257_v21, %s16788_s23  ;;  %6376 = vrot.lane.b32.xlu1 %v14781_v25, %s15783_s25  ;;  %s7933_s25 = smov 120   ;;  %v6323_v21 = vrot.slane %v14804_v5, 4 }
 0xbc1   : > { %v6429_v4 = vsel %vm6428_vm11, %v6424_v45, %v6260_v48 }
 0xbc2   : > { %v6234_v22 = vpop.permute.xlu0 %6233  ;;  %v6218_v44 = vpop.permute.xlu1 %6217 }
 0xbc3   : > { %v6417_v42 = vsel %vm6148_vm15, %v14765_v28, %v6218_v44 }
 0xbc4   : > { %v14896_v62 = vsel %vm6418_vm9, %v6417_v42, %v6234_v22 }
 0xbc6   : > { %6560 = vrot.lane.b32.xlu2 %v14892_v12, %s7929_s29 }
 0xbc8   : > { %v6275_v15 = vpop.permute.xlu2 %6274  ;;  %6488 = vrot.lane.b32.xlu0 %v6483_v20, %s7924_s21  ;;  %6289 = vrot.lane.b32.xlu1 %v14772_v18, %s7928_s22 }
 0xbca   : > { %v6248_v24 = vpop.permute.xlu0 %6247  ;;  %v6232_v7 = vpop.permute.xlu1 %6231 }
 0xbcb   : > { %v6421_v10 = vsel %vm6418_vm9, %v6416_v30, %v6232_v7 }
 0xbcc   : > { %v14909_v49 = vsel %vm6423_vm12, %v6421_v10, %v6248_v24 }
 0xbce   : > { %6391 = vrot.lane.b32.xlu2 %v6258_v55, %s16788_s23 }
 0xbd0   : > { %v6485_v33 = vpop.permute.xlu2 %6484  ;;  %6404 = vrot.lane.b32.xlu0 %v14804_v5, %s7933_s25  ;;  %6486 = vrot.lane.b32.xlu1 %v14854_v29, %s7924_s21 }
 0xbd1   : > { %v6569_v14 = vsel %vm6148_vm15, %v14804_v5, %v6485_v33 }
 0xbd2   : > { %v6273_v0 = vpop.permute.xlu0 %6272  ;;  %v6246_v43 = vpop.permute.xlu1 %6245 }
 0xbd3   : > { %v6433_v37 = vsel %vm2785_vm1, %v6429_v4, %v6273_v0  ;;  %v6425_v17 = vsel %vm6423_vm12, %v6420_v63, %v6246_v43  ;;  %v6191_v0 = vld [vmem:[%s15244_s7 + $0x70] sm:$0xff]  ;;  %v6388_v43 = vrot.slane %v14824_v1, 4 }
 0xbd6   : > { %6302 = vrot.lane.b32.xlu2 %v14769_v54, %s16864_s14  ;;  %v6493_v54 = vrot.slane %v14887_v8, 2 }
 0xbd8   : > { %v6495_v58 = vpop.permute.xlu2 %6494  ;;  %6315 = vrot.lane.b32.xlu0 %v14819_v38, %s7929_s29  ;;  %6402 = vrot.lane.b32.xlu1 %v14765_v28, %s7933_s25  ;;  %v14937_v28 = vld [vmem:[#allocation4 + $0x38] sm:$0xff] }
 0xbd9   : > { %v6572_v11 = vsel %vm6418_vm9, %v6569_v14, %v6495_v58  ;;  %v6517_v39 = vrot.slane %v14937_v28, 7  ;;  %v6549_v22 = vrot.slane %v14937_v28, 2  ;;  %v6539_v44 = vrot.slane %v14937_v28, 1  ;;  %v6189_v58 = vld [vmem:[%s15244_s7 + $0x60] sm:$0xff] }
 0xbda   : > { %v6288_v61 = vpop.permute.xlu0 %6287  ;;  %v6262_v53 = vpop.permute.xlu1 %6261 }
 0xbdb   : > { %v6430_v31 = vsel %vm6428_vm11, %v6425_v17, %v6262_v53  ;;  %v6186_v53 = vld [vmem:[%s15244_s7 + $0x48] sm:$0xff] }
 0xbdc   : > { %v6434_v47 = vsel %vm2785_vm1, %v6430_v31, %v6275_v15 }
 0xbdd   : > { %v6439_v18 = vsel %vm6437_vm0, %v6434_v47, %v6288_v61 }
 0xbde   : > { %6496 = vrot.lane.b32.xlu2 %v14874_v46, %s7925_s27 }
 0xbe0   : > { %v6314_v36 = vpop.permute.xlu2 %6313  ;;  %6328 = vrot.lane.b32.xlu0 %v6258_v55, %s7930_s16  ;;  %6498 = vrot.lane.b32.xlu1 %v6493_v54, %s7925_s27  ;;  %s17137_s27 = smov 104  }
 0xbe2   : > { %v6301_v25 = vpop.permute.xlu0 %6300  ;;  %v6286_v51 = vpop.permute.xlu1 %6285 }
 0xbe3   : > { %v6443_v34 = vsel %vm17135_vm13, %v6439_v18, %v6301_v25  ;;  %v6438_v50 = vsel %vm6437_vm0, %v6433_v37, %v6286_v51  ;;  %v6183_v25 = vld [vmem:[%s15244_s7 + $0x30] sm:$0xff]  ;;  %vm17140_vm13 = vmmov %vm17139_vm5 }
 0xbe4   : > { %v6448_v26 = vsel %vm6446_vm3, %v6443_v34, %v6314_v36  ;;  %v6182_v34 = vld [vmem:[%s15244_s7 + $0x28] sm:$0xff] }
 0xbe6   : > { %6506 = vrot.lane.b32.xlu2 %v14892_v12, %s7926_s26 }
 0xbe8   : > { %v6327_v35 = vpop.permute.xlu2 %6326  ;;  %6524 = vrot.lane.b32.xlu0 %v6517_v39, %s7927_s17  ;;  %6508 = vrot.lane.b32.xlu1 %v6503_v40, %s7926_s26  ;;  %v6181_v39 = vld [vmem:[%s15244_s7 + $0x20] sm:$0xff] }
 0xbe9   : > { %v14949_v9 = vsel %vm6451_vm6, %v6448_v26, %v6327_v35  ;;  %v6179_v35 = vld [vmem:[%s15244_s7 + $0x10] sm:$0xff] }
 0xbea   : > { %v6312_v60 = vpop.permute.xlu0 %6311  ;;  %v6299_v38 = vpop.permute.xlu1 %6298 }
 0xbeb   : > { %v6442_v16 = vsel %vm17136_vm14, %v6438_v50, %v6299_v38  ;;  %v6178_v38 = vld [vmem:[%s15244_s7 + $0x8] sm:$0xff]  ;;  %vm17141_vm14 = vcmask 785408  }
 0xbec   : > { %v6447_v32 = vsel %vm6446_vm3, %v6442_v16, %v6312_v60 }
 0xbee   : > { %6330 = vrot.lane.b32.xlu2 %v6323_v21, %s7930_s16 }
 0xbf0   : > { %v6279_v59 = vpop.permute.xlu2 %6278  ;;  %6532 = vrot.lane.b32.xlu0 %v14887_v8, %s17131_s24  ;;  %6522 = vrot.lane.b32.xlu1 %v6516_v23, %s7927_s17  ;;  %v6177_v23 = vld [vmem:[%s15244_s7] sm:$0xff] }
 0xbf2   : > { %v6325_v41 = vpop.permute.xlu0 %6324  ;;  %v6250_v6 = vpop.permute.xlu1 %6249 }
 0xbf3   : > { %v14962_v52 = vsel %vm6451_vm6, %v6447_v32, %v6325_v41  ;;  %v6427_v19 = vsel %vm6423_vm12, %v14896_v62, %v6250_v6 }
 0xbf6   : > { %6341 = vrot.lane.b32.xlu2 %v14804_v5, %s7923_s18  ;;  %v6185_v5 = vld [vmem:[%s15244_s7 + $0x40] sm:$0xff] }
 0xbf8   : > { %v14968_v55 = vpop.permute.xlu2 %6530  ;;  %6356 = vrot.lane.b32.xlu0 %v14854_v29, %s7931_s28  ;;  %6343 = vrot.lane.b32.xlu1 %v14824_v1, %s7923_s18 }
 0xbfa   : > { %v6521_v56 = vpop.permute.xlu0 %6520  ;;  %v6505_v57 = vpop.permute.xlu1 %6504 }
 0xbfb   : > { %v6575_v63 = vsel %vm6423_vm12, %v6572_v11, %v6505_v57  ;;  %v6188_v11 = vld [vmem:[%s15244_s7 + $0x58] sm:$0xff] }
 0xbfc   : > { %v14976_v13 = vsel %vm6428_vm11, %v6575_v63, %v6521_v56 }
 0xbfd   : > { %v6583_v41 = vsel %vm2785_vm1, %v14976_v13, %v14968_v55 }
 0xbfe   : > { %6534 = vrot.lane.b32.xlu2 %v14937_v28, %s17131_s24 }
 0xc00   : > { %v14980_v45 = vpop.permute.xlu2 %6352  ;;  %6367 = vrot.lane.b32.xlu0 %v14814_v2, %s16859_s0  ;;  %6354 = vrot.lane.b32.xlu1 %v14807_v3, %s7931_s28 }
 0xc02   : > { %v14986_v29 = vpop.permute.xlu0 %6339  ;;  %v6519_v48 = vpop.permute.xlu1 %6518 }
 0xc03   : > { %v6578_v4 = vsel %vm6428_vm11, %v6427_v19, %v6519_v48 }
 0xc04   : > { %v14992_v42 = vsel %vm2785_vm1, %v6578_v4, %v6279_v59 }
 0xc06   : > { %6542 = vrot.lane.b32.xlu2 %v6483_v20, %s7928_s22 }
 0xc08   : > { %v6266_v2 = vpop.permute.xlu2 %6265  ;;  %6554 = vrot.lane.b32.xlu0 %v6549_v22, %s16864_s14  ;;  %6544 = vrot.lane.b32.xlu1 %v6539_v44, %s7928_s22 }
 0xc09   : > { %v6432_v3 = vsel %vm6428_vm11, %v6427_v19, %v6266_v2 }
 0xc0a   : > { %v15000_v62 = vpop.permute.xlu0 %6350  ;;  %v15002_v15 = vpop.permute.xlu1 %6337  ;;  %v6436_v30 = vsel %vm2785_vm1, %v6432_v3, %v6279_v59  ;;  %v6457_v59 = vsel %vm6094_vm8, %v14949_v9, %v14986_v29 }
 0xc0b   : > { %v6462_v9 = vsel %vm6460_vm2, %v6457_v59, %v14980_v45  ;;  %v6456_v4 = vsel %vm6094_vm8, %v14962_v52, %v15002_v15 }
 0xc0c   : > { %v6461_v15 = vsel %vm6460_vm2, %v6456_v4, %v15000_v62 }
 0xc0e   : > { %6369 = vrot.lane.b32.xlu2 %v14874_v46, %s16859_s0  ;;  %v6192_v46 = vld [vmem:[%s15244_s7 + $0x78] sm:$0xff] }
 0xc0f   : > { %6638 = vmatpush.msra.mxu3 %v6192_v46 }
 0xc10   : > { %v15007_v24 = vpop.permute.xlu2 %6365  ;;  %6562 = vrot.lane.b32.xlu0 %v6503_v40, %s7929_s29  ;;  %6552 = vrot.lane.b32.xlu1 %v6493_v54, %s16864_s14  ;;  %v6180_v40 = vld [vmem:[%s15244_s7 + $0x18] sm:$0xff]  ;;  %s6829_s14 = sshll.u32 %s8006_s13, 4 }
 0xc11   : > { %6639 = vmatpush.msra.mxu3 %v6191_v0  ;;  %v6466_v29 = vsel %vm17141_vm14, %v6462_v9, %v15007_v24  ;;  %vm17143_vm14 = vcmask 1043456   ;;  %s6708_s22 = scalar_lea.hbm %s15246_s9, %s6829_s14 }
 0xc12   : > { %v6264_v20 = vpop.permute.xlu0 %6263  ;;  %v15013_v7 = vpop.permute.xlu1 %6291  ;;  %s6711_s28 = sshll.u32 %s6708_s22, 4  ;;  %s6712_s28 = int_to_ptr.hbm [resolvable:$true] %s6711_s28 }
 0xc13   : > { %v6431_v10 = vsel %vm6428_vm11, %v14909_v49, %v6264_v20  ;;  %v6441_v33 = vsel %vm6437_vm0, %v6436_v30, %v15013_v7  ;;  %v6190_v49 = vld [vmem:[%s15244_s7 + $0x68] sm:$0xff]  ;;  %v6586_v45 = vsel %vm6437_vm0, %v14992_v42, %v15013_v7  ;;  %s7842_s24 = sshra.s32 %s6712_s28, 4  ;;  %s7843_s24 = int_to_ptr.hbm [resolvable:$true] %s7842_s24 }
 0xc14   : > { %6640 = vmatpush.msra.mxu3 %v6190_v49  ;;  %s7844_s18 = scalar_lea.hbm %s7843_s24, 16  ;;  %p7849_p0 = scmp.lt.s32.totalorder %s7843_s24, %s15246_s9 }
 0xc15   : > { %p7845_p11 = scmp.ne.s32.totalorder %s7843_s24, %s7844_s18 }
 0xc16   : > { %6380 = vrot.lane.b32.xlu2 %v14829_v27, %s17137_s27  ;;  %v6559_v27 = vrot.slane %v14937_v28, 3  ;;  %6641 = vmatpush.msra.mxu3 %v6189_v58  ;;  %v6184_v28 = vld [vmem:[%s15244_s7 + $0x38] sm:$0xff] }
 0xc17   : > { %p7846_p12 = pnand %p7845_p11, %p8023_p5 }
 0xc18   : > { %v15028_v37 = vpop.permute.xlu2 %6317  ;;  %6395 = vrot.lane.b32.xlu0 %v6388_v43, %s16788_s23  ;;  %6382 = vrot.lane.b32.xlu1 %v14892_v12, %s17137_s27  ;;  %v6187_v12 = vld [vmem:[%s15244_s7 + $0x50] sm:$0xff]  ;;  %s323_s27 = sand.u32 1, %s7882_s10  }
 0xc19   : > { %6642 = vmatpush.msra.mxu3 %v6188_v11  ;;  %s6697_s13 = scalar_lea.sflag [#allocation6], %s323_s27  ;;  %p7847_p13 = pneg %p7846_p12 }
 0xc1a   : > { %v15036_v17 = vpop.permute.xlu0 %6363  ;;  %v6541_v14 = vpop.permute.xlu1 %6540 }
 0xc1b   : > { %6643 = vmatpush.msra.mxu3 %v6187_v12  ;;  %v6587_v56 = vsel %vm6437_vm0, %v6583_v41, %v6541_v14 }
 0xc1d   : > { %6644 = vmatpush.msra.mxu3 %v6186_v53 }
 0xc1e   : > { %6564 = vrot.lane.b32.xlu2 %v6559_v27, %s7929_s29 }
 0xc1f   : > { %6645 = vmatpush.msra.mxu3 %v6185_v5 }
 0xc20   : > { %v6561_v61 = vpop.permute.xlu2 %6560  ;;  %6393 = vrot.lane.b32.xlu1 %v6323_v21, %s16788_s23 }
 0xc21   : > { %6646 = vmatpush.msra.mxu3 %v6184_v28 }
 0xc22   : > { %v6277_v31 = vpop.permute.xlu0 %6276  ;;  %v6305_v47 = vpop.permute.xlu1 %6304 }
 0xc23   : > { %v6435_v54 = vsel %vm2785_vm1, %v6431_v10, %v6277_v31  ;;  %v6445_v18 = vsel %vm17138_vm10, %v6441_v33, %v6305_v47  ;;  %6647 = vmatpush.msra.mxu3 %v6183_v25  ;;  %vm6478_vm10 = vcmask 982016   ;;  %v6590_v10 = vsel %vm17140_vm13, %v6586_v45, %v6305_v47 }
 0xc24   : > { %v15059_v36 = vsel %vm6446_vm3, %v6445_v18, %v15028_v37  ;;  %v6594_v42 = vsel %vm6446_vm3, %v6590_v10, %v15028_v37 }
 0xc25   : > { %6648 = vmatpush.msra.mxu3 %v6182_v34  ;;  %v6817_v0 = vrot.slane %v6594_v42, 5 }
 0xc26   : > { %6406 = vrot.lane.b32.xlu2 %v14824_v1, %s7933_s25 }
 0xc27   : > { %6649 = vmatpush.msra.mxu3 %v6181_v39  ;;  %v6200_v39 = vld [vmem:[%s15244_s7 + $0xb8] sm:$0xff] }
 0xc28   : > { %v6392_v51 = vpop.permute.xlu2 %6391  ;;  %6408 = vrot.lane.b32.xlu1 %v14887_v8, %s7933_s25  ;;  %s6778_s25 = sshll.u32 %s323_s27, 4 }
 0xc29   : > { %6650 = vmatpush.msra.mxu3 %v6180_v40  ;;  %s325_s23 = scalar_lea.vmem [#allocation5], %s6778_s25  ;;  %s7848_s25 = scalar_lea.hbm %s15246_s9, 32 }
 0xc2a   : > { %v6379_v50 = vpop.permute.xlu0 %6378  ;;  %v6551_v26 = vpop.permute.xlu1 %6550  ;;  %s6709_s16 = sshll.u32 %s325_s23, 4  ;;  %p7850_p1 = scmp.lt.s32.totalorder %s7848_s25, %s7844_s18  ;;  %s6710_s16 = int_to_ptr.vmem [resolvable:$true] %s6709_s16 }
 0xc2b   : > { %6651 = vmatpush.msra.mxu3 %v6179_v35  ;;  %v6591_v63 = vsel %vm17139_vm5, %v6587_v56, %v6551_v26  ;;  %v6471_v55 = vsel %vm6469_vm7, %v6466_v29, %v6379_v50  ;;  %vm17142_vm5 = vcmask 916480   ;;  %v6199_v35 = vld [vmem:[%s15244_s7 + $0xb0] sm:$0xff] }
 0xc2c   : > { %v6595_v13 = vsel %vm6446_vm3, %v6591_v63, %v6561_v61  ;;  %v6475_v2 = vsel %vm17142_vm5, %v6471_v55, %v6392_v51  ;;  %vm17144_vm5 = vcmask 785408   ;;  %v6194_v63 = vld [vmem:[%s15244_s7 + $0x88] sm:$0xff]  ;;  %v6193_v55 = vld [vmem:[%s15244_s7 + $0x80] sm:$0xff]  ;;  %p7851_p2 = por %p7850_p1, %p7849_p0 }
 0xc2d   : > { %6652 = vmatpush.msra.mxu3 %v6178_v38  ;;  %v6818_v22 = vrot.slane %v6595_v13, 5  ;;  %v6465_v46 = vsel %vm17144_vm5, %v6461_v15, %v15036_v17 }
 0xc2e   : > { %p7852_p3 = pnand %p7851_p2, %p7847_p13 }
 0xc2f   : > { %6653 = vmatpush.msra.mxu3 %v6177_v23 }
 0xc30   : > { %v6303_v60 = vpop.permute.xlu2 %6302 }
 0xc32   : > { %v6390_v16 = vpop.permute.xlu0 %6389  ;;  %v6377_v21 = vpop.permute.xlu1 %6376 }
 0xc33   : > { %v6470_v7 = vsel %vm6469_vm7, %v6465_v46, %v6377_v21  ;;  %v6197_v21 = vld [vmem:[%s15244_s7 + $0xa0] sm:$0xff] }
 0xc34   : > { %v6474_v43 = vsel %vm17145_vm4, %v6470_v7, %v6390_v16  ;;  %vm17148_vm4 = vmmov %vm17144_vm5 }
 0xc38   : > { %v6497_v32 = vpop.permute.xlu2 %6496 }
 0xc3a   : > { %v6489_v6 = vpop.permute.xlu0 %6488  ;;  %v6290_v19 = vpop.permute.xlu1 %6289 }
 0xc3b   : > { %v6440_v57 = vsel %vm6437_vm0, %v6435_v54, %v6290_v19  ;;  %v6571_v62 = vsel %vm6148_vm15, %v14887_v8, %v6489_v6  ;;  %v6201_v8 = vld [vmem:[%s15244_s7 + $0xc0] sm:$0xff]  ;;  %v6195_v6 = vld [vmem:[%s15244_s7 + $0x90] sm:$0xff] }
 0xc3c   : > { %v15102_v48 = vsel %vm17140_vm13, %v6440_v57, %v6303_v60  ;;  %vm17146_vm13 = vmmov %vm17143_vm14  ;;  %6668 = vmatpush.msrb.mxu3 %v6201_v8  ;;  %v6198_v60 = vld [vmem:[%s15244_s7 + $0xa8] sm:$0xff] }
 0xc3e   : > { %6669 = vmatpush.msrb.mxu3 %v6200_v39 }
 0xc40   : > { %v6507_v30 = vpop.permute.xlu2 %6506  ;;  %6670 = vmatpush.msrb.mxu3 %v6199_v35 }
 0xc42   : > { %v6405_v44 = vpop.permute.xlu0 %6404  ;;  %v6487_v3 = vpop.permute.xlu1 %6486  ;;  %6671 = vmatpush.msrb.mxu3 %v6198_v60 }
 0xc43   : > { %v6480_v24 = vsel %vm6478_vm10, %v6475_v2, %v6405_v44  ;;  %v6570_v20 = vsel %vm6148_vm15, %v14824_v1, %v6487_v3  ;;  %vm17147_vm15 = vcmask 457728  }
 0xc44   : > { %v6615_v33 = vsel %vm17143_vm14, %v6480_v24, %v6818_v22  ;;  %v6573_v52 = vsel %vm6418_vm9, %v6570_v20, %v6497_v32  ;;  %v6196_v32 = vld [vmem:[%s15244_s7 + $0x98] sm:$0xff]  ;;  %6672 = vmatpush.msrb.mxu3 %v6197_v21 }
 0xc45   : > { %6623 = vst [vmem:[#allocation1 + $0x1] ss:$2 sm:$0xff] %v6615_v33  ;;  %v6576_v23 = vsel %vm6423_vm12, %v6573_v52, %v6507_v30 }
 0xc46   : > { %6673 = vmatpush.msrb.mxu3 %v6196_v32 }
 0xc48   : > { %v6331_v58 = vpop.permute.xlu2 %6330  ;;  %6674 = vmatpush.msrb.mxu3 %v6195_v6 }
 0xc49   : > { %v6455_v3 = vsel %vm6451_vm6, %v15059_v36, %v6331_v58 }
 0xc4a   : > { %v6316_v1 = vpop.permute.xlu0 %6315  ;;  %v6403_v49 = vpop.permute.xlu1 %6402  ;;  %6675 = vmatpush.msrb.mxu3 %v6194_v63 }
 0xc4b   : > { %v6479_v14 = vsel %vm6478_vm10, %v6474_v43, %v6403_v49  ;;  %v6449_v41 = vsel %vm6446_vm3, %v15102_v48, %v6316_v1 }
 0xc4c   : > { %v6614_v27 = vsel %vm17146_vm13, %v6479_v14, %v6817_v0  ;;  %6676 = vmatpush.msrb.mxu3 %v6193_v55 }
 0xc4d   : > { %6621 = vst [vmem:[#allocation1] ss:$2 sm:$0xff] %v6614_v27 }
 0xc50   : > { %v6342_v61 = vpop.permute.xlu2 %6341 }
 0xc52   : > { %v6329_v17 = vpop.permute.xlu0 %6328  ;;  %v6499_v11 = vpop.permute.xlu1 %6498 }
 0xc53   : > { %v6574_v37 = vsel %vm6418_vm9, %v6571_v62, %v6499_v11  ;;  %v6454_v19 = vsel %vm6451_vm6, %v6449_v41, %v6329_v17  ;;  %vm17149_vm9 = vcmask 916480  }
 0xc54   : > { %v6628_v12 = vld.sshfl [vmem:[#allocation1] sm:$0xff pattern:$0x75316420]  ;;  %v6458_v48 = vsel %vm6094_vm8, %v6454_v19, %v6342_v61  ;;  %v6629_v61 = vld.sshfl [vmem:[#allocation1 + $0x8] sm:$0xff pattern:$0x75316420] }
 0xc55   : > { %6654 = vmatmul.f32.vlgmr.msra.gmra.mxu3 %v6628_v12 }
 0xc58   : > { %v6535_v47 = vpop.permute.xlu2 %6534 }
 0xc5a   : > { %v6509_v53 = vpop.permute.xlu1 %6508  ;;  %v6525_v31 = vpop.permute.xlu0 %6524 }
 0xc5b   : > { %v6577_v9 = vsel %vm6423_vm12, %v6574_v37, %v6509_v53  ;;  %vm17150_vm12 = vmmov %vm17147_vm15 }
 0xc5c   : > { %v6581_v22 = vsel %vm6428_vm11, %v6577_v9, %v6525_v31 }
 0xc5d   : > { %v6585_v24 = vsel %vm2785_vm1, %v6581_v22, %v6535_v47 }
 0xc60   : > { %v6543_v28 = vpop.permute.xlu2 %6542 }
 0xc62   : > { %v6523_v54 = vpop.permute.xlu1 %6522  ;;  %v6533_v18 = vpop.permute.xlu0 %6532 }
 0xc63   : > { %v6580_v59 = vsel %vm6428_vm11, %v6576_v23, %v6523_v54  ;;  %vm17153_vm11 = vmmov %vm17149_vm9  ;;  %v7703_v54 = vld [vmem:[%s15245_s8] ss:$0 sm:$0xff] }
 0xc64   : > { %v6584_v56 = vsel %vm2785_vm1, %v6580_v59, %v6533_v18  ;;  %vm17152_vm1 = vmmov %vm17148_vm4 }
 0xc65   : > { %v6588_v4 = vsel %vm6437_vm0, %v6584_v56, %v6543_v28 }
 0xc68   : > { %v6370_v34 = vpop.permute.xlu2 %6369 }
 0xc6a   : > { %v6344_v5 = vpop.permute.xlu1 %6343  ;;  %v6357_v25 = vpop.permute.xlu0 %6356 }
 0xc6b   : > { %v6459_v30 = vsel %vm6094_vm8, %v6455_v3, %v6344_v5  ;;  %vm17151_vm8 = vmmov %vm17146_vm13 }
 0xc6c   : > { %v6464_v15 = vsel %vm6460_vm2, %v6459_v30, %v6357_v25 }
 0xc6d   : > { %v6468_v43 = vsel %vm17152_vm1, %v6464_v15, %v6370_v34 }
 0xc70   : > { %v6381_v40 = vpop.permute.xlu2 %6380 }
 0xc72   : > { %v6355_v51 = vpop.permute.xlu1 %6354  ;;  %v6368_v50 = vpop.permute.xlu0 %6367 }
 0xc73   : > { %v6463_v13 = vsel %vm6460_vm2, %v6458_v48, %v6355_v51 }
 0xc74   : > { %v6467_v45 = vsel %vm17148_vm4, %v6463_v13, %v6368_v50 }
 0xc75   : > { %v6472_v33 = vsel %vm6469_vm7, %v6467_v45, %v6381_v40 }
 0xc78   : > { %v6565_v57 = vpop.permute.xlu2 %6564 }
 0xc7a   : > { %v6545_v26 = vpop.permute.xlu1 %6544  ;;  %v6555_v16 = vpop.permute.xlu0 %6554 }
 0xc7b   : > { %v6589_v10 = vsel %vm6437_vm0, %v6585_v24, %v6545_v26  ;;  %vm17154_vm0 = vmmov %vm17151_vm8 }
 0xc7c   : > { %v6593_v36 = vsel %vm17150_vm12, %v6589_v10, %v6555_v16 }
 0xc7d   : > { %v6597_v49 = vsel %vm6446_vm3, %v6593_v36, %v6565_v57 }
 0xc7e   : > { %v6820_v58 = vrot.slane %v6597_v49, 5 }
 0xc80   : > { %v6407_v46 = vpop.permute.xlu2 %6406 }
 0xc82   : > { %v6553_v38 = vpop.permute.xlu1 %6552  ;;  %v6563_v44 = vpop.permute.xlu0 %6562 }
 0xc83   : > { %v6592_v2 = vsel %vm17147_vm15, %v6588_v4, %v6553_v38 }
 0xc84   : > { %v6596_v20 = vsel %vm6446_vm3, %v6592_v2, %v6563_v44  ;;  %vm17155_vm3 = vcmask 60416  }
 0xc85   : > { %v6819_v42 = vrot.slane %v6596_v20, 5  ;;  %vm17156_vm2 = vmmov %vm17155_vm3 }
 0xc8a   : > { %v6383_v29 = vpop.permute.xlu1 %6382  ;;  %v6396_v14 = vpop.permute.xlu0 %6395 }
 0xc8b   : > { %v6473_v27 = vsel %vm6469_vm7, %v6468_v43, %v6383_v29  ;;  %vm17158_vm7 = vmmov %vm17156_vm2 }
 0xc8c   : > { %v6477_v62 = vsel %vm17153_vm11, %v6473_v27, %v6396_v14 }
 0xc92   : > { %v6394_v52 = vpop.permute.xlu1 %6393 }
 0xc93   : > { %v6476_v7 = vsel %vm17149_vm9, %v6472_v33, %v6394_v52 }
 0xc94   : > { %v6481_v0 = vsel %vm6478_vm10, %v6476_v7, %v6407_v46 }
 0xc95   : > { %v6616_v1 = vsel %vm17151_vm8, %v6481_v0, %v6819_v42 }
 0xc96   : > { %6625 = vst [vmem:[#allocation1 + $0x10] ss:$2 sm:$0xff] %v6616_v1 }
 0xc9a   : > { %v6409_v17 = vpop.permute.xlu1 %6408 }
 0xc9b   : > { %v6482_v11 = vsel %vm6478_vm10, %v6477_v62, %v6409_v17 }
 0xc9c   : > { %v6617_v37 = vsel %vm17154_vm0, %v6482_v11, %v6820_v58 }
 0xc9d   : > { %6627 = vst [vmem:[#allocation1 + $0x11] ss:$2 sm:$0xff] %v6617_v37 }
 0xca4   : > { %v6630_v12 = vld.sshfl [vmem:[#allocation1 + $0x10] sm:$0xff pattern:$0x75316420]  ;;  %v6631_v53 = vld.sshfl [vmem:[#allocation1 + $0x18] sm:$0xff pattern:$0x75316420] }
 0xca5   : > { %6657 = vmatmul.f32.gmra.mxu3 %v6630_v12 }
 0xcad   : > { %6821 = vmatmul.msk.f32.vlgmr.msrb.gmra.mxu3 %vm6451_vm6, %v6629_v61 }
 0xcb5   : > { %6822 = vmatmul.msk.f32.gmra.mxu3 %vm6451_vm6, %v6631_v53  ;;  %vm17157_vm6 = vmmov %vm17156_vm2 }
 0xcd8   : > { %v6655_v31 = vpop.f32.mrf.mxu3 }
 0xcd9   : > { %v6656_v18 = vadd.f32 %v7703_v54, %v6655_v31 }
 0xd28   : > { %v6658_v47 = vpop.f32.mrf.mxu3 }
 0xd29   : > { %v6659_v34 = vadd.f32 %v7703_v54, %v6658_v47 }
 0xd30   : > { %v6678_v5 = vpop.f32.mrf.mxu3 }
 0xd31   : > { %v6679_v28 = vadd.f32 %v6678_v5, %v6656_v18 }
 0xd33   : > { %v6684_v25 = vmax.f32 %v6679_v28, 0.0 }
 0xd35   : > { %v6688_v51 = vrot.slane %v6684_v25, 4  ;;  %6692 = vst.msk [vmem:[%s325_s23] sm:$0xf] %vm17155_vm3, %v6684_v25 }
 0xd37   : > { %6693 = vst.msk [vmem:[%s325_s23 + $0x4] sm:$0xf] %vm17156_vm2, %v6688_v51 }
 0xd38   : > { %v6681_v50 = vpop.f32.mrf.mxu3 }
 0xd39   : > { %v6682_v26 = vadd.f32 %v6681_v50, %v6659_v34 }
 0xd3b   : > { %v6685_v8 = vmax.f32 %v6682_v26, 0.0 }
 0xd3d   : > { %v6689_v39 = vrot.slane %v6685_v8, 4  ;;  %6694 = vst.msk [vmem:[%s325_s23 + $0x8] sm:$0xf] %vm17157_vm6, %v6685_v8 }
 0xd3f   : > { %6695 = vst.msk [vmem:[%s325_s23 + $0xc] sm:$0xf] %vm17158_vm7, %v6689_v39 }
 0xd40   : > { %7855 = shalt.err (!%p7852_p3)
}
 0xd41   : > { %s7934_s27 = smov 4  }
 0xd42   : > { %6874 = dma.vmem_to_hbm [thread:$0]  (%p8023_p5), %s6710_s16, 256, %s6712_s28, %s6697_s13, %s7929_s29, %s7929_s29, %s7934_s27  }
 0xd43 PF: > { %p6880_p4 = scmp.ge.s32.totalorder %s7890_s12, 2  ;;  %s6726_s23 = sand.u32 1, %s7878_s30  }
 0xd44   : > { %s6727_s17 = scalar_lea.sflag [#allocation6], %s6726_s23 }
 0xd45   : > { %p6877_p7 = pnand %p6880_p4, %p8027_p6 }
 0xd47   : > { %p6878_p8 = pneg %p6877_p7 }
 0xd49   : > { %7873 = dma.done.wait (%p6878_p8), %s6727_s17, 256  }
 0xd4a   : > { %7875 = vsyncadd (%p6878_p8), %s6727_s17, 4294967040  ;;  %s17159_s22 = sld [smem:[#allocation8_spill]]  ;;  %p19_p9 = scmp.ge.s32.totalorder %s8010_s15, 4  }
 0xd4b   : > { %s17160_s30 = smov %s7882_s10  ;;  %s17161_s10 = smov %s7886_s11 }
 0xd4c   : > { %s17163_s12 = smov %s8010_s15  ;;  %21 = sbr.rel (!%p19_p9) target bundleno = 5 (0x5), region = 100 }
 0xd50   : > { %s17162_s11 = smov %s17159_s22 }
 0xd51   :  { %6733 = vsyncpa [#allocation6], 1 }
 0xd52   :  { %6735 = vsyncpa [#allocation6 + $0x1], 1 }

</bundles_post_ra>
